<compile_context>
chip_gen: v7x
topology: tpu7x:2x2x1
jax: 0.10.0
libtpu: 0.0.40
codegen_flags: <defaults>
</compile_context>

<pallas_src>
import math
import jax
import jax.numpy as jnp
from jax.experimental import pallas as pl
from jax.experimental.pallas import tpu as pltpu


# --------------------------- Layer configuration ---------------------------

_LAYER_DIMS = [
    (32 * 32 * 3, 256),
    (256, 512),
    (512, 1024),
    (1024, 1024),
    (1024, 1024),
    (1024, 1024),
    (1024, 1024),
    (1024, 256),
    (256, 128),
    (128, 10),
]

_NUM_LAYERS = len(_LAYER_DIMS)
_PADDED_OUT = 128      # final layer padded from 10 -> 128 lanes (lane-dense out)
_NUM_CLASSES = 10

# Output width per layer as seen by the kernel (last layer padded).
_OUT_DIMS = [d[1] for d in _LAYER_DIMS[:-1]] + [_PADDED_OUT]
# Static offsets into the concatenated bias array (all multiples of 128).
_BIAS_OFFSETS = []
_off = 0
for _n in _OUT_DIMS:
    _BIAS_OFFSETS.append(_off)
    _off += _n
_BIAS_TOTAL = _off  # 6400


# ------------------------------ Fused kernel -------------------------------

def _fused_mlp_kernel(x_ref, bias_ref, *refs):
    """Args: x (VMEM), concat bias (VMEM), 10 HBM weight refs, output (VMEM),
    then scratch: 10 VMEM weight buffers + a (10,) DMA semaphore array."""
    w_hbm = refs[:_NUM_LAYERS]
    o_ref = refs[_NUM_LAYERS]
    w_vmem = refs[_NUM_LAYERS + 1: 2 * _NUM_LAYERS + 1]
    sem = refs[2 * _NUM_LAYERS + 1]

    # Kick off every weight DMA up front; they queue on the DMA engine and
    # complete in issue order, so layer-i compute overlaps later weight DMAs.
    for i in range(_NUM_LAYERS):
        pltpu.make_async_copy(w_hbm[i], w_vmem[i], sem.at[i]).start()

    h = x_ref[...].astype(jnp.bfloat16)                  # (B, 3072) bf16
    y = None
    for i in range(_NUM_LAYERS):
        n = _OUT_DIMS[i]
        off = _BIAS_OFFSETS[i]
        # Block only until THIS layer's weights have landed.
        pltpu.make_async_copy(w_hbm[i], w_vmem[i], sem.at[i]).wait()
        b = bias_ref[:, off:off + n]                      # (1, n) f32, static slice
        y = jnp.dot(h, w_vmem[i][...],
                    preferred_element_type=jnp.float32) + b
        if i < _NUM_LAYERS - 1:
            h = jnp.maximum(y, 0.0).astype(jnp.bfloat16)

    # Final layer: padded lanes carry bias = -1e30 (weights 0), so they vanish
    # in the softmax (exp underflows to exactly 0); wrapper slices [:, :10].
    m = jnp.max(y, axis=-1, keepdims=True)
    s = y - m
    lse = jnp.log(jnp.sum(jnp.exp(s), axis=-1, keepdims=True))
    o_ref[...] = s - lse


def mlp10_forward(x_nchw, weights, bias_cat):
    """x_nchw: (B, 3, 32, 32) float32 -> (B, 10) log-probabilities (float32)."""
    B = x_nchw.shape[0]
    x = x_nchw.reshape(B, -1)                            # fp32; cast in-kernel

    vmem = pl.BlockSpec(memory_space=pltpu.MemorySpace.VMEM)
    hbm = pl.BlockSpec(memory_space=pl.ANY)              # raw HBM ref, manual DMA

    scratch = [pltpu.VMEM(w.shape, jnp.bfloat16) for w in weights]
    scratch.append(pltpu.SemaphoreType.DMA((_NUM_LAYERS,)))

    out_padded = pl.pallas_call(
        _fused_mlp_kernel,
        out_shape=jax.ShapeDtypeStruct((B, _PADDED_OUT), jnp.float32),
        in_specs=[vmem, vmem] + [hbm] * _NUM_LAYERS,
        out_specs=vmem,
        scratch_shapes=scratch,
        compiler_params=pltpu.CompilerParams(
            vmem_limit_bytes=24 * 1024 * 1024),
    )(x, bias_cat, *weights)
    return out_padded[:, :_NUM_CLASSES]


# ------------------------- Parameter initialization ------------------------

def init_params(key):
    """torch.nn.Linear default init: U(-1/sqrt(fan_in), +1/sqrt(fan_in)).

    Weights stored transposed (in, out) in bf16. Biases are concatenated into
    one (1, 6400) fp32 array; the last layer is padded from out=10 to out=128
    with zero weight columns and -1e30 bias lanes (folds the softmax mask in).
    """
    weights, biases = [], []
    for li, (fan_in, fan_out) in enumerate(_LAYER_DIMS):
        key, kw, kb = jax.random.split(key, 3)
        bound = 1.0 / math.sqrt(fan_in)
        w = jax.random.uniform(kw, (fan_in, fan_out), jnp.float32, -bound, bound)
        b = jax.random.uniform(kb, (1, fan_out), jnp.float32, -bound, bound)
        if li == _NUM_LAYERS - 1:
            pad = _PADDED_OUT - fan_out
            w = jnp.pad(w, ((0, 0), (0, pad)))
            b = jnp.pad(b, ((0, 0), (0, pad)), constant_values=-1e30)
        weights.append(w.astype(jnp.bfloat16))
        biases.append(b.astype(jnp.float32))
    bias_cat = jnp.concatenate(biases, axis=1)           # (1, 6400) f32
    return weights, bias_cat


# ---------------------------- Pure-JAX reference ----------------------------

def mlp10_reference(x_nchw, weights, bias_cat):
    B = x_nchw.shape[0]
    h = x_nchw.reshape(B, -1).astype(jnp.bfloat16)
    y = None
    for i in range(_NUM_LAYERS):
        n = _OUT_DIMS[i]
        off = _BIAS_OFFSETS[i]
        b = bias_cat[:, off:off + n]
        y = jnp.dot(h, weights[i], preferred_element_type=jnp.float32) + b
        if i < _NUM_LAYERS - 1:
            h = jnp.maximum(y, 0.0).astype(jnp.bfloat16)
    y = y[:, :_NUM_CLASSES]
    return jax.nn.log_softmax(y, axis=-1)


# ---------------------------------- Main -----------------------------------

if __name__ == "__main__":
    key = jax.random.PRNGKey(0)
    key, kx = jax.random.split(key)

    # CIFAR-10 shaped input (NCHW) — 3072 features are required by fc1.
    B = 8
    x = jax.random.normal(kx, (B, 3, 32, 32), dtype=jnp.float32)

    weights, bias_cat = init_params(key)

    out = jax.jit(mlp10_forward)(x, weights, bias_cat)
    out = jax.block_until_ready(out)

    assert out.shape == (B, _NUM_CLASSES)
    assert bool(jnp.all(jnp.isfinite(out)))

    # log_softmax rows should exponentiate-sum to ~1.
    row_sums = jnp.exp(out).sum(axis=-1)
    assert bool(jnp.all(jnp.abs(row_sums - 1.0) < 1e-4))

    # Compare against a pure-JAX reference using the same bf16 weights.
    ref = jax.jit(mlp10_reference)(x, weights, bias_cat)
    ref = jax.block_until_ready(ref)
    max_diff = float(jnp.max(jnp.abs(out - ref)))
    assert max_diff < 5e-2, f"max diff vs reference too large: {max_diff}"

    print("KERNEL_OK")
</pallas_src>

<mosaic_0001>
module attributes {stable_mosaic.version = 11 : i64} {
  func.func @_fused_mlp_kernel(%arg0: memref<8x3072xf32, #tpu.memory_space<vmem>>, %arg1: memref<1x6400xf32, #tpu.memory_space<vmem>>, %arg2: memref<3072x256xbf16, #tpu.memory_space<any>>, %arg3: memref<256x512xbf16, #tpu.memory_space<any>>, %arg4: memref<512x1024xbf16, #tpu.memory_space<any>>, %arg5: memref<1024x1024xbf16, #tpu.memory_space<any>>, %arg6: memref<1024x1024xbf16, #tpu.memory_space<any>>, %arg7: memref<1024x1024xbf16, #tpu.memory_space<any>>, %arg8: memref<1024x1024xbf16, #tpu.memory_space<any>>, %arg9: memref<1024x256xbf16, #tpu.memory_space<any>>, %arg10: memref<256x128xbf16, #tpu.memory_space<any>>, %arg11: memref<128x128xbf16, #tpu.memory_space<any>>, %arg12: memref<8x128xf32, #tpu.memory_space<vmem>>, %arg13: memref<3072x256xbf16, #tpu.memory_space<vmem>>, %arg14: memref<256x512xbf16, #tpu.memory_space<vmem>>, %arg15: memref<512x1024xbf16, #tpu.memory_space<vmem>>, %arg16: memref<1024x1024xbf16, #tpu.memory_space<vmem>>, %arg17: memref<1024x1024xbf16, #tpu.memory_space<vmem>>, %arg18: memref<1024x1024xbf16, #tpu.memory_space<vmem>>, %arg19: memref<1024x1024xbf16, #tpu.memory_space<vmem>>, %arg20: memref<1024x256xbf16, #tpu.memory_space<vmem>>, %arg21: memref<256x128xbf16, #tpu.memory_space<vmem>>, %arg22: memref<128x128xbf16, #tpu.memory_space<vmem>>, %arg23: memref<10x!tpu.dma_semaphore, #tpu.memory_space<semaphore_mem>>) attributes {dimension_semantics = [], scalar_prefetch = 0 : i64, scratch_operands = 11 : i64, tpu.core_type = #tpu.core_type<tc>} {
    %c0_i32 = arith.constant 0 : i32
    %0 = tpu.memref_slice %arg23[%c0_i32] : memref<10x!tpu.dma_semaphore, #tpu.memory_space<semaphore_mem>> -> memref<1x!tpu.dma_semaphore, #tpu.memory_space<semaphore_mem>>
    %1 = tpu.memref_squeeze %0 : memref<1x!tpu.dma_semaphore, #tpu.memory_space<semaphore_mem>> -> memref<!tpu.dma_semaphore, #tpu.memory_space<semaphore_mem>>
    tpu.enqueue_dma source(%arg2 : memref<3072x256xbf16, #tpu.memory_space<any>>) target(%arg13 : memref<3072x256xbf16, #tpu.memory_space<vmem>>) target_semaphore(%1 : memref<!tpu.dma_semaphore, #tpu.memory_space<semaphore_mem>>)
    %c1_i32 = arith.constant 1 : i32
    %2 = tpu.memref_slice %arg23[%c1_i32] : memref<10x!tpu.dma_semaphore, #tpu.memory_space<semaphore_mem>> -> memref<1x!tpu.dma_semaphore, #tpu.memory_space<semaphore_mem>>
    %3 = tpu.memref_squeeze %2 : memref<1x!tpu.dma_semaphore, #tpu.memory_space<semaphore_mem>> -> memref<!tpu.dma_semaphore, #tpu.memory_space<semaphore_mem>>
    tpu.enqueue_dma source(%arg3 : memref<256x512xbf16, #tpu.memory_space<any>>) target(%arg14 : memref<256x512xbf16, #tpu.memory_space<vmem>>) target_semaphore(%3 : memref<!tpu.dma_semaphore, #tpu.memory_space<semaphore_mem>>)
    %c2_i32 = arith.constant 2 : i32
    %4 = tpu.memref_slice %arg23[%c2_i32] : memref<10x!tpu.dma_semaphore, #tpu.memory_space<semaphore_mem>> -> memref<1x!tpu.dma_semaphore, #tpu.memory_space<semaphore_mem>>
    %5 = tpu.memref_squeeze %4 : memref<1x!tpu.dma_semaphore, #tpu.memory_space<semaphore_mem>> -> memref<!tpu.dma_semaphore, #tpu.memory_space<semaphore_mem>>
    tpu.enqueue_dma source(%arg4 : memref<512x1024xbf16, #tpu.memory_space<any>>) target(%arg15 : memref<512x1024xbf16, #tpu.memory_space<vmem>>) target_semaphore(%5 : memref<!tpu.dma_semaphore, #tpu.memory_space<semaphore_mem>>)
    %c3_i32 = arith.constant 3 : i32
    %6 = tpu.memref_slice %arg23[%c3_i32] : memref<10x!tpu.dma_semaphore, #tpu.memory_space<semaphore_mem>> -> memref<1x!tpu.dma_semaphore, #tpu.memory_space<semaphore_mem>>
    %7 = tpu.memref_squeeze %6 : memref<1x!tpu.dma_semaphore, #tpu.memory_space<semaphore_mem>> -> memref<!tpu.dma_semaphore, #tpu.memory_space<semaphore_mem>>
    tpu.enqueue_dma source(%arg5 : memref<1024x1024xbf16, #tpu.memory_space<any>>) target(%arg16 : memref<1024x1024xbf16, #tpu.memory_space<vmem>>) target_semaphore(%7 : memref<!tpu.dma_semaphore, #tpu.memory_space<semaphore_mem>>)
    %c4_i32 = arith.constant 4 : i32
    %8 = tpu.memref_slice %arg23[%c4_i32] : memref<10x!tpu.dma_semaphore, #tpu.memory_space<semaphore_mem>> -> memref<1x!tpu.dma_semaphore, #tpu.memory_space<semaphore_mem>>
    %9 = tpu.memref_squeeze %8 : memref<1x!tpu.dma_semaphore, #tpu.memory_space<semaphore_mem>> -> memref<!tpu.dma_semaphore, #tpu.memory_space<semaphore_mem>>
    tpu.enqueue_dma source(%arg6 : memref<1024x1024xbf16, #tpu.memory_space<any>>) target(%arg17 : memref<1024x1024xbf16, #tpu.memory_space<vmem>>) target_semaphore(%9 : memref<!tpu.dma_semaphore, #tpu.memory_space<semaphore_mem>>)
    %c5_i32 = arith.constant 5 : i32
    %10 = tpu.memref_slice %arg23[%c5_i32] : memref<10x!tpu.dma_semaphore, #tpu.memory_space<semaphore_mem>> -> memref<1x!tpu.dma_semaphore, #tpu.memory_space<semaphore_mem>>
    %11 = tpu.memref_squeeze %10 : memref<1x!tpu.dma_semaphore, #tpu.memory_space<semaphore_mem>> -> memref<!tpu.dma_semaphore, #tpu.memory_space<semaphore_mem>>
    tpu.enqueue_dma source(%arg7 : memref<1024x1024xbf16, #tpu.memory_space<any>>) target(%arg18 : memref<1024x1024xbf16, #tpu.memory_space<vmem>>) target_semaphore(%11 : memref<!tpu.dma_semaphore, #tpu.memory_space<semaphore_mem>>)
    %c6_i32 = arith.constant 6 : i32
    %12 = tpu.memref_slice %arg23[%c6_i32] : memref<10x!tpu.dma_semaphore, #tpu.memory_space<semaphore_mem>> -> memref<1x!tpu.dma_semaphore, #tpu.memory_space<semaphore_mem>>
    %13 = tpu.memref_squeeze %12 : memref<1x!tpu.dma_semaphore, #tpu.memory_space<semaphore_mem>> -> memref<!tpu.dma_semaphore, #tpu.memory_space<semaphore_mem>>
    tpu.enqueue_dma source(%arg8 : memref<1024x1024xbf16, #tpu.memory_space<any>>) target(%arg19 : memref<1024x1024xbf16, #tpu.memory_space<vmem>>) target_semaphore(%13 : memref<!tpu.dma_semaphore, #tpu.memory_space<semaphore_mem>>)
    %c7_i32 = arith.constant 7 : i32
    %14 = tpu.memref_slice %arg23[%c7_i32] : memref<10x!tpu.dma_semaphore, #tpu.memory_space<semaphore_mem>> -> memref<1x!tpu.dma_semaphore, #tpu.memory_space<semaphore_mem>>
    %15 = tpu.memref_squeeze %14 : memref<1x!tpu.dma_semaphore, #tpu.memory_space<semaphore_mem>> -> memref<!tpu.dma_semaphore, #tpu.memory_space<semaphore_mem>>
    tpu.enqueue_dma source(%arg9 : memref<1024x256xbf16, #tpu.memory_space<any>>) target(%arg20 : memref<1024x256xbf16, #tpu.memory_space<vmem>>) target_semaphore(%15 : memref<!tpu.dma_semaphore, #tpu.memory_space<semaphore_mem>>)
    %c8_i32 = arith.constant 8 : i32
    %16 = tpu.memref_slice %arg23[%c8_i32] : memref<10x!tpu.dma_semaphore, #tpu.memory_space<semaphore_mem>> -> memref<1x!tpu.dma_semaphore, #tpu.memory_space<semaphore_mem>>
    %17 = tpu.memref_squeeze %16 : memref<1x!tpu.dma_semaphore, #tpu.memory_space<semaphore_mem>> -> memref<!tpu.dma_semaphore, #tpu.memory_space<semaphore_mem>>
    tpu.enqueue_dma source(%arg10 : memref<256x128xbf16, #tpu.memory_space<any>>) target(%arg21 : memref<256x128xbf16, #tpu.memory_space<vmem>>) target_semaphore(%17 : memref<!tpu.dma_semaphore, #tpu.memory_space<semaphore_mem>>)
    %c9_i32 = arith.constant 9 : i32
    %18 = tpu.memref_slice %arg23[%c9_i32] : memref<10x!tpu.dma_semaphore, #tpu.memory_space<semaphore_mem>> -> memref<1x!tpu.dma_semaphore, #tpu.memory_space<semaphore_mem>>
    %19 = tpu.memref_squeeze %18 : memref<1x!tpu.dma_semaphore, #tpu.memory_space<semaphore_mem>> -> memref<!tpu.dma_semaphore, #tpu.memory_space<semaphore_mem>>
    tpu.enqueue_dma source(%arg11 : memref<128x128xbf16, #tpu.memory_space<any>>) target(%arg22 : memref<128x128xbf16, #tpu.memory_space<vmem>>) target_semaphore(%19 : memref<!tpu.dma_semaphore, #tpu.memory_space<semaphore_mem>>)
    %c0 = arith.constant 0 : index
    %c0_0 = arith.constant 0 : index
    %20 = vector.load %arg0[%c0, %c0_0] : memref<8x3072xf32, #tpu.memory_space<vmem>>, vector<8x3072xf32>
    %21 = arith.truncf %20 : vector<8x3072xf32> to vector<8x3072xbf16>
    %c0_i32_1 = arith.constant 0 : i32
    %22 = tpu.memref_slice %arg23[%c0_i32_1] : memref<10x!tpu.dma_semaphore, #tpu.memory_space<semaphore_mem>> -> memref<1x!tpu.dma_semaphore, #tpu.memory_space<semaphore_mem>>
    %23 = tpu.memref_squeeze %22 : memref<1x!tpu.dma_semaphore, #tpu.memory_space<semaphore_mem>> -> memref<!tpu.dma_semaphore, #tpu.memory_space<semaphore_mem>>
    tpu.wait_dma2 semaphore(%23 : memref<!tpu.dma_semaphore, #tpu.memory_space<semaphore_mem>>) src(%arg2 : memref<3072x256xbf16, #tpu.memory_space<any>>) dst(%arg13 : memref<3072x256xbf16, #tpu.memory_space<vmem>>)
    %c0_2 = arith.constant 0 : index
    %c0_3 = arith.constant 0 : index
    %24 = vector.load %arg1[%c0_2, %c0_3] : memref<1x6400xf32, #tpu.memory_space<vmem>>, vector<1x256xf32>
    %c0_4 = arith.constant 0 : index
    %c0_5 = arith.constant 0 : index
    %25 = vector.load %arg13[%c0_4, %c0_5] : memref<3072x256xbf16, #tpu.memory_space<vmem>>, vector<3072x256xbf16>
    %cst = arith.constant dense<0.000000e+00> : vector<8x256xf32>
    %26 = tpu.matmul %21, %25, %cst {dimension_numbers = #tpu.dot_dimension_numbers<[1], [0], [0], [1], [0, 0, 1, 1], [], []>} : vector<8x3072xbf16>, vector<3072x256xbf16>, vector<8x256xf32> -> vector<8x256xf32>
    %27 = vector.broadcast %24 : vector<1x256xf32> to vector<8x256xf32>
    %28 = arith.addf %26, %27 : vector<8x256xf32>
    %cst_6 = arith.constant 0.000000e+00 : f32
    %29 = vector.broadcast %cst_6 : f32 to vector<8x256xf32>
    %30 = arith.maximumf %28, %29 : vector<8x256xf32>
    %31 = arith.truncf %30 : vector<8x256xf32> to vector<8x256xbf16>
    %c1_i32_7 = arith.constant 1 : i32
    %32 = tpu.memref_slice %arg23[%c1_i32_7] : memref<10x!tpu.dma_semaphore, #tpu.memory_space<semaphore_mem>> -> memref<1x!tpu.dma_semaphore, #tpu.memory_space<semaphore_mem>>
    %33 = tpu.memref_squeeze %32 : memref<1x!tpu.dma_semaphore, #tpu.memory_space<semaphore_mem>> -> memref<!tpu.dma_semaphore, #tpu.memory_space<semaphore_mem>>
    tpu.wait_dma2 semaphore(%33 : memref<!tpu.dma_semaphore, #tpu.memory_space<semaphore_mem>>) src(%arg3 : memref<256x512xbf16, #tpu.memory_space<any>>) dst(%arg14 : memref<256x512xbf16, #tpu.memory_space<vmem>>)
    %c0_8 = arith.constant 0 : index
    %c256 = arith.constant 256 : index
    %34 = vector.load %arg1[%c0_8, %c256] : memref<1x6400xf32, #tpu.memory_space<vmem>>, vector<1x512xf32>
    %c0_9 = arith.constant 0 : index
    %c0_10 = arith.constant 0 : index
    %35 = vector.load %arg14[%c0_9, %c0_10] : memref<256x512xbf16, #tpu.memory_space<vmem>>, vector<256x512xbf16>
    %cst_11 = arith.constant dense<0.000000e+00> : vector<8x512xf32>
    %36 = tpu.matmul %31, %35, %cst_11 {dimension_numbers = #tpu.dot_dimension_numbers<[1], [0], [0], [1], [0, 0, 1, 1], [], []>} : vector<8x256xbf16>, vector<256x512xbf16>, vector<8x512xf32> -> vector<8x512xf32>
    %37 = vector.broadcast %34 : vector<1x512xf32> to vector<8x512xf32>
    %38 = arith.addf %36, %37 : vector<8x512xf32>
    %cst_12 = arith.constant 0.000000e+00 : f32
    %39 = vector.broadcast %cst_12 : f32 to vector<8x512xf32>
    %40 = arith.maximumf %38, %39 : vector<8x512xf32>
    %41 = arith.truncf %40 : vector<8x512xf32> to vector<8x512xbf16>
    %c2_i32_13 = arith.constant 2 : i32
    %42 = tpu.memref_slice %arg23[%c2_i32_13] : memref<10x!tpu.dma_semaphore, #tpu.memory_space<semaphore_mem>> -> memref<1x!tpu.dma_semaphore, #tpu.memory_space<semaphore_mem>>
    %43 = tpu.memref_squeeze %42 : memref<1x!tpu.dma_semaphore, #tpu.memory_space<semaphore_mem>> -> memref<!tpu.dma_semaphore, #tpu.memory_space<semaphore_mem>>
    tpu.wait_dma2 semaphore(%43 : memref<!tpu.dma_semaphore, #tpu.memory_space<semaphore_mem>>) src(%arg4 : memref<512x1024xbf16, #tpu.memory_space<any>>) dst(%arg15 : memref<512x1024xbf16, #tpu.memory_space<vmem>>)
    %c0_14 = arith.constant 0 : index
    %c768 = arith.constant 768 : index
    %44 = vector.load %arg1[%c0_14, %c768] : memref<1x6400xf32, #tpu.memory_space<vmem>>, vector<1x1024xf32>
    %c0_15 = arith.constant 0 : index
    %c0_16 = arith.constant 0 : index
    %45 = vector.load %arg15[%c0_15, %c0_16] : memref<512x1024xbf16, #tpu.memory_space<vmem>>, vector<512x1024xbf16>
    %cst_17 = arith.constant dense<0.000000e+00> : vector<8x1024xf32>
    %46 = tpu.matmul %41, %45, %cst_17 {dimension_numbers = #tpu.dot_dimension_numbers<[1], [0], [0], [1], [0, 0, 1, 1], [], []>} : vector<8x512xbf16>, vector<512x1024xbf16>, vector<8x1024xf32> -> vector<8x1024xf32>
    %47 = vector.broadcast %44 : vector<1x1024xf32> to vector<8x1024xf32>
    %48 = arith.addf %46, %47 : vector<8x1024xf32>
    %cst_18 = arith.constant 0.000000e+00 : f32
    %49 = vector.broadcast %cst_18 : f32 to vector<8x1024xf32>
    %50 = arith.maximumf %48, %49 : vector<8x1024xf32>
    %51 = arith.truncf %50 : vector<8x1024xf32> to vector<8x1024xbf16>
    %c3_i32_19 = arith.constant 3 : i32
    %52 = tpu.memref_slice %arg23[%c3_i32_19] : memref<10x!tpu.dma_semaphore, #tpu.memory_space<semaphore_mem>> -> memref<1x!tpu.dma_semaphore, #tpu.memory_space<semaphore_mem>>
    %53 = tpu.memref_squeeze %52 : memref<1x!tpu.dma_semaphore, #tpu.memory_space<semaphore_mem>> -> memref<!tpu.dma_semaphore, #tpu.memory_space<semaphore_mem>>
    tpu.wait_dma2 semaphore(%53 : memref<!tpu.dma_semaphore, #tpu.memory_space<semaphore_mem>>) src(%arg5 : memref<1024x1024xbf16, #tpu.memory_space<any>>) dst(%arg16 : memref<1024x1024xbf16, #tpu.memory_space<vmem>>)
    %c0_20 = arith.constant 0 : index
    %c1792 = arith.constant 1792 : index
    %54 = vector.load %arg1[%c0_20, %c1792] : memref<1x6400xf32, #tpu.memory_space<vmem>>, vector<1x1024xf32>
    %c0_21 = arith.constant 0 : index
    %c0_22 = arith.constant 0 : index
    %55 = vector.load %arg16[%c0_21, %c0_22] : memref<1024x1024xbf16, #tpu.memory_space<vmem>>, vector<1024x1024xbf16>
    %cst_23 = arith.constant dense<0.000000e+00> : vector<8x1024xf32>
    %56 = tpu.matmul %51, %55, %cst_23 {dimension_numbers = #tpu.dot_dimension_numbers<[1], [0], [0], [1], [0, 0, 1, 1], [], []>} : vector<8x1024xbf16>, vector<1024x1024xbf16>, vector<8x1024xf32> -> vector<8x1024xf32>
    %57 = vector.broadcast %54 : vector<1x1024xf32> to vector<8x1024xf32>
    %58 = arith.addf %56, %57 : vector<8x1024xf32>
    %cst_24 = arith.constant 0.000000e+00 : f32
    %59 = vector.broadcast %cst_24 : f32 to vector<8x1024xf32>
    %60 = arith.maximumf %58, %59 : vector<8x1024xf32>
    %61 = arith.truncf %60 : vector<8x1024xf32> to vector<8x1024xbf16>
    %c4_i32_25 = arith.constant 4 : i32
    %62 = tpu.memref_slice %arg23[%c4_i32_25] : memref<10x!tpu.dma_semaphore, #tpu.memory_space<semaphore_mem>> -> memref<1x!tpu.dma_semaphore, #tpu.memory_space<semaphore_mem>>
    %63 = tpu.memref_squeeze %62 : memref<1x!tpu.dma_semaphore, #tpu.memory_space<semaphore_mem>> -> memref<!tpu.dma_semaphore, #tpu.memory_space<semaphore_mem>>
    tpu.wait_dma2 semaphore(%63 : memref<!tpu.dma_semaphore, #tpu.memory_space<semaphore_mem>>) src(%arg6 : memref<1024x1024xbf16, #tpu.memory_space<any>>) dst(%arg17 : memref<1024x1024xbf16, #tpu.memory_space<vmem>>)
    %c0_26 = arith.constant 0 : index
    %c2816 = arith.constant 2816 : index
    %64 = vector.load %arg1[%c0_26, %c2816] : memref<1x6400xf32, #tpu.memory_space<vmem>>, vector<1x1024xf32>
    %c0_27 = arith.constant 0 : index
    %c0_28 = arith.constant 0 : index
    %65 = vector.load %arg17[%c0_27, %c0_28] : memref<1024x1024xbf16, #tpu.memory_space<vmem>>, vector<1024x1024xbf16>
    %cst_29 = arith.constant dense<0.000000e+00> : vector<8x1024xf32>
    %66 = tpu.matmul %61, %65, %cst_29 {dimension_numbers = #tpu.dot_dimension_numbers<[1], [0], [0], [1], [0, 0, 1, 1], [], []>} : vector<8x1024xbf16>, vector<1024x1024xbf16>, vector<8x1024xf32> -> vector<8x1024xf32>
    %67 = vector.broadcast %64 : vector<1x1024xf32> to vector<8x1024xf32>
    %68 = arith.addf %66, %67 : vector<8x1024xf32>
    %cst_30 = arith.constant 0.000000e+00 : f32
    %69 = vector.broadcast %cst_30 : f32 to vector<8x1024xf32>
    %70 = arith.maximumf %68, %69 : vector<8x1024xf32>
    %71 = arith.truncf %70 : vector<8x1024xf32> to vector<8x1024xbf16>
    %c5_i32_31 = arith.constant 5 : i32
    %72 = tpu.memref_slice %arg23[%c5_i32_31] : memref<10x!tpu.dma_semaphore, #tpu.memory_space<semaphore_mem>> -> memref<1x!tpu.dma_semaphore, #tpu.memory_space<semaphore_mem>>
    %73 = tpu.memref_squeeze %72 : memref<1x!tpu.dma_semaphore, #tpu.memory_space<semaphore_mem>> -> memref<!tpu.dma_semaphore, #tpu.memory_space<semaphore_mem>>
    tpu.wait_dma2 semaphore(%73 : memref<!tpu.dma_semaphore, #tpu.memory_space<semaphore_mem>>) src(%arg7 : memref<1024x1024xbf16, #tpu.memory_space<any>>) dst(%arg18 : memref<1024x1024xbf16, #tpu.memory_space<vmem>>)
    %c0_32 = arith.constant 0 : index
    %c3840 = arith.constant 3840 : index
    %74 = vector.load %arg1[%c0_32, %c3840] : memref<1x6400xf32, #tpu.memory_space<vmem>>, vector<1x1024xf32>
    %c0_33 = arith.constant 0 : index
    %c0_34 = arith.constant 0 : index
    %75 = vector.load %arg18[%c0_33, %c0_34] : memref<1024x1024xbf16, #tpu.memory_space<vmem>>, vector<1024x1024xbf16>
    %cst_35 = arith.constant dense<0.000000e+00> : vector<8x1024xf32>
    %76 = tpu.matmul %71, %75, %cst_35 {dimension_numbers = #tpu.dot_dimension_numbers<[1], [0], [0], [1], [0, 0, 1, 1], [], []>} : vector<8x1024xbf16>, vector<1024x1024xbf16>, vector<8x1024xf32> -> vector<8x1024xf32>
    %77 = vector.broadcast %74 : vector<1x1024xf32> to vector<8x1024xf32>
    %78 = arith.addf %76, %77 : vector<8x1024xf32>
    %cst_36 = arith.constant 0.000000e+00 : f32
    %79 = vector.broadcast %cst_36 : f32 to vector<8x1024xf32>
    %80 = arith.maximumf %78, %79 : vector<8x1024xf32>
    %81 = arith.truncf %80 : vector<8x1024xf32> to vector<8x1024xbf16>
    %c6_i32_37 = arith.constant 6 : i32
    %82 = tpu.memref_slice %arg23[%c6_i32_37] : memref<10x!tpu.dma_semaphore, #tpu.memory_space<semaphore_mem>> -> memref<1x!tpu.dma_semaphore, #tpu.memory_space<semaphore_mem>>
    %83 = tpu.memref_squeeze %82 : memref<1x!tpu.dma_semaphore, #tpu.memory_space<semaphore_mem>> -> memref<!tpu.dma_semaphore, #tpu.memory_space<semaphore_mem>>
    tpu.wait_dma2 semaphore(%83 : memref<!tpu.dma_semaphore, #tpu.memory_space<semaphore_mem>>) src(%arg8 : memref<1024x1024xbf16, #tpu.memory_space<any>>) dst(%arg19 : memref<1024x1024xbf16, #tpu.memory_space<vmem>>)
    %c0_38 = arith.constant 0 : index
    %c4864 = arith.constant 4864 : index
    %84 = vector.load %arg1[%c0_38, %c4864] : memref<1x6400xf32, #tpu.memory_space<vmem>>, vector<1x1024xf32>
    %c0_39 = arith.constant 0 : index
    %c0_40 = arith.constant 0 : index
    %85 = vector.load %arg19[%c0_39, %c0_40] : memref<1024x1024xbf16, #tpu.memory_space<vmem>>, vector<1024x1024xbf16>
    %cst_41 = arith.constant dense<0.000000e+00> : vector<8x1024xf32>
    %86 = tpu.matmul %81, %85, %cst_41 {dimension_numbers = #tpu.dot_dimension_numbers<[1], [0], [0], [1], [0, 0, 1, 1], [], []>} : vector<8x1024xbf16>, vector<1024x1024xbf16>, vector<8x1024xf32> -> vector<8x1024xf32>
    %87 = vector.broadcast %84 : vector<1x1024xf32> to vector<8x1024xf32>
    %88 = arith.addf %86, %87 : vector<8x1024xf32>
    %cst_42 = arith.constant 0.000000e+00 : f32
    %89 = vector.broadcast %cst_42 : f32 to vector<8x1024xf32>
    %90 = arith.maximumf %88, %89 : vector<8x1024xf32>
    %91 = arith.truncf %90 : vector<8x1024xf32> to vector<8x1024xbf16>
    %c7_i32_43 = arith.constant 7 : i32
    %92 = tpu.memref_slice %arg23[%c7_i32_43] : memref<10x!tpu.dma_semaphore, #tpu.memory_space<semaphore_mem>> -> memref<1x!tpu.dma_semaphore, #tpu.memory_space<semaphore_mem>>
    %93 = tpu.memref_squeeze %92 : memref<1x!tpu.dma_semaphore, #tpu.memory_space<semaphore_mem>> -> memref<!tpu.dma_semaphore, #tpu.memory_space<semaphore_mem>>
    tpu.wait_dma2 semaphore(%93 : memref<!tpu.dma_semaphore, #tpu.memory_space<semaphore_mem>>) src(%arg9 : memref<1024x256xbf16, #tpu.memory_space<any>>) dst(%arg20 : memref<1024x256xbf16, #tpu.memory_space<vmem>>)
    %c0_44 = arith.constant 0 : index
    %c5888 = arith.constant 5888 : index
    %94 = vector.load %arg1[%c0_44, %c5888] : memref<1x6400xf32, #tpu.memory_space<vmem>>, vector<1x256xf32>
    %c0_45 = arith.constant 0 : index
    %c0_46 = arith.constant 0 : index
    %95 = vector.load %arg20[%c0_45, %c0_46] : memref<1024x256xbf16, #tpu.memory_space<vmem>>, vector<1024x256xbf16>
    %cst_47 = arith.constant dense<0.000000e+00> : vector<8x256xf32>
    %96 = tpu.matmul %91, %95, %cst_47 {dimension_numbers = #tpu.dot_dimension_numbers<[1], [0], [0], [1], [0, 0, 1, 1], [], []>} : vector<8x1024xbf16>, vector<1024x256xbf16>, vector<8x256xf32> -> vector<8x256xf32>
    %97 = vector.broadcast %94 : vector<1x256xf32> to vector<8x256xf32>
    %98 = arith.addf %96, %97 : vector<8x256xf32>
    %cst_48 = arith.constant 0.000000e+00 : f32
    %99 = vector.broadcast %cst_48 : f32 to vector<8x256xf32>
    %100 = arith.maximumf %98, %99 : vector<8x256xf32>
    %101 = arith.truncf %100 : vector<8x256xf32> to vector<8x256xbf16>
    %c8_i32_49 = arith.constant 8 : i32
    %102 = tpu.memref_slice %arg23[%c8_i32_49] : memref<10x!tpu.dma_semaphore, #tpu.memory_space<semaphore_mem>> -> memref<1x!tpu.dma_semaphore, #tpu.memory_space<semaphore_mem>>
    %103 = tpu.memref_squeeze %102 : memref<1x!tpu.dma_semaphore, #tpu.memory_space<semaphore_mem>> -> memref<!tpu.dma_semaphore, #tpu.memory_space<semaphore_mem>>
    tpu.wait_dma2 semaphore(%103 : memref<!tpu.dma_semaphore, #tpu.memory_space<semaphore_mem>>) src(%arg10 : memref<256x128xbf16, #tpu.memory_space<any>>) dst(%arg21 : memref<256x128xbf16, #tpu.memory_space<vmem>>)
    %c0_50 = arith.constant 0 : index
    %c6144 = arith.constant 6144 : index
    %104 = vector.load %arg1[%c0_50, %c6144] : memref<1x6400xf32, #tpu.memory_space<vmem>>, vector<1x128xf32>
    %c0_51 = arith.constant 0 : index
    %c0_52 = arith.constant 0 : index
    %105 = vector.load %arg21[%c0_51, %c0_52] : memref<256x128xbf16, #tpu.memory_space<vmem>>, vector<256x128xbf16>
    %cst_53 = arith.constant dense<0.000000e+00> : vector<8x128xf32>
    %106 = tpu.matmul %101, %105, %cst_53 {dimension_numbers = #tpu.dot_dimension_numbers<[1], [0], [0], [1], [0, 0, 1, 1], [], []>} : vector<8x256xbf16>, vector<256x128xbf16>, vector<8x128xf32> -> vector<8x128xf32>
    %107 = vector.broadcast %104 : vector<1x128xf32> to vector<8x128xf32>
    %108 = arith.addf %106, %107 : vector<8x128xf32>
    %cst_54 = arith.constant 0.000000e+00 : f32
    %109 = vector.broadcast %cst_54 : f32 to vector<8x128xf32>
    %110 = arith.maximumf %108, %109 : vector<8x128xf32>
    %111 = arith.truncf %110 : vector<8x128xf32> to vector<8x128xbf16>
    %c9_i32_55 = arith.constant 9 : i32
    %112 = tpu.memref_slice %arg23[%c9_i32_55] : memref<10x!tpu.dma_semaphore, #tpu.memory_space<semaphore_mem>> -> memref<1x!tpu.dma_semaphore, #tpu.memory_space<semaphore_mem>>
    %113 = tpu.memref_squeeze %112 : memref<1x!tpu.dma_semaphore, #tpu.memory_space<semaphore_mem>> -> memref<!tpu.dma_semaphore, #tpu.memory_space<semaphore_mem>>
    tpu.wait_dma2 semaphore(%113 : memref<!tpu.dma_semaphore, #tpu.memory_space<semaphore_mem>>) src(%arg11 : memref<128x128xbf16, #tpu.memory_space<any>>) dst(%arg22 : memref<128x128xbf16, #tpu.memory_space<vmem>>)
    %c0_56 = arith.constant 0 : index
    %c6272 = arith.constant 6272 : index
    %114 = vector.load %arg1[%c0_56, %c6272] : memref<1x6400xf32, #tpu.memory_space<vmem>>, vector<1x128xf32>
    %c0_57 = arith.constant 0 : index
    %c0_58 = arith.constant 0 : index
    %115 = vector.load %arg22[%c0_57, %c0_58] : memref<128x128xbf16, #tpu.memory_space<vmem>>, vector<128x128xbf16>
    %cst_59 = arith.constant dense<0.000000e+00> : vector<8x128xf32>
    %116 = tpu.matmul %111, %115, %cst_59 {dimension_numbers = #tpu.dot_dimension_numbers<[1], [0], [0], [1], [0, 0, 1, 1], [], []>} : vector<8x128xbf16>, vector<128x128xbf16>, vector<8x128xf32> -> vector<8x128xf32>
    %117 = vector.broadcast %114 : vector<1x128xf32> to vector<8x128xf32>
    %118 = arith.addf %116, %117 : vector<8x128xf32>
    %cst_60 = arith.constant dense<0xFF800000> : vector<8xf32>
    %119 = vector.multi_reduction <maximumf>, %118, %cst_60 [1] : vector<8x128xf32> to vector<8xf32>
    %120 = vector.shape_cast %119 : vector<8xf32> to vector<8x1xf32>
    %121 = vector.broadcast %120 : vector<8x1xf32> to vector<8x128xf32>
    %122 = arith.subf %118, %121 : vector<8x128xf32>
    %123 = math.exp %122 : vector<8x128xf32>
    %cst_61 = arith.constant dense<0.000000e+00> : vector<8xf32>
    %124 = vector.multi_reduction <add>, %123, %cst_61 [1] : vector<8x128xf32> to vector<8xf32>
    %125 = vector.shape_cast %124 : vector<8xf32> to vector<8x1xf32>
    %126 = math.log %125 : vector<8x1xf32>
    %127 = vector.broadcast %126 : vector<8x1xf32> to vector<8x128xf32>
    %128 = arith.subf %122, %127 : vector<8x128xf32>
    %c0_62 = arith.constant 0 : index
    %c0_63 = arith.constant 0 : index
    %129 = vector.load %arg12[%c0_62, %c0_63] : memref<8x128xf32, #tpu.memory_space<vmem>>, vector<8x128xf32>
    tpu.vector_store %arg12[%c0_62, %c0_63], %128 {strides = array<i32>} : memref<8x128xf32, #tpu.memory_space<vmem>>, vector<8x128xf32>,
    return
  }
}

</mosaic_0001>

<bundles_post_ra>
// kernel: mlp10_forward.1
= control target key start
LH: loop header
LB: loop body
LE: loop exit
PB: predicated region body
PF: predicated region fallthrough
CT: control target
= control target key end

     0   :  { %17 = vsyncpa [#allocation14], 0  ;;  %s8966_s0 = inlined_call_operand.vmem [shape: f32[8,3072], index: 0, kind: input, shape index: {}]   ;;  %s8967_s1 = inlined_call_operand.hbm [shape: f32[1,6400], index: 1, kind: input, shape index: {}]   ;;  %s8968_s2 = inlined_call_operand.hbm [shape: bf16[3072,256], index: 2, kind: input, shape index: {}]   ;;  %s8969_s3 = inlined_call_operand.hbm [shape: bf16[256,512], index: 3, kind: input, shape index: {}]   ;;  %s8970_s4 = inlined_call_operand.hbm [shape: bf16[512,1024], index: 4, kind: input, shape index: {}]   ;;  %s8971_s5 = inlined_call_operand.hbm [shape: bf16[1024,1024], index: 5, kind: input, shape index: {}]   ;;  %s8972_s6 = inlined_call_operand.hbm [shape: bf16[1024,1024], index: 6, kind: input, shape index: {}]   ;;  %s8973_s7 = inlined_call_operand.hbm [shape: bf16[1024,1024], index: 7, kind: input, shape index: {}]   ;;  %s8974_s8 = inlined_call_operand.hbm [shape: bf16[1024,1024], index: 8, kind: input, shape index: {}]   ;;  %s8975_s9 = inlined_call_operand.hbm [shape: bf16[1024,256], index: 9, kind: input, shape index: {}]   ;;  %s8976_s10 = inlined_call_operand.hbm [shape: bf16[256,128], index: 10, kind: input, shape index: {}]   ;;  %s8977_s11 = inlined_call_operand.hbm [shape: bf16[128,128], index: 11, kind: input, shape index: {}]   ;;  %s8978_s12 = inlined_call_operand.hbm [shape: f32[8,128], index: 12, kind: output, shape index: {}]  }
   0x1   :  { %18 = vsyncpa [#allocation15], 0  ;;  %s8097_s21 = smov [#allocation13]   ;;  %s7985_s25 = scalar_lea.hbm %s8967_s1, 800 }
   0x2   :  { %s27_s22 = sshll.u32 %s8097_s21, 4  ;;  %p7986_p0 = scmp.ne.s32.totalorder %s8967_s1, %s7985_s25  ;;  %s28_s22 = int_to_ptr.vmem [resolvable:$true] %s27_s22 }
   0x3   :  { %p7989_p1 = scmp.lt.u32.totalorder %s7985_s25, %s8967_s1 }
   0x5   :  { %p7991_p2 = pnand %p7989_p1, %p7986_p0 }
   0x7   :  { %7994 = shalt.err (!%p7991_p2)
}
   0x8   :  { %s7995_s30 = scalar_lea.vmem %s28_s22, 800  ;;  %p8000_p4 = scmp.lt.s32.totalorder %s28_s22, %s28_s22 }
   0x9   :  { %p7996_p3 = scmp.ne.s32.totalorder %s28_s22, %s7995_s30  ;;  %p8001_p5 = scmp.lt.s32.totalorder %s7995_s30, %s7995_s30 }
   0xb   :  { %p8002_p6 = por %p8001_p5, %p8000_p4 }
   0xd   :  { %p8003_p7 = pnand %p8002_p6, %p7996_p3 }
   0xf   :  { %8006 = shalt.err (!%p8003_p7)
}
  0x10   :  { %30 = dma.hbm_to_vmem [thread:$0]  %s8967_s1, 800, %s28_s22, [#allocation14]  }
  0x11   :  { %8073 = dma.done.wait [#allocation14], 800  }
  0x12   :  { %8074 = vsyncadd [#allocation14], 4294966496  ;;  %s39_s15 = sld [smem:[#allocation0]]   ;;  %s8098_s16 = smov 256  }
  0x13   :  { %51 = sst [smem:[#allocation18]] %s8098_s16  ;;  %s8099_s17 = smov 2  }
  0x14   :  { %53 = sst [smem:[#allocation18 + $0x1]] %s8098_s16  ;;  %s8100_s18 = smov 64  }
  0x15   :  { %55 = sst [smem:[#allocation18 + $0x2]] %s8099_s17  ;;  %s8101_s19 = smov 128  }
  0x16   :  { %57 = sst [smem:[#allocation18 + $0x3]] %s8100_s18  ;;  %s8102_s1 = smov [#allocation2]  }
  0x17   :  { %59 = sst [smem:[#allocation18 + $0x4]] %s8101_s19  ;;  %s47_s20 = sshll.u32 %s8102_s1, 4  ;;  %s48_s20 = int_to_ptr.vmem [resolvable:$true] %s47_s20 }
  0x18   :  { %61 = sst [smem:[#allocation18 + $0x5]] %s8099_s17  ;;  %s7556_s21 = sshll.u32 %s39_s15, 26 }
  0x19   :  { %63 = sst [smem:[#allocation18 + $0x6]] %s8101_s19  ;;  %s8219_s22 = sadd.s32 134217728, %s7556_s21 }
  0x1a   :  { %65 = sst [smem:[#allocation18 + $0x7]] %s8100_s18  ;;  %s8103_s23 = smov 4  }
  0x1b   :  { %67 = sst [smem:[#allocation18 + $0x8]] %s8103_s23  ;;  %s8104_s24 = smov [#allocation12]  }
  0x1c   :  { %s8105_s25 = smov [#allocation17]   ;;  %s8106_s28 = smov 512  }
  0x1d   :  { %69 = dma.general %s8968_s2, 49152, %s48_s20, %s8104_s24, %s8105_s25, [#allocation18], %s8219_s22, 0  }
  0x1e   :  { %90 = sst [smem:[#allocation20 + $0x2]] %s8103_s23  ;;  %s8107_s29 = smov [#allocation3]  }
  0x1f   :  { %86 = sst [smem:[#allocation20]] %s8106_s28  ;;  %s82_s30 = sshll.u32 %s8107_s29, 4  ;;  %s83_s30 = int_to_ptr.vmem [resolvable:$true] %s82_s30 }
  0x20   :  { %88 = sst [smem:[#allocation20 + $0x1]] %s8106_s28  ;;  %s8108_s2 = smov [#allocation12 + $0x1]  }
  0x21   :  { %92 = sst [smem:[#allocation20 + $0x3]] %s8100_s18  ;;  %s8109_s13 = smov [#allocation19]  }
  0x22   :  { %94 = sst [smem:[#allocation20 + $0x4]] %s8101_s19  ;;  %s8110_s1 = smov 1024  }
  0x23   :  { %96 = sst [smem:[#allocation20 + $0x5]] %s8099_s17  ;;  %s8111_s20 = smov [#allocation4]  }
  0x24   :  { %98 = sst [smem:[#allocation20 + $0x6]] %s8098_s16  ;;  %s117_s21 = sshll.u32 %s8111_s20, 4  ;;  %s118_s21 = int_to_ptr.vmem [resolvable:$true] %s117_s21 }
  0x25   :  { %100 = sst [smem:[#allocation20 + $0x7]] %s8100_s18  ;;  %s8112_s24 = smov 8  }
  0x26   :  { %102 = sst [smem:[#allocation20 + $0x8]] %s8103_s23  ;;  %s8114_s25 = smov [#allocation21]  }
  0x27   :  { %104 = dma.general %s8969_s3, 8192, %s83_s30, %s8108_s2, %s8109_s13, [#allocation20], %s8219_s22, 0  }
  0x28   :  { %121 = sst [smem:[#allocation22]] %s8110_s1  ;;  %s8113_s3 = smov [#allocation12 + $0x2]  }
  0x29   :  { %123 = sst [smem:[#allocation22 + $0x1]] %s8110_s1  ;;  %s8115_s29 = smov [#allocation5]  }
  0x2a   :  { %125 = sst [smem:[#allocation22 + $0x2]] %s8112_s24  ;;  %s152_s30 = sshll.u32 %s8115_s29, 4  ;;  %s153_s30 = int_to_ptr.vmem [resolvable:$true] %s152_s30 }
  0x2b   :  { %127 = sst [smem:[#allocation22 + $0x3]] %s8100_s18  ;;  %s8117_s2 = smov [#allocation23]  }
  0x2c   :  { %129 = sst [smem:[#allocation22 + $0x4]] %s8101_s19  ;;  %s8118_s15 = smov [#allocation6]  }
  0x2d   :  { %131 = sst [smem:[#allocation22 + $0x5]] %s8099_s17  ;;  %s187_s20 = sshll.u32 %s8118_s15, 4  ;;  %s188_s20 = int_to_ptr.vmem [resolvable:$true] %s187_s20 }
  0x2e   :  { %133 = sst [smem:[#allocation22 + $0x6]] %s8106_s28  ;;  %s8121_s26 = smov [#allocation7]  }
  0x2f   :  { %135 = sst [smem:[#allocation22 + $0x7]] %s8100_s18  ;;  %s222_s27 = sshll.u32 %s8121_s26, 4  ;;  %s223_s27 = int_to_ptr.vmem [resolvable:$true] %s222_s27 }
  0x30   :  { %137 = sst [smem:[#allocation22 + $0x8]] %s8103_s23  ;;  %s8123_s29 = smov [#allocation27]  }
  0x31   :  { %139 = dma.general %s8970_s4, 32768, %s118_s21, %s8113_s3, %s8114_s25, [#allocation22], %s8219_s22, 0  }
  0x32   :  { %156 = sst [smem:[#allocation24]] %s8110_s1  ;;  %s8116_s4 = smov [#allocation12 + $0x3]  }
  0x33   :  { %158 = sst [smem:[#allocation24 + $0x1]] %s8110_s1  ;;  %s8120_s21 = smov [#allocation25]  }
  0x34   :  { %160 = sst [smem:[#allocation24 + $0x2]] %s8112_s24  ;;  %s8126_s15 = smov [#allocation12 + $0x6]  }
  0x35   :  { %162 = sst [smem:[#allocation24 + $0x3]] %s8100_s18 }
  0x36   :  { %164 = sst [smem:[#allocation24 + $0x4]] %s8101_s19 }
  0x37   :  { %166 = sst [smem:[#allocation24 + $0x5]] %s8099_s17 }
  0x38   :  { %168 = sst [smem:[#allocation24 + $0x6]] %s8106_s28 }
  0x39   :  { %170 = sst [smem:[#allocation24 + $0x7]] %s8100_s18 }
  0x3a   :  { %172 = sst [smem:[#allocation24 + $0x8]] %s8103_s23 }
  0x3b   :  { %174 = dma.general %s8971_s5, 65536, %s153_s30, %s8116_s4, %s8117_s2, [#allocation24], %s8219_s22, 0  }
  0x3c   :  { %191 = sst [smem:[#allocation26]] %s8110_s1  ;;  %s8119_s5 = smov [#allocation12 + $0x4]  }
  0x3d   :  { %193 = sst [smem:[#allocation26 + $0x1]] %s8110_s1  ;;  %s8124_s2 = smov [#allocation8]  }
  0x3e   :  { %195 = sst [smem:[#allocation26 + $0x2]] %s8112_s24  ;;  %s257_s13 = sshll.u32 %s8124_s2, 4  ;;  %s258_s13 = int_to_ptr.vmem [resolvable:$true] %s257_s13 }
  0x3f   :  { %197 = sst [smem:[#allocation26 + $0x3]] %s8100_s18 }
  0x40   :  { %199 = sst [smem:[#allocation26 + $0x4]] %s8101_s19 }
  0x41   :  { %201 = sst [smem:[#allocation26 + $0x5]] %s8099_s17 }
  0x42   :  { %203 = sst [smem:[#allocation26 + $0x6]] %s8106_s28 }
  0x43   :  { %205 = sst [smem:[#allocation26 + $0x7]] %s8100_s18 }
  0x44   :  { %207 = sst [smem:[#allocation26 + $0x8]] %s8103_s23 }
  0x45   :  { %209 = dma.general %s8972_s6, 65536, %s188_s20, %s8119_s5, %s8120_s21, [#allocation26], %s8219_s22, 0  }
  0x46   :  { %226 = sst [smem:[#allocation28]] %s8110_s1  ;;  %s8122_s6 = smov [#allocation12 + $0x5]  }
  0x47   :  { %228 = sst [smem:[#allocation28 + $0x1]] %s8110_s1  ;;  %s8127_s20 = smov [#allocation29]  }
  0x48   :  { %230 = sst [smem:[#allocation28 + $0x2]] %s8112_s24  ;;  %s8129_s21 = smov [#allocation11]  }
  0x49   :  { %232 = sst [smem:[#allocation28 + $0x3]] %s8100_s18  ;;  %s335_s3 = sshll.u32 %s8129_s21, 4  ;;  %s8314_s3 = int_to_ptr.vmem [resolvable:$true] %s335_s3 }
  0x4a   :  { %234 = sst [smem:[#allocation28 + $0x4]] %s8101_s19 }
  0x4b   :  { %236 = sst [smem:[#allocation28 + $0x5]] %s8099_s17 }
  0x4c   :  { %238 = sst [smem:[#allocation28 + $0x6]] %s8106_s28 }
  0x4d   :  { %240 = sst [smem:[#allocation28 + $0x7]] %s8100_s18 }
  0x4e   :  { %242 = sst [smem:[#allocation28 + $0x8]] %s8103_s23 }
  0x4f   :  { %244 = dma.general %s8973_s7, 65536, %s223_s27, %s8122_s6, %s8123_s29, [#allocation28], %s8219_s22, 0  }
  0x50   :  { %261 = sst [smem:[#allocation30]] %s8110_s1  ;;  %s8125_s7 = smov [#allocation9]  }
  0x51   :  { %263 = sst [smem:[#allocation30 + $0x1]] %s8110_s1  ;;  %s292_s14 = sshll.u32 %s8125_s7, 4  ;;  %s293_s14 = int_to_ptr.vmem [resolvable:$true] %s292_s14 }
  0x52   :  { %265 = sst [smem:[#allocation30 + $0x2]] %s8112_s24 }
  0x53   :  { %267 = sst [smem:[#allocation30 + $0x3]] %s8100_s18 }
  0x54   :  { %269 = sst [smem:[#allocation30 + $0x4]] %s8101_s19 }
  0x55   :  { %271 = sst [smem:[#allocation30 + $0x5]] %s8099_s17 }
  0x56   :  { %273 = sst [smem:[#allocation30 + $0x6]] %s8106_s28  ;;  %s8128_s28 = smov [#allocation10]  }
  0x57   :  { %275 = sst [smem:[#allocation30 + $0x7]] %s8100_s18  ;;  %s323_s24 = sshll.u32 %s8128_s28, 4  ;;  %s324_s24 = int_to_ptr.vmem [resolvable:$true] %s323_s24 }
  0x58   :  { %277 = sst [smem:[#allocation30 + $0x8]] %s8103_s23 }
  0x59   :  { %279 = dma.general %s8974_s8, 65536, %s258_s13, %s8126_s15, %s8127_s20, [#allocation30], %s8219_s22, 0  }
  0x5a   :  { %296 = sst [smem:[#allocation32]] %s8098_s16  ;;  %s8130_s8 = smov [#allocation12 + $0x7]  }
  0x5b   :  { %298 = sst [smem:[#allocation32 + $0x1]] %s8098_s16  ;;  %s8131_s16 = smov [#allocation31]  }
  0x5c   :  { %300 = sst [smem:[#allocation32 + $0x2]] %s8099_s17 }
  0x5d   :  { %302 = sst [smem:[#allocation32 + $0x3]] %s8100_s18 }
  0x5e   :  { %304 = sst [smem:[#allocation32 + $0x4]] %s8101_s19 }
  0x5f   :  { %306 = sst [smem:[#allocation32 + $0x5]] %s8099_s17  ;;  %s8007_s17 = scalar_lea.hbm %s8976_s10, 2048 }
  0x60   :  { %308 = sst [smem:[#allocation32 + $0x6]] %s8101_s19  ;;  %p8008_p8 = scmp.ne.s32.totalorder %s8976_s10, %s8007_s17 }
  0x61   :  { %310 = sst [smem:[#allocation32 + $0x7]] %s8100_s18  ;;  %p8011_p9 = scmp.lt.u32.totalorder %s8007_s17, %s8976_s10 }
  0x62   :  { %312 = sst [smem:[#allocation32 + $0x8]] %s8103_s23 }
  0x63   :  { %314 = dma.general %s8975_s9, 16384, %s293_s14, %s8130_s8, %s8131_s16, [#allocation32], %s8219_s22, 0  }
  0x64   :  { %p8013_p10 = pnand %p8011_p9, %p8008_p8 }
  0x66   :  { %8016 = shalt.err (!%p8013_p10)  }
  0x67   :  { %s8017_s23 = scalar_lea.vmem %s324_s24, 2048  ;;  %p8022_p12 = scmp.lt.s32.totalorder %s324_s24, %s324_s24 }
  0x68   :  { %p8018_p11 = scmp.ne.s32.totalorder %s324_s24, %s8017_s23  ;;  %p8023_p13 = scmp.lt.s32.totalorder %s8017_s23, %s8017_s23 }
  0x6a   :  { %p8024_p0 = por %p8023_p13, %p8022_p12 }
  0x6c   :  { %p8025_p1 = pnand %p8024_p0, %p8018_p11 }
  0x6e   :  { %8028 = shalt.err (!%p8025_p1)  }
  0x6f   :  { %326 = dma.hbm_to_vmem [thread:$0]  %s8976_s10, 2048, %s324_s24, [#allocation12 + $0x8] }
  0x70   :  { %s8029_s13 = scalar_lea.hbm %s8977_s11, 1024 }
  0x71   :  { %p8030_p2 = scmp.ne.s32.totalorder %s8977_s11, %s8029_s13  ;;  %p8033_p3 = scmp.lt.u32.totalorder %s8029_s13, %s8977_s11 }
  0x73   :  { %p8035_p4 = pnand %p8033_p3, %p8030_p2 }
  0x75   :  { %8038 = shalt.err (!%p8035_p4)  }
  0x76   :  { %s8039_s1 = scalar_lea.vmem %s8314_s3, 1024  ;;  %p8044_p6 = scmp.lt.s32.totalorder %s8314_s3, %s8314_s3 }
  0x77   :  { %p8040_p5 = scmp.ne.s32.totalorder %s8314_s3, %s8039_s1  ;;  %p8045_p7 = scmp.lt.s32.totalorder %s8039_s1, %s8039_s1 }
  0x79   :  { %p8046_p8 = por %p8045_p7, %p8044_p6 }
  0x7b   :  { %p8047_p9 = pnand %p8046_p8, %p8040_p5 }
  0x7d   :  { %8050 = shalt.err (!%p8047_p9)  }
  0x7e   :  { %338 = dma.hbm_to_vmem [thread:$0]  %s8977_s11, 1024, %s8314_s3, [#allocation12 + $0x9]  ;;  %v8352_v0 = vld [vmem:[%s8966_s0] sm:$0xff]  ;;  %v340_v1 = vld [vmem:[%s8966_s0 + $0x8] sm:$0xff]  ;;  %v8360_v2 = vld [vmem:[%s8966_s0 + $0x10] sm:$0xff] }
  0x7f   :  { %v8365_v3 = vld [vmem:[%s8966_s0 + $0x18] sm:$0xff]  ;;  %v8370_v4 = vld [vmem:[%s8966_s0 + $0x20] sm:$0xff]  ;;  %v8375_v5 = vld [vmem:[%s8966_s0 + $0x28] sm:$0xff]  ;;  %v363_v6 = vpack.c.bf16 %v8352_v0, %v8352_v0  ;;  %v364_v7 = vpack.c.bf16 %v340_v1, %v340_v1  ;;  %v365_v8 = vpack.c.bf16 %v8360_v2, %v8360_v2 }
  0x80   :  { %v8384_v9 = vld [vmem:[%s8966_s0 + $0x30] sm:$0xff]  ;;  %v8389_v10 = vld [vmem:[%s8966_s0 + $0x38] sm:$0xff]  ;;  %v8394_v11 = vld [vmem:[%s8966_s0 + $0x40] sm:$0xff]  ;;  %v366_v12 = vpack.c.bf16 %v8365_v3, %v8365_v3  ;;  %v367_v13 = vpack.c.bf16 %v8370_v4, %v8370_v4  ;;  %v368_v14 = vpack.c.bf16 %v8375_v5, %v8375_v5 }
  0x81   :  { %v8405_v15 = vld [vmem:[%s8966_s0 + $0x48] sm:$0xff]  ;;  %v8410_v16 = vld [vmem:[%s8966_s0 + $0x50] sm:$0xff]  ;;  %v8415_v17 = vld [vmem:[%s8966_s0 + $0x58] sm:$0xff]  ;;  %v369_v18 = vpack.c.bf16 %v8384_v9, %v8384_v9  ;;  %v370_v19 = vpack.c.bf16 %v8389_v10, %v8389_v10  ;;  %v371_v20 = vpack.c.bf16 %v8394_v11, %v8394_v11 }
  0x82   :  { %v8426_v21 = vld [vmem:[%s8966_s0 + $0x60] sm:$0xff]  ;;  %v8431_v22 = vld [vmem:[%s8966_s0 + $0x68] sm:$0xff]  ;;  %v8436_v23 = vld [vmem:[%s8966_s0 + $0x70] sm:$0xff]  ;;  %v372_v24 = vpack.c.bf16 %v8405_v15, %v8405_v15  ;;  %v373_v25 = vpack.c.bf16 %v8410_v16, %v8410_v16  ;;  %v374_v26 = vpack.c.bf16 %v8415_v17, %v8415_v17 }
  0x83   :  { %v8447_v27 = vld [vmem:[%s8966_s0 + $0x78] sm:$0xff]  ;;  %v8452_v28 = vld [vmem:[%s8966_s0 + $0x80] sm:$0xff]  ;;  %v8457_v29 = vld [vmem:[%s8966_s0 + $0x88] sm:$0xff]  ;;  %v375_v30 = vpack.c.bf16 %v8426_v21, %v8426_v21  ;;  %v376_v31 = vpack.c.bf16 %v8431_v22, %v8431_v22  ;;  %v377_v32 = vpack.c.bf16 %v8436_v23, %v8436_v23 }
  0x84   :  { %v8468_v33 = vld [vmem:[%s8966_s0 + $0x90] sm:$0xff]  ;;  %v8473_v34 = vld [vmem:[%s8966_s0 + $0x98] sm:$0xff]  ;;  %v8478_v35 = vld [vmem:[%s8966_s0 + $0xa0] sm:$0xff]  ;;  %v378_v36 = vpack.c.bf16 %v8447_v27, %v8447_v27  ;;  %v379_v37 = vpack.c.bf16 %v8452_v28, %v8452_v28  ;;  %v380_v38 = vpack.c.bf16 %v8457_v29, %v8457_v29 }
  0x85   :  { %v8489_v39 = vld [vmem:[%s8966_s0 + $0xa8] sm:$0xff]  ;;  %v8494_v40 = vld [vmem:[%s8966_s0 + $0xb0] sm:$0xff]  ;;  %v8499_v41 = vld [vmem:[%s8966_s0 + $0xb8] sm:$0xff]  ;;  %v381_v42 = vpack.c.bf16 %v8468_v33, %v8468_v33  ;;  %v382_v43 = vpack.c.bf16 %v8473_v34, %v8473_v34  ;;  %v383_v44 = vpack.c.bf16 %v8478_v35, %v8478_v35 }
  0x86   :  { %v384_v45 = vpack.c.bf16 %v8489_v39, %v8489_v39  ;;  %v385_v46 = vpack.c.bf16 %v8494_v40, %v8494_v40  ;;  %v386_v47 = vpack.c.bf16 %v8499_v41, %v8499_v41 }
  0x87   :  { %8075 = dma.done.wait [#allocation12], 49152 }
  0x88   :  { %8076 = vsyncadd [#allocation12], 4294918144  ;;  %819 = vmatprep.mubr.bf16.mxu0 %v364_v7  ;;  %v393_v48 = vld [vmem:[#allocation2 + $0x8] sm:$0xff]  ;;  %v392_v49 = vld [vmem:[#allocation2] sm:$0xff] }
  0x89   :  { %v395_v50 = vld [vmem:[#allocation2 + $0x18] sm:$0xff]  ;;  %787 = vmatprep.subr.bf16.mxu0 %v393_v48  ;;  %v394_v51 = vld [vmem:[#allocation2 + $0x10] sm:$0xff]  ;;  %v397_v52 = vld [vmem:[#allocation2 + $0x28] sm:$0xff] }
  0x8a   :  { %788 = vmatpush1.bf16.msra.mxu0 %v392_v49  ;;  %v396_v53 = vld [vmem:[#allocation2 + $0x20] sm:$0xff]  ;;  %v399_v54 = vld [vmem:[#allocation2 + $0x38] sm:$0xff]  ;;  %v398_v55 = vld [vmem:[#allocation2 + $0x30] sm:$0xff] }
  0x8b   :  { %789 = vmatprep.subr.bf16.mxu0 %v395_v50  ;;  %v401_v56 = vld [vmem:[#allocation2 + $0x48] sm:$0xff]  ;;  %v400_v57 = vld [vmem:[#allocation2 + $0x40] sm:$0xff]  ;;  %v403_v58 = vld [vmem:[#allocation2 + $0x58] sm:$0xff] }
  0x8c   :  { %v402_v59 = vld [vmem:[#allocation2 + $0x50] sm:$0xff]  ;;  %v405_v60 = vld [vmem:[#allocation2 + $0x68] sm:$0xff]  ;;  %v404_v61 = vld [vmem:[#allocation2 + $0x60] sm:$0xff] }
  0x8d   :  { %v407_v62 = vld [vmem:[#allocation2 + $0x78] sm:$0xff]  ;;  %v406_v63 = vld [vmem:[#allocation2 + $0x70] sm:$0xff]  ;;  %v409_v1 = vld [vmem:[#allocation2 + $0x88] sm:$0xff] }
  0x8e   :  { %790 = vmatpush1.bf16.msra.mxu0 %v394_v51  ;;  %v408_v7 = vld [vmem:[#allocation2 + $0x80] sm:$0xff]  ;;  %v411_v48 = vld [vmem:[#allocation2 + $0x98] sm:$0xff]  ;;  %v410_v49 = vld [vmem:[#allocation2 + $0x90] sm:$0xff] }
  0x8f   :  { %791 = vmatprep.subr.bf16.mxu0 %v397_v52  ;;  %v413_v50 = vld [vmem:[#allocation2 + $0xa8] sm:$0xff]  ;;  %v412_v51 = vld [vmem:[#allocation2 + $0xa0] sm:$0xff]  ;;  %v415_v52 = vld [vmem:[#allocation2 + $0xb8] sm:$0xff] }
  0x90   :  { %v432_v0 = vld [vmem:[#allocation2 + $0x140] sm:$0xff]  ;;  %v437_v3 = vld [vmem:[#allocation2 + $0x168] sm:$0xff] }
  0x91   :  { %v464_v2 = vld [vmem:[#allocation2 + $0x240] sm:$0xff]  ;;  %v469_v5 = vld [vmem:[#allocation2 + $0x268] sm:$0xff] }
  0x92   :  { %792 = vmatpush1.bf16.msra.mxu0 %v396_v53  ;;  %v414_v53 = vld [vmem:[#allocation2 + $0xb0] sm:$0xff]  ;;  %v496_v4 = vld [vmem:[#allocation2 + $0x340] sm:$0xff]  ;;  %v501_v10 = vld [vmem:[#allocation2 + $0x368] sm:$0xff] }
  0x93   :  { %793 = vmatprep.subr.bf16.mxu0 %v399_v54  ;;  %v417_v54 = vld [vmem:[#allocation2 + $0xc8] sm:$0xff]  ;;  %v528_v9 = vld [vmem:[#allocation2 + $0x440] sm:$0xff] }
  0x94   :  { %v533_v15 = vld [vmem:[#allocation2 + $0x468] sm:$0xff]  ;;  %v560_v11 = vld [vmem:[#allocation2 + $0x540] sm:$0xff] }
  0x95   :  { %v565_v17 = vld [vmem:[#allocation2 + $0x568] sm:$0xff]  ;;  %v592_v16 = vld [vmem:[#allocation2 + $0x640] sm:$0xff] }
  0x96   :  { %794 = vmatpush1.bf16.msra.mxu0 %v398_v55  ;;  %v416_v55 = vld [vmem:[#allocation2 + $0xc0] sm:$0xff]  ;;  %v597_v22 = vld [vmem:[#allocation2 + $0x668] sm:$0xff] }
  0x97   :  { %795 = vmatprep.subr.bf16.mxu0 %v401_v56  ;;  %v419_v56 = vld [vmem:[#allocation2 + $0xd8] sm:$0xff]  ;;  %v624_v21 = vld [vmem:[#allocation2 + $0x740] sm:$0xff]  ;;  %v629_v27 = vld [vmem:[#allocation2 + $0x768] sm:$0xff] }
  0x98   :  { %v656_v23 = vld [vmem:[#allocation2 + $0x840] sm:$0xff]  ;;  %v661_v29 = vld [vmem:[#allocation2 + $0x868] sm:$0xff] }
  0x99   :  { %v688_v28 = vld [vmem:[#allocation2 + $0x940] sm:$0xff]  ;;  %v693_v34 = vld [vmem:[#allocation2 + $0x968] sm:$0xff] }
  0x9a   :  { %796 = vmatpush1.bf16.msra.mxu0 %v400_v57  ;;  %v418_v57 = vld [vmem:[#allocation2 + $0xd0] sm:$0xff]  ;;  %v720_v33 = vld [vmem:[#allocation2 + $0xa40] sm:$0xff]  ;;  %v725_v39 = vld [vmem:[#allocation2 + $0xa68] sm:$0xff] }
  0x9b   :  { %797 = vmatprep.subr.bf16.mxu0 %v403_v58  ;;  %v421_v58 = vld [vmem:[#allocation2 + $0xe8] sm:$0xff]  ;;  %v752_v35 = vld [vmem:[#allocation2 + $0xb40] sm:$0xff] }
  0x9c   :  { %v757_v41 = vld [vmem:[#allocation2 + $0xb68] sm:$0xff] }
  0x9e   :  { %798 = vmatpush1.bf16.msra.mxu0 %v402_v59  ;;  %v420_v59 = vld [vmem:[#allocation2 + $0xe0] sm:$0xff] }
  0x9f   :  { %799 = vmatprep.subr.bf16.mxu0 %v405_v60  ;;  %v423_v60 = vld [vmem:[#allocation2 + $0xf8] sm:$0xff] }
  0xa2   :  { %800 = vmatpush1.bf16.msra.mxu0 %v404_v61  ;;  %v422_v61 = vld [vmem:[#allocation2 + $0xf0] sm:$0xff] }
  0xa3   :  { %801 = vmatprep.subr.bf16.mxu0 %v407_v62  ;;  %v425_v62 = vld [vmem:[#allocation2 + $0x108] sm:$0xff] }
  0xa6   :  { %802 = vmatpush1.bf16.msra.mxu0 %v406_v63  ;;  %v424_v63 = vld [vmem:[#allocation2 + $0x100] sm:$0xff] }
  0xa7   :  { %803 = vmatprep.subr.bf16.mxu0 %v409_v1  ;;  %v427_v1 = vld [vmem:[#allocation2 + $0x118] sm:$0xff] }
  0xaa   :  { %804 = vmatpush1.bf16.msra.mxu0 %v408_v7  ;;  %v426_v7 = vld [vmem:[#allocation2 + $0x110] sm:$0xff] }
  0xab   :  { %805 = vmatprep.subr.bf16.mxu0 %v411_v48  ;;  %v429_v48 = vld [vmem:[#allocation2 + $0x128] sm:$0xff] }
  0xae   :  { %806 = vmatpush1.bf16.msra.mxu0 %v410_v49  ;;  %v428_v49 = vld [vmem:[#allocation2 + $0x120] sm:$0xff] }
  0xaf   :  { %807 = vmatprep.subr.bf16.mxu0 %v413_v50  ;;  %v431_v50 = vld [vmem:[#allocation2 + $0x138] sm:$0xff] }
  0xb2   :  { %808 = vmatpush1.bf16.msra.mxu0 %v412_v51  ;;  %v430_v51 = vld [vmem:[#allocation2 + $0x130] sm:$0xff] }
  0xb3   :  { %809 = vmatprep.subr.bf16.mxu0 %v415_v52  ;;  %v433_v52 = vld [vmem:[#allocation2 + $0x148] sm:$0xff] }
  0xb6   :  { %810 = vmatpush1.bf16.msra.mxu0 %v414_v53  ;;  %v434_v53 = vld [vmem:[#allocation2 + $0x150] sm:$0xff] }
  0xb7   :  { %811 = vmatprep.subr.bf16.mxu0 %v417_v54  ;;  %v439_v54 = vld [vmem:[#allocation2 + $0x178] sm:$0xff] }
  0xba   :  { %812 = vmatpush1.bf16.msra.mxu0 %v416_v55  ;;  %v438_v55 = vld [vmem:[#allocation2 + $0x170] sm:$0xff] }
  0xbb   :  { %813 = vmatprep.subr.bf16.mxu0 %v419_v56  ;;  %v441_v56 = vld [vmem:[#allocation2 + $0x188] sm:$0xff] }
  0xbe   :  { %814 = vmatpush1.bf16.msra.mxu0 %v418_v57  ;;  %v440_v57 = vld [vmem:[#allocation2 + $0x180] sm:$0xff] }
  0xbf   :  { %815 = vmatprep.subr.bf16.mxu0 %v421_v58  ;;  %v443_v58 = vld [vmem:[#allocation2 + $0x198] sm:$0xff] }
  0xc2   :  { %816 = vmatpush1.bf16.msra.mxu0 %v420_v59  ;;  %v442_v59 = vld [vmem:[#allocation2 + $0x190] sm:$0xff] }
  0xc3   :  { %817 = vmatprep.subr.bf16.mxu0 %v423_v60  ;;  %v445_v60 = vld [vmem:[#allocation2 + $0x1a8] sm:$0xff] }
  0xc6   :  { %818 = vmatpush1.bf16.msra.mxu0 %v422_v61  ;;  %v444_v61 = vld [vmem:[#allocation2 + $0x1a0] sm:$0xff] }
  0xc7   :  { %828 = vmatprep.subr.bf16.mxu0 %v425_v62  ;;  %v447_v62 = vld [vmem:[#allocation2 + $0x1b8] sm:$0xff] }
  0xc9   :  { %820 = vmatmul.mubr.bf16.vlgmr.msra.gmra.mrb[0].mxu0 %v363_v6  ;;  %v435_v6 = vld [vmem:[#allocation2 + $0x158] sm:$0xff] }
  0xca   :  { %829 = vmatpush1.bf16.msra.mxu0 %v424_v63  ;;  %860 = vmatprep.mubr.bf16.mxu0 %v366_v12  ;;  %v436_v12 = vld [vmem:[#allocation2 + $0x160] sm:$0xff]  ;;  %v446_v63 = vld [vmem:[#allocation2 + $0x1b0] sm:$0xff] }
  0xcb   :  { %830 = vmatprep.subr.bf16.mxu0 %v427_v1  ;;  %v449_v1 = vld [vmem:[#allocation2 + $0x1c8] sm:$0xff] }
  0xce   :  { %831 = vmatpush1.bf16.msra.mxu0 %v426_v7  ;;  %v448_v7 = vld [vmem:[#allocation2 + $0x1c0] sm:$0xff] }
  0xcf   :  { %832 = vmatprep.subr.bf16.mxu0 %v429_v48  ;;  %v451_v48 = vld [vmem:[#allocation2 + $0x1d8] sm:$0xff] }
  0xd2   :  { %833 = vmatpush1.bf16.msra.mxu0 %v428_v49  ;;  %v450_v49 = vld [vmem:[#allocation2 + $0x1d0] sm:$0xff] }
  0xd3   :  { %834 = vmatprep.subr.bf16.mxu0 %v431_v50  ;;  %v453_v50 = vld [vmem:[#allocation2 + $0x1e8] sm:$0xff] }
  0xd6   :  { %835 = vmatpush1.bf16.msra.mxu0 %v430_v51  ;;  %v452_v51 = vld [vmem:[#allocation2 + $0x1e0] sm:$0xff] }
  0xd7   :  { %836 = vmatprep.subr.bf16.mxu0 %v433_v52  ;;  %v455_v52 = vld [vmem:[#allocation2 + $0x1f8] sm:$0xff] }
  0xda   :  { %837 = vmatpush1.bf16.msra.mxu0 %v432_v0  ;;  %v454_v0 = vld [vmem:[#allocation2 + $0x1f0] sm:$0xff] }
  0xdb   :  { %838 = vmatprep.subr.bf16.mxu0 %v435_v6  ;;  %v457_v6 = vld [vmem:[#allocation2 + $0x208] sm:$0xff] }
  0xde   :  { %839 = vmatpush1.bf16.msra.mxu0 %v434_v53  ;;  %v456_v53 = vld [vmem:[#allocation2 + $0x200] sm:$0xff] }
  0xdf   :  { %840 = vmatprep.subr.bf16.mxu0 %v437_v3  ;;  %v459_v3 = vld [vmem:[#allocation2 + $0x218] sm:$0xff] }
  0xe2   :  { %841 = vmatpush1.bf16.msra.mxu0 %v436_v12  ;;  %v458_v12 = vld [vmem:[#allocation2 + $0x210] sm:$0xff] }
  0xe3   :  { %842 = vmatprep.subr.bf16.mxu0 %v439_v54  ;;  %v461_v54 = vld [vmem:[#allocation2 + $0x228] sm:$0xff] }
  0xe6   :  { %843 = vmatpush1.bf16.msra.mxu0 %v438_v55  ;;  %v460_v55 = vld [vmem:[#allocation2 + $0x220] sm:$0xff] }
  0xe7   :  { %844 = vmatprep.subr.bf16.mxu0 %v441_v56  ;;  %v463_v56 = vld [vmem:[#allocation2 + $0x238] sm:$0xff] }
  0xea   :  { %845 = vmatpush1.bf16.msra.mxu0 %v440_v57  ;;  %v462_v57 = vld [vmem:[#allocation2 + $0x230] sm:$0xff] }
  0xeb   :  { %846 = vmatprep.subr.bf16.mxu0 %v443_v58  ;;  %v465_v58 = vld [vmem:[#allocation2 + $0x248] sm:$0xff] }
  0xee   :  { %847 = vmatpush1.bf16.msra.mxu0 %v442_v59  ;;  %v466_v59 = vld [vmem:[#allocation2 + $0x250] sm:$0xff] }
  0xef   :  { %848 = vmatprep.subr.bf16.mxu0 %v445_v60  ;;  %v471_v60 = vld [vmem:[#allocation2 + $0x278] sm:$0xff] }
  0xf2   :  { %849 = vmatpush1.bf16.msra.mxu0 %v444_v61  ;;  %v470_v61 = vld [vmem:[#allocation2 + $0x270] sm:$0xff] }
  0xf3   :  { %850 = vmatprep.subr.bf16.mxu0 %v447_v62  ;;  %v473_v62 = vld [vmem:[#allocation2 + $0x288] sm:$0xff] }
  0xf6   :  { %851 = vmatpush1.bf16.msra.mxu0 %v446_v63  ;;  %v472_v63 = vld [vmem:[#allocation2 + $0x280] sm:$0xff] }
  0xf7   :  { %852 = vmatprep.subr.bf16.mxu0 %v449_v1  ;;  %v475_v1 = vld [vmem:[#allocation2 + $0x298] sm:$0xff] }
  0xfa   :  { %853 = vmatpush1.bf16.msra.mxu0 %v448_v7  ;;  %v474_v7 = vld [vmem:[#allocation2 + $0x290] sm:$0xff] }
  0xfb   :  { %854 = vmatprep.subr.bf16.mxu0 %v451_v48  ;;  %v477_v48 = vld [vmem:[#allocation2 + $0x2a8] sm:$0xff] }
  0xfe   :  { %855 = vmatpush1.bf16.msra.mxu0 %v450_v49  ;;  %v476_v49 = vld [vmem:[#allocation2 + $0x2a0] sm:$0xff] }
  0xff   :  { %856 = vmatprep.subr.bf16.mxu0 %v453_v50  ;;  %v479_v50 = vld [vmem:[#allocation2 + $0x2b8] sm:$0xff] }
 0x102   :  { %857 = vmatpush1.bf16.msra.mxu0 %v452_v51  ;;  %v478_v51 = vld [vmem:[#allocation2 + $0x2b0] sm:$0xff] }
 0x103   :  { %858 = vmatprep.subr.bf16.mxu0 %v455_v52  ;;  %v481_v52 = vld [vmem:[#allocation2 + $0x2c8] sm:$0xff] }
 0x106   :  { %859 = vmatpush1.bf16.msra.mxu0 %v454_v0  ;;  %v480_v0 = vld [vmem:[#allocation2 + $0x2c0] sm:$0xff] }
 0x107   :  { %869 = vmatprep.subr.bf16.mxu0 %v457_v6  ;;  %v483_v6 = vld [vmem:[#allocation2 + $0x2d8] sm:$0xff] }
 0x109   :  { %861 = vmatmul.mubr.bf16.vlgmr.msra.gmra.mrb[0].mxu0 %v365_v8  ;;  %v467_v8 = vld [vmem:[#allocation2 + $0x258] sm:$0xff] }
 0x10a   :  { %870 = vmatpush1.bf16.msra.mxu0 %v456_v53  ;;  %901 = vmatprep.mubr.bf16.mxu0 %v368_v14  ;;  %v468_v14 = vld [vmem:[#allocation2 + $0x260] sm:$0xff]  ;;  %v482_v53 = vld [vmem:[#allocation2 + $0x2d0] sm:$0xff] }
 0x10b   :  { %871 = vmatprep.subr.bf16.mxu0 %v459_v3  ;;  %v485_v3 = vld [vmem:[#allocation2 + $0x2e8] sm:$0xff] }
 0x10e   :  { %872 = vmatpush1.bf16.msra.mxu0 %v458_v12  ;;  %v484_v12 = vld [vmem:[#allocation2 + $0x2e0] sm:$0xff] }
 0x10f   :  { %873 = vmatprep.subr.bf16.mxu0 %v461_v54  ;;  %v487_v54 = vld [vmem:[#allocation2 + $0x2f8] sm:$0xff] }
 0x112   :  { %874 = vmatpush1.bf16.msra.mxu0 %v460_v55  ;;  %v486_v55 = vld [vmem:[#allocation2 + $0x2f0] sm:$0xff] }
 0x113   :  { %875 = vmatprep.subr.bf16.mxu0 %v463_v56  ;;  %v489_v56 = vld [vmem:[#allocation2 + $0x308] sm:$0xff] }
 0x116   :  { %876 = vmatpush1.bf16.msra.mxu0 %v462_v57  ;;  %v488_v57 = vld [vmem:[#allocation2 + $0x300] sm:$0xff] }
 0x117   :  { %877 = vmatprep.subr.bf16.mxu0 %v465_v58  ;;  %v491_v58 = vld [vmem:[#allocation2 + $0x318] sm:$0xff] }
 0x11a   :  { %878 = vmatpush1.bf16.msra.mxu0 %v464_v2  ;;  %v490_v2 = vld [vmem:[#allocation2 + $0x310] sm:$0xff] }
 0x11b   :  { %879 = vmatprep.subr.bf16.mxu0 %v467_v8  ;;  %v493_v8 = vld [vmem:[#allocation2 + $0x328] sm:$0xff] }
 0x11e   :  { %880 = vmatpush1.bf16.msra.mxu0 %v466_v59  ;;  %v492_v59 = vld [vmem:[#allocation2 + $0x320] sm:$0xff] }
 0x11f   :  { %881 = vmatprep.subr.bf16.mxu0 %v469_v5  ;;  %v495_v5 = vld [vmem:[#allocation2 + $0x338] sm:$0xff] }
 0x122   :  { %882 = vmatpush1.bf16.msra.mxu0 %v468_v14  ;;  %v494_v14 = vld [vmem:[#allocation2 + $0x330] sm:$0xff] }
 0x123   :  { %883 = vmatprep.subr.bf16.mxu0 %v471_v60  ;;  %v497_v60 = vld [vmem:[#allocation2 + $0x348] sm:$0xff] }
 0x126   :  { %884 = vmatpush1.bf16.msra.mxu0 %v470_v61  ;;  %v498_v61 = vld [vmem:[#allocation2 + $0x350] sm:$0xff] }
 0x127   :  { %885 = vmatprep.subr.bf16.mxu0 %v473_v62  ;;  %v503_v62 = vld [vmem:[#allocation2 + $0x378] sm:$0xff] }
 0x12a   :  { %886 = vmatpush1.bf16.msra.mxu0 %v472_v63  ;;  %v502_v63 = vld [vmem:[#allocation2 + $0x370] sm:$0xff] }
 0x12b   :  { %887 = vmatprep.subr.bf16.mxu0 %v475_v1  ;;  %v505_v1 = vld [vmem:[#allocation2 + $0x388] sm:$0xff] }
 0x12e   :  { %888 = vmatpush1.bf16.msra.mxu0 %v474_v7  ;;  %v504_v7 = vld [vmem:[#allocation2 + $0x380] sm:$0xff] }
 0x12f   :  { %889 = vmatprep.subr.bf16.mxu0 %v477_v48  ;;  %v507_v48 = vld [vmem:[#allocation2 + $0x398] sm:$0xff] }
 0x132   :  { %890 = vmatpush1.bf16.msra.mxu0 %v476_v49  ;;  %v506_v49 = vld [vmem:[#allocation2 + $0x390] sm:$0xff] }
 0x133   :  { %891 = vmatprep.subr.bf16.mxu0 %v479_v50  ;;  %v509_v50 = vld [vmem:[#allocation2 + $0x3a8] sm:$0xff] }
 0x136   :  { %892 = vmatpush1.bf16.msra.mxu0 %v478_v51  ;;  %v508_v51 = vld [vmem:[#allocation2 + $0x3a0] sm:$0xff] }
 0x137   :  { %893 = vmatprep.subr.bf16.mxu0 %v481_v52  ;;  %v511_v52 = vld [vmem:[#allocation2 + $0x3b8] sm:$0xff] }
 0x13a   :  { %894 = vmatpush1.bf16.msra.mxu0 %v480_v0  ;;  %v510_v0 = vld [vmem:[#allocation2 + $0x3b0] sm:$0xff] }
 0x13b   :  { %895 = vmatprep.subr.bf16.mxu0 %v483_v6  ;;  %v513_v6 = vld [vmem:[#allocation2 + $0x3c8] sm:$0xff] }
 0x13e   :  { %896 = vmatpush1.bf16.msra.mxu0 %v482_v53  ;;  %v512_v53 = vld [vmem:[#allocation2 + $0x3c0] sm:$0xff] }
 0x13f   :  { %897 = vmatprep.subr.bf16.mxu0 %v485_v3  ;;  %v515_v3 = vld [vmem:[#allocation2 + $0x3d8] sm:$0xff] }
 0x142   :  { %898 = vmatpush1.bf16.msra.mxu0 %v484_v12  ;;  %v514_v12 = vld [vmem:[#allocation2 + $0x3d0] sm:$0xff] }
 0x143   :  { %899 = vmatprep.subr.bf16.mxu0 %v487_v54  ;;  %v517_v54 = vld [vmem:[#allocation2 + $0x3e8] sm:$0xff] }
 0x146   :  { %900 = vmatpush1.bf16.msra.mxu0 %v486_v55  ;;  %v516_v55 = vld [vmem:[#allocation2 + $0x3e0] sm:$0xff] }
 0x147   :  { %910 = vmatprep.subr.bf16.mxu0 %v489_v56  ;;  %v519_v56 = vld [vmem:[#allocation2 + $0x3f8] sm:$0xff] }
 0x149   :  { %902 = vmatmul.mubr.bf16.vlgmr.msra.gmra.mrb[0].mxu0 %v367_v13  ;;  %v499_v13 = vld [vmem:[#allocation2 + $0x358] sm:$0xff] }
 0x14a   :  { %911 = vmatpush1.bf16.msra.mxu0 %v488_v57  ;;  %942 = vmatprep.mubr.bf16.mxu0 %v370_v19  ;;  %v500_v19 = vld [vmem:[#allocation2 + $0x360] sm:$0xff]  ;;  %v518_v57 = vld [vmem:[#allocation2 + $0x3f0] sm:$0xff] }
 0x14b   :  { %912 = vmatprep.subr.bf16.mxu0 %v491_v58  ;;  %v521_v58 = vld [vmem:[#allocation2 + $0x408] sm:$0xff] }
 0x14e   :  { %913 = vmatpush1.bf16.msra.mxu0 %v490_v2  ;;  %v520_v2 = vld [vmem:[#allocation2 + $0x400] sm:$0xff] }
 0x14f   :  { %914 = vmatprep.subr.bf16.mxu0 %v493_v8  ;;  %v523_v8 = vld [vmem:[#allocation2 + $0x418] sm:$0xff] }
 0x152   :  { %915 = vmatpush1.bf16.msra.mxu0 %v492_v59  ;;  %v522_v59 = vld [vmem:[#allocation2 + $0x410] sm:$0xff] }
 0x153   :  { %916 = vmatprep.subr.bf16.mxu0 %v495_v5  ;;  %v525_v5 = vld [vmem:[#allocation2 + $0x428] sm:$0xff] }
 0x156   :  { %917 = vmatpush1.bf16.msra.mxu0 %v494_v14  ;;  %v524_v14 = vld [vmem:[#allocation2 + $0x420] sm:$0xff] }
 0x157   :  { %918 = vmatprep.subr.bf16.mxu0 %v497_v60  ;;  %v527_v60 = vld [vmem:[#allocation2 + $0x438] sm:$0xff] }
 0x15a   :  { %919 = vmatpush1.bf16.msra.mxu0 %v496_v4  ;;  %v526_v4 = vld [vmem:[#allocation2 + $0x430] sm:$0xff] }
 0x15b   :  { %920 = vmatprep.subr.bf16.mxu0 %v499_v13  ;;  %v529_v13 = vld [vmem:[#allocation2 + $0x448] sm:$0xff] }
 0x15e   :  { %921 = vmatpush1.bf16.msra.mxu0 %v498_v61  ;;  %v530_v61 = vld [vmem:[#allocation2 + $0x450] sm:$0xff] }
 0x15f   :  { %922 = vmatprep.subr.bf16.mxu0 %v501_v10  ;;  %v535_v10 = vld [vmem:[#allocation2 + $0x478] sm:$0xff] }
 0x162   :  { %923 = vmatpush1.bf16.msra.mxu0 %v500_v19  ;;  %v534_v19 = vld [vmem:[#allocation2 + $0x470] sm:$0xff] }
 0x163   :  { %924 = vmatprep.subr.bf16.mxu0 %v503_v62  ;;  %v537_v62 = vld [vmem:[#allocation2 + $0x488] sm:$0xff] }
 0x166   :  { %925 = vmatpush1.bf16.msra.mxu0 %v502_v63  ;;  %v536_v63 = vld [vmem:[#allocation2 + $0x480] sm:$0xff] }
 0x167   :  { %926 = vmatprep.subr.bf16.mxu0 %v505_v1  ;;  %v539_v1 = vld [vmem:[#allocation2 + $0x498] sm:$0xff] }
 0x16a   :  { %927 = vmatpush1.bf16.msra.mxu0 %v504_v7  ;;  %v538_v7 = vld [vmem:[#allocation2 + $0x490] sm:$0xff] }
 0x16b   :  { %928 = vmatprep.subr.bf16.mxu0 %v507_v48  ;;  %v541_v48 = vld [vmem:[#allocation2 + $0x4a8] sm:$0xff] }
 0x16e   :  { %929 = vmatpush1.bf16.msra.mxu0 %v506_v49  ;;  %v540_v49 = vld [vmem:[#allocation2 + $0x4a0] sm:$0xff] }
 0x16f   :  { %930 = vmatprep.subr.bf16.mxu0 %v509_v50  ;;  %v543_v50 = vld [vmem:[#allocation2 + $0x4b8] sm:$0xff] }
 0x172   :  { %931 = vmatpush1.bf16.msra.mxu0 %v508_v51  ;;  %v542_v51 = vld [vmem:[#allocation2 + $0x4b0] sm:$0xff] }
 0x173   :  { %932 = vmatprep.subr.bf16.mxu0 %v511_v52  ;;  %v545_v52 = vld [vmem:[#allocation2 + $0x4c8] sm:$0xff] }
 0x176   :  { %933 = vmatpush1.bf16.msra.mxu0 %v510_v0  ;;  %v544_v0 = vld [vmem:[#allocation2 + $0x4c0] sm:$0xff] }
 0x177   :  { %934 = vmatprep.subr.bf16.mxu0 %v513_v6  ;;  %v547_v6 = vld [vmem:[#allocation2 + $0x4d8] sm:$0xff] }
 0x17a   :  { %935 = vmatpush1.bf16.msra.mxu0 %v512_v53  ;;  %v546_v53 = vld [vmem:[#allocation2 + $0x4d0] sm:$0xff] }
 0x17b   :  { %936 = vmatprep.subr.bf16.mxu0 %v515_v3  ;;  %v549_v3 = vld [vmem:[#allocation2 + $0x4e8] sm:$0xff] }
 0x17e   :  { %937 = vmatpush1.bf16.msra.mxu0 %v514_v12  ;;  %v548_v12 = vld [vmem:[#allocation2 + $0x4e0] sm:$0xff] }
 0x17f   :  { %938 = vmatprep.subr.bf16.mxu0 %v517_v54  ;;  %v551_v54 = vld [vmem:[#allocation2 + $0x4f8] sm:$0xff] }
 0x182   :  { %939 = vmatpush1.bf16.msra.mxu0 %v516_v55  ;;  %v550_v55 = vld [vmem:[#allocation2 + $0x4f0] sm:$0xff] }
 0x183   :  { %940 = vmatprep.subr.bf16.mxu0 %v519_v56  ;;  %v553_v56 = vld [vmem:[#allocation2 + $0x508] sm:$0xff] }
 0x186   :  { %941 = vmatpush1.bf16.msra.mxu0 %v518_v57  ;;  %v552_v57 = vld [vmem:[#allocation2 + $0x500] sm:$0xff] }
 0x187   :  { %951 = vmatprep.subr.bf16.mxu0 %v521_v58  ;;  %v555_v58 = vld [vmem:[#allocation2 + $0x518] sm:$0xff] }
 0x189   :  { %943 = vmatmul.mubr.bf16.vlgmr.msra.gmra.mrb[0].mxu0 %v369_v18  ;;  %v531_v18 = vld [vmem:[#allocation2 + $0x458] sm:$0xff] }
 0x18a   :  { %952 = vmatpush1.bf16.msra.mxu0 %v520_v2  ;;  %983 = vmatprep.mubr.bf16.mxu0 %v372_v24  ;;  %v532_v24 = vld [vmem:[#allocation2 + $0x460] sm:$0xff]  ;;  %v554_v2 = vld [vmem:[#allocation2 + $0x510] sm:$0xff] }
 0x18b   :  { %953 = vmatprep.subr.bf16.mxu0 %v523_v8  ;;  %v557_v8 = vld [vmem:[#allocation2 + $0x528] sm:$0xff] }
 0x18e   :  { %954 = vmatpush1.bf16.msra.mxu0 %v522_v59  ;;  %v556_v59 = vld [vmem:[#allocation2 + $0x520] sm:$0xff] }
 0x18f   :  { %955 = vmatprep.subr.bf16.mxu0 %v525_v5  ;;  %v559_v5 = vld [vmem:[#allocation2 + $0x538] sm:$0xff] }
 0x192   :  { %956 = vmatpush1.bf16.msra.mxu0 %v524_v14  ;;  %v558_v14 = vld [vmem:[#allocation2 + $0x530] sm:$0xff] }
 0x193   :  { %957 = vmatprep.subr.bf16.mxu0 %v527_v60  ;;  %v561_v60 = vld [vmem:[#allocation2 + $0x548] sm:$0xff] }
 0x196   :  { %958 = vmatpush1.bf16.msra.mxu0 %v526_v4  ;;  %v562_v4 = vld [vmem:[#allocation2 + $0x550] sm:$0xff] }
 0x197   :  { %959 = vmatprep.subr.bf16.mxu0 %v529_v13  ;;  %v567_v13 = vld [vmem:[#allocation2 + $0x578] sm:$0xff] }
 0x19a   :  { %960 = vmatpush1.bf16.msra.mxu0 %v528_v9  ;;  %v566_v9 = vld [vmem:[#allocation2 + $0x570] sm:$0xff] }
 0x19b   :  { %961 = vmatprep.subr.bf16.mxu0 %v531_v18  ;;  %v569_v18 = vld [vmem:[#allocation2 + $0x588] sm:$0xff] }
 0x19e   :  { %962 = vmatpush1.bf16.msra.mxu0 %v530_v61  ;;  %v568_v61 = vld [vmem:[#allocation2 + $0x580] sm:$0xff] }
 0x19f   :  { %963 = vmatprep.subr.bf16.mxu0 %v533_v15  ;;  %v571_v15 = vld [vmem:[#allocation2 + $0x598] sm:$0xff] }
 0x1a2   :  { %964 = vmatpush1.bf16.msra.mxu0 %v532_v24  ;;  %v570_v24 = vld [vmem:[#allocation2 + $0x590] sm:$0xff] }
 0x1a3   :  { %965 = vmatprep.subr.bf16.mxu0 %v535_v10  ;;  %v573_v10 = vld [vmem:[#allocation2 + $0x5a8] sm:$0xff] }
 0x1a6   :  { %966 = vmatpush1.bf16.msra.mxu0 %v534_v19  ;;  %v572_v19 = vld [vmem:[#allocation2 + $0x5a0] sm:$0xff] }
 0x1a7   :  { %967 = vmatprep.subr.bf16.mxu0 %v537_v62  ;;  %v575_v62 = vld [vmem:[#allocation2 + $0x5b8] sm:$0xff] }
 0x1aa   :  { %968 = vmatpush1.bf16.msra.mxu0 %v536_v63  ;;  %v574_v63 = vld [vmem:[#allocation2 + $0x5b0] sm:$0xff] }
 0x1ab   :  { %969 = vmatprep.subr.bf16.mxu0 %v539_v1  ;;  %v577_v1 = vld [vmem:[#allocation2 + $0x5c8] sm:$0xff] }
 0x1ae   :  { %970 = vmatpush1.bf16.msra.mxu0 %v538_v7  ;;  %v576_v7 = vld [vmem:[#allocation2 + $0x5c0] sm:$0xff] }
 0x1af   :  { %971 = vmatprep.subr.bf16.mxu0 %v541_v48  ;;  %v579_v48 = vld [vmem:[#allocation2 + $0x5d8] sm:$0xff] }
 0x1b2   :  { %972 = vmatpush1.bf16.msra.mxu0 %v540_v49  ;;  %v578_v49 = vld [vmem:[#allocation2 + $0x5d0] sm:$0xff] }
 0x1b3   :  { %973 = vmatprep.subr.bf16.mxu0 %v543_v50  ;;  %v581_v50 = vld [vmem:[#allocation2 + $0x5e8] sm:$0xff] }
 0x1b6   :  { %974 = vmatpush1.bf16.msra.mxu0 %v542_v51  ;;  %v580_v51 = vld [vmem:[#allocation2 + $0x5e0] sm:$0xff] }
 0x1b7   :  { %975 = vmatprep.subr.bf16.mxu0 %v545_v52  ;;  %v583_v52 = vld [vmem:[#allocation2 + $0x5f8] sm:$0xff] }
 0x1ba   :  { %976 = vmatpush1.bf16.msra.mxu0 %v544_v0  ;;  %v582_v0 = vld [vmem:[#allocation2 + $0x5f0] sm:$0xff] }
 0x1bb   :  { %977 = vmatprep.subr.bf16.mxu0 %v547_v6  ;;  %v585_v6 = vld [vmem:[#allocation2 + $0x608] sm:$0xff] }
 0x1be   :  { %978 = vmatpush1.bf16.msra.mxu0 %v546_v53  ;;  %v584_v53 = vld [vmem:[#allocation2 + $0x600] sm:$0xff] }
 0x1bf   :  { %979 = vmatprep.subr.bf16.mxu0 %v549_v3  ;;  %v587_v3 = vld [vmem:[#allocation2 + $0x618] sm:$0xff] }
 0x1c2   :  { %980 = vmatpush1.bf16.msra.mxu0 %v548_v12  ;;  %v586_v12 = vld [vmem:[#allocation2 + $0x610] sm:$0xff] }
 0x1c3   :  { %981 = vmatprep.subr.bf16.mxu0 %v551_v54  ;;  %v589_v54 = vld [vmem:[#allocation2 + $0x628] sm:$0xff] }
 0x1c6   :  { %982 = vmatpush1.bf16.msra.mxu0 %v550_v55  ;;  %v588_v55 = vld [vmem:[#allocation2 + $0x620] sm:$0xff] }
 0x1c7   :  { %992 = vmatprep.subr.bf16.mxu0 %v553_v56  ;;  %v591_v56 = vld [vmem:[#allocation2 + $0x638] sm:$0xff] }
 0x1c9   :  { %984 = vmatmul.mubr.bf16.vlgmr.msra.gmra.mrb[0].mxu0 %v371_v20  ;;  %v563_v20 = vld [vmem:[#allocation2 + $0x558] sm:$0xff] }
 0x1ca   :  { %993 = vmatpush1.bf16.msra.mxu0 %v552_v57  ;;  %1024 = vmatprep.mubr.bf16.mxu0 %v374_v26  ;;  %v564_v26 = vld [vmem:[#allocation2 + $0x560] sm:$0xff]  ;;  %v590_v57 = vld [vmem:[#allocation2 + $0x630] sm:$0xff] }
 0x1cb   :  { %994 = vmatprep.subr.bf16.mxu0 %v555_v58  ;;  %v593_v58 = vld [vmem:[#allocation2 + $0x648] sm:$0xff] }
 0x1ce   :  { %995 = vmatpush1.bf16.msra.mxu0 %v554_v2  ;;  %v594_v2 = vld [vmem:[#allocation2 + $0x650] sm:$0xff] }
 0x1cf   :  { %996 = vmatprep.subr.bf16.mxu0 %v557_v8  ;;  %v599_v8 = vld [vmem:[#allocation2 + $0x678] sm:$0xff] }
 0x1d2   :  { %997 = vmatpush1.bf16.msra.mxu0 %v556_v59  ;;  %v598_v59 = vld [vmem:[#allocation2 + $0x670] sm:$0xff] }
 0x1d3   :  { %998 = vmatprep.subr.bf16.mxu0 %v559_v5  ;;  %v601_v5 = vld [vmem:[#allocation2 + $0x688] sm:$0xff] }
 0x1d6   :  { %999 = vmatpush1.bf16.msra.mxu0 %v558_v14  ;;  %v600_v14 = vld [vmem:[#allocation2 + $0x680] sm:$0xff] }
 0x1d7   :  { %1000 = vmatprep.subr.bf16.mxu0 %v561_v60  ;;  %v603_v60 = vld [vmem:[#allocation2 + $0x698] sm:$0xff] }
 0x1da   :  { %1001 = vmatpush1.bf16.msra.mxu0 %v560_v11  ;;  %v602_v11 = vld [vmem:[#allocation2 + $0x690] sm:$0xff] }
 0x1db   :  { %1002 = vmatprep.subr.bf16.mxu0 %v563_v20  ;;  %v605_v20 = vld [vmem:[#allocation2 + $0x6a8] sm:$0xff] }
 0x1de   :  { %1003 = vmatpush1.bf16.msra.mxu0 %v562_v4  ;;  %v604_v4 = vld [vmem:[#allocation2 + $0x6a0] sm:$0xff] }
 0x1df   :  { %1004 = vmatprep.subr.bf16.mxu0 %v565_v17  ;;  %v607_v17 = vld [vmem:[#allocation2 + $0x6b8] sm:$0xff] }
 0x1e2   :  { %1005 = vmatpush1.bf16.msra.mxu0 %v564_v26  ;;  %v606_v26 = vld [vmem:[#allocation2 + $0x6b0] sm:$0xff] }
 0x1e3   :  { %1006 = vmatprep.subr.bf16.mxu0 %v567_v13  ;;  %v609_v13 = vld [vmem:[#allocation2 + $0x6c8] sm:$0xff] }
 0x1e6   :  { %1007 = vmatpush1.bf16.msra.mxu0 %v566_v9  ;;  %v608_v9 = vld [vmem:[#allocation2 + $0x6c0] sm:$0xff] }
 0x1e7   :  { %1008 = vmatprep.subr.bf16.mxu0 %v569_v18  ;;  %v611_v18 = vld [vmem:[#allocation2 + $0x6d8] sm:$0xff] }
 0x1ea   :  { %1009 = vmatpush1.bf16.msra.mxu0 %v568_v61  ;;  %v610_v61 = vld [vmem:[#allocation2 + $0x6d0] sm:$0xff] }
 0x1eb   :  { %1010 = vmatprep.subr.bf16.mxu0 %v571_v15  ;;  %v613_v15 = vld [vmem:[#allocation2 + $0x6e8] sm:$0xff] }
 0x1ee   :  { %1011 = vmatpush1.bf16.msra.mxu0 %v570_v24  ;;  %v612_v24 = vld [vmem:[#allocation2 + $0x6e0] sm:$0xff] }
 0x1ef   :  { %1012 = vmatprep.subr.bf16.mxu0 %v573_v10  ;;  %v615_v10 = vld [vmem:[#allocation2 + $0x6f8] sm:$0xff] }
 0x1f2   :  { %1013 = vmatpush1.bf16.msra.mxu0 %v572_v19  ;;  %v614_v19 = vld [vmem:[#allocation2 + $0x6f0] sm:$0xff] }
 0x1f3   :  { %1014 = vmatprep.subr.bf16.mxu0 %v575_v62  ;;  %v617_v62 = vld [vmem:[#allocation2 + $0x708] sm:$0xff] }
 0x1f6   :  { %1015 = vmatpush1.bf16.msra.mxu0 %v574_v63  ;;  %v616_v63 = vld [vmem:[#allocation2 + $0x700] sm:$0xff] }
 0x1f7   :  { %1016 = vmatprep.subr.bf16.mxu0 %v577_v1  ;;  %v619_v1 = vld [vmem:[#allocation2 + $0x718] sm:$0xff] }
 0x1fa   :  { %1017 = vmatpush1.bf16.msra.mxu0 %v576_v7  ;;  %v618_v7 = vld [vmem:[#allocation2 + $0x710] sm:$0xff] }
 0x1fb   :  { %1018 = vmatprep.subr.bf16.mxu0 %v579_v48  ;;  %v621_v48 = vld [vmem:[#allocation2 + $0x728] sm:$0xff] }
 0x1fe   :  { %1019 = vmatpush1.bf16.msra.mxu0 %v578_v49  ;;  %v620_v49 = vld [vmem:[#allocation2 + $0x720] sm:$0xff] }
 0x1ff   :  { %1020 = vmatprep.subr.bf16.mxu0 %v581_v50  ;;  %v623_v50 = vld [vmem:[#allocation2 + $0x738] sm:$0xff] }
 0x202   :  { %1021 = vmatpush1.bf16.msra.mxu0 %v580_v51  ;;  %v622_v51 = vld [vmem:[#allocation2 + $0x730] sm:$0xff] }
 0x203   :  { %1022 = vmatprep.subr.bf16.mxu0 %v583_v52  ;;  %v625_v52 = vld [vmem:[#allocation2 + $0x748] sm:$0xff] }
 0x206   :  { %1023 = vmatpush1.bf16.msra.mxu0 %v582_v0  ;;  %v626_v0 = vld [vmem:[#allocation2 + $0x750] sm:$0xff] }
 0x207   :  { %1033 = vmatprep.subr.bf16.mxu0 %v585_v6  ;;  %v631_v6 = vld [vmem:[#allocation2 + $0x778] sm:$0xff] }
 0x209   :  { %1025 = vmatmul.mubr.bf16.vlgmr.msra.gmra.mrb[0].mxu0 %v373_v25  ;;  %v595_v25 = vld [vmem:[#allocation2 + $0x658] sm:$0xff] }
 0x20a   :  { %1034 = vmatpush1.bf16.msra.mxu0 %v584_v53  ;;  %1065 = vmatprep.mubr.bf16.mxu0 %v376_v31  ;;  %v596_v31 = vld [vmem:[#allocation2 + $0x660] sm:$0xff]  ;;  %v630_v53 = vld [vmem:[#allocation2 + $0x770] sm:$0xff] }
 0x20b   :  { %1035 = vmatprep.subr.bf16.mxu0 %v587_v3  ;;  %v633_v3 = vld [vmem:[#allocation2 + $0x788] sm:$0xff] }
 0x20e   :  { %1036 = vmatpush1.bf16.msra.mxu0 %v586_v12  ;;  %v632_v12 = vld [vmem:[#allocation2 + $0x780] sm:$0xff] }
 0x20f   :  { %1037 = vmatprep.subr.bf16.mxu0 %v589_v54  ;;  %v635_v54 = vld [vmem:[#allocation2 + $0x798] sm:$0xff] }
 0x212   :  { %1038 = vmatpush1.bf16.msra.mxu0 %v588_v55  ;;  %v634_v55 = vld [vmem:[#allocation2 + $0x790] sm:$0xff] }
 0x213   :  { %1039 = vmatprep.subr.bf16.mxu0 %v591_v56  ;;  %v637_v56 = vld [vmem:[#allocation2 + $0x7a8] sm:$0xff] }
 0x216   :  { %1040 = vmatpush1.bf16.msra.mxu0 %v590_v57  ;;  %v636_v57 = vld [vmem:[#allocation2 + $0x7a0] sm:$0xff] }
 0x217   :  { %1041 = vmatprep.subr.bf16.mxu0 %v593_v58  ;;  %v639_v58 = vld [vmem:[#allocation2 + $0x7b8] sm:$0xff] }
 0x21a   :  { %1042 = vmatpush1.bf16.msra.mxu0 %v592_v16  ;;  %v638_v16 = vld [vmem:[#allocation2 + $0x7b0] sm:$0xff] }
 0x21b   :  { %1043 = vmatprep.subr.bf16.mxu0 %v595_v25  ;;  %v641_v25 = vld [vmem:[#allocation2 + $0x7c8] sm:$0xff] }
 0x21e   :  { %1044 = vmatpush1.bf16.msra.mxu0 %v594_v2  ;;  %v640_v2 = vld [vmem:[#allocation2 + $0x7c0] sm:$0xff] }
 0x21f   :  { %1045 = vmatprep.subr.bf16.mxu0 %v597_v22  ;;  %v643_v22 = vld [vmem:[#allocation2 + $0x7d8] sm:$0xff] }
 0x222   :  { %1046 = vmatpush1.bf16.msra.mxu0 %v596_v31  ;;  %v642_v31 = vld [vmem:[#allocation2 + $0x7d0] sm:$0xff] }
 0x223   :  { %1047 = vmatprep.subr.bf16.mxu0 %v599_v8  ;;  %v645_v8 = vld [vmem:[#allocation2 + $0x7e8] sm:$0xff] }
 0x226   :  { %1048 = vmatpush1.bf16.msra.mxu0 %v598_v59  ;;  %v644_v59 = vld [vmem:[#allocation2 + $0x7e0] sm:$0xff] }
 0x227   :  { %1049 = vmatprep.subr.bf16.mxu0 %v601_v5  ;;  %v647_v5 = vld [vmem:[#allocation2 + $0x7f8] sm:$0xff] }
 0x22a   :  { %1050 = vmatpush1.bf16.msra.mxu0 %v600_v14  ;;  %v646_v14 = vld [vmem:[#allocation2 + $0x7f0] sm:$0xff] }
 0x22b   :  { %1051 = vmatprep.subr.bf16.mxu0 %v603_v60  ;;  %v649_v60 = vld [vmem:[#allocation2 + $0x808] sm:$0xff] }
 0x22e   :  { %1052 = vmatpush1.bf16.msra.mxu0 %v602_v11  ;;  %v648_v11 = vld [vmem:[#allocation2 + $0x800] sm:$0xff] }
 0x22f   :  { %1053 = vmatprep.subr.bf16.mxu0 %v605_v20  ;;  %v651_v20 = vld [vmem:[#allocation2 + $0x818] sm:$0xff] }
 0x232   :  { %1054 = vmatpush1.bf16.msra.mxu0 %v604_v4  ;;  %v650_v4 = vld [vmem:[#allocation2 + $0x810] sm:$0xff] }
 0x233   :  { %1055 = vmatprep.subr.bf16.mxu0 %v607_v17  ;;  %v653_v17 = vld [vmem:[#allocation2 + $0x828] sm:$0xff] }
 0x236   :  { %1056 = vmatpush1.bf16.msra.mxu0 %v606_v26  ;;  %v652_v26 = vld [vmem:[#allocation2 + $0x820] sm:$0xff] }
 0x237   :  { %1057 = vmatprep.subr.bf16.mxu0 %v609_v13  ;;  %v655_v13 = vld [vmem:[#allocation2 + $0x838] sm:$0xff] }
 0x23a   :  { %1058 = vmatpush1.bf16.msra.mxu0 %v608_v9  ;;  %v654_v9 = vld [vmem:[#allocation2 + $0x830] sm:$0xff] }
 0x23b   :  { %1059 = vmatprep.subr.bf16.mxu0 %v611_v18  ;;  %v657_v18 = vld [vmem:[#allocation2 + $0x848] sm:$0xff] }
 0x23e   :  { %1060 = vmatpush1.bf16.msra.mxu0 %v610_v61  ;;  %v658_v61 = vld [vmem:[#allocation2 + $0x850] sm:$0xff] }
 0x23f   :  { %1061 = vmatprep.subr.bf16.mxu0 %v613_v15  ;;  %v663_v15 = vld [vmem:[#allocation2 + $0x878] sm:$0xff] }
 0x242   :  { %1062 = vmatpush1.bf16.msra.mxu0 %v612_v24  ;;  %v662_v24 = vld [vmem:[#allocation2 + $0x870] sm:$0xff] }
 0x243   :  { %1063 = vmatprep.subr.bf16.mxu0 %v615_v10  ;;  %v665_v10 = vld [vmem:[#allocation2 + $0x888] sm:$0xff] }
 0x246   :  { %1064 = vmatpush1.bf16.msra.mxu0 %v614_v19  ;;  %v664_v19 = vld [vmem:[#allocation2 + $0x880] sm:$0xff] }
 0x247   :  { %1074 = vmatprep.subr.bf16.mxu0 %v617_v62  ;;  %v667_v62 = vld [vmem:[#allocation2 + $0x898] sm:$0xff] }
 0x249   :  { %1066 = vmatmul.mubr.bf16.vlgmr.msra.gmra.mrb[0].mxu0 %v375_v30  ;;  %v627_v30 = vld [vmem:[#allocation2 + $0x758] sm:$0xff] }
 0x24a   :  { %1075 = vmatpush1.bf16.msra.mxu0 %v616_v63  ;;  %1106 = vmatprep.mubr.bf16.mxu0 %v378_v36  ;;  %v628_v36 = vld [vmem:[#allocation2 + $0x760] sm:$0xff]  ;;  %v666_v63 = vld [vmem:[#allocation2 + $0x890] sm:$0xff] }
 0x24b   :  { %1076 = vmatprep.subr.bf16.mxu0 %v619_v1  ;;  %v669_v1 = vld [vmem:[#allocation2 + $0x8a8] sm:$0xff] }
 0x24e   :  { %1077 = vmatpush1.bf16.msra.mxu0 %v618_v7  ;;  %v668_v7 = vld [vmem:[#allocation2 + $0x8a0] sm:$0xff] }
 0x24f   :  { %1078 = vmatprep.subr.bf16.mxu0 %v621_v48  ;;  %v671_v48 = vld [vmem:[#allocation2 + $0x8b8] sm:$0xff] }
 0x252   :  { %1079 = vmatpush1.bf16.msra.mxu0 %v620_v49  ;;  %v670_v49 = vld [vmem:[#allocation2 + $0x8b0] sm:$0xff] }
 0x253   :  { %1080 = vmatprep.subr.bf16.mxu0 %v623_v50  ;;  %v673_v50 = vld [vmem:[#allocation2 + $0x8c8] sm:$0xff] }
 0x256   :  { %1081 = vmatpush1.bf16.msra.mxu0 %v622_v51  ;;  %v672_v51 = vld [vmem:[#allocation2 + $0x8c0] sm:$0xff] }
 0x257   :  { %1082 = vmatprep.subr.bf16.mxu0 %v625_v52  ;;  %v675_v52 = vld [vmem:[#allocation2 + $0x8d8] sm:$0xff] }
 0x25a   :  { %1083 = vmatpush1.bf16.msra.mxu0 %v624_v21  ;;  %v674_v21 = vld [vmem:[#allocation2 + $0x8d0] sm:$0xff] }
 0x25b   :  { %1084 = vmatprep.subr.bf16.mxu0 %v627_v30  ;;  %v677_v30 = vld [vmem:[#allocation2 + $0x8e8] sm:$0xff] }
 0x25e   :  { %1085 = vmatpush1.bf16.msra.mxu0 %v626_v0  ;;  %v676_v0 = vld [vmem:[#allocation2 + $0x8e0] sm:$0xff] }
 0x25f   :  { %1086 = vmatprep.subr.bf16.mxu0 %v629_v27  ;;  %v679_v27 = vld [vmem:[#allocation2 + $0x8f8] sm:$0xff] }
 0x262   :  { %1087 = vmatpush1.bf16.msra.mxu0 %v628_v36  ;;  %v678_v36 = vld [vmem:[#allocation2 + $0x8f0] sm:$0xff] }
 0x263   :  { %1088 = vmatprep.subr.bf16.mxu0 %v631_v6  ;;  %v681_v6 = vld [vmem:[#allocation2 + $0x908] sm:$0xff] }
 0x266   :  { %1089 = vmatpush1.bf16.msra.mxu0 %v630_v53  ;;  %v680_v53 = vld [vmem:[#allocation2 + $0x900] sm:$0xff] }
 0x267   :  { %1090 = vmatprep.subr.bf16.mxu0 %v633_v3  ;;  %v683_v3 = vld [vmem:[#allocation2 + $0x918] sm:$0xff] }
 0x26a   :  { %1091 = vmatpush1.bf16.msra.mxu0 %v632_v12  ;;  %v682_v12 = vld [vmem:[#allocation2 + $0x910] sm:$0xff] }
 0x26b   :  { %1092 = vmatprep.subr.bf16.mxu0 %v635_v54  ;;  %v685_v54 = vld [vmem:[#allocation2 + $0x928] sm:$0xff] }
 0x26e   :  { %1093 = vmatpush1.bf16.msra.mxu0 %v634_v55  ;;  %v684_v55 = vld [vmem:[#allocation2 + $0x920] sm:$0xff] }
 0x26f   :  { %1094 = vmatprep.subr.bf16.mxu0 %v637_v56  ;;  %v687_v56 = vld [vmem:[#allocation2 + $0x938] sm:$0xff] }
 0x272   :  { %1095 = vmatpush1.bf16.msra.mxu0 %v636_v57  ;;  %v686_v57 = vld [vmem:[#allocation2 + $0x930] sm:$0xff] }
 0x273   :  { %1096 = vmatprep.subr.bf16.mxu0 %v639_v58  ;;  %v689_v58 = vld [vmem:[#allocation2 + $0x948] sm:$0xff] }
 0x276   :  { %1097 = vmatpush1.bf16.msra.mxu0 %v638_v16  ;;  %v690_v16 = vld [vmem:[#allocation2 + $0x950] sm:$0xff] }
 0x277   :  { %1098 = vmatprep.subr.bf16.mxu0 %v641_v25  ;;  %v695_v25 = vld [vmem:[#allocation2 + $0x978] sm:$0xff] }
 0x27a   :  { %1099 = vmatpush1.bf16.msra.mxu0 %v640_v2  ;;  %v694_v2 = vld [vmem:[#allocation2 + $0x970] sm:$0xff] }
 0x27b   :  { %1100 = vmatprep.subr.bf16.mxu0 %v643_v22  ;;  %v697_v22 = vld [vmem:[#allocation2 + $0x988] sm:$0xff] }
 0x27e   :  { %1101 = vmatpush1.bf16.msra.mxu0 %v642_v31  ;;  %v696_v31 = vld [vmem:[#allocation2 + $0x980] sm:$0xff] }
 0x27f   :  { %1102 = vmatprep.subr.bf16.mxu0 %v645_v8  ;;  %v699_v8 = vld [vmem:[#allocation2 + $0x998] sm:$0xff] }
 0x282   :  { %1103 = vmatpush1.bf16.msra.mxu0 %v644_v59  ;;  %v698_v59 = vld [vmem:[#allocation2 + $0x990] sm:$0xff] }
 0x283   :  { %1104 = vmatprep.subr.bf16.mxu0 %v647_v5  ;;  %v701_v5 = vld [vmem:[#allocation2 + $0x9a8] sm:$0xff] }
 0x286   :  { %1105 = vmatpush1.bf16.msra.mxu0 %v646_v14  ;;  %v700_v14 = vld [vmem:[#allocation2 + $0x9a0] sm:$0xff] }
 0x287   :  { %1115 = vmatprep.subr.bf16.mxu0 %v649_v60  ;;  %v703_v60 = vld [vmem:[#allocation2 + $0x9b8] sm:$0xff] }
 0x289   :  { %1107 = vmatmul.mubr.bf16.vlgmr.msra.gmra.mrb[0].mxu0 %v377_v32  ;;  %v659_v32 = vld [vmem:[#allocation2 + $0x858] sm:$0xff] }
 0x28a   :  { %1116 = vmatpush1.bf16.msra.mxu0 %v648_v11  ;;  %1147 = vmatprep.mubr.bf16.mxu0 %v380_v38  ;;  %v660_v38 = vld [vmem:[#allocation2 + $0x860] sm:$0xff]  ;;  %v702_v11 = vld [vmem:[#allocation2 + $0x9b0] sm:$0xff] }
 0x28b   :  { %1117 = vmatprep.subr.bf16.mxu0 %v651_v20  ;;  %v705_v20 = vld [vmem:[#allocation2 + $0x9c8] sm:$0xff] }
 0x28e   :  { %1118 = vmatpush1.bf16.msra.mxu0 %v650_v4  ;;  %v704_v4 = vld [vmem:[#allocation2 + $0x9c0] sm:$0xff] }
 0x28f   :  { %1119 = vmatprep.subr.bf16.mxu0 %v653_v17  ;;  %v707_v17 = vld [vmem:[#allocation2 + $0x9d8] sm:$0xff] }
 0x292   :  { %1120 = vmatpush1.bf16.msra.mxu0 %v652_v26  ;;  %v706_v26 = vld [vmem:[#allocation2 + $0x9d0] sm:$0xff] }
 0x293   :  { %1121 = vmatprep.subr.bf16.mxu0 %v655_v13  ;;  %v709_v13 = vld [vmem:[#allocation2 + $0x9e8] sm:$0xff] }
 0x296   :  { %1122 = vmatpush1.bf16.msra.mxu0 %v654_v9  ;;  %v708_v9 = vld [vmem:[#allocation2 + $0x9e0] sm:$0xff] }
 0x297   :  { %1123 = vmatprep.subr.bf16.mxu0 %v657_v18  ;;  %v711_v18 = vld [vmem:[#allocation2 + $0x9f8] sm:$0xff] }
 0x29a   :  { %1124 = vmatpush1.bf16.msra.mxu0 %v656_v23  ;;  %v710_v23 = vld [vmem:[#allocation2 + $0x9f0] sm:$0xff] }
 0x29b   :  { %1125 = vmatprep.subr.bf16.mxu0 %v659_v32  ;;  %v713_v32 = vld [vmem:[#allocation2 + $0xa08] sm:$0xff] }
 0x29e   :  { %1126 = vmatpush1.bf16.msra.mxu0 %v658_v61  ;;  %v712_v61 = vld [vmem:[#allocation2 + $0xa00] sm:$0xff] }
 0x29f   :  { %1127 = vmatprep.subr.bf16.mxu0 %v661_v29  ;;  %v715_v29 = vld [vmem:[#allocation2 + $0xa18] sm:$0xff] }
 0x2a2   :  { %1128 = vmatpush1.bf16.msra.mxu0 %v660_v38  ;;  %v714_v38 = vld [vmem:[#allocation2 + $0xa10] sm:$0xff] }
 0x2a3   :  { %1129 = vmatprep.subr.bf16.mxu0 %v663_v15  ;;  %v717_v15 = vld [vmem:[#allocation2 + $0xa28] sm:$0xff] }
 0x2a6   :  { %1130 = vmatpush1.bf16.msra.mxu0 %v662_v24  ;;  %v716_v24 = vld [vmem:[#allocation2 + $0xa20] sm:$0xff] }
 0x2a7   :  { %1131 = vmatprep.subr.bf16.mxu0 %v665_v10  ;;  %v719_v10 = vld [vmem:[#allocation2 + $0xa38] sm:$0xff] }
 0x2aa   :  { %1132 = vmatpush1.bf16.msra.mxu0 %v664_v19  ;;  %v718_v19 = vld [vmem:[#allocation2 + $0xa30] sm:$0xff] }
 0x2ab   :  { %1133 = vmatprep.subr.bf16.mxu0 %v667_v62  ;;  %v721_v62 = vld [vmem:[#allocation2 + $0xa48] sm:$0xff] }
 0x2ae   :  { %1134 = vmatpush1.bf16.msra.mxu0 %v666_v63  ;;  %v722_v63 = vld [vmem:[#allocation2 + $0xa50] sm:$0xff] }
 0x2af   :  { %1135 = vmatprep.subr.bf16.mxu0 %v669_v1  ;;  %v727_v1 = vld [vmem:[#allocation2 + $0xa78] sm:$0xff] }
 0x2b2   :  { %1136 = vmatpush1.bf16.msra.mxu0 %v668_v7  ;;  %v726_v7 = vld [vmem:[#allocation2 + $0xa70] sm:$0xff] }
 0x2b3   :  { %1137 = vmatprep.subr.bf16.mxu0 %v671_v48  ;;  %v729_v48 = vld [vmem:[#allocation2 + $0xa88] sm:$0xff] }
 0x2b6   :  { %1138 = vmatpush1.bf16.msra.mxu0 %v670_v49  ;;  %v728_v49 = vld [vmem:[#allocation2 + $0xa80] sm:$0xff] }
 0x2b7   :  { %1139 = vmatprep.subr.bf16.mxu0 %v673_v50  ;;  %v731_v50 = vld [vmem:[#allocation2 + $0xa98] sm:$0xff] }
 0x2ba   :  { %1140 = vmatpush1.bf16.msra.mxu0 %v672_v51  ;;  %v730_v51 = vld [vmem:[#allocation2 + $0xa90] sm:$0xff] }
 0x2bb   :  { %1141 = vmatprep.subr.bf16.mxu0 %v675_v52  ;;  %v733_v52 = vld [vmem:[#allocation2 + $0xaa8] sm:$0xff] }
 0x2be   :  { %1142 = vmatpush1.bf16.msra.mxu0 %v674_v21  ;;  %v732_v21 = vld [vmem:[#allocation2 + $0xaa0] sm:$0xff] }
 0x2bf   :  { %1143 = vmatprep.subr.bf16.mxu0 %v677_v30  ;;  %v735_v30 = vld [vmem:[#allocation2 + $0xab8] sm:$0xff] }
 0x2c2   :  { %1144 = vmatpush1.bf16.msra.mxu0 %v676_v0  ;;  %v734_v0 = vld [vmem:[#allocation2 + $0xab0] sm:$0xff] }
 0x2c3   :  { %1145 = vmatprep.subr.bf16.mxu0 %v679_v27  ;;  %v737_v27 = vld [vmem:[#allocation2 + $0xac8] sm:$0xff] }
 0x2c6   :  { %1146 = vmatpush1.bf16.msra.mxu0 %v678_v36  ;;  %v736_v36 = vld [vmem:[#allocation2 + $0xac0] sm:$0xff] }
 0x2c7   :  { %1156 = vmatprep.subr.bf16.mxu0 %v681_v6  ;;  %v739_v6 = vld [vmem:[#allocation2 + $0xad8] sm:$0xff] }
 0x2c9   :  { %1148 = vmatmul.mubr.bf16.vlgmr.msra.gmra.mrb[0].mxu0 %v379_v37  ;;  %v691_v37 = vld [vmem:[#allocation2 + $0x958] sm:$0xff] }
 0x2ca   :  { %1157 = vmatpush1.bf16.msra.mxu0 %v680_v53  ;;  %1188 = vmatprep.mubr.bf16.mxu0 %v382_v43  ;;  %v692_v43 = vld [vmem:[#allocation2 + $0x960] sm:$0xff]  ;;  %v738_v53 = vld [vmem:[#allocation2 + $0xad0] sm:$0xff] }
 0x2cb   :  { %1158 = vmatprep.subr.bf16.mxu0 %v683_v3  ;;  %v741_v3 = vld [vmem:[#allocation2 + $0xae8] sm:$0xff] }
 0x2ce   :  { %1159 = vmatpush1.bf16.msra.mxu0 %v682_v12  ;;  %v740_v12 = vld [vmem:[#allocation2 + $0xae0] sm:$0xff] }
 0x2cf   :  { %1160 = vmatprep.subr.bf16.mxu0 %v685_v54  ;;  %v743_v54 = vld [vmem:[#allocation2 + $0xaf8] sm:$0xff] }
 0x2d2   :  { %1161 = vmatpush1.bf16.msra.mxu0 %v684_v55  ;;  %v742_v55 = vld [vmem:[#allocation2 + $0xaf0] sm:$0xff] }
 0x2d3   :  { %1162 = vmatprep.subr.bf16.mxu0 %v687_v56  ;;  %v745_v56 = vld [vmem:[#allocation2 + $0xb08] sm:$0xff] }
 0x2d6   :  { %1163 = vmatpush1.bf16.msra.mxu0 %v686_v57  ;;  %v744_v57 = vld [vmem:[#allocation2 + $0xb00] sm:$0xff] }
 0x2d7   :  { %1164 = vmatprep.subr.bf16.mxu0 %v689_v58  ;;  %v747_v58 = vld [vmem:[#allocation2 + $0xb18] sm:$0xff] }
 0x2da   :  { %1165 = vmatpush1.bf16.msra.mxu0 %v688_v28  ;;  %v746_v28 = vld [vmem:[#allocation2 + $0xb10] sm:$0xff] }
 0x2db   :  { %1166 = vmatprep.subr.bf16.mxu0 %v691_v37  ;;  %v749_v37 = vld [vmem:[#allocation2 + $0xb28] sm:$0xff] }
 0x2de   :  { %1167 = vmatpush1.bf16.msra.mxu0 %v690_v16  ;;  %v748_v16 = vld [vmem:[#allocation2 + $0xb20] sm:$0xff] }
 0x2df   :  { %1168 = vmatprep.subr.bf16.mxu0 %v693_v34  ;;  %v751_v34 = vld [vmem:[#allocation2 + $0xb38] sm:$0xff] }
 0x2e2   :  { %1169 = vmatpush1.bf16.msra.mxu0 %v692_v43  ;;  %v750_v43 = vld [vmem:[#allocation2 + $0xb30] sm:$0xff] }
 0x2e3   :  { %1170 = vmatprep.subr.bf16.mxu0 %v695_v25  ;;  %v753_v25 = vld [vmem:[#allocation2 + $0xb48] sm:$0xff] }
 0x2e6   :  { %1171 = vmatpush1.bf16.msra.mxu0 %v694_v2  ;;  %v754_v2 = vld [vmem:[#allocation2 + $0xb50] sm:$0xff] }
 0x2e7   :  { %1172 = vmatprep.subr.bf16.mxu0 %v697_v22  ;;  %v759_v22 = vld [vmem:[#allocation2 + $0xb78] sm:$0xff] }
 0x2ea   :  { %1173 = vmatpush1.bf16.msra.mxu0 %v696_v31  ;;  %v758_v31 = vld [vmem:[#allocation2 + $0xb70] sm:$0xff] }
 0x2eb   :  { %1174 = vmatprep.subr.bf16.mxu0 %v699_v8  ;;  %v761_v8 = vld [vmem:[#allocation2 + $0xb88] sm:$0xff] }
 0x2ee   :  { %1175 = vmatpush1.bf16.msra.mxu0 %v698_v59  ;;  %v760_v59 = vld [vmem:[#allocation2 + $0xb80] sm:$0xff] }
 0x2ef   :  { %1176 = vmatprep.subr.bf16.mxu0 %v701_v5  ;;  %v763_v5 = vld [vmem:[#allocation2 + $0xb98] sm:$0xff] }
 0x2f2   :  { %1177 = vmatpush1.bf16.msra.mxu0 %v700_v14  ;;  %v762_v14 = vld [vmem:[#allocation2 + $0xb90] sm:$0xff] }
 0x2f3   :  { %1178 = vmatprep.subr.bf16.mxu0 %v703_v60  ;;  %v765_v60 = vld [vmem:[#allocation2 + $0xba8] sm:$0xff] }
 0x2f6   :  { %1179 = vmatpush1.bf16.msra.mxu0 %v702_v11  ;;  %v764_v11 = vld [vmem:[#allocation2 + $0xba0] sm:$0xff] }
 0x2f7   :  { %1180 = vmatprep.subr.bf16.mxu0 %v705_v20  ;;  %v767_v20 = vld [vmem:[#allocation2 + $0xbb8] sm:$0xff] }
 0x2fa   :  { %1181 = vmatpush1.bf16.msra.mxu0 %v704_v4  ;;  %v766_v4 = vld [vmem:[#allocation2 + $0xbb0] sm:$0xff] }
 0x2fb   :  { %1182 = vmatprep.subr.bf16.mxu0 %v707_v17  ;;  %v769_v17 = vld [vmem:[#allocation2 + $0xbc8] sm:$0xff] }
 0x2fe   :  { %1183 = vmatpush1.bf16.msra.mxu0 %v706_v26  ;;  %v768_v26 = vld [vmem:[#allocation2 + $0xbc0] sm:$0xff] }
 0x2ff   :  { %1184 = vmatprep.subr.bf16.mxu0 %v709_v13  ;;  %v771_v13 = vld [vmem:[#allocation2 + $0xbd8] sm:$0xff] }
 0x302   :  { %1185 = vmatpush1.bf16.msra.mxu0 %v708_v9  ;;  %v770_v9 = vld [vmem:[#allocation2 + $0xbd0] sm:$0xff] }
 0x303   :  { %1186 = vmatprep.subr.bf16.mxu0 %v711_v18  ;;  %v773_v18 = vld [vmem:[#allocation2 + $0xbe8] sm:$0xff] }
 0x306   :  { %1187 = vmatpush1.bf16.msra.mxu0 %v710_v23  ;;  %v772_v23 = vld [vmem:[#allocation2 + $0xbe0] sm:$0xff] }
 0x307   :  { %1197 = vmatprep.subr.bf16.mxu0 %v713_v32  ;;  %v775_v32 = vld [vmem:[#allocation2 + $0xbf8] sm:$0xff] }
 0x309   :  { %1189 = vmatmul.mubr.bf16.vlgmr.msra.gmra.mrb[0].mxu0 %v381_v42  ;;  %v723_v42 = vld [vmem:[#allocation2 + $0xa58] sm:$0xff] }
 0x30a   :  { %1198 = vmatpush1.bf16.msra.mxu0 %v712_v61  ;;  %1229 = vmatprep.mubr.bf16.mxu0 %v384_v45  ;;  %v724_v45 = vld [vmem:[#allocation2 + $0xa60] sm:$0xff]  ;;  %v774_v61 = vld [vmem:[#allocation2 + $0xbf0] sm:$0xff] }
 0x30b   :  { %1199 = vmatprep.subr.bf16.mxu0 %v715_v29  ;;  %v777_v29 = vlaneseq }
 0x30e   :  { %1200 = vmatpush1.bf16.msra.mxu0 %v714_v38  ;;  %v8582_v38 = vshrl.u32 %v777_v29, 7 }
 0x30f   :  { %1201 = vmatprep.subr.bf16.mxu0 %v717_v15 }
 0x310   :  { %v8585_v15 = vsub.s32 0, %v8582_v38 }
 0x312   :  { %1202 = vmatpush1.bf16.msra.mxu0 %v716_v24  ;;  %v391_v24 = vld [vmem:[#allocation13] sm:$0x3] }
 0x313   :  { %1203 = vmatprep.subr.bf16.mxu0 %v719_v10  ;;  %v8588_v10 = vsub.s32 1, %v8582_v38 }
 0x316   :  { %1204 = vmatpush1.bf16.msra.mxu0 %v718_v19  ;;  %v780_v19 = vrot.slane %v391_v24, %v8585_v15 }
 0x317   :  { %1205 = vmatprep.subr.bf16.mxu0 %v721_v62  ;;  %v784_v62 = vrot.slane %v391_v24, %v8588_v10 }
 0x31a   :  { %1206 = vmatpush1.bf16.msra.mxu0 %v720_v33 }
 0x31b   :  { %1207 = vmatprep.subr.bf16.mxu0 %v723_v42 }
 0x31e   :  { %1208 = vmatpush1.bf16.msra.mxu0 %v722_v63 }
 0x31f   :  { %1209 = vmatprep.subr.bf16.mxu0 %v725_v39 }
 0x322   :  { %1210 = vmatpush1.bf16.msra.mxu0 %v724_v45 }
 0x323   :  { %1211 = vmatprep.subr.bf16.mxu0 %v727_v1 }
 0x326   :  { %1212 = vmatpush1.bf16.msra.mxu0 %v726_v7 }
 0x327   :  { %1213 = vmatprep.subr.bf16.mxu0 %v729_v48 }
 0x32a   :  { %1214 = vmatpush1.bf16.msra.mxu0 %v728_v49 }
 0x32b   :  { %1215 = vmatprep.subr.bf16.mxu0 %v731_v50 }
 0x32e   :  { %1216 = vmatpush1.bf16.msra.mxu0 %v730_v51 }
 0x32f   :  { %1217 = vmatprep.subr.bf16.mxu0 %v733_v52 }
 0x332   :  { %1218 = vmatpush1.bf16.msra.mxu0 %v732_v21 }
 0x333   :  { %1219 = vmatprep.subr.bf16.mxu0 %v735_v30 }
 0x336   :  { %1220 = vmatpush1.bf16.msra.mxu0 %v734_v0 }
 0x337   :  { %1221 = vmatprep.subr.bf16.mxu0 %v737_v27 }
 0x33a   :  { %1222 = vmatpush1.bf16.msra.mxu0 %v736_v36 }
 0x33b   :  { %1223 = vmatprep.subr.bf16.mxu0 %v739_v6 }
 0x33e   :  { %1224 = vmatpush1.bf16.msra.mxu0 %v738_v53 }
 0x33f   :  { %1225 = vmatprep.subr.bf16.mxu0 %v741_v3 }
 0x342   :  { %1226 = vmatpush1.bf16.msra.mxu0 %v740_v12 }
 0x343   :  { %1227 = vmatprep.subr.bf16.mxu0 %v743_v54 }
 0x346   :  { %1228 = vmatpush1.bf16.msra.mxu0 %v742_v55 }
 0x347   :  { %1238 = vmatprep.subr.bf16.mxu0 %v745_v56 }
 0x349   :  { %1230 = vmatmul.mubr.bf16.vlgmr.msra.gmra.mrb[0].mxu0 %v383_v44  ;;  %v755_v44 = vld [vmem:[#allocation2 + $0xb58] sm:$0xff] }
 0x34a   :  { %1239 = vmatpush1.bf16.msra.mxu0 %v744_v57  ;;  %1270 = vmatprep.mubr.bf16.mxu0 %v386_v47  ;;  %v756_v47 = vld [vmem:[#allocation2 + $0xb60] sm:$0xff] }
 0x34b   :  { %1240 = vmatprep.subr.bf16.mxu0 %v747_v58 }
 0x34e   :  { %1241 = vmatpush1.bf16.msra.mxu0 %v746_v28 }
 0x34f   :  { %1242 = vmatprep.subr.bf16.mxu0 %v749_v37 }
 0x352   :  { %1243 = vmatpush1.bf16.msra.mxu0 %v748_v16 }
 0x353   :  { %1244 = vmatprep.subr.bf16.mxu0 %v751_v34 }
 0x356   :  { %1245 = vmatpush1.bf16.msra.mxu0 %v750_v43 }
 0x357   :  { %1246 = vmatprep.subr.bf16.mxu0 %v753_v25 }
 0x35a   :  { %1247 = vmatpush1.bf16.msra.mxu0 %v752_v35 }
 0x35b   :  { %1248 = vmatprep.subr.bf16.mxu0 %v755_v44 }
 0x35e   :  { %1249 = vmatpush1.bf16.msra.mxu0 %v754_v2 }
 0x35f   :  { %1250 = vmatprep.subr.bf16.mxu0 %v757_v41 }
 0x362   :  { %1251 = vmatpush1.bf16.msra.mxu0 %v756_v47 }
 0x363   :  { %1252 = vmatprep.subr.bf16.mxu0 %v759_v22 }
 0x366   :  { %1253 = vmatpush1.bf16.msra.mxu0 %v758_v31 }
 0x367   :  { %1254 = vmatprep.subr.bf16.mxu0 %v761_v8 }
 0x36a   :  { %1255 = vmatpush1.bf16.msra.mxu0 %v760_v59 }
 0x36b   :  { %1256 = vmatprep.subr.bf16.mxu0 %v763_v5 }
 0x36e   :  { %1257 = vmatpush1.bf16.msra.mxu0 %v762_v14 }
 0x36f   :  { %1258 = vmatprep.subr.bf16.mxu0 %v765_v60 }
 0x372   :  { %1259 = vmatpush1.bf16.msra.mxu0 %v764_v11 }
 0x373   :  { %1260 = vmatprep.subr.bf16.mxu0 %v767_v20 }
 0x376   :  { %1261 = vmatpush1.bf16.msra.mxu0 %v766_v4 }
 0x377   :  { %1262 = vmatprep.subr.bf16.mxu0 %v769_v17 }
 0x37a   :  { %1263 = vmatpush1.bf16.msra.mxu0 %v768_v26 }
 0x37b   :  { %1264 = vmatprep.subr.bf16.mxu0 %v771_v13 }
 0x37e   :  { %1265 = vmatpush1.bf16.msra.mxu0 %v770_v9 }
 0x37f   :  { %1266 = vmatprep.subr.bf16.mxu0 %v773_v18 }
 0x382   :  { %1267 = vmatpush1.bf16.msra.mxu0 %v772_v23 }
 0x383   :  { %1268 = vmatprep.subr.bf16.mxu0 %v775_v32 }
 0x386   :  { %1269 = vmatpush1.bf16.msra.mxu0 %v774_v61 }
 0x389   :  { %1271 = vmatmul.mubr.bf16.vlgmr.msra.gmra.mrb[0].mxu0 %v385_v46 }
 0x45c   :  { %v1272_v33 = vpop.f32.mrb[0].mxu0 }
 0x45d   :  { %v7635_v42 = vadd.f32 %v1272_v33, %v780_v19  ;;  %v1274_v63 = vpop.f32.mrb[1].mxu0 }
 0x45e   :  { %v7636_v39 = vadd.f32 %v1274_v63, %v784_v62  ;;  %v1276_v40 = vpop.f32.mrb[2].mxu0 }
 0x45f   :  { %v1279_v46 = vmax.f32 %v7635_v42, 0.0  ;;  %v1277_v45 = vpop.f32.mrb[3].mxu0 }
 0x460   :  { %v1280_v1 = vmax.f32 %v7636_v39, 0.0 }
 0x461   :  { %v8592_v7 = vpack.c.bf16 %v1279_v46, %v1279_v46 }
 0x462   :  { %v8594_v48 = vpack.c.bf16 %v1280_v1, %v1280_v1 }
 0x463   :  { %8077 = dma.done.wait [#allocation12 + $0x1], 8192 }
 0x464   :  { %8078 = vsyncadd [#allocation12 + $0x1], 4294959104  ;;  %1405 = vmatprep.mubr.bf16.mxu1 %v8594_v48  ;;  %v1289_v49 = vld [vmem:[#allocation3 + $0x8] sm:$0xff]  ;;  %v1288_v50 = vld [vmem:[#allocation3] sm:$0xff] }
 0x465   :  { %v1293_v51 = vld [vmem:[#allocation3 + $0x28] sm:$0xff]  ;;  %1373 = vmatprep.subr.bf16.mxu1 %v1289_v49  ;;  %v1292_v52 = vld [vmem:[#allocation3 + $0x20] sm:$0xff]  ;;  %v1291_v59 = vld [vmem:[#allocation3 + $0x18] sm:$0xff] }
 0x466   :  { %1374 = vmatpush1.bf16.msra.mxu1 %v1288_v50  ;;  %v1297_v21 = vld [vmem:[#allocation3 + $0x48] sm:$0xff]  ;;  %v1296_v30 = vld [vmem:[#allocation3 + $0x40] sm:$0xff]  ;;  %v1290_v5 = vld [vmem:[#allocation3 + $0x10] sm:$0xff] }
 0x467   :  { %1375 = vmatprep.subr.bf16.mxu1 %v1293_v51  ;;  %v1301_v0 = vld [vmem:[#allocation3 + $0x68] sm:$0xff]  ;;  %v1300_v27 = vld [vmem:[#allocation3 + $0x60] sm:$0xff]  ;;  %v1295_v14 = vld [vmem:[#allocation3 + $0x38] sm:$0xff] }
 0x468   :  { %v1305_v36 = vld [vmem:[#allocation3 + $0x88] sm:$0xff]  ;;  %v1304_v6 = vld [vmem:[#allocation3 + $0x80] sm:$0xff]  ;;  %v1294_v60 = vld [vmem:[#allocation3 + $0x30] sm:$0xff] }
 0x469   :  { %v1309_v53 = vld [vmem:[#allocation3 + $0xa8] sm:$0xff]  ;;  %v1308_v3 = vld [vmem:[#allocation3 + $0xa0] sm:$0xff]  ;;  %v1299_v11 = vld [vmem:[#allocation3 + $0x58] sm:$0xff] }
 0x46a   :  { %1376 = vmatpush1.bf16.msra.mxu1 %v1292_v52  ;;  %v1313_v12 = vld [vmem:[#allocation3 + $0xc8] sm:$0xff]  ;;  %v1312_v54 = vld [vmem:[#allocation3 + $0xc0] sm:$0xff]  ;;  %v1298_v20 = vld [vmem:[#allocation3 + $0x50] sm:$0xff] }
 0x46b   :  { %1377 = vmatprep.subr.bf16.mxu1 %v1297_v21  ;;  %v1317_v55 = vld [vmem:[#allocation3 + $0xe8] sm:$0xff]  ;;  %v1316_v56 = vld [vmem:[#allocation3 + $0xe0] sm:$0xff]  ;;  %v1303_v4 = vld [vmem:[#allocation3 + $0x78] sm:$0xff] }
 0x46c   :  { %v1321_v57 = vld [vmem:[#allocation3 + $0x108] sm:$0xff]  ;;  %v1320_v58 = vld [vmem:[#allocation3 + $0x100] sm:$0xff]  ;;  %v1302_v17 = vld [vmem:[#allocation3 + $0x70] sm:$0xff] }
 0x46d   :  { %v1325_v28 = vld [vmem:[#allocation3 + $0x128] sm:$0xff]  ;;  %v1324_v37 = vld [vmem:[#allocation3 + $0x120] sm:$0xff]  ;;  %v1307_v26 = vld [vmem:[#allocation3 + $0x98] sm:$0xff] }
 0x46e   :  { %1378 = vmatpush1.bf16.msra.mxu1 %v1296_v30  ;;  %v1329_v16 = vld [vmem:[#allocation3 + $0x148] sm:$0xff]  ;;  %v1328_v34 = vld [vmem:[#allocation3 + $0x140] sm:$0xff]  ;;  %v1306_v13 = vld [vmem:[#allocation3 + $0x90] sm:$0xff] }
 0x46f   :  { %1379 = vmatprep.subr.bf16.mxu1 %v1301_v0  ;;  %v1333_v43 = vld [vmem:[#allocation3 + $0x168] sm:$0xff]  ;;  %v1332_v25 = vld [vmem:[#allocation3 + $0x160] sm:$0xff]  ;;  %v1311_v9 = vld [vmem:[#allocation3 + $0xb8] sm:$0xff] }
 0x470   :  { %v1337_v35 = vld [vmem:[#allocation3 + $0x188] sm:$0xff]  ;;  %v1336_v44 = vld [vmem:[#allocation3 + $0x180] sm:$0xff]  ;;  %v1310_v18 = vld [vmem:[#allocation3 + $0xb0] sm:$0xff] }
 0x471   :  { %v1341_v2 = vld [vmem:[#allocation3 + $0x1a8] sm:$0xff]  ;;  %v1340_v41 = vld [vmem:[#allocation3 + $0x1a0] sm:$0xff]  ;;  %v1315_v23 = vld [vmem:[#allocation3 + $0xd8] sm:$0xff] }
 0x472   :  { %1380 = vmatpush1.bf16.msra.mxu1 %v1300_v27  ;;  %v1345_v47 = vld [vmem:[#allocation3 + $0x1c8] sm:$0xff]  ;;  %v1344_v22 = vld [vmem:[#allocation3 + $0x1c0] sm:$0xff]  ;;  %v1314_v32 = vld [vmem:[#allocation3 + $0xd0] sm:$0xff] }
 0x473   :  { %1381 = vmatprep.subr.bf16.mxu1 %v1305_v36  ;;  %v1349_v31 = vld [vmem:[#allocation3 + $0x1e8] sm:$0xff]  ;;  %v1348_v8 = vld [vmem:[#allocation3 + $0x1e0] sm:$0xff]  ;;  %v1319_v61 = vld [vmem:[#allocation3 + $0xf8] sm:$0xff] }
 0x474   :  { %v1318_v29 = vld [vmem:[#allocation3 + $0xf0] sm:$0xff]  ;;  %v1323_v24 = vld [vmem:[#allocation3 + $0x118] sm:$0xff]  ;;  %v1287_v21 = vld [vmem:[#allocation13 + $0x2] sm:$0xf] }
 0x475   :  { %v1322_v19 = vld [vmem:[#allocation3 + $0x110] sm:$0xff]  ;;  %v1327_v62 = vld [vmem:[#allocation3 + $0x138] sm:$0xff]  ;;  %v1356_v30 = vrot.slane %v1287_v21, %v8585_v15  ;;  %v1360_v0 = vrot.slane %v1287_v21, %v8588_v10 }
 0x476   :  { %1382 = vmatpush1.bf16.msra.mxu1 %v1304_v6  ;;  %v1326_v33 = vld [vmem:[#allocation3 + $0x130] sm:$0xff]  ;;  %v1331_v42 = vld [vmem:[#allocation3 + $0x158] sm:$0xff] }
 0x477   :  { %1383 = vmatprep.subr.bf16.mxu1 %v1309_v53  ;;  %v1330_v63 = vld [vmem:[#allocation3 + $0x150] sm:$0xff]  ;;  %v1335_v39 = vld [vmem:[#allocation3 + $0x178] sm:$0xff] }
 0x478   :  { %v1334_v40 = vld [vmem:[#allocation3 + $0x170] sm:$0xff]  ;;  %v1339_v46 = vld [vmem:[#allocation3 + $0x198] sm:$0xff] }
 0x479   :  { %v1338_v45 = vld [vmem:[#allocation3 + $0x190] sm:$0xff]  ;;  %v1343_v1 = vld [vmem:[#allocation3 + $0x1b8] sm:$0xff] }
 0x47a   :  { %1384 = vmatpush1.bf16.msra.mxu1 %v1308_v3  ;;  %v1347_v49 = vld [vmem:[#allocation3 + $0x1d8] sm:$0xff]  ;;  %v1346_v50 = vld [vmem:[#allocation3 + $0x1d0] sm:$0xff] }
 0x47b   :  { %1385 = vmatprep.subr.bf16.mxu1 %v1313_v12  ;;  %v1351_v51 = vld [vmem:[#allocation3 + $0x1f8] sm:$0xff]  ;;  %v1350_v52 = vld [vmem:[#allocation3 + $0x1f0] sm:$0xff] }
 0x47e   :  { %1386 = vmatpush1.bf16.msra.mxu1 %v1312_v54 }
 0x47f   :  { %1387 = vmatprep.subr.bf16.mxu1 %v1317_v55 }
 0x482   :  { %1388 = vmatpush1.bf16.msra.mxu1 %v1316_v56 }
 0x483   :  { %1389 = vmatprep.subr.bf16.mxu1 %v1321_v57 }
 0x486   :  { %1390 = vmatpush1.bf16.msra.mxu1 %v1320_v58  ;;  %v8607_v58 = vsub.s32 2, %v8582_v38 }
 0x487   :  { %1391 = vmatprep.subr.bf16.mxu1 %v1325_v28 }
 0x488   :  { %v1364_v28 = vrot.slane %v1287_v21, %v8607_v58 }
 0x48a   :  { %1392 = vmatpush1.bf16.msra.mxu1 %v1324_v37 }
 0x48b   :  { %1393 = vmatprep.subr.bf16.mxu1 %v1329_v16 }
 0x48e   :  { %1394 = vmatpush1.bf16.msra.mxu1 %v1328_v34 }
 0x48f   :  { %1395 = vmatprep.subr.bf16.mxu1 %v1333_v43 }
 0x492   :  { %1396 = vmatpush1.bf16.msra.mxu1 %v1332_v25 }
 0x493   :  { %1397 = vmatprep.subr.bf16.mxu1 %v1337_v35 }
 0x496   :  { %1398 = vmatpush1.bf16.msra.mxu1 %v1336_v44 }
 0x497   :  { %1399 = vmatprep.subr.bf16.mxu1 %v1341_v2 }
 0x49a   :  { %1400 = vmatpush1.bf16.msra.mxu1 %v1340_v41 }
 0x49b   :  { %1401 = vmatprep.subr.bf16.mxu1 %v1345_v47 }
 0x49e   :  { %1402 = vmatpush1.bf16.msra.mxu1 %v1344_v22 }
 0x49f   :  { %1403 = vmatprep.subr.bf16.mxu1 %v1349_v31 }
 0x4a2   :  { %1404 = vmatpush1.bf16.msra.mxu1 %v1348_v8 }
 0x4a3   :  { %1414 = vmatprep.subr.bf16.mxu1 %v1291_v59 }
 0x4a5   :  { %1406 = vmatmul.mubr.bf16.vlgmr.msra.gmra.mrb[0].mxu1 %v8592_v7 }
 0x4a6   :  { %1415 = vmatpush1.bf16.msra.mxu1 %v1290_v5  ;;  %1446 = vmatprep.mubr.bf16.mxu1 %v8594_v48  ;;  %v1342_v48 = vld [vmem:[#allocation3 + $0x1b0] sm:$0xff] }
 0x4a7   :  { %1416 = vmatprep.subr.bf16.mxu1 %v1295_v14 }
 0x4aa   :  { %1417 = vmatpush1.bf16.msra.mxu1 %v1294_v60 }
 0x4ab   :  { %1418 = vmatprep.subr.bf16.mxu1 %v1299_v11 }
 0x4ae   :  { %1419 = vmatpush1.bf16.msra.mxu1 %v1298_v20 }
 0x4af   :  { %1420 = vmatprep.subr.bf16.mxu1 %v1303_v4 }
 0x4b2   :  { %1421 = vmatpush1.bf16.msra.mxu1 %v1302_v17 }
 0x4b3   :  { %1422 = vmatprep.subr.bf16.mxu1 %v1307_v26 }
 0x4b6   :  { %1423 = vmatpush1.bf16.msra.mxu1 %v1306_v13 }
 0x4b7   :  { %1424 = vmatprep.subr.bf16.mxu1 %v1311_v9 }
 0x4ba   :  { %1425 = vmatpush1.bf16.msra.mxu1 %v1310_v18 }
 0x4bb   :  { %1426 = vmatprep.subr.bf16.mxu1 %v1315_v23 }
 0x4be   :  { %1427 = vmatpush1.bf16.msra.mxu1 %v1314_v32 }
 0x4bf   :  { %1428 = vmatprep.subr.bf16.mxu1 %v1319_v61 }
 0x4c2   :  { %1429 = vmatpush1.bf16.msra.mxu1 %v1318_v29 }
 0x4c3   :  { %1430 = vmatprep.subr.bf16.mxu1 %v1323_v24 }
 0x4c6   :  { %1431 = vmatpush1.bf16.msra.mxu1 %v1322_v19 }
 0x4c7   :  { %1432 = vmatprep.subr.bf16.mxu1 %v1327_v62 }
 0x4ca   :  { %1433 = vmatpush1.bf16.msra.mxu1 %v1326_v33 }
 0x4cb   :  { %1434 = vmatprep.subr.bf16.mxu1 %v1331_v42 }
 0x4ce   :  { %1435 = vmatpush1.bf16.msra.mxu1 %v1330_v63 }
 0x4cf   :  { %1436 = vmatprep.subr.bf16.mxu1 %v1335_v39 }
 0x4d2   :  { %1437 = vmatpush1.bf16.msra.mxu1 %v1334_v40 }
 0x4d3   :  { %1438 = vmatprep.subr.bf16.mxu1 %v1339_v46 }
 0x4d6   :  { %1439 = vmatpush1.bf16.msra.mxu1 %v1338_v45 }
 0x4d7   :  { %1440 = vmatprep.subr.bf16.mxu1 %v1343_v1 }
 0x4da   :  { %1441 = vmatpush1.bf16.msra.mxu1 %v1342_v48 }
 0x4db   :  { %1442 = vmatprep.subr.bf16.mxu1 %v1347_v49 }
 0x4de   :  { %1443 = vmatpush1.bf16.msra.mxu1 %v1346_v50 }
 0x4df   :  { %1444 = vmatprep.subr.bf16.mxu1 %v1351_v51 }
 0x4e2   :  { %1445 = vmatpush1.bf16.msra.mxu1 %v1350_v52 }
 0x4e5   :  { %1447 = vmatmul.mubr.bf16.vlgmr.msra.gmra.mrb[4].mxu1 %v8592_v7  ;;  %v8610_v7 = vsub.s32 3, %v8582_v38 }
 0x4e7   :  { %v1368_v37 = vrot.slane %v1287_v21, %v8610_v7 }
 0x578   :  { %v1407_v27 = vpop.f32.mrb[0].mxu1 }
 0x579   :  { %v1408_v36 = vadd.f32 %v1407_v27, %v1356_v30  ;;  %v1409_v6 = vpop.f32.mrb[1].mxu1 }
 0x57a   :  { %v1410_v53 = vadd.f32 %v1409_v6, %v1360_v0  ;;  %v1411_v3 = vpop.f32.mrb[2].mxu1 }
 0x57b   :  { %v1455_v12 = vmax.f32 %v1408_v36, 0.0  ;;  %v1412_v54 = vpop.f32.mrb[3].mxu1 }
 0x57c   :  { %v1456_v55 = vmax.f32 %v1410_v53, 0.0 }
 0x57d   :  { %v8602_v56 = vpack.c.bf16 %v1455_v12, %v1455_v12 }
 0x57e   :  { %v8604_v57 = vpack.c.bf16 %v1456_v55, %v1456_v55 }
 0x5b8   :  { %v1448_v16 = vpop.f32.mrb[4].mxu1 }
 0x5b9   :  { %v1449_v34 = vadd.f32 %v1448_v16, %v1364_v28  ;;  %v1450_v43 = vpop.f32.mrb[5].mxu1 }
 0x5ba   :  { %v1451_v25 = vadd.f32 %v1450_v43, %v1368_v37  ;;  %v1452_v35 = vpop.f32.mrb[6].mxu1 }
 0x5bb   :  { %v1457_v44 = vmax.f32 %v1449_v34, 0.0  ;;  %v1453_v2 = vpop.f32.mrb[7].mxu1 }
 0x5bc   :  { %v1458_v41 = vmax.f32 %v1451_v25, 0.0 }
 0x5bd   :  { %v8614_v47 = vpack.c.bf16 %v1457_v44, %v1457_v44 }
 0x5be   :  { %v8616_v22 = vpack.c.bf16 %v1458_v41, %v1458_v41 }
 0x5bf   :  { %8079 = dma.done.wait [#allocation12 + $0x2], 32768 }
 0x5c0   :  { %8080 = vsyncadd [#allocation12 + $0x2], 4294934528  ;;  %1797 = vmatprep.mubr.bf16.mxu1 %v8604_v57  ;;  %v1469_v31 = vld [vmem:[#allocation4 + $0x8] sm:$0xff]  ;;  %v1468_v8 = vld [vmem:[#allocation4] sm:$0xff] }
 0x5c1   :  { %v1477_v59 = vld [vmem:[#allocation4 + $0x48] sm:$0xff]  ;;  %1765 = vmatprep.subr.bf16.mxu1 %v1469_v31  ;;  %v1476_v5 = vld [vmem:[#allocation4 + $0x40] sm:$0xff] }
 0x5c2   :  { %1766 = vmatpush1.bf16.msra.mxu1 %v1468_v8  ;;  %v1485_v14 = vld [vmem:[#allocation4 + $0x88] sm:$0xff]  ;;  %v1484_v60 = vld [vmem:[#allocation4 + $0x80] sm:$0xff] }
 0x5c3   :  { %1767 = vmatprep.subr.bf16.mxu1 %v1477_v59  ;;  %v1493_v11 = vld [vmem:[#allocation4 + $0xc8] sm:$0xff]  ;;  %v1492_v20 = vld [vmem:[#allocation4 + $0xc0] sm:$0xff] }
 0x5c4   :  { %v1501_v4 = vld [vmem:[#allocation4 + $0x108] sm:$0xff]  ;;  %v1500_v17 = vld [vmem:[#allocation4 + $0x100] sm:$0xff] }
 0x5c5   :  { %v1509_v26 = vld [vmem:[#allocation4 + $0x148] sm:$0xff]  ;;  %v1508_v13 = vld [vmem:[#allocation4 + $0x140] sm:$0xff] }
 0x5c6   :  { %1768 = vmatpush1.bf16.msra.mxu1 %v1476_v5  ;;  %v1517_v9 = vld [vmem:[#allocation4 + $0x188] sm:$0xff]  ;;  %v1516_v18 = vld [vmem:[#allocation4 + $0x180] sm:$0xff] }
 0x5c7   :  { %1769 = vmatprep.subr.bf16.mxu1 %v1485_v14  ;;  %v1525_v23 = vld [vmem:[#allocation4 + $0x1c8] sm:$0xff]  ;;  %v1524_v32 = vld [vmem:[#allocation4 + $0x1c0] sm:$0xff] }
 0x5c8   :  { %v1533_v61 = vld [vmem:[#allocation4 + $0x208] sm:$0xff]  ;;  %v1532_v29 = vld [vmem:[#allocation4 + $0x200] sm:$0xff] }
 0x5c9   :  { %v1541_v24 = vld [vmem:[#allocation4 + $0x248] sm:$0xff]  ;;  %v1540_v19 = vld [vmem:[#allocation4 + $0x240] sm:$0xff] }
 0x5ca   :  { %1770 = vmatpush1.bf16.msra.mxu1 %v1484_v60  ;;  %v1549_v62 = vld [vmem:[#allocation4 + $0x288] sm:$0xff]  ;;  %v1548_v33 = vld [vmem:[#allocation4 + $0x280] sm:$0xff] }
 0x5cb   :  { %1771 = vmatprep.subr.bf16.mxu1 %v1493_v11  ;;  %v1557_v42 = vld [vmem:[#allocation4 + $0x2c8] sm:$0xff]  ;;  %v1556_v63 = vld [vmem:[#allocation4 + $0x2c0] sm:$0xff] }
 0x5cc   :  { %v1565_v39 = vld [vmem:[#allocation4 + $0x308] sm:$0xff]  ;;  %v1564_v40 = vld [vmem:[#allocation4 + $0x300] sm:$0xff] }
 0x5cd   :  { %v1573_v46 = vld [vmem:[#allocation4 + $0x348] sm:$0xff]  ;;  %v1572_v45 = vld [vmem:[#allocation4 + $0x340] sm:$0xff] }
 0x5ce   :  { %1772 = vmatpush1.bf16.msra.mxu1 %v1492_v20  ;;  %v1581_v1 = vld [vmem:[#allocation4 + $0x388] sm:$0xff]  ;;  %v1580_v48 = vld [vmem:[#allocation4 + $0x380] sm:$0xff] }
 0x5cf   :  { %1773 = vmatprep.subr.bf16.mxu1 %v1501_v4  ;;  %v1589_v49 = vld [vmem:[#allocation4 + $0x3c8] sm:$0xff]  ;;  %v1588_v50 = vld [vmem:[#allocation4 + $0x3c0] sm:$0xff] }
 0x5d0   :  { %v1597_v51 = vld [vmem:[#allocation4 + $0x408] sm:$0xff]  ;;  %v1596_v52 = vld [vmem:[#allocation4 + $0x400] sm:$0xff] }
 0x5d1   :  { %v1605_v21 = vld [vmem:[#allocation4 + $0x448] sm:$0xff]  ;;  %v1604_v30 = vld [vmem:[#allocation4 + $0x440] sm:$0xff] }
 0x5d2   :  { %1774 = vmatpush1.bf16.msra.mxu1 %v1500_v17  ;;  %v1613_v0 = vld [vmem:[#allocation4 + $0x488] sm:$0xff]  ;;  %v1612_v27 = vld [vmem:[#allocation4 + $0x480] sm:$0xff]  ;;  %v1471_v17 = vld [vmem:[#allocation4 + $0x18] sm:$0xff] }
 0x5d3   :  { %1775 = vmatprep.subr.bf16.mxu1 %v1509_v26  ;;  %v1621_v36 = vld [vmem:[#allocation4 + $0x4c8] sm:$0xff]  ;;  %v1620_v6 = vld [vmem:[#allocation4 + $0x4c0] sm:$0xff]  ;;  %v1470_v26 = vld [vmem:[#allocation4 + $0x10] sm:$0xff] }
 0x5d4   :  { %v1629_v53 = vld [vmem:[#allocation4 + $0x508] sm:$0xff]  ;;  %v1628_v3 = vld [vmem:[#allocation4 + $0x500] sm:$0xff] }
 0x5d5   :  { %v1637_v12 = vld [vmem:[#allocation4 + $0x548] sm:$0xff]  ;;  %v1636_v54 = vld [vmem:[#allocation4 + $0x540] sm:$0xff] }
 0x5d6   :  { %1776 = vmatpush1.bf16.msra.mxu1 %v1508_v13  ;;  %v1645_v55 = vld [vmem:[#allocation4 + $0x588] sm:$0xff]  ;;  %v1644_v28 = vld [vmem:[#allocation4 + $0x580] sm:$0xff]  ;;  %v1479_v13 = vld [vmem:[#allocation4 + $0x58] sm:$0xff] }
 0x5d7   :  { %1777 = vmatprep.subr.bf16.mxu1 %v1517_v9  ;;  %v1653_v37 = vld [vmem:[#allocation4 + $0x5c8] sm:$0xff]  ;;  %v1652_v16 = vld [vmem:[#allocation4 + $0x5c0] sm:$0xff]  ;;  %v1478_v9 = vld [vmem:[#allocation4 + $0x50] sm:$0xff] }
 0x5d8   :  { %v1661_v34 = vld [vmem:[#allocation4 + $0x608] sm:$0xff]  ;;  %v1660_v43 = vld [vmem:[#allocation4 + $0x600] sm:$0xff] }
 0x5d9   :  { %v1669_v25 = vld [vmem:[#allocation4 + $0x648] sm:$0xff]  ;;  %v1668_v35 = vld [vmem:[#allocation4 + $0x640] sm:$0xff] }
 0x5da   :  { %1778 = vmatpush1.bf16.msra.mxu1 %v1516_v18  ;;  %v1677_v44 = vld [vmem:[#allocation4 + $0x688] sm:$0xff]  ;;  %v1676_v2 = vld [vmem:[#allocation4 + $0x680] sm:$0xff]  ;;  %v1487_v18 = vld [vmem:[#allocation4 + $0x98] sm:$0xff] }
 0x5db   :  { %1779 = vmatprep.subr.bf16.mxu1 %v1525_v23  ;;  %v1685_v41 = vld [vmem:[#allocation4 + $0x6c8] sm:$0xff]  ;;  %v1684_v31 = vld [vmem:[#allocation4 + $0x6c0] sm:$0xff]  ;;  %v1486_v23 = vld [vmem:[#allocation4 + $0x90] sm:$0xff] }
 0x5dc   :  { %v1693_v8 = vld [vmem:[#allocation4 + $0x708] sm:$0xff]  ;;  %v1692_v59 = vld [vmem:[#allocation4 + $0x700] sm:$0xff] }
 0x5dd   :  { %v1701_v5 = vld [vmem:[#allocation4 + $0x748] sm:$0xff]  ;;  %v1700_v14 = vld [vmem:[#allocation4 + $0x740] sm:$0xff] }
 0x5de   :  { %1780 = vmatpush1.bf16.msra.mxu1 %v1524_v32  ;;  %v1709_v60 = vld [vmem:[#allocation4 + $0x788] sm:$0xff]  ;;  %v1708_v11 = vld [vmem:[#allocation4 + $0x780] sm:$0xff]  ;;  %v1495_v32 = vld [vmem:[#allocation4 + $0xd8] sm:$0xff] }
 0x5df   :  { %1781 = vmatprep.subr.bf16.mxu1 %v1533_v61  ;;  %v1717_v20 = vld [vmem:[#allocation4 + $0x7c8] sm:$0xff]  ;;  %v1716_v4 = vld [vmem:[#allocation4 + $0x7c0] sm:$0xff]  ;;  %v1494_v61 = vld [vmem:[#allocation4 + $0xd0] sm:$0xff] }
 0x5e2   :  { %1782 = vmatpush1.bf16.msra.mxu1 %v1532_v29  ;;  %v1503_v29 = vld [vmem:[#allocation4 + $0x118] sm:$0xff] }
 0x5e3   :  { %1783 = vmatprep.subr.bf16.mxu1 %v1541_v24  ;;  %v1502_v24 = vld [vmem:[#allocation4 + $0x110] sm:$0xff] }
 0x5e6   :  { %1784 = vmatpush1.bf16.msra.mxu1 %v1540_v19  ;;  %v1511_v19 = vld [vmem:[#allocation4 + $0x158] sm:$0xff] }
 0x5e7   :  { %1785 = vmatprep.subr.bf16.mxu1 %v1549_v62  ;;  %v1510_v62 = vld [vmem:[#allocation4 + $0x150] sm:$0xff] }
 0x5ea   :  { %1786 = vmatpush1.bf16.msra.mxu1 %v1548_v33  ;;  %v1519_v33 = vld [vmem:[#allocation4 + $0x198] sm:$0xff] }
 0x5eb   :  { %1787 = vmatprep.subr.bf16.mxu1 %v1557_v42  ;;  %v1518_v42 = vld [vmem:[#allocation4 + $0x190] sm:$0xff] }
 0x5ee   :  { %1788 = vmatpush1.bf16.msra.mxu1 %v1556_v63  ;;  %v1527_v63 = vld [vmem:[#allocation4 + $0x1d8] sm:$0xff] }
 0x5ef   :  { %1789 = vmatprep.subr.bf16.mxu1 %v1565_v39  ;;  %v1526_v39 = vld [vmem:[#allocation4 + $0x1d0] sm:$0xff] }
 0x5f2   :  { %1790 = vmatpush1.bf16.msra.mxu1 %v1564_v40  ;;  %v1535_v40 = vld [vmem:[#allocation4 + $0x218] sm:$0xff] }
 0x5f3   :  { %1791 = vmatprep.subr.bf16.mxu1 %v1573_v46  ;;  %v1534_v46 = vld [vmem:[#allocation4 + $0x210] sm:$0xff] }
 0x5f6   :  { %1792 = vmatpush1.bf16.msra.mxu1 %v1572_v45  ;;  %v1543_v45 = vld [vmem:[#allocation4 + $0x258] sm:$0xff] }
 0x5f7   :  { %1793 = vmatprep.subr.bf16.mxu1 %v1581_v1  ;;  %v1542_v1 = vld [vmem:[#allocation4 + $0x250] sm:$0xff] }
 0x5fa   :  { %1794 = vmatpush1.bf16.msra.mxu1 %v1580_v48  ;;  %v1551_v48 = vld [vmem:[#allocation4 + $0x298] sm:$0xff] }
 0x5fb   :  { %1795 = vmatprep.subr.bf16.mxu1 %v1589_v49  ;;  %v1550_v49 = vld [vmem:[#allocation4 + $0x290] sm:$0xff] }
 0x5fe   :  { %1796 = vmatpush1.bf16.msra.mxu1 %v1588_v50  ;;  %v1559_v50 = vld [vmem:[#allocation4 + $0x2d8] sm:$0xff] }
 0x5ff   :  { %1806 = vmatprep.subr.bf16.mxu1 %v1597_v51  ;;  %v1558_v51 = vld [vmem:[#allocation4 + $0x2d0] sm:$0xff] }
 0x601   :  { %1798 = vmatmul.mubr.bf16.vlgmr.msra.gmra.mrb[8].mxu1 %v8602_v56 }
 0x602   :  { %1807 = vmatpush1.bf16.msra.mxu1 %v1596_v52  ;;  %1838 = vmatprep.mubr.bf16.mxu1 %v8616_v22  ;;  %v1567_v52 = vld [vmem:[#allocation4 + $0x318] sm:$0xff] }
 0x603   :  { %1808 = vmatprep.subr.bf16.mxu1 %v1605_v21  ;;  %v1566_v21 = vld [vmem:[#allocation4 + $0x310] sm:$0xff] }
 0x606   :  { %1809 = vmatpush1.bf16.msra.mxu1 %v1604_v30  ;;  %v1575_v30 = vld [vmem:[#allocation4 + $0x358] sm:$0xff] }
 0x607   :  { %1810 = vmatprep.subr.bf16.mxu1 %v1613_v0  ;;  %v1574_v0 = vld [vmem:[#allocation4 + $0x350] sm:$0xff] }
 0x60a   :  { %1811 = vmatpush1.bf16.msra.mxu1 %v1612_v27  ;;  %v1583_v27 = vld [vmem:[#allocation4 + $0x398] sm:$0xff] }
 0x60b   :  { %1812 = vmatprep.subr.bf16.mxu1 %v1621_v36  ;;  %v1582_v36 = vld [vmem:[#allocation4 + $0x390] sm:$0xff] }
 0x60e   :  { %1813 = vmatpush1.bf16.msra.mxu1 %v1620_v6  ;;  %v1591_v6 = vld [vmem:[#allocation4 + $0x3d8] sm:$0xff] }
 0x60f   :  { %1814 = vmatprep.subr.bf16.mxu1 %v1629_v53  ;;  %v1590_v53 = vld [vmem:[#allocation4 + $0x3d0] sm:$0xff] }
 0x612   :  { %1815 = vmatpush1.bf16.msra.mxu1 %v1628_v3  ;;  %v1599_v3 = vld [vmem:[#allocation4 + $0x418] sm:$0xff] }
 0x613   :  { %1816 = vmatprep.subr.bf16.mxu1 %v1637_v12  ;;  %v1598_v12 = vld [vmem:[#allocation4 + $0x410] sm:$0xff] }
 0x616   :  { %1817 = vmatpush1.bf16.msra.mxu1 %v1636_v54  ;;  %v1607_v54 = vld [vmem:[#allocation4 + $0x458] sm:$0xff] }
 0x617   :  { %1818 = vmatprep.subr.bf16.mxu1 %v1645_v55  ;;  %v1606_v55 = vld [vmem:[#allocation4 + $0x450] sm:$0xff] }
 0x61a   :  { %1819 = vmatpush1.bf16.msra.mxu1 %v1644_v28  ;;  %v1615_v28 = vld [vmem:[#allocation4 + $0x498] sm:$0xff] }
 0x61b   :  { %1820 = vmatprep.subr.bf16.mxu1 %v1653_v37  ;;  %v1614_v37 = vld [vmem:[#allocation4 + $0x490] sm:$0xff] }
 0x61e   :  { %1821 = vmatpush1.bf16.msra.mxu1 %v1652_v16  ;;  %v1623_v16 = vld [vmem:[#allocation4 + $0x4d8] sm:$0xff] }
 0x61f   :  { %1822 = vmatprep.subr.bf16.mxu1 %v1661_v34  ;;  %v1622_v34 = vld [vmem:[#allocation4 + $0x4d0] sm:$0xff] }
 0x622   :  { %1823 = vmatpush1.bf16.msra.mxu1 %v1660_v43  ;;  %v1631_v43 = vld [vmem:[#allocation4 + $0x518] sm:$0xff] }
 0x623   :  { %1824 = vmatprep.subr.bf16.mxu1 %v1669_v25  ;;  %v1630_v25 = vld [vmem:[#allocation4 + $0x510] sm:$0xff] }
 0x626   :  { %1825 = vmatpush1.bf16.msra.mxu1 %v1668_v35  ;;  %v1639_v35 = vld [vmem:[#allocation4 + $0x558] sm:$0xff] }
 0x627   :  { %1826 = vmatprep.subr.bf16.mxu1 %v1677_v44  ;;  %v1638_v44 = vld [vmem:[#allocation4 + $0x550] sm:$0xff] }
 0x62a   :  { %1827 = vmatpush1.bf16.msra.mxu1 %v1676_v2  ;;  %v1647_v2 = vld [vmem:[#allocation4 + $0x598] sm:$0xff] }
 0x62b   :  { %1828 = vmatprep.subr.bf16.mxu1 %v1685_v41  ;;  %v1646_v41 = vld [vmem:[#allocation4 + $0x590] sm:$0xff] }
 0x62e   :  { %1829 = vmatpush1.bf16.msra.mxu1 %v1684_v31  ;;  %v1655_v31 = vld [vmem:[#allocation4 + $0x5d8] sm:$0xff] }
 0x62f   :  { %1830 = vmatprep.subr.bf16.mxu1 %v1693_v8  ;;  %v1654_v8 = vld [vmem:[#allocation4 + $0x5d0] sm:$0xff] }
 0x632   :  { %1831 = vmatpush1.bf16.msra.mxu1 %v1692_v59  ;;  %v1663_v59 = vld [vmem:[#allocation4 + $0x618] sm:$0xff] }
 0x633   :  { %1832 = vmatprep.subr.bf16.mxu1 %v1701_v5  ;;  %v1662_v5 = vld [vmem:[#allocation4 + $0x610] sm:$0xff] }
 0x636   :  { %1833 = vmatpush1.bf16.msra.mxu1 %v1700_v14  ;;  %v1671_v14 = vld [vmem:[#allocation4 + $0x658] sm:$0xff] }
 0x637   :  { %1834 = vmatprep.subr.bf16.mxu1 %v1709_v60  ;;  %v1670_v60 = vld [vmem:[#allocation4 + $0x650] sm:$0xff] }
 0x63a   :  { %1835 = vmatpush1.bf16.msra.mxu1 %v1708_v11  ;;  %v1679_v11 = vld [vmem:[#allocation4 + $0x698] sm:$0xff] }
 0x63b   :  { %1836 = vmatprep.subr.bf16.mxu1 %v1717_v20  ;;  %v1678_v20 = vld [vmem:[#allocation4 + $0x690] sm:$0xff] }
 0x63e   :  { %1837 = vmatpush1.bf16.msra.mxu1 %v1716_v4  ;;  %v1687_v4 = vld [vmem:[#allocation4 + $0x6d8] sm:$0xff] }
 0x63f   :  { %1847 = vmatprep.subr.bf16.mxu1 %v1471_v17  ;;  %v1686_v17 = vld [vmem:[#allocation4 + $0x6d0] sm:$0xff] }
 0x641   :  { %1839 = vmatmul.mubr.bf16.vlgmr.msra.gmra.mrb[8].mxu1 %v8614_v47 }
 0x642   :  { %1848 = vmatpush1.bf16.msra.mxu1 %v1470_v26  ;;  %1879 = vmatprep.mubr.bf16.mxu1 %v8604_v57  ;;  %v1695_v26 = vld [vmem:[#allocation4 + $0x718] sm:$0xff] }
 0x643   :  { %1849 = vmatprep.subr.bf16.mxu1 %v1479_v13  ;;  %v1694_v13 = vld [vmem:[#allocation4 + $0x710] sm:$0xff] }
 0x646   :  { %1850 = vmatpush1.bf16.msra.mxu1 %v1478_v9  ;;  %v1703_v9 = vld [vmem:[#allocation4 + $0x758] sm:$0xff] }
 0x647   :  { %1851 = vmatprep.subr.bf16.mxu1 %v1487_v18  ;;  %v1702_v18 = vld [vmem:[#allocation4 + $0x750] sm:$0xff] }
 0x64a   :  { %1852 = vmatpush1.bf16.msra.mxu1 %v1486_v23  ;;  %v1711_v23 = vld [vmem:[#allocation4 + $0x798] sm:$0xff] }
 0x64b   :  { %1853 = vmatprep.subr.bf16.mxu1 %v1495_v32  ;;  %v1710_v32 = vld [vmem:[#allocation4 + $0x790] sm:$0xff] }
 0x64e   :  { %1854 = vmatpush1.bf16.msra.mxu1 %v1494_v61  ;;  %v1719_v61 = vld [vmem:[#allocation4 + $0x7d8] sm:$0xff] }
 0x64f   :  { %1855 = vmatprep.subr.bf16.mxu1 %v1503_v29  ;;  %v1718_v29 = vld [vmem:[#allocation4 + $0x7d0] sm:$0xff] }
 0x652   :  { %1856 = vmatpush1.bf16.msra.mxu1 %v1502_v24  ;;  %v1473_v24 = vld [vmem:[#allocation4 + $0x28] sm:$0xff] }
 0x653   :  { %1857 = vmatprep.subr.bf16.mxu1 %v1511_v19  ;;  %v1472_v19 = vld [vmem:[#allocation4 + $0x20] sm:$0xff] }
 0x656   :  { %1858 = vmatpush1.bf16.msra.mxu1 %v1510_v62  ;;  %v1481_v62 = vld [vmem:[#allocation4 + $0x68] sm:$0xff] }
 0x657   :  { %1859 = vmatprep.subr.bf16.mxu1 %v1519_v33  ;;  %v1480_v33 = vld [vmem:[#allocation4 + $0x60] sm:$0xff] }
 0x65a   :  { %1860 = vmatpush1.bf16.msra.mxu1 %v1518_v42  ;;  %v1489_v42 = vld [vmem:[#allocation4 + $0xa8] sm:$0xff] }
 0x65b   :  { %1861 = vmatprep.subr.bf16.mxu1 %v1527_v63  ;;  %v1488_v63 = vld [vmem:[#allocation4 + $0xa0] sm:$0xff] }
 0x65e   :  { %1862 = vmatpush1.bf16.msra.mxu1 %v1526_v39  ;;  %v1497_v39 = vld [vmem:[#allocation4 + $0xe8] sm:$0xff] }
 0x65f   :  { %1863 = vmatprep.subr.bf16.mxu1 %v1535_v40  ;;  %v1496_v40 = vld [vmem:[#allocation4 + $0xe0] sm:$0xff] }
 0x662   :  { %1864 = vmatpush1.bf16.msra.mxu1 %v1534_v46  ;;  %v1505_v46 = vld [vmem:[#allocation4 + $0x128] sm:$0xff] }
 0x663   :  { %1865 = vmatprep.subr.bf16.mxu1 %v1543_v45  ;;  %v1504_v45 = vld [vmem:[#allocation4 + $0x120] sm:$0xff] }
 0x666   :  { %1866 = vmatpush1.bf16.msra.mxu1 %v1542_v1  ;;  %v1513_v1 = vld [vmem:[#allocation4 + $0x168] sm:$0xff] }
 0x667   :  { %1867 = vmatprep.subr.bf16.mxu1 %v1551_v48  ;;  %v1512_v48 = vld [vmem:[#allocation4 + $0x160] sm:$0xff] }
 0x66a   :  { %1868 = vmatpush1.bf16.msra.mxu1 %v1550_v49  ;;  %v1521_v49 = vld [vmem:[#allocation4 + $0x1a8] sm:$0xff] }
 0x66b   :  { %1869 = vmatprep.subr.bf16.mxu1 %v1559_v50  ;;  %v1520_v50 = vld [vmem:[#allocation4 + $0x1a0] sm:$0xff] }
 0x66e   :  { %1870 = vmatpush1.bf16.msra.mxu1 %v1558_v51  ;;  %v1529_v51 = vld [vmem:[#allocation4 + $0x1e8] sm:$0xff] }
 0x66f   :  { %1871 = vmatprep.subr.bf16.mxu1 %v1567_v52  ;;  %v1528_v52 = vld [vmem:[#allocation4 + $0x1e0] sm:$0xff] }
 0x672   :  { %1872 = vmatpush1.bf16.msra.mxu1 %v1566_v21  ;;  %v1537_v21 = vld [vmem:[#allocation4 + $0x228] sm:$0xff] }
 0x673   :  { %1873 = vmatprep.subr.bf16.mxu1 %v1575_v30  ;;  %v1536_v30 = vld [vmem:[#allocation4 + $0x220] sm:$0xff] }
 0x676   :  { %1874 = vmatpush1.bf16.msra.mxu1 %v1574_v0  ;;  %v1545_v0 = vld [vmem:[#allocation4 + $0x268] sm:$0xff] }
 0x677   :  { %1875 = vmatprep.subr.bf16.mxu1 %v1583_v27  ;;  %v1544_v27 = vld [vmem:[#allocation4 + $0x260] sm:$0xff] }
 0x67a   :  { %1876 = vmatpush1.bf16.msra.mxu1 %v1582_v36  ;;  %v1553_v36 = vld [vmem:[#allocation4 + $0x2a8] sm:$0xff] }
 0x67b   :  { %1877 = vmatprep.subr.bf16.mxu1 %v1591_v6  ;;  %v1552_v6 = vld [vmem:[#allocation4 + $0x2a0] sm:$0xff] }
 0x67e   :  { %1878 = vmatpush1.bf16.msra.mxu1 %v1590_v53  ;;  %v1561_v53 = vld [vmem:[#allocation4 + $0x2e8] sm:$0xff] }
 0x67f   :  { %1888 = vmatprep.subr.bf16.mxu1 %v1599_v3  ;;  %v1560_v3 = vld [vmem:[#allocation4 + $0x2e0] sm:$0xff] }
 0x681   :  { %1880 = vmatmul.mubr.bf16.vlgmr.msra.gmra.mrb[12].mxu1 %v8602_v56 }
 0x682   :  { %1889 = vmatpush1.bf16.msra.mxu1 %v1598_v12  ;;  %1920 = vmatprep.mubr.bf16.mxu1 %v8616_v22  ;;  %v1569_v12 = vld [vmem:[#allocation4 + $0x328] sm:$0xff] }
 0x683   :  { %1890 = vmatprep.subr.bf16.mxu1 %v1607_v54  ;;  %v1568_v54 = vld [vmem:[#allocation4 + $0x320] sm:$0xff] }
 0x686   :  { %1891 = vmatpush1.bf16.msra.mxu1 %v1606_v55  ;;  %v1577_v55 = vld [vmem:[#allocation4 + $0x368] sm:$0xff] }
 0x687   :  { %1892 = vmatprep.subr.bf16.mxu1 %v1615_v28  ;;  %v1576_v28 = vld [vmem:[#allocation4 + $0x360] sm:$0xff] }
 0x68a   :  { %1893 = vmatpush1.bf16.msra.mxu1 %v1614_v37  ;;  %v1585_v37 = vld [vmem:[#allocation4 + $0x3a8] sm:$0xff] }
 0x68b   :  { %1894 = vmatprep.subr.bf16.mxu1 %v1623_v16  ;;  %v1584_v16 = vld [vmem:[#allocation4 + $0x3a0] sm:$0xff] }
 0x68e   :  { %1895 = vmatpush1.bf16.msra.mxu1 %v1622_v34  ;;  %v1593_v34 = vld [vmem:[#allocation4 + $0x3e8] sm:$0xff] }
 0x68f   :  { %1896 = vmatprep.subr.bf16.mxu1 %v1631_v43  ;;  %v1592_v43 = vld [vmem:[#allocation4 + $0x3e0] sm:$0xff] }
 0x692   :  { %1897 = vmatpush1.bf16.msra.mxu1 %v1630_v25  ;;  %v1601_v25 = vld [vmem:[#allocation4 + $0x428] sm:$0xff] }
 0x693   :  { %1898 = vmatprep.subr.bf16.mxu1 %v1639_v35  ;;  %v1600_v35 = vld [vmem:[#allocation4 + $0x420] sm:$0xff] }
 0x696   :  { %1899 = vmatpush1.bf16.msra.mxu1 %v1638_v44  ;;  %v1609_v44 = vld [vmem:[#allocation4 + $0x468] sm:$0xff] }
 0x697   :  { %1900 = vmatprep.subr.bf16.mxu1 %v1647_v2  ;;  %v1608_v2 = vld [vmem:[#allocation4 + $0x460] sm:$0xff] }
 0x69a   :  { %1901 = vmatpush1.bf16.msra.mxu1 %v1646_v41  ;;  %v1617_v41 = vld [vmem:[#allocation4 + $0x4a8] sm:$0xff] }
 0x69b   :  { %1902 = vmatprep.subr.bf16.mxu1 %v1655_v31  ;;  %v1616_v31 = vld [vmem:[#allocation4 + $0x4a0] sm:$0xff] }
 0x69e   :  { %1903 = vmatpush1.bf16.msra.mxu1 %v1654_v8  ;;  %v1625_v8 = vld [vmem:[#allocation4 + $0x4e8] sm:$0xff] }
 0x69f   :  { %1904 = vmatprep.subr.bf16.mxu1 %v1663_v59  ;;  %v1624_v59 = vld [vmem:[#allocation4 + $0x4e0] sm:$0xff] }
 0x6a2   :  { %1905 = vmatpush1.bf16.msra.mxu1 %v1662_v5  ;;  %v1633_v5 = vld [vmem:[#allocation4 + $0x528] sm:$0xff] }
 0x6a3   :  { %1906 = vmatprep.subr.bf16.mxu1 %v1671_v14  ;;  %v8629_v14 = vld [vmem:[#allocation13 + $0x6] sm:$0xff] }
 0x6a6   :  { %1907 = vmatpush1.bf16.msra.mxu1 %v1670_v60  ;;  %v1632_v60 = vld [vmem:[#allocation4 + $0x520] sm:$0xff] }
 0x6a7   :  { %1908 = vmatprep.subr.bf16.mxu1 %v1679_v11  ;;  %v1641_v11 = vld [vmem:[#allocation4 + $0x568] sm:$0xff] }
 0x6aa   :  { %1909 = vmatpush1.bf16.msra.mxu1 %v1678_v20  ;;  %v1728_v20 = vrot.slane %v8629_v14, %v8585_v15 }
 0x6ab   :  { %1910 = vmatprep.subr.bf16.mxu1 %v1687_v4  ;;  %v1732_v4 = vrot.slane %v8629_v14, %v8588_v10 }
 0x6ae   :  { %1911 = vmatpush1.bf16.msra.mxu1 %v1686_v17  ;;  %v1640_v17 = vld [vmem:[#allocation4 + $0x560] sm:$0xff] }
 0x6af   :  { %1912 = vmatprep.subr.bf16.mxu1 %v1695_v26 }
 0x6b2   :  { %1913 = vmatpush1.bf16.msra.mxu1 %v1694_v13  ;;  %v1649_v13 = vld [vmem:[#allocation4 + $0x5a8] sm:$0xff] }
 0x6b3   :  { %1914 = vmatprep.subr.bf16.mxu1 %v1703_v9 }
 0x6b6   :  { %1915 = vmatpush1.bf16.msra.mxu1 %v1702_v18 }
 0x6b7   :  { %1916 = vmatprep.subr.bf16.mxu1 %v1711_v23 }
 0x6ba   :  { %1917 = vmatpush1.bf16.msra.mxu1 %v1710_v32 }
 0x6bb   :  { %1918 = vmatprep.subr.bf16.mxu1 %v1719_v61 }
 0x6be   :  { %1919 = vmatpush1.bf16.msra.mxu1 %v1718_v29 }
 0x6bf   :  { %1929 = vmatprep.subr.bf16.mxu1 %v1473_v24  ;;  %v1648_v24 = vld [vmem:[#allocation4 + $0x5a0] sm:$0xff] }
 0x6c1   :  { %1921 = vmatmul.mubr.bf16.vlgmr.msra.gmra.mrb[12].mxu1 %v8614_v47 }
 0x6c2   :  { %1930 = vmatpush1.bf16.msra.mxu1 %v1472_v19  ;;  %1961 = vmatprep.mubr.bf16.mxu1 %v8604_v57 }
 0x6c3   :  { %1931 = vmatprep.subr.bf16.mxu1 %v1481_v62  ;;  %v1657_v62 = vld [vmem:[#allocation4 + $0x5e8] sm:$0xff] }
 0x6c6   :  { %1932 = vmatpush1.bf16.msra.mxu1 %v1480_v33 }
 0x6c7   :  { %1933 = vmatprep.subr.bf16.mxu1 %v1489_v42 }
 0x6ca   :  { %1934 = vmatpush1.bf16.msra.mxu1 %v1488_v63  ;;  %v1656_v63 = vld [vmem:[#allocation4 + $0x5e0] sm:$0xff] }
 0x6cb   :  { %1935 = vmatprep.subr.bf16.mxu1 %v1497_v39  ;;  %v1665_v39 = vld [vmem:[#allocation4 + $0x628] sm:$0xff] }
 0x6ce   :  { %1936 = vmatpush1.bf16.msra.mxu1 %v1496_v40  ;;  %v1664_v40 = vld [vmem:[#allocation4 + $0x620] sm:$0xff] }
 0x6cf   :  { %1937 = vmatprep.subr.bf16.mxu1 %v1505_v46  ;;  %v1673_v46 = vld [vmem:[#allocation4 + $0x668] sm:$0xff] }
 0x6d2   :  { %1938 = vmatpush1.bf16.msra.mxu1 %v1504_v45  ;;  %v1672_v45 = vld [vmem:[#allocation4 + $0x660] sm:$0xff] }
 0x6d3   :  { %1939 = vmatprep.subr.bf16.mxu1 %v1513_v1  ;;  %v1681_v1 = vld [vmem:[#allocation4 + $0x6a8] sm:$0xff] }
 0x6d6   :  { %1940 = vmatpush1.bf16.msra.mxu1 %v1512_v48  ;;  %v1680_v48 = vld [vmem:[#allocation4 + $0x6a0] sm:$0xff] }
 0x6d7   :  { %1941 = vmatprep.subr.bf16.mxu1 %v1521_v49  ;;  %v1689_v49 = vld [vmem:[#allocation4 + $0x6e8] sm:$0xff] }
 0x6da   :  { %1942 = vmatpush1.bf16.msra.mxu1 %v1520_v50  ;;  %v1688_v50 = vld [vmem:[#allocation4 + $0x6e0] sm:$0xff] }
 0x6db   :  { %1943 = vmatprep.subr.bf16.mxu1 %v1529_v51  ;;  %v1697_v51 = vld [vmem:[#allocation4 + $0x728] sm:$0xff] }
 0x6de   :  { %1944 = vmatpush1.bf16.msra.mxu1 %v1528_v52  ;;  %v1696_v52 = vld [vmem:[#allocation4 + $0x720] sm:$0xff] }
 0x6df   :  { %1945 = vmatprep.subr.bf16.mxu1 %v1537_v21  ;;  %v1705_v21 = vld [vmem:[#allocation4 + $0x768] sm:$0xff] }
 0x6e2   :  { %1946 = vmatpush1.bf16.msra.mxu1 %v1536_v30  ;;  %v1704_v30 = vld [vmem:[#allocation4 + $0x760] sm:$0xff] }
 0x6e3   :  { %1947 = vmatprep.subr.bf16.mxu1 %v1545_v0  ;;  %v1713_v0 = vld [vmem:[#allocation4 + $0x7a8] sm:$0xff] }
 0x6e6   :  { %1948 = vmatpush1.bf16.msra.mxu1 %v1544_v27  ;;  %v1712_v27 = vld [vmem:[#allocation4 + $0x7a0] sm:$0xff] }
 0x6e7   :  { %1949 = vmatprep.subr.bf16.mxu1 %v1553_v36  ;;  %v1721_v36 = vld [vmem:[#allocation4 + $0x7e8] sm:$0xff] }
 0x6ea   :  { %1950 = vmatpush1.bf16.msra.mxu1 %v1552_v6  ;;  %v1720_v6 = vld [vmem:[#allocation4 + $0x7e0] sm:$0xff] }
 0x6eb   :  { %1951 = vmatprep.subr.bf16.mxu1 %v1561_v53  ;;  %v1475_v53 = vld [vmem:[#allocation4 + $0x38] sm:$0xff] }
 0x6ee   :  { %1952 = vmatpush1.bf16.msra.mxu1 %v1560_v3  ;;  %v1474_v3 = vld [vmem:[#allocation4 + $0x30] sm:$0xff] }
 0x6ef   :  { %1953 = vmatprep.subr.bf16.mxu1 %v1569_v12  ;;  %v1483_v12 = vld [vmem:[#allocation4 + $0x78] sm:$0xff] }
 0x6f2   :  { %1954 = vmatpush1.bf16.msra.mxu1 %v1568_v54  ;;  %v1482_v54 = vld [vmem:[#allocation4 + $0x70] sm:$0xff] }
 0x6f3   :  { %1955 = vmatprep.subr.bf16.mxu1 %v1577_v55  ;;  %v1491_v55 = vld [vmem:[#allocation4 + $0xb8] sm:$0xff] }
 0x6f6   :  { %1956 = vmatpush1.bf16.msra.mxu1 %v1576_v28  ;;  %v1490_v28 = vld [vmem:[#allocation4 + $0xb0] sm:$0xff] }
 0x6f7   :  { %1957 = vmatprep.subr.bf16.mxu1 %v1585_v37  ;;  %v1499_v37 = vld [vmem:[#allocation4 + $0xf8] sm:$0xff] }
 0x6fa   :  { %1958 = vmatpush1.bf16.msra.mxu1 %v1584_v16  ;;  %v1498_v16 = vld [vmem:[#allocation4 + $0xf0] sm:$0xff] }
 0x6fb   :  { %1959 = vmatprep.subr.bf16.mxu1 %v1593_v34  ;;  %v1507_v34 = vld [vmem:[#allocation4 + $0x138] sm:$0xff] }
 0x6fe   :  { %1960 = vmatpush1.bf16.msra.mxu1 %v1592_v43  ;;  %v1506_v43 = vld [vmem:[#allocation4 + $0x130] sm:$0xff] }
 0x6ff   :  { %1970 = vmatprep.subr.bf16.mxu1 %v1601_v25  ;;  %v1515_v25 = vld [vmem:[#allocation4 + $0x178] sm:$0xff] }
 0x701   :  { %1962 = vmatmul.mubr.bf16.vlgmr.msra.gmra.mrb[16].mxu1 %v8602_v56 }
 0x702   :  { %1971 = vmatpush1.bf16.msra.mxu1 %v1600_v35  ;;  %2002 = vmatprep.mubr.bf16.mxu1 %v8616_v22  ;;  %v1514_v35 = vld [vmem:[#allocation4 + $0x170] sm:$0xff] }
 0x703   :  { %1972 = vmatprep.subr.bf16.mxu1 %v1609_v44  ;;  %v1523_v44 = vld [vmem:[#allocation4 + $0x1b8] sm:$0xff] }
 0x706   :  { %1973 = vmatpush1.bf16.msra.mxu1 %v1608_v2  ;;  %v1531_v2 = vld [vmem:[#allocation4 + $0x1f8] sm:$0xff] }
 0x707   :  { %1974 = vmatprep.subr.bf16.mxu1 %v1617_v41  ;;  %v1530_v41 = vld [vmem:[#allocation4 + $0x1f0] sm:$0xff] }
 0x70a   :  { %1975 = vmatpush1.bf16.msra.mxu1 %v1616_v31  ;;  %v1539_v31 = vld [vmem:[#allocation4 + $0x238] sm:$0xff] }
 0x70b   :  { %1976 = vmatprep.subr.bf16.mxu1 %v1625_v8  ;;  %v1538_v8 = vld [vmem:[#allocation4 + $0x230] sm:$0xff] }
 0x70e   :  { %1977 = vmatpush1.bf16.msra.mxu1 %v1624_v59  ;;  %v1547_v59 = vld [vmem:[#allocation4 + $0x278] sm:$0xff] }
 0x70f   :  { %1978 = vmatprep.subr.bf16.mxu1 %v1633_v5  ;;  %v1546_v5 = vld [vmem:[#allocation4 + $0x270] sm:$0xff] }
 0x712   :  { %1979 = vmatpush1.bf16.msra.mxu1 %v1632_v60  ;;  %v1555_v60 = vld [vmem:[#allocation4 + $0x2b8] sm:$0xff] }
 0x713   :  { %1980 = vmatprep.subr.bf16.mxu1 %v1641_v11  ;;  %v1554_v11 = vld [vmem:[#allocation4 + $0x2b0] sm:$0xff] }
 0x714   :  { %v1840_v26 = vpop.f32.mrb[8].mxu1 }
 0x715   :  { %v7637_v9 = vadd.f32 %v1840_v26, %v1728_v20  ;;  %v1842_v18 = vpop.f32.mrb[9].mxu1  ;;  %v1563_v20 = vld [vmem:[#allocation4 + $0x2f8] sm:$0xff]  ;;  %v1570_v26 = vld [vmem:[#allocation4 + $0x330] sm:$0xff] }
 0x716   :  { %v7638_v23 = vadd.f32 %v1842_v18, %v1732_v4  ;;  %v1844_v32 = vpop.f32.mrb[10].mxu1  ;;  %1981 = vmatpush1.bf16.msra.mxu1 %v1640_v17  ;;  %v1562_v4 = vld [vmem:[#allocation4 + $0x2f0] sm:$0xff]  ;;  %v1571_v17 = vld [vmem:[#allocation4 + $0x338] sm:$0xff] }
 0x717   :  { %v2093_v61 = vmax.f32 %v7637_v9, 0.0  ;;  %v1845_v29 = vpop.f32.mrb[11].mxu1  ;;  %1982 = vmatprep.subr.bf16.mxu1 %v1649_v13  ;;  %v1579_v13 = vld [vmem:[#allocation4 + $0x378] sm:$0xff]  ;;  %v1578_v9 = vld [vmem:[#allocation4 + $0x370] sm:$0xff] }
 0x718   :  { %v2094_v19 = vmax.f32 %v7638_v23, 0.0  ;;  %v1587_v18 = vld [vmem:[#allocation4 + $0x3b8] sm:$0xff]  ;;  %v1586_v23 = vld [vmem:[#allocation4 + $0x3b0] sm:$0xff] }
 0x719   :  { %v8635_v33 = vpack.c.bf16 %v2093_v61, %v2093_v61  ;;  %v1595_v32 = vld [vmem:[#allocation4 + $0x3f8] sm:$0xff]  ;;  %v1594_v61 = vld [vmem:[#allocation4 + $0x3f0] sm:$0xff] }
 0x71a   :  { %v8637_v42 = vpack.c.bf16 %v2094_v19, %v2094_v19  ;;  %1983 = vmatpush1.bf16.msra.mxu1 %v1648_v24  ;;  %v1603_v29 = vld [vmem:[#allocation4 + $0x438] sm:$0xff]  ;;  %v1602_v24 = vld [vmem:[#allocation4 + $0x430] sm:$0xff] }
 0x71b   :  { %1984 = vmatprep.subr.bf16.mxu1 %v1657_v62  ;;  %v1611_v19 = vld [vmem:[#allocation4 + $0x478] sm:$0xff]  ;;  %v1610_v62 = vld [vmem:[#allocation4 + $0x470] sm:$0xff] }
 0x71e   :  { %1985 = vmatpush1.bf16.msra.mxu1 %v1656_v63  ;;  %v1619_v63 = vld [vmem:[#allocation4 + $0x4b8] sm:$0xff] }
 0x71f   :  { %1986 = vmatprep.subr.bf16.mxu1 %v1665_v39  ;;  %v1618_v39 = vld [vmem:[#allocation4 + $0x4b0] sm:$0xff] }
 0x722   :  { %1987 = vmatpush1.bf16.msra.mxu1 %v1664_v40  ;;  %v1627_v40 = vld [vmem:[#allocation4 + $0x4f8] sm:$0xff] }
 0x723   :  { %1988 = vmatprep.subr.bf16.mxu1 %v1673_v46  ;;  %v1626_v46 = vld [vmem:[#allocation4 + $0x4f0] sm:$0xff] }
 0x726   :  { %1989 = vmatpush1.bf16.msra.mxu1 %v1672_v45  ;;  %v1635_v45 = vld [vmem:[#allocation4 + $0x538] sm:$0xff] }
 0x727   :  { %1990 = vmatprep.subr.bf16.mxu1 %v1681_v1  ;;  %v1634_v1 = vld [vmem:[#allocation4 + $0x530] sm:$0xff] }
 0x72a   :  { %1991 = vmatpush1.bf16.msra.mxu1 %v1680_v48  ;;  %v1643_v48 = vld [vmem:[#allocation4 + $0x578] sm:$0xff] }
 0x72b   :  { %1992 = vmatprep.subr.bf16.mxu1 %v1689_v49  ;;  %v1642_v49 = vld [vmem:[#allocation4 + $0x570] sm:$0xff] }
 0x72e   :  { %1993 = vmatpush1.bf16.msra.mxu1 %v1688_v50 }
 0x72f   :  { %1994 = vmatprep.subr.bf16.mxu1 %v1697_v51  ;;  %v1651_v51 = vld [vmem:[#allocation4 + $0x5b8] sm:$0xff] }
 0x732   :  { %1995 = vmatpush1.bf16.msra.mxu1 %v1696_v52 }
 0x733   :  { %1996 = vmatprep.subr.bf16.mxu1 %v1705_v21 }
 0x736   :  { %1997 = vmatpush1.bf16.msra.mxu1 %v1704_v30 }
 0x737   :  { %1998 = vmatprep.subr.bf16.mxu1 %v1713_v0 }
 0x73a   :  { %1999 = vmatpush1.bf16.msra.mxu1 %v1712_v27 }
 0x73b   :  { %2000 = vmatprep.subr.bf16.mxu1 %v1721_v36 }
 0x73e   :  { %2001 = vmatpush1.bf16.msra.mxu1 %v1720_v6  ;;  %v1650_v6 = vld [vmem:[#allocation4 + $0x5b0] sm:$0xff] }
 0x73f   :  { %2011 = vmatprep.subr.bf16.mxu1 %v1475_v53 }
 0x741   :  { %2003 = vmatmul.mubr.bf16.vlgmr.msra.gmra.mrb[16].mxu1 %v8614_v47 }
 0x742   :  { %2012 = vmatpush1.bf16.msra.mxu1 %v1474_v3  ;;  %2043 = vmatprep.mubr.bf16.mxu1 %v8604_v57  ;;  %v1522_v57 = vld [vmem:[#allocation4 + $0x1b0] sm:$0xff]  ;;  %v1659_v3 = vld [vmem:[#allocation4 + $0x5f8] sm:$0xff] }
 0x743   :  { %2013 = vmatprep.subr.bf16.mxu1 %v1483_v12 }
 0x746   :  { %2014 = vmatpush1.bf16.msra.mxu1 %v1482_v54 }
 0x747   :  { %2015 = vmatprep.subr.bf16.mxu1 %v1491_v55  ;;  %v1658_v55 = vld [vmem:[#allocation4 + $0x5f0] sm:$0xff] }
 0x74a   :  { %2016 = vmatpush1.bf16.msra.mxu1 %v1490_v28  ;;  %v1667_v28 = vld [vmem:[#allocation4 + $0x638] sm:$0xff] }
 0x74b   :  { %2017 = vmatprep.subr.bf16.mxu1 %v1499_v37  ;;  %v1666_v37 = vld [vmem:[#allocation4 + $0x630] sm:$0xff] }
 0x74e   :  { %2018 = vmatpush1.bf16.msra.mxu1 %v1498_v16  ;;  %v1675_v16 = vld [vmem:[#allocation4 + $0x678] sm:$0xff] }
 0x74f   :  { %2019 = vmatprep.subr.bf16.mxu1 %v1507_v34  ;;  %v1674_v34 = vld [vmem:[#allocation4 + $0x670] sm:$0xff] }
 0x752   :  { %2020 = vmatpush1.bf16.msra.mxu1 %v1506_v43  ;;  %v1683_v43 = vld [vmem:[#allocation4 + $0x6b8] sm:$0xff] }
 0x753   :  { %2021 = vmatprep.subr.bf16.mxu1 %v1515_v25  ;;  %v1682_v25 = vld [vmem:[#allocation4 + $0x6b0] sm:$0xff] }
 0x756   :  { %2022 = vmatpush1.bf16.msra.mxu1 %v1514_v35  ;;  %v1691_v35 = vld [vmem:[#allocation4 + $0x6f8] sm:$0xff] }
 0x757   :  { %2023 = vmatprep.subr.bf16.mxu1 %v1523_v44  ;;  %v1690_v44 = vld [vmem:[#allocation4 + $0x6f0] sm:$0xff] }
 0x75a   :  { %2024 = vmatpush1.bf16.msra.mxu1 %v1522_v57  ;;  %v1699_v57 = vld [vmem:[#allocation4 + $0x738] sm:$0xff] }
 0x75b   :  { %2025 = vmatprep.subr.bf16.mxu1 %v1531_v2  ;;  %v1698_v2 = vld [vmem:[#allocation4 + $0x730] sm:$0xff] }
 0x75e   :  { %2026 = vmatpush1.bf16.msra.mxu1 %v1530_v41  ;;  %v1707_v41 = vld [vmem:[#allocation4 + $0x778] sm:$0xff] }
 0x75f   :  { %2027 = vmatprep.subr.bf16.mxu1 %v1539_v31  ;;  %v1706_v31 = vld [vmem:[#allocation4 + $0x770] sm:$0xff] }
 0x762   :  { %2028 = vmatpush1.bf16.msra.mxu1 %v1538_v8  ;;  %v1715_v8 = vld [vmem:[#allocation4 + $0x7b8] sm:$0xff] }
 0x763   :  { %2029 = vmatprep.subr.bf16.mxu1 %v1547_v59  ;;  %v1714_v59 = vld [vmem:[#allocation4 + $0x7b0] sm:$0xff] }
 0x766   :  { %2030 = vmatpush1.bf16.msra.mxu1 %v1546_v5  ;;  %v1723_v5 = vld [vmem:[#allocation4 + $0x7f8] sm:$0xff] }
 0x767   :  { %2031 = vmatprep.subr.bf16.mxu1 %v1555_v60  ;;  %v1722_v60 = vld [vmem:[#allocation4 + $0x7f0] sm:$0xff] }
 0x76a   :  { %2032 = vmatpush1.bf16.msra.mxu1 %v1554_v11  ;;  %v8653_v11 = vsub.s32 4, %v8582_v38 }
 0x76b   :  { %2033 = vmatprep.subr.bf16.mxu1 %v1563_v20  ;;  %v8656_v20 = vsub.s32 5, %v8582_v38 }
 0x76e   :  { %2034 = vmatpush1.bf16.msra.mxu1 %v1562_v4  ;;  %v1744_v4 = vrot.slane %v8629_v14, %v8653_v11 }
 0x76f   :  { %2035 = vmatprep.subr.bf16.mxu1 %v1571_v17  ;;  %v1748_v17 = vrot.slane %v8629_v14, %v8656_v20 }
 0x772   :  { %2036 = vmatpush1.bf16.msra.mxu1 %v1570_v26 }
 0x773   :  { %2037 = vmatprep.subr.bf16.mxu1 %v1579_v13 }
 0x776   :  { %2038 = vmatpush1.bf16.msra.mxu1 %v1578_v9 }
 0x777   :  { %2039 = vmatprep.subr.bf16.mxu1 %v1587_v18 }
 0x77a   :  { %2040 = vmatpush1.bf16.msra.mxu1 %v1586_v23 }
 0x77b   :  { %2041 = vmatprep.subr.bf16.mxu1 %v1595_v32 }
 0x77e   :  { %2042 = vmatpush1.bf16.msra.mxu1 %v1594_v61 }
 0x77f   :  { %2052 = vmatprep.subr.bf16.mxu1 %v1603_v29 }
 0x781   :  { %2044 = vmatmul.mubr.bf16.vlgmr.msra.gmra.mrb[20].mxu1 %v8602_v56  ;;  %v1736_v56 = vrot.slane %v8629_v14, %v8607_v58 }
 0x782   :  { %2053 = vmatpush1.bf16.msra.mxu1 %v1602_v24  ;;  %2084 = vmatprep.mubr.bf16.mxu1 %v8616_v22  ;;  %v1740_v22 = vrot.slane %v8629_v14, %v8610_v7 }
 0x783   :  { %2054 = vmatprep.subr.bf16.mxu1 %v1611_v19  ;;  %v8667_v19 = vsub.s32 6, %v8582_v38 }
 0x786   :  { %2055 = vmatpush1.bf16.msra.mxu1 %v1610_v62  ;;  %v8670_v62 = vsub.s32 7, %v8582_v38 }
 0x787   :  { %2056 = vmatprep.subr.bf16.mxu1 %v1619_v63  ;;  %v1752_v63 = vrot.slane %v8629_v14, %v8667_v19 }
 0x78a   :  { %2057 = vmatpush1.bf16.msra.mxu1 %v1618_v39  ;;  %v1756_v39 = vrot.slane %v8629_v14, %v8670_v62 }
 0x78b   :  { %2058 = vmatprep.subr.bf16.mxu1 %v1627_v40 }
 0x78e   :  { %2059 = vmatpush1.bf16.msra.mxu1 %v1626_v46 }
 0x78f   :  { %2060 = vmatprep.subr.bf16.mxu1 %v1635_v45 }
 0x792   :  { %2061 = vmatpush1.bf16.msra.mxu1 %v1634_v1 }
 0x793   :  { %2062 = vmatprep.subr.bf16.mxu1 %v1643_v48 }
 0x794   :  { %v1922_v50 = vpop.f32.mrb[12].mxu1 }
 0x795   :  { %v7639_v52 = vadd.f32 %v1922_v50, %v1736_v56  ;;  %v1924_v21 = vpop.f32.mrb[13].mxu1 }
 0x796   :  { %v7640_v30 = vadd.f32 %v1924_v21, %v1740_v22  ;;  %v1926_v0 = vpop.f32.mrb[14].mxu1  ;;  %2063 = vmatpush1.bf16.msra.mxu1 %v1642_v49 }
 0x797   :  { %v2095_v27 = vmax.f32 %v7639_v52, 0.0  ;;  %v1927_v36 = vpop.f32.mrb[15].mxu1  ;;  %2064 = vmatprep.subr.bf16.mxu1 %v1651_v51 }
 0x798   :  { %v2096_v53 = vmax.f32 %v7640_v30, 0.0 }
 0x799   :  { %v8647_v12 = vpack.c.bf16 %v2095_v27, %v2095_v27 }
 0x79a   :  { %v8649_v54 = vpack.c.bf16 %v2096_v53, %v2096_v53  ;;  %2065 = vmatpush1.bf16.msra.mxu1 %v1650_v6 }
 0x79b   :  { %2066 = vmatprep.subr.bf16.mxu1 %v1659_v3 }
 0x79e   :  { %2067 = vmatpush1.bf16.msra.mxu1 %v1658_v55 }
 0x79f   :  { %2068 = vmatprep.subr.bf16.mxu1 %v1667_v28 }
 0x7a2   :  { %2069 = vmatpush1.bf16.msra.mxu1 %v1666_v37 }
 0x7a3   :  { %2070 = vmatprep.subr.bf16.mxu1 %v1675_v16 }
 0x7a6   :  { %2071 = vmatpush1.bf16.msra.mxu1 %v1674_v34 }
 0x7a7   :  { %2072 = vmatprep.subr.bf16.mxu1 %v1683_v43 }
 0x7aa   :  { %2073 = vmatpush1.bf16.msra.mxu1 %v1682_v25 }
 0x7ab   :  { %2074 = vmatprep.subr.bf16.mxu1 %v1691_v35 }
 0x7ae   :  { %2075 = vmatpush1.bf16.msra.mxu1 %v1690_v44 }
 0x7af   :  { %2076 = vmatprep.subr.bf16.mxu1 %v1699_v57 }
 0x7b2   :  { %2077 = vmatpush1.bf16.msra.mxu1 %v1698_v2 }
 0x7b3   :  { %2078 = vmatprep.subr.bf16.mxu1 %v1707_v41 }
 0x7b6   :  { %2079 = vmatpush1.bf16.msra.mxu1 %v1706_v31 }
 0x7b7   :  { %2080 = vmatprep.subr.bf16.mxu1 %v1715_v8 }
 0x7ba   :  { %2081 = vmatpush1.bf16.msra.mxu1 %v1714_v59 }
 0x7bb   :  { %2082 = vmatprep.subr.bf16.mxu1 %v1723_v5 }
 0x7be   :  { %2083 = vmatpush1.bf16.msra.mxu1 %v1722_v60 }
 0x7c1   :  { %2085 = vmatmul.mubr.bf16.vlgmr.msra.gmra.mrb[20].mxu1 %v8614_v47 }
 0x814   :  { %v2004_v26 = vpop.f32.mrb[16].mxu1 }
 0x815   :  { %v7641_v13 = vadd.f32 %v2004_v26, %v1744_v4  ;;  %v2006_v9 = vpop.f32.mrb[17].mxu1 }
 0x816   :  { %v7642_v18 = vadd.f32 %v2006_v9, %v1748_v17  ;;  %v2008_v23 = vpop.f32.mrb[18].mxu1 }
 0x817   :  { %v2097_v32 = vmax.f32 %v7641_v13, 0.0  ;;  %v2009_v61 = vpop.f32.mrb[19].mxu1 }
 0x818   :  { %v2098_v47 = vmax.f32 %v7642_v18, 0.0 }
 0x819   :  { %v8662_v29 = vpack.c.bf16 %v2097_v32, %v2097_v32 }
 0x81a   :  { %v8664_v24 = vpack.c.bf16 %v2098_v47, %v2098_v47 }
 0x894   :  { %v2086_v40 = vpop.f32.mrb[20].mxu1 }
 0x895   :  { %v7643_v46 = vadd.f32 %v2086_v40, %v1752_v63  ;;  %v2088_v45 = vpop.f32.mrb[21].mxu1 }
 0x896   :  { %v7644_v1 = vadd.f32 %v2088_v45, %v1756_v39  ;;  %v2090_v48 = vpop.f32.mrb[22].mxu1 }
 0x897   :  { %v2099_v56 = vmax.f32 %v7643_v46, 0.0  ;;  %v2091_v22 = vpop.f32.mrb[23].mxu1 }
 0x898   :  { %v2100_v49 = vmax.f32 %v7644_v1, 0.0 }
 0x899   :  { %v8676_v50 = vpack.c.bf16 %v2099_v56, %v2099_v56 }
 0x89a   :  { %v8678_v51 = vpack.c.bf16 %v2100_v49, %v2100_v49 }
 0x89b   :  { %8081 = dma.done.wait [#allocation12 + $0x3], 65536 }
 0x89c   :  { %8082 = vsyncadd [#allocation12 + $0x3], 4294901760  ;;  %2699 = vmatprep.mubr.bf16.mxu1 %v8637_v42  ;;  %2863 = vmatprep.mubr.bf16.mxu0 %v8637_v42  ;;  %v2115_v38 = vld [vmem:[#allocation5 + $0x8] sm:$0xff]  ;;  %v2117_v14 = vld [vmem:[#allocation5 + $0x18] sm:$0xff] }
 0x89d   :  { %v2114_v52 = vld [vmem:[#allocation5] sm:$0xff]  ;;  %2667 = vmatprep.subr.bf16.mxu1 %v2115_v38  ;;  %2831 = vmatprep.subr.bf16.mxu0 %v2117_v14  ;;  %v2116_v21 = vld [vmem:[#allocation5 + $0x10] sm:$0xff]  ;;  %v2123_v30 = vld [vmem:[#allocation5 + $0x48] sm:$0xff] }
 0x89e   :  { %v2125_v0 = vld [vmem:[#allocation5 + $0x58] sm:$0xff]  ;;  %2668 = vmatpush1.bf16.msra.mxu1 %v2114_v52  ;;  %2832 = vmatpush1.bf16.msra.mxu0 %v2116_v21  ;;  %v2122_v27 = vld [vmem:[#allocation5 + $0x40] sm:$0xff]  ;;  %v2124_v36 = vld [vmem:[#allocation5 + $0x50] sm:$0xff] }
 0x89f   :  { %2669 = vmatprep.subr.bf16.mxu1 %v2123_v30  ;;  %2833 = vmatprep.subr.bf16.mxu0 %v2125_v0  ;;  %v2131_v6 = vld [vmem:[#allocation5 + $0x88] sm:$0xff]  ;;  %v2133_v53 = vld [vmem:[#allocation5 + $0x98] sm:$0xff]  ;;  %v2130_v3 = vld [vmem:[#allocation5 + $0x80] sm:$0xff] }
 0x8a0   :  { %v2132_v55 = vld [vmem:[#allocation5 + $0x90] sm:$0xff]  ;;  %v2139_v28 = vld [vmem:[#allocation5 + $0xc8] sm:$0xff]  ;;  %v2141_v37 = vld [vmem:[#allocation5 + $0xd8] sm:$0xff] }
 0x8a1   :  { %v2138_v16 = vld [vmem:[#allocation5 + $0xc0] sm:$0xff]  ;;  %v2140_v34 = vld [vmem:[#allocation5 + $0xd0] sm:$0xff]  ;;  %v2147_v43 = vld [vmem:[#allocation5 + $0x108] sm:$0xff] }
 0x8a2   :  { %2670 = vmatpush1.bf16.msra.mxu1 %v2122_v27  ;;  %2834 = vmatpush1.bf16.msra.mxu0 %v2124_v36  ;;  %v2149_v25 = vld [vmem:[#allocation5 + $0x118] sm:$0xff]  ;;  %v2146_v35 = vld [vmem:[#allocation5 + $0x100] sm:$0xff]  ;;  %v2148_v44 = vld [vmem:[#allocation5 + $0x110] sm:$0xff] }
 0x8a3   :  { %2671 = vmatprep.subr.bf16.mxu1 %v2131_v6  ;;  %2835 = vmatprep.subr.bf16.mxu0 %v2133_v53  ;;  %v2155_v57 = vld [vmem:[#allocation5 + $0x148] sm:$0xff]  ;;  %v2157_v2 = vld [vmem:[#allocation5 + $0x158] sm:$0xff]  ;;  %v2154_v41 = vld [vmem:[#allocation5 + $0x140] sm:$0xff] }
 0x8a4   :  { %v2156_v31 = vld [vmem:[#allocation5 + $0x150] sm:$0xff]  ;;  %v2163_v8 = vld [vmem:[#allocation5 + $0x188] sm:$0xff]  ;;  %v2165_v59 = vld [vmem:[#allocation5 + $0x198] sm:$0xff] }
 0x8a5   :  { %v2162_v5 = vld [vmem:[#allocation5 + $0x180] sm:$0xff]  ;;  %v2164_v60 = vld [vmem:[#allocation5 + $0x190] sm:$0xff]  ;;  %v2171_v4 = vld [vmem:[#allocation5 + $0x1c8] sm:$0xff] }
 0x8a6   :  { %2672 = vmatpush1.bf16.msra.mxu1 %v2130_v3  ;;  %2836 = vmatpush1.bf16.msra.mxu0 %v2132_v55  ;;  %v2173_v17 = vld [vmem:[#allocation5 + $0x1d8] sm:$0xff]  ;;  %v2170_v26 = vld [vmem:[#allocation5 + $0x1c0] sm:$0xff]  ;;  %v2172_v13 = vld [vmem:[#allocation5 + $0x1d0] sm:$0xff] }
 0x8a7   :  { %2673 = vmatprep.subr.bf16.mxu1 %v2139_v28  ;;  %2837 = vmatprep.subr.bf16.mxu0 %v2141_v37  ;;  %v2179_v9 = vld [vmem:[#allocation5 + $0x208] sm:$0xff]  ;;  %v2181_v18 = vld [vmem:[#allocation5 + $0x218] sm:$0xff]  ;;  %v2178_v23 = vld [vmem:[#allocation5 + $0x200] sm:$0xff] }
 0x8a8   :  { %v2180_v32 = vld [vmem:[#allocation5 + $0x210] sm:$0xff]  ;;  %v2187_v61 = vld [vmem:[#allocation5 + $0x248] sm:$0xff]  ;;  %v2189_v47 = vld [vmem:[#allocation5 + $0x258] sm:$0xff] }
 0x8a9   :  { %v2186_v63 = vld [vmem:[#allocation5 + $0x240] sm:$0xff]  ;;  %v2188_v39 = vld [vmem:[#allocation5 + $0x250] sm:$0xff]  ;;  %v2195_v40 = vld [vmem:[#allocation5 + $0x288] sm:$0xff] }
 0x8aa   :  { %2674 = vmatpush1.bf16.msra.mxu1 %v2138_v16  ;;  %2838 = vmatpush1.bf16.msra.mxu0 %v2140_v34  ;;  %v2197_v46 = vld [vmem:[#allocation5 + $0x298] sm:$0xff]  ;;  %v2194_v45 = vld [vmem:[#allocation5 + $0x280] sm:$0xff]  ;;  %v2196_v1 = vld [vmem:[#allocation5 + $0x290] sm:$0xff] }
 0x8ab   :  { %2675 = vmatprep.subr.bf16.mxu1 %v2147_v43  ;;  %2839 = vmatprep.subr.bf16.mxu0 %v2149_v25  ;;  %v2203_v48 = vld [vmem:[#allocation5 + $0x2c8] sm:$0xff]  ;;  %v2205_v56 = vld [vmem:[#allocation5 + $0x2d8] sm:$0xff]  ;;  %v2202_v22 = vld [vmem:[#allocation5 + $0x2c0] sm:$0xff] }
 0x8ac   :  { %v2204_v49 = vld [vmem:[#allocation5 + $0x2d0] sm:$0xff]  ;;  %v2211_v38 = vld [vmem:[#allocation5 + $0x308] sm:$0xff]  ;;  %v2213_v14 = vld [vmem:[#allocation5 + $0x318] sm:$0xff] }
 0x8ad   :  { %v2210_v52 = vld [vmem:[#allocation5 + $0x300] sm:$0xff]  ;;  %v2212_v21 = vld [vmem:[#allocation5 + $0x310] sm:$0xff]  ;;  %v2219_v30 = vld [vmem:[#allocation5 + $0x348] sm:$0xff] }
 0x8ae   :  { %2676 = vmatpush1.bf16.msra.mxu1 %v2146_v35  ;;  %2840 = vmatpush1.bf16.msra.mxu0 %v2148_v44  ;;  %v2221_v0 = vld [vmem:[#allocation5 + $0x358] sm:$0xff]  ;;  %v2218_v27 = vld [vmem:[#allocation5 + $0x340] sm:$0xff]  ;;  %v2220_v36 = vld [vmem:[#allocation5 + $0x350] sm:$0xff] }
 0x8af   :  { %2677 = vmatprep.subr.bf16.mxu1 %v2155_v57  ;;  %2841 = vmatprep.subr.bf16.mxu0 %v2157_v2  ;;  %v2227_v6 = vld [vmem:[#allocation5 + $0x388] sm:$0xff]  ;;  %v2229_v53 = vld [vmem:[#allocation5 + $0x398] sm:$0xff]  ;;  %v2226_v3 = vld [vmem:[#allocation5 + $0x380] sm:$0xff] }
 0x8b0   :  { %v2228_v55 = vld [vmem:[#allocation5 + $0x390] sm:$0xff]  ;;  %v2235_v28 = vld [vmem:[#allocation5 + $0x3c8] sm:$0xff]  ;;  %v2237_v37 = vld [vmem:[#allocation5 + $0x3d8] sm:$0xff] }
 0x8b1   :  { %v2234_v16 = vld [vmem:[#allocation5 + $0x3c0] sm:$0xff]  ;;  %v2236_v34 = vld [vmem:[#allocation5 + $0x3d0] sm:$0xff]  ;;  %v2243_v43 = vld [vmem:[#allocation5 + $0x408] sm:$0xff] }
 0x8b2   :  { %2678 = vmatpush1.bf16.msra.mxu1 %v2154_v41  ;;  %2842 = vmatpush1.bf16.msra.mxu0 %v2156_v31  ;;  %v2245_v25 = vld [vmem:[#allocation5 + $0x418] sm:$0xff]  ;;  %v2242_v35 = vld [vmem:[#allocation5 + $0x400] sm:$0xff]  ;;  %v2244_v44 = vld [vmem:[#allocation5 + $0x410] sm:$0xff] }
 0x8b3   :  { %2679 = vmatprep.subr.bf16.mxu1 %v2163_v8  ;;  %2843 = vmatprep.subr.bf16.mxu0 %v2165_v59  ;;  %v2251_v57 = vld [vmem:[#allocation5 + $0x448] sm:$0xff]  ;;  %v2253_v2 = vld [vmem:[#allocation5 + $0x458] sm:$0xff]  ;;  %v2250_v41 = vld [vmem:[#allocation5 + $0x440] sm:$0xff] }
 0x8b4   :  { %v2252_v31 = vld [vmem:[#allocation5 + $0x450] sm:$0xff]  ;;  %v2259_v8 = vld [vmem:[#allocation5 + $0x488] sm:$0xff]  ;;  %v2261_v59 = vld [vmem:[#allocation5 + $0x498] sm:$0xff] }
 0x8b6   :  { %2680 = vmatpush1.bf16.msra.mxu1 %v2162_v5  ;;  %2844 = vmatpush1.bf16.msra.mxu0 %v2164_v60  ;;  %v2258_v5 = vld [vmem:[#allocation5 + $0x480] sm:$0xff]  ;;  %v2260_v60 = vld [vmem:[#allocation5 + $0x490] sm:$0xff] }
 0x8b7   :  { %2681 = vmatprep.subr.bf16.mxu1 %v2171_v4  ;;  %2845 = vmatprep.subr.bf16.mxu0 %v2173_v17  ;;  %v2267_v4 = vld [vmem:[#allocation5 + $0x4c8] sm:$0xff]  ;;  %v2269_v17 = vld [vmem:[#allocation5 + $0x4d8] sm:$0xff] }
 0x8ba   :  { %2682 = vmatpush1.bf16.msra.mxu1 %v2170_v26  ;;  %2846 = vmatpush1.bf16.msra.mxu0 %v2172_v13  ;;  %v2266_v26 = vld [vmem:[#allocation5 + $0x4c0] sm:$0xff]  ;;  %v2268_v13 = vld [vmem:[#allocation5 + $0x4d0] sm:$0xff] }
 0x8bb   :  { %2683 = vmatprep.subr.bf16.mxu1 %v2179_v9  ;;  %2847 = vmatprep.subr.bf16.mxu0 %v2181_v18  ;;  %v2275_v9 = vld [vmem:[#allocation5 + $0x508] sm:$0xff]  ;;  %v2277_v18 = vld [vmem:[#allocation5 + $0x518] sm:$0xff] }
 0x8be   :  { %2684 = vmatpush1.bf16.msra.mxu1 %v2178_v23  ;;  %2848 = vmatpush1.bf16.msra.mxu0 %v2180_v32  ;;  %v2274_v23 = vld [vmem:[#allocation5 + $0x500] sm:$0xff]  ;;  %v2276_v32 = vld [vmem:[#allocation5 + $0x510] sm:$0xff] }
 0x8bf   :  { %2685 = vmatprep.subr.bf16.mxu1 %v2187_v61  ;;  %2849 = vmatprep.subr.bf16.mxu0 %v2189_v47  ;;  %v2283_v61 = vld [vmem:[#allocation5 + $0x548] sm:$0xff]  ;;  %v2285_v47 = vld [vmem:[#allocation5 + $0x558] sm:$0xff] }
 0x8c2   :  { %2686 = vmatpush1.bf16.msra.mxu1 %v2186_v63  ;;  %2850 = vmatpush1.bf16.msra.mxu0 %v2188_v39  ;;  %v2282_v63 = vld [vmem:[#allocation5 + $0x540] sm:$0xff]  ;;  %v2284_v39 = vld [vmem:[#allocation5 + $0x550] sm:$0xff] }
 0x8c3   :  { %2687 = vmatprep.subr.bf16.mxu1 %v2195_v40  ;;  %2851 = vmatprep.subr.bf16.mxu0 %v2197_v46  ;;  %v2291_v40 = vld [vmem:[#allocation5 + $0x588] sm:$0xff]  ;;  %v2293_v46 = vld [vmem:[#allocation5 + $0x598] sm:$0xff] }
 0x8c6   :  { %2688 = vmatpush1.bf16.msra.mxu1 %v2194_v45  ;;  %2852 = vmatpush1.bf16.msra.mxu0 %v2196_v1  ;;  %v2290_v45 = vld [vmem:[#allocation5 + $0x580] sm:$0xff]  ;;  %v2292_v1 = vld [vmem:[#allocation5 + $0x590] sm:$0xff] }
 0x8c7   :  { %2689 = vmatprep.subr.bf16.mxu1 %v2203_v48  ;;  %2853 = vmatprep.subr.bf16.mxu0 %v2205_v56  ;;  %v2299_v48 = vld [vmem:[#allocation5 + $0x5c8] sm:$0xff]  ;;  %v2301_v56 = vld [vmem:[#allocation5 + $0x5d8] sm:$0xff] }
 0x8ca   :  { %2690 = vmatpush1.bf16.msra.mxu1 %v2202_v22  ;;  %2854 = vmatpush1.bf16.msra.mxu0 %v2204_v49  ;;  %v2298_v22 = vld [vmem:[#allocation5 + $0x5c0] sm:$0xff]  ;;  %v2300_v49 = vld [vmem:[#allocation5 + $0x5d0] sm:$0xff] }
 0x8cb   :  { %2691 = vmatprep.subr.bf16.mxu1 %v2211_v38  ;;  %2855 = vmatprep.subr.bf16.mxu0 %v2213_v14  ;;  %v2307_v38 = vld [vmem:[#allocation5 + $0x608] sm:$0xff]  ;;  %v2309_v14 = vld [vmem:[#allocation5 + $0x618] sm:$0xff] }
 0x8ce   :  { %2692 = vmatpush1.bf16.msra.mxu1 %v2210_v52  ;;  %2856 = vmatpush1.bf16.msra.mxu0 %v2212_v21  ;;  %v2306_v52 = vld [vmem:[#allocation5 + $0x600] sm:$0xff]  ;;  %v2308_v21 = vld [vmem:[#allocation5 + $0x610] sm:$0xff] }
 0x8cf   :  { %2693 = vmatprep.subr.bf16.mxu1 %v2219_v30  ;;  %2857 = vmatprep.subr.bf16.mxu0 %v2221_v0  ;;  %v2315_v30 = vld [vmem:[#allocation5 + $0x648] sm:$0xff]  ;;  %v2317_v0 = vld [vmem:[#allocation5 + $0x658] sm:$0xff] }
 0x8d2   :  { %2694 = vmatpush1.bf16.msra.mxu1 %v2218_v27  ;;  %2858 = vmatpush1.bf16.msra.mxu0 %v2220_v36  ;;  %v2314_v27 = vld [vmem:[#allocation5 + $0x640] sm:$0xff]  ;;  %v2316_v36 = vld [vmem:[#allocation5 + $0x650] sm:$0xff] }
 0x8d3   :  { %2695 = vmatprep.subr.bf16.mxu1 %v2227_v6  ;;  %2859 = vmatprep.subr.bf16.mxu0 %v2229_v53  ;;  %v2323_v6 = vld [vmem:[#allocation5 + $0x688] sm:$0xff]  ;;  %v2325_v53 = vld [vmem:[#allocation5 + $0x698] sm:$0xff] }
 0x8d6   :  { %2696 = vmatpush1.bf16.msra.mxu1 %v2226_v3  ;;  %2860 = vmatpush1.bf16.msra.mxu0 %v2228_v55  ;;  %v2322_v3 = vld [vmem:[#allocation5 + $0x680] sm:$0xff]  ;;  %v2324_v55 = vld [vmem:[#allocation5 + $0x690] sm:$0xff] }
 0x8d7   :  { %2697 = vmatprep.subr.bf16.mxu1 %v2235_v28  ;;  %2861 = vmatprep.subr.bf16.mxu0 %v2237_v37  ;;  %v2331_v28 = vld [vmem:[#allocation5 + $0x6c8] sm:$0xff]  ;;  %v2333_v37 = vld [vmem:[#allocation5 + $0x6d8] sm:$0xff] }
 0x8da   :  { %2698 = vmatpush1.bf16.msra.mxu1 %v2234_v16  ;;  %2862 = vmatpush1.bf16.msra.mxu0 %v2236_v34  ;;  %v2330_v16 = vld [vmem:[#allocation5 + $0x6c0] sm:$0xff]  ;;  %v2332_v34 = vld [vmem:[#allocation5 + $0x6d0] sm:$0xff] }
 0x8db   :  { %2708 = vmatprep.subr.bf16.mxu1 %v2243_v43  ;;  %2872 = vmatprep.subr.bf16.mxu0 %v2245_v25  ;;  %v2339_v43 = vld [vmem:[#allocation5 + $0x708] sm:$0xff]  ;;  %v2341_v25 = vld [vmem:[#allocation5 + $0x718] sm:$0xff] }
 0x8dd   :  { %2700 = vmatmul.mubr.bf16.vlgmr.msra.gmra.mrb[24].mxu1 %v8635_v33  ;;  %2864 = vmatmul.mubr.bf16.vlgmr.msra.gmra.mrb[4].mxu0 %v8635_v33 }
 0x8de   :  { %2709 = vmatpush1.bf16.msra.mxu1 %v2242_v35  ;;  %2873 = vmatpush1.bf16.msra.mxu0 %v2244_v44  ;;  %v2338_v35 = vld [vmem:[#allocation5 + $0x700] sm:$0xff]  ;;  %v2340_v44 = vld [vmem:[#allocation5 + $0x710] sm:$0xff] }
 0x8df   :  { %2710 = vmatprep.subr.bf16.mxu1 %v2251_v57  ;;  %2874 = vmatprep.subr.bf16.mxu0 %v2253_v2  ;;  %v2347_v57 = vld [vmem:[#allocation5 + $0x748] sm:$0xff]  ;;  %v2349_v2 = vld [vmem:[#allocation5 + $0x758] sm:$0xff] }
 0x8e0   :  { %2740 = vmatprep.mubr.bf16.mxu1 %v8649_v54  ;;  %2904 = vmatprep.mubr.bf16.mxu0 %v8649_v54 }
 0x8e2   :  { %2711 = vmatpush1.bf16.msra.mxu1 %v2250_v41  ;;  %2875 = vmatpush1.bf16.msra.mxu0 %v2252_v31  ;;  %v2346_v41 = vld [vmem:[#allocation5 + $0x740] sm:$0xff]  ;;  %v2348_v31 = vld [vmem:[#allocation5 + $0x750] sm:$0xff] }
 0x8e3   :  { %2712 = vmatprep.subr.bf16.mxu1 %v2259_v8  ;;  %2876 = vmatprep.subr.bf16.mxu0 %v2261_v59  ;;  %v2355_v8 = vld [vmem:[#allocation5 + $0x788] sm:$0xff]  ;;  %v2357_v59 = vld [vmem:[#allocation5 + $0x798] sm:$0xff] }
 0x8e6   :  { %2713 = vmatpush1.bf16.msra.mxu1 %v2258_v5  ;;  %2877 = vmatpush1.bf16.msra.mxu0 %v2260_v60  ;;  %v2354_v5 = vld [vmem:[#allocation5 + $0x780] sm:$0xff]  ;;  %v2356_v60 = vld [vmem:[#allocation5 + $0x790] sm:$0xff] }
 0x8e7   :  { %2714 = vmatprep.subr.bf16.mxu1 %v2267_v4  ;;  %2878 = vmatprep.subr.bf16.mxu0 %v2269_v17  ;;  %v2363_v4 = vld [vmem:[#allocation5 + $0x7c8] sm:$0xff]  ;;  %v2365_v17 = vld [vmem:[#allocation5 + $0x7d8] sm:$0xff] }
 0x8ea   :  { %2715 = vmatpush1.bf16.msra.mxu1 %v2266_v26  ;;  %2879 = vmatpush1.bf16.msra.mxu0 %v2268_v13  ;;  %v2362_v26 = vld [vmem:[#allocation5 + $0x7c0] sm:$0xff]  ;;  %v2364_v13 = vld [vmem:[#allocation5 + $0x7d0] sm:$0xff] }
 0x8eb   :  { %2716 = vmatprep.subr.bf16.mxu1 %v2275_v9  ;;  %2880 = vmatprep.subr.bf16.mxu0 %v2277_v18  ;;  %v2371_v9 = vld [vmem:[#allocation5 + $0x808] sm:$0xff]  ;;  %v2373_v18 = vld [vmem:[#allocation5 + $0x818] sm:$0xff] }
 0x8ee   :  { %2717 = vmatpush1.bf16.msra.mxu1 %v2274_v23  ;;  %2881 = vmatpush1.bf16.msra.mxu0 %v2276_v32  ;;  %v2370_v23 = vld [vmem:[#allocation5 + $0x800] sm:$0xff]  ;;  %v2372_v32 = vld [vmem:[#allocation5 + $0x810] sm:$0xff] }
 0x8ef   :  { %2718 = vmatprep.subr.bf16.mxu1 %v2283_v61  ;;  %2882 = vmatprep.subr.bf16.mxu0 %v2285_v47  ;;  %v2379_v61 = vld [vmem:[#allocation5 + $0x848] sm:$0xff]  ;;  %v2381_v47 = vld [vmem:[#allocation5 + $0x858] sm:$0xff] }
 0x8f2   :  { %2719 = vmatpush1.bf16.msra.mxu1 %v2282_v63  ;;  %2883 = vmatpush1.bf16.msra.mxu0 %v2284_v39  ;;  %v2378_v63 = vld [vmem:[#allocation5 + $0x840] sm:$0xff]  ;;  %v2380_v39 = vld [vmem:[#allocation5 + $0x850] sm:$0xff] }
 0x8f3   :  { %2720 = vmatprep.subr.bf16.mxu1 %v2291_v40  ;;  %2884 = vmatprep.subr.bf16.mxu0 %v2293_v46  ;;  %v2387_v40 = vld [vmem:[#allocation5 + $0x888] sm:$0xff]  ;;  %v2389_v46 = vld [vmem:[#allocation5 + $0x898] sm:$0xff] }
 0x8f6   :  { %2721 = vmatpush1.bf16.msra.mxu1 %v2290_v45  ;;  %2885 = vmatpush1.bf16.msra.mxu0 %v2292_v1  ;;  %v2386_v45 = vld [vmem:[#allocation5 + $0x880] sm:$0xff]  ;;  %v2388_v1 = vld [vmem:[#allocation5 + $0x890] sm:$0xff] }
 0x8f7   :  { %2722 = vmatprep.subr.bf16.mxu1 %v2299_v48  ;;  %2886 = vmatprep.subr.bf16.mxu0 %v2301_v56  ;;  %v2395_v48 = vld [vmem:[#allocation5 + $0x8c8] sm:$0xff]  ;;  %v2397_v56 = vld [vmem:[#allocation5 + $0x8d8] sm:$0xff] }
 0x8fa   :  { %2723 = vmatpush1.bf16.msra.mxu1 %v2298_v22  ;;  %2887 = vmatpush1.bf16.msra.mxu0 %v2300_v49  ;;  %v2394_v22 = vld [vmem:[#allocation5 + $0x8c0] sm:$0xff]  ;;  %v2396_v49 = vld [vmem:[#allocation5 + $0x8d0] sm:$0xff] }
 0x8fb   :  { %2724 = vmatprep.subr.bf16.mxu1 %v2307_v38  ;;  %2888 = vmatprep.subr.bf16.mxu0 %v2309_v14  ;;  %v2403_v38 = vld [vmem:[#allocation5 + $0x908] sm:$0xff]  ;;  %v2405_v14 = vld [vmem:[#allocation5 + $0x918] sm:$0xff] }
 0x8fe   :  { %2725 = vmatpush1.bf16.msra.mxu1 %v2306_v52  ;;  %2889 = vmatpush1.bf16.msra.mxu0 %v2308_v21  ;;  %v2402_v52 = vld [vmem:[#allocation5 + $0x900] sm:$0xff]  ;;  %v2404_v21 = vld [vmem:[#allocation5 + $0x910] sm:$0xff] }
 0x8ff   :  { %2726 = vmatprep.subr.bf16.mxu1 %v2315_v30  ;;  %2890 = vmatprep.subr.bf16.mxu0 %v2317_v0  ;;  %v2411_v30 = vld [vmem:[#allocation5 + $0x948] sm:$0xff]  ;;  %v2413_v0 = vld [vmem:[#allocation5 + $0x958] sm:$0xff] }
 0x902   :  { %2727 = vmatpush1.bf16.msra.mxu1 %v2314_v27  ;;  %2891 = vmatpush1.bf16.msra.mxu0 %v2316_v36  ;;  %v2410_v27 = vld [vmem:[#allocation5 + $0x940] sm:$0xff]  ;;  %v2412_v36 = vld [vmem:[#allocation5 + $0x950] sm:$0xff] }
 0x903   :  { %2728 = vmatprep.subr.bf16.mxu1 %v2323_v6  ;;  %2892 = vmatprep.subr.bf16.mxu0 %v2325_v53  ;;  %v2419_v6 = vld [vmem:[#allocation5 + $0x988] sm:$0xff]  ;;  %v2421_v53 = vld [vmem:[#allocation5 + $0x998] sm:$0xff] }
 0x906   :  { %2729 = vmatpush1.bf16.msra.mxu1 %v2322_v3  ;;  %2893 = vmatpush1.bf16.msra.mxu0 %v2324_v55  ;;  %v2418_v3 = vld [vmem:[#allocation5 + $0x980] sm:$0xff]  ;;  %v2420_v55 = vld [vmem:[#allocation5 + $0x990] sm:$0xff] }
 0x907   :  { %2730 = vmatprep.subr.bf16.mxu1 %v2331_v28  ;;  %2894 = vmatprep.subr.bf16.mxu0 %v2333_v37  ;;  %v2427_v28 = vld [vmem:[#allocation5 + $0x9c8] sm:$0xff]  ;;  %v2429_v37 = vld [vmem:[#allocation5 + $0x9d8] sm:$0xff] }
 0x90a   :  { %2731 = vmatpush1.bf16.msra.mxu1 %v2330_v16  ;;  %2895 = vmatpush1.bf16.msra.mxu0 %v2332_v34  ;;  %v2426_v16 = vld [vmem:[#allocation5 + $0x9c0] sm:$0xff]  ;;  %v2428_v34 = vld [vmem:[#allocation5 + $0x9d0] sm:$0xff] }
 0x90b   :  { %2732 = vmatprep.subr.bf16.mxu1 %v2339_v43  ;;  %2896 = vmatprep.subr.bf16.mxu0 %v2341_v25  ;;  %v2435_v43 = vld [vmem:[#allocation5 + $0xa08] sm:$0xff]  ;;  %v2437_v25 = vld [vmem:[#allocation5 + $0xa18] sm:$0xff] }
 0x90e   :  { %2733 = vmatpush1.bf16.msra.mxu1 %v2338_v35  ;;  %2897 = vmatpush1.bf16.msra.mxu0 %v2340_v44  ;;  %v2434_v35 = vld [vmem:[#allocation5 + $0xa00] sm:$0xff]  ;;  %v2436_v44 = vld [vmem:[#allocation5 + $0xa10] sm:$0xff] }
 0x90f   :  { %2734 = vmatprep.subr.bf16.mxu1 %v2347_v57  ;;  %2898 = vmatprep.subr.bf16.mxu0 %v2349_v2  ;;  %v2443_v57 = vld [vmem:[#allocation5 + $0xa48] sm:$0xff]  ;;  %v2445_v2 = vld [vmem:[#allocation5 + $0xa58] sm:$0xff] }
 0x912   :  { %2735 = vmatpush1.bf16.msra.mxu1 %v2346_v41  ;;  %2899 = vmatpush1.bf16.msra.mxu0 %v2348_v31  ;;  %v2442_v41 = vld [vmem:[#allocation5 + $0xa40] sm:$0xff]  ;;  %v2444_v31 = vld [vmem:[#allocation5 + $0xa50] sm:$0xff] }
 0x913   :  { %2736 = vmatprep.subr.bf16.mxu1 %v2355_v8  ;;  %2900 = vmatprep.subr.bf16.mxu0 %v2357_v59  ;;  %v2451_v8 = vld [vmem:[#allocation5 + $0xa88] sm:$0xff]  ;;  %v2453_v59 = vld [vmem:[#allocation5 + $0xa98] sm:$0xff] }
 0x916   :  { %2737 = vmatpush1.bf16.msra.mxu1 %v2354_v5  ;;  %2901 = vmatpush1.bf16.msra.mxu0 %v2356_v60  ;;  %v2450_v5 = vld [vmem:[#allocation5 + $0xa80] sm:$0xff]  ;;  %v2452_v60 = vld [vmem:[#allocation5 + $0xa90] sm:$0xff] }
 0x917   :  { %2738 = vmatprep.subr.bf16.mxu1 %v2363_v4  ;;  %2902 = vmatprep.subr.bf16.mxu0 %v2365_v17  ;;  %v2459_v4 = vld [vmem:[#allocation5 + $0xac8] sm:$0xff]  ;;  %v2461_v17 = vld [vmem:[#allocation5 + $0xad8] sm:$0xff] }
 0x91a   :  { %2739 = vmatpush1.bf16.msra.mxu1 %v2362_v26  ;;  %2903 = vmatpush1.bf16.msra.mxu0 %v2364_v13  ;;  %v2458_v26 = vld [vmem:[#allocation5 + $0xac0] sm:$0xff]  ;;  %v2460_v13 = vld [vmem:[#allocation5 + $0xad0] sm:$0xff] }
 0x91b   :  { %2749 = vmatprep.subr.bf16.mxu1 %v2371_v9  ;;  %2913 = vmatprep.subr.bf16.mxu0 %v2373_v18  ;;  %v2467_v9 = vld [vmem:[#allocation5 + $0xb08] sm:$0xff]  ;;  %v2469_v18 = vld [vmem:[#allocation5 + $0xb18] sm:$0xff] }
 0x91d   :  { %2741 = vmatmul.mubr.bf16.vlgmr.msra.gmra.mrb[24].mxu1 %v8647_v12  ;;  %2905 = vmatmul.mubr.bf16.vlgmr.msra.gmra.mrb[4].mxu0 %v8647_v12 }
 0x91e   :  { %2750 = vmatpush1.bf16.msra.mxu1 %v2370_v23  ;;  %2914 = vmatpush1.bf16.msra.mxu0 %v2372_v32  ;;  %v2466_v23 = vld [vmem:[#allocation5 + $0xb00] sm:$0xff]  ;;  %v2468_v32 = vld [vmem:[#allocation5 + $0xb10] sm:$0xff] }
 0x91f   :  { %2751 = vmatprep.subr.bf16.mxu1 %v2379_v61  ;;  %2915 = vmatprep.subr.bf16.mxu0 %v2381_v47  ;;  %v2475_v61 = vld [vmem:[#allocation5 + $0xb48] sm:$0xff]  ;;  %v2477_v47 = vld [vmem:[#allocation5 + $0xb58] sm:$0xff] }
 0x920   :  { %2781 = vmatprep.mubr.bf16.mxu1 %v8664_v24  ;;  %2945 = vmatprep.mubr.bf16.mxu0 %v8664_v24 }
 0x922   :  { %2752 = vmatpush1.bf16.msra.mxu1 %v2378_v63  ;;  %2916 = vmatpush1.bf16.msra.mxu0 %v2380_v39  ;;  %v2474_v63 = vld [vmem:[#allocation5 + $0xb40] sm:$0xff]  ;;  %v2476_v39 = vld [vmem:[#allocation5 + $0xb50] sm:$0xff] }
 0x923   :  { %2753 = vmatprep.subr.bf16.mxu1 %v2387_v40  ;;  %2917 = vmatprep.subr.bf16.mxu0 %v2389_v46  ;;  %v2483_v40 = vld [vmem:[#allocation5 + $0xb88] sm:$0xff]  ;;  %v2485_v46 = vld [vmem:[#allocation5 + $0xb98] sm:$0xff] }
 0x926   :  { %2754 = vmatpush1.bf16.msra.mxu1 %v2386_v45  ;;  %2918 = vmatpush1.bf16.msra.mxu0 %v2388_v1  ;;  %v2482_v45 = vld [vmem:[#allocation5 + $0xb80] sm:$0xff]  ;;  %v2484_v1 = vld [vmem:[#allocation5 + $0xb90] sm:$0xff] }
 0x927   :  { %2755 = vmatprep.subr.bf16.mxu1 %v2395_v48  ;;  %2919 = vmatprep.subr.bf16.mxu0 %v2397_v56  ;;  %v2491_v48 = vld [vmem:[#allocation5 + $0xbc8] sm:$0xff]  ;;  %v2493_v56 = vld [vmem:[#allocation5 + $0xbd8] sm:$0xff] }
 0x92a   :  { %2756 = vmatpush1.bf16.msra.mxu1 %v2394_v22  ;;  %2920 = vmatpush1.bf16.msra.mxu0 %v2396_v49  ;;  %v2490_v22 = vld [vmem:[#allocation5 + $0xbc0] sm:$0xff]  ;;  %v2492_v49 = vld [vmem:[#allocation5 + $0xbd0] sm:$0xff] }
 0x92b   :  { %2757 = vmatprep.subr.bf16.mxu1 %v2403_v38  ;;  %2921 = vmatprep.subr.bf16.mxu0 %v2405_v14  ;;  %v2499_v38 = vld [vmem:[#allocation5 + $0xc08] sm:$0xff]  ;;  %v2501_v14 = vld [vmem:[#allocation5 + $0xc18] sm:$0xff] }
 0x92e   :  { %2758 = vmatpush1.bf16.msra.mxu1 %v2402_v52  ;;  %2922 = vmatpush1.bf16.msra.mxu0 %v2404_v21  ;;  %v2498_v52 = vld [vmem:[#allocation5 + $0xc00] sm:$0xff]  ;;  %v2500_v21 = vld [vmem:[#allocation5 + $0xc10] sm:$0xff] }
 0x92f   :  { %2759 = vmatprep.subr.bf16.mxu1 %v2411_v30  ;;  %2923 = vmatprep.subr.bf16.mxu0 %v2413_v0  ;;  %v2507_v30 = vld [vmem:[#allocation5 + $0xc48] sm:$0xff]  ;;  %v2509_v0 = vld [vmem:[#allocation5 + $0xc58] sm:$0xff] }
 0x932   :  { %2760 = vmatpush1.bf16.msra.mxu1 %v2410_v27  ;;  %2924 = vmatpush1.bf16.msra.mxu0 %v2412_v36  ;;  %v2506_v27 = vld [vmem:[#allocation5 + $0xc40] sm:$0xff]  ;;  %v2508_v36 = vld [vmem:[#allocation5 + $0xc50] sm:$0xff] }
 0x933   :  { %2761 = vmatprep.subr.bf16.mxu1 %v2419_v6  ;;  %2925 = vmatprep.subr.bf16.mxu0 %v2421_v53  ;;  %v2515_v6 = vld [vmem:[#allocation5 + $0xc88] sm:$0xff]  ;;  %v2517_v53 = vld [vmem:[#allocation5 + $0xc98] sm:$0xff] }
 0x936   :  { %2762 = vmatpush1.bf16.msra.mxu1 %v2418_v3  ;;  %2926 = vmatpush1.bf16.msra.mxu0 %v2420_v55  ;;  %v2514_v3 = vld [vmem:[#allocation5 + $0xc80] sm:$0xff]  ;;  %v2516_v55 = vld [vmem:[#allocation5 + $0xc90] sm:$0xff] }
 0x937   :  { %2763 = vmatprep.subr.bf16.mxu1 %v2427_v28  ;;  %2927 = vmatprep.subr.bf16.mxu0 %v2429_v37  ;;  %v2523_v28 = vld [vmem:[#allocation5 + $0xcc8] sm:$0xff]  ;;  %v2525_v37 = vld [vmem:[#allocation5 + $0xcd8] sm:$0xff] }
 0x93a   :  { %2764 = vmatpush1.bf16.msra.mxu1 %v2426_v16  ;;  %2928 = vmatpush1.bf16.msra.mxu0 %v2428_v34  ;;  %v2522_v16 = vld [vmem:[#allocation5 + $0xcc0] sm:$0xff]  ;;  %v2524_v34 = vld [vmem:[#allocation5 + $0xcd0] sm:$0xff] }
 0x93b   :  { %2765 = vmatprep.subr.bf16.mxu1 %v2435_v43  ;;  %2929 = vmatprep.subr.bf16.mxu0 %v2437_v25  ;;  %v2531_v43 = vld [vmem:[#allocation5 + $0xd08] sm:$0xff]  ;;  %v2533_v25 = vld [vmem:[#allocation5 + $0xd18] sm:$0xff] }
 0x93e   :  { %2766 = vmatpush1.bf16.msra.mxu1 %v2434_v35  ;;  %2930 = vmatpush1.bf16.msra.mxu0 %v2436_v44  ;;  %v2530_v35 = vld [vmem:[#allocation5 + $0xd00] sm:$0xff]  ;;  %v2532_v44 = vld [vmem:[#allocation5 + $0xd10] sm:$0xff] }
 0x93f   :  { %2767 = vmatprep.subr.bf16.mxu1 %v2443_v57  ;;  %2931 = vmatprep.subr.bf16.mxu0 %v2445_v2  ;;  %v2539_v57 = vld [vmem:[#allocation5 + $0xd48] sm:$0xff]  ;;  %v2541_v2 = vld [vmem:[#allocation5 + $0xd58] sm:$0xff] }
 0x942   :  { %2768 = vmatpush1.bf16.msra.mxu1 %v2442_v41  ;;  %2932 = vmatpush1.bf16.msra.mxu0 %v2444_v31  ;;  %v2538_v41 = vld [vmem:[#allocation5 + $0xd40] sm:$0xff]  ;;  %v2540_v31 = vld [vmem:[#allocation5 + $0xd50] sm:$0xff] }
 0x943   :  { %2769 = vmatprep.subr.bf16.mxu1 %v2451_v8  ;;  %2933 = vmatprep.subr.bf16.mxu0 %v2453_v59  ;;  %v2547_v8 = vld [vmem:[#allocation5 + $0xd88] sm:$0xff]  ;;  %v2549_v59 = vld [vmem:[#allocation5 + $0xd98] sm:$0xff] }
 0x946   :  { %2770 = vmatpush1.bf16.msra.mxu1 %v2450_v5  ;;  %2934 = vmatpush1.bf16.msra.mxu0 %v2452_v60  ;;  %v2546_v5 = vld [vmem:[#allocation5 + $0xd80] sm:$0xff]  ;;  %v2548_v60 = vld [vmem:[#allocation5 + $0xd90] sm:$0xff] }
 0x947   :  { %2771 = vmatprep.subr.bf16.mxu1 %v2459_v4  ;;  %2935 = vmatprep.subr.bf16.mxu0 %v2461_v17  ;;  %v2555_v4 = vld [vmem:[#allocation5 + $0xdc8] sm:$0xff]  ;;  %v2557_v17 = vld [vmem:[#allocation5 + $0xdd8] sm:$0xff] }
 0x94a   :  { %2772 = vmatpush1.bf16.msra.mxu1 %v2458_v26  ;;  %2936 = vmatpush1.bf16.msra.mxu0 %v2460_v13  ;;  %v2554_v26 = vld [vmem:[#allocation5 + $0xdc0] sm:$0xff]  ;;  %v2556_v13 = vld [vmem:[#allocation5 + $0xdd0] sm:$0xff] }
 0x94b   :  { %2773 = vmatprep.subr.bf16.mxu1 %v2467_v9  ;;  %2937 = vmatprep.subr.bf16.mxu0 %v2469_v18  ;;  %v2563_v9 = vld [vmem:[#allocation5 + $0xe08] sm:$0xff]  ;;  %v2565_v18 = vld [vmem:[#allocation5 + $0xe18] sm:$0xff] }
 0x94e   :  { %2774 = vmatpush1.bf16.msra.mxu1 %v2466_v23  ;;  %2938 = vmatpush1.bf16.msra.mxu0 %v2468_v32  ;;  %v2562_v23 = vld [vmem:[#allocation5 + $0xe00] sm:$0xff]  ;;  %v2564_v32 = vld [vmem:[#allocation5 + $0xe10] sm:$0xff] }
 0x94f   :  { %2775 = vmatprep.subr.bf16.mxu1 %v2475_v61  ;;  %2939 = vmatprep.subr.bf16.mxu0 %v2477_v47  ;;  %v2571_v61 = vld [vmem:[#allocation5 + $0xe48] sm:$0xff]  ;;  %v2573_v47 = vld [vmem:[#allocation5 + $0xe58] sm:$0xff] }
 0x952   :  { %2776 = vmatpush1.bf16.msra.mxu1 %v2474_v63  ;;  %2940 = vmatpush1.bf16.msra.mxu0 %v2476_v39  ;;  %v2570_v63 = vld [vmem:[#allocation5 + $0xe40] sm:$0xff]  ;;  %v2572_v39 = vld [vmem:[#allocation5 + $0xe50] sm:$0xff] }
 0x953   :  { %2777 = vmatprep.subr.bf16.mxu1 %v2483_v40  ;;  %2941 = vmatprep.subr.bf16.mxu0 %v2485_v46  ;;  %v2579_v40 = vld [vmem:[#allocation5 + $0xe88] sm:$0xff]  ;;  %v2581_v46 = vld [vmem:[#allocation5 + $0xe98] sm:$0xff] }
 0x956   :  { %2778 = vmatpush1.bf16.msra.mxu1 %v2482_v45  ;;  %2942 = vmatpush1.bf16.msra.mxu0 %v2484_v1  ;;  %v2578_v45 = vld [vmem:[#allocation5 + $0xe80] sm:$0xff]  ;;  %v2580_v1 = vld [vmem:[#allocation5 + $0xe90] sm:$0xff] }
 0x957   :  { %2779 = vmatprep.subr.bf16.mxu1 %v2491_v48  ;;  %2943 = vmatprep.subr.bf16.mxu0 %v2493_v56  ;;  %v2587_v48 = vld [vmem:[#allocation5 + $0xec8] sm:$0xff]  ;;  %v2589_v56 = vld [vmem:[#allocation5 + $0xed8] sm:$0xff] }
 0x95a   :  { %2780 = vmatpush1.bf16.msra.mxu1 %v2490_v22  ;;  %2944 = vmatpush1.bf16.msra.mxu0 %v2492_v49  ;;  %v2586_v22 = vld [vmem:[#allocation5 + $0xec0] sm:$0xff]  ;;  %v2588_v49 = vld [vmem:[#allocation5 + $0xed0] sm:$0xff] }
 0x95b   :  { %2790 = vmatprep.subr.bf16.mxu1 %v2499_v38  ;;  %2954 = vmatprep.subr.bf16.mxu0 %v2501_v14  ;;  %v2595_v38 = vld [vmem:[#allocation5 + $0xf08] sm:$0xff]  ;;  %v2597_v14 = vld [vmem:[#allocation5 + $0xf18] sm:$0xff] }
 0x95d   :  { %2782 = vmatmul.mubr.bf16.vlgmr.msra.gmra.mrb[24].mxu1 %v8662_v29  ;;  %2946 = vmatmul.mubr.bf16.vlgmr.msra.gmra.mrb[4].mxu0 %v8662_v29 }
 0x95e   :  { %2791 = vmatpush1.bf16.msra.mxu1 %v2498_v52  ;;  %2955 = vmatpush1.bf16.msra.mxu0 %v2500_v21  ;;  %v2594_v52 = vld [vmem:[#allocation5 + $0xf00] sm:$0xff]  ;;  %v2596_v21 = vld [vmem:[#allocation5 + $0xf10] sm:$0xff] }
 0x95f   :  { %2792 = vmatprep.subr.bf16.mxu1 %v2507_v30  ;;  %2956 = vmatprep.subr.bf16.mxu0 %v2509_v0  ;;  %v2603_v30 = vld [vmem:[#allocation5 + $0xf48] sm:$0xff]  ;;  %v2605_v0 = vld [vmem:[#allocation5 + $0xf58] sm:$0xff] }
 0x960   :  { %2822 = vmatprep.mubr.bf16.mxu1 %v8678_v51  ;;  %2986 = vmatprep.mubr.bf16.mxu0 %v8678_v51 }
 0x962   :  { %2793 = vmatpush1.bf16.msra.mxu1 %v2506_v27  ;;  %2957 = vmatpush1.bf16.msra.mxu0 %v2508_v36  ;;  %v2602_v27 = vld [vmem:[#allocation5 + $0xf40] sm:$0xff]  ;;  %v2604_v36 = vld [vmem:[#allocation5 + $0xf50] sm:$0xff] }
 0x963   :  { %2794 = vmatprep.subr.bf16.mxu1 %v2515_v6  ;;  %2958 = vmatprep.subr.bf16.mxu0 %v2517_v53  ;;  %v2611_v6 = vld [vmem:[#allocation5 + $0xf88] sm:$0xff]  ;;  %v2613_v53 = vld [vmem:[#allocation5 + $0xf98] sm:$0xff] }
 0x966   :  { %2795 = vmatpush1.bf16.msra.mxu1 %v2514_v3  ;;  %2959 = vmatpush1.bf16.msra.mxu0 %v2516_v55  ;;  %v2610_v3 = vld [vmem:[#allocation5 + $0xf80] sm:$0xff]  ;;  %v2612_v55 = vld [vmem:[#allocation5 + $0xf90] sm:$0xff] }
 0x967   :  { %2796 = vmatprep.subr.bf16.mxu1 %v2523_v28  ;;  %2960 = vmatprep.subr.bf16.mxu0 %v2525_v37  ;;  %v2619_v28 = vld [vmem:[#allocation5 + $0xfc8] sm:$0xff]  ;;  %v2621_v37 = vld [vmem:[#allocation5 + $0xfd8] sm:$0xff] }
 0x96a   :  { %2797 = vmatpush1.bf16.msra.mxu1 %v2522_v16  ;;  %2961 = vmatpush1.bf16.msra.mxu0 %v2524_v34  ;;  %v2618_v16 = vld [vmem:[#allocation5 + $0xfc0] sm:$0xff]  ;;  %v2620_v34 = vld [vmem:[#allocation5 + $0xfd0] sm:$0xff] }
 0x96b   :  { %2798 = vmatprep.subr.bf16.mxu1 %v2531_v43  ;;  %2962 = vmatprep.subr.bf16.mxu0 %v2533_v25  ;;  %v2119_v43 = vld [vmem:[#allocation5 + $0x28] sm:$0xff]  ;;  %v2121_v25 = vld [vmem:[#allocation5 + $0x38] sm:$0xff] }
 0x96e   :  { %2799 = vmatpush1.bf16.msra.mxu1 %v2530_v35  ;;  %2963 = vmatpush1.bf16.msra.mxu0 %v2532_v44  ;;  %v2118_v35 = vld [vmem:[#allocation5 + $0x20] sm:$0xff]  ;;  %v2120_v44 = vld [vmem:[#allocation5 + $0x30] sm:$0xff] }
 0x96f   :  { %2800 = vmatprep.subr.bf16.mxu1 %v2539_v57  ;;  %2964 = vmatprep.subr.bf16.mxu0 %v2541_v2  ;;  %v2127_v57 = vld [vmem:[#allocation5 + $0x68] sm:$0xff]  ;;  %v2129_v2 = vld [vmem:[#allocation5 + $0x78] sm:$0xff] }
 0x972   :  { %2801 = vmatpush1.bf16.msra.mxu1 %v2538_v41  ;;  %2965 = vmatpush1.bf16.msra.mxu0 %v2540_v31  ;;  %v2126_v41 = vld [vmem:[#allocation5 + $0x60] sm:$0xff]  ;;  %v2128_v31 = vld [vmem:[#allocation5 + $0x70] sm:$0xff] }
 0x973   :  { %2802 = vmatprep.subr.bf16.mxu1 %v2547_v8  ;;  %2966 = vmatprep.subr.bf16.mxu0 %v2549_v59  ;;  %v2135_v8 = vld [vmem:[#allocation5 + $0xa8] sm:$0xff]  ;;  %v2137_v59 = vld [vmem:[#allocation5 + $0xb8] sm:$0xff] }
 0x976   :  { %2803 = vmatpush1.bf16.msra.mxu1 %v2546_v5  ;;  %2967 = vmatpush1.bf16.msra.mxu0 %v2548_v60  ;;  %v2134_v5 = vld [vmem:[#allocation5 + $0xa0] sm:$0xff]  ;;  %v2136_v60 = vld [vmem:[#allocation5 + $0xb0] sm:$0xff] }
 0x977   :  { %2804 = vmatprep.subr.bf16.mxu1 %v2555_v4  ;;  %2968 = vmatprep.subr.bf16.mxu0 %v2557_v17  ;;  %v2143_v4 = vld [vmem:[#allocation5 + $0xe8] sm:$0xff]  ;;  %v2145_v17 = vld [vmem:[#allocation5 + $0xf8] sm:$0xff] }
 0x97a   :  { %2805 = vmatpush1.bf16.msra.mxu1 %v2554_v26  ;;  %2969 = vmatpush1.bf16.msra.mxu0 %v2556_v13  ;;  %v2142_v26 = vld [vmem:[#allocation5 + $0xe0] sm:$0xff]  ;;  %v2144_v13 = vld [vmem:[#allocation5 + $0xf0] sm:$0xff] }
 0x97b   :  { %2806 = vmatprep.subr.bf16.mxu1 %v2563_v9  ;;  %2970 = vmatprep.subr.bf16.mxu0 %v2565_v18  ;;  %v2151_v9 = vld [vmem:[#allocation5 + $0x128] sm:$0xff]  ;;  %v2153_v18 = vld [vmem:[#allocation5 + $0x138] sm:$0xff] }
 0x97e   :  { %2807 = vmatpush1.bf16.msra.mxu1 %v2562_v23  ;;  %2971 = vmatpush1.bf16.msra.mxu0 %v2564_v32  ;;  %v2152_v23 = vld [vmem:[#allocation5 + $0x130] sm:$0xff]  ;;  %v2159_v32 = vld [vmem:[#allocation5 + $0x168] sm:$0xff] }
 0x97f   :  { %2808 = vmatprep.subr.bf16.mxu1 %v2571_v61  ;;  %2972 = vmatprep.subr.bf16.mxu0 %v2573_v47  ;;  %v2161_v61 = vld [vmem:[#allocation5 + $0x178] sm:$0xff]  ;;  %v2158_v47 = vld [vmem:[#allocation5 + $0x160] sm:$0xff] }
 0x982   :  { %2809 = vmatpush1.bf16.msra.mxu1 %v2570_v63  ;;  %2973 = vmatpush1.bf16.msra.mxu0 %v2572_v39  ;;  %v2160_v63 = vld [vmem:[#allocation5 + $0x170] sm:$0xff]  ;;  %v2167_v39 = vld [vmem:[#allocation5 + $0x1a8] sm:$0xff] }
 0x983   :  { %2810 = vmatprep.subr.bf16.mxu1 %v2579_v40  ;;  %2974 = vmatprep.subr.bf16.mxu0 %v2581_v46  ;;  %v2169_v40 = vld [vmem:[#allocation5 + $0x1b8] sm:$0xff]  ;;  %v2166_v46 = vld [vmem:[#allocation5 + $0x1a0] sm:$0xff] }
 0x986   :  { %2811 = vmatpush1.bf16.msra.mxu1 %v2578_v45  ;;  %2975 = vmatpush1.bf16.msra.mxu0 %v2580_v1  ;;  %v2168_v45 = vld [vmem:[#allocation5 + $0x1b0] sm:$0xff]  ;;  %v2175_v1 = vld [vmem:[#allocation5 + $0x1e8] sm:$0xff] }
 0x987   :  { %2812 = vmatprep.subr.bf16.mxu1 %v2587_v48  ;;  %2976 = vmatprep.subr.bf16.mxu0 %v2589_v56  ;;  %v2177_v48 = vld [vmem:[#allocation5 + $0x1f8] sm:$0xff]  ;;  %v2174_v56 = vld [vmem:[#allocation5 + $0x1e0] sm:$0xff] }
 0x98a   :  { %2813 = vmatpush1.bf16.msra.mxu1 %v2586_v22  ;;  %2977 = vmatpush1.bf16.msra.mxu0 %v2588_v49  ;;  %v2176_v22 = vld [vmem:[#allocation5 + $0x1f0] sm:$0xff]  ;;  %v2183_v49 = vld [vmem:[#allocation5 + $0x228] sm:$0xff] }
 0x98b   :  { %2814 = vmatprep.subr.bf16.mxu1 %v2595_v38  ;;  %2978 = vmatprep.subr.bf16.mxu0 %v2597_v14  ;;  %v2185_v38 = vld [vmem:[#allocation5 + $0x238] sm:$0xff]  ;;  %v2182_v14 = vld [vmem:[#allocation5 + $0x220] sm:$0xff] }
 0x98e   :  { %2815 = vmatpush1.bf16.msra.mxu1 %v2594_v52  ;;  %2979 = vmatpush1.bf16.msra.mxu0 %v2596_v21  ;;  %v2184_v52 = vld [vmem:[#allocation5 + $0x230] sm:$0xff]  ;;  %v2191_v21 = vld [vmem:[#allocation5 + $0x268] sm:$0xff] }
 0x98f   :  { %2816 = vmatprep.subr.bf16.mxu1 %v2603_v30  ;;  %2980 = vmatprep.subr.bf16.mxu0 %v2605_v0  ;;  %v2193_v30 = vld [vmem:[#allocation5 + $0x278] sm:$0xff]  ;;  %v2190_v0 = vld [vmem:[#allocation5 + $0x260] sm:$0xff] }
 0x992   :  { %2817 = vmatpush1.bf16.msra.mxu1 %v2602_v27  ;;  %2981 = vmatpush1.bf16.msra.mxu0 %v2604_v36  ;;  %v2192_v27 = vld [vmem:[#allocation5 + $0x270] sm:$0xff]  ;;  %v2199_v36 = vld [vmem:[#allocation5 + $0x2a8] sm:$0xff] }
 0x993   :  { %2818 = vmatprep.subr.bf16.mxu1 %v2611_v6  ;;  %2982 = vmatprep.subr.bf16.mxu0 %v2613_v53  ;;  %v2201_v6 = vld [vmem:[#allocation5 + $0x2b8] sm:$0xff]  ;;  %v2198_v53 = vld [vmem:[#allocation5 + $0x2a0] sm:$0xff] }
 0x996   :  { %2819 = vmatpush1.bf16.msra.mxu1 %v2610_v3  ;;  %2983 = vmatpush1.bf16.msra.mxu0 %v2612_v55  ;;  %v2200_v3 = vld [vmem:[#allocation5 + $0x2b0] sm:$0xff]  ;;  %v2207_v55 = vld [vmem:[#allocation5 + $0x2e8] sm:$0xff] }
 0x997   :  { %2820 = vmatprep.subr.bf16.mxu1 %v2619_v28  ;;  %2984 = vmatprep.subr.bf16.mxu0 %v2621_v37  ;;  %v2209_v28 = vld [vmem:[#allocation5 + $0x2f8] sm:$0xff]  ;;  %v2206_v37 = vld [vmem:[#allocation5 + $0x2e0] sm:$0xff] }
 0x99a   :  { %2821 = vmatpush1.bf16.msra.mxu1 %v2618_v16  ;;  %2985 = vmatpush1.bf16.msra.mxu0 %v2620_v34  ;;  %v2208_v16 = vld [vmem:[#allocation5 + $0x2f0] sm:$0xff]  ;;  %v2215_v34 = vld [vmem:[#allocation5 + $0x328] sm:$0xff] }
 0x99b   :  { %2995 = vmatprep.subr.bf16.mxu1 %v2119_v43  ;;  %3159 = vmatprep.subr.bf16.mxu0 %v2121_v25  ;;  %v2217_v43 = vld [vmem:[#allocation5 + $0x338] sm:$0xff]  ;;  %v2214_v25 = vld [vmem:[#allocation5 + $0x320] sm:$0xff] }
 0x99d   :  { %2823 = vmatmul.mubr.bf16.vlgmr.msra.gmra.mrb[24].mxu1 %v8676_v50  ;;  %2987 = vmatmul.mubr.bf16.vlgmr.msra.gmra.mrb[4].mxu0 %v8676_v50 }
 0x99e   :  { %2996 = vmatpush1.bf16.msra.mxu1 %v2118_v35  ;;  %3160 = vmatpush1.bf16.msra.mxu0 %v2120_v44  ;;  %v2216_v35 = vld [vmem:[#allocation5 + $0x330] sm:$0xff]  ;;  %v2223_v44 = vld [vmem:[#allocation5 + $0x368] sm:$0xff] }
 0x99f   :  { %2997 = vmatprep.subr.bf16.mxu1 %v2127_v57  ;;  %3161 = vmatprep.subr.bf16.mxu0 %v2129_v2  ;;  %v2225_v57 = vld [vmem:[#allocation5 + $0x378] sm:$0xff]  ;;  %v2222_v2 = vld [vmem:[#allocation5 + $0x360] sm:$0xff] }
 0x9a0   :  { %3027 = vmatprep.mubr.bf16.mxu1 %v8637_v42  ;;  %3191 = vmatprep.mubr.bf16.mxu0 %v8637_v42  ;;  %v2150_v42 = vld [vmem:[#allocation5 + $0x120] sm:$0xff] }
 0x9a2   :  { %2998 = vmatpush1.bf16.msra.mxu1 %v2126_v41  ;;  %3162 = vmatpush1.bf16.msra.mxu0 %v2128_v31  ;;  %v2224_v41 = vld [vmem:[#allocation5 + $0x370] sm:$0xff]  ;;  %v2231_v31 = vld [vmem:[#allocation5 + $0x3a8] sm:$0xff] }
 0x9a3   :  { %2999 = vmatprep.subr.bf16.mxu1 %v2135_v8  ;;  %3163 = vmatprep.subr.bf16.mxu0 %v2137_v59  ;;  %v2233_v8 = vld [vmem:[#allocation5 + $0x3b8] sm:$0xff]  ;;  %v2230_v59 = vld [vmem:[#allocation5 + $0x3a0] sm:$0xff] }
 0x9a6   :  { %3000 = vmatpush1.bf16.msra.mxu1 %v2134_v5  ;;  %3164 = vmatpush1.bf16.msra.mxu0 %v2136_v60  ;;  %v2232_v5 = vld [vmem:[#allocation5 + $0x3b0] sm:$0xff]  ;;  %v2239_v60 = vld [vmem:[#allocation5 + $0x3e8] sm:$0xff] }
 0x9a7   :  { %3001 = vmatprep.subr.bf16.mxu1 %v2143_v4  ;;  %3165 = vmatprep.subr.bf16.mxu0 %v2145_v17  ;;  %v2241_v4 = vld [vmem:[#allocation5 + $0x3f8] sm:$0xff]  ;;  %v2238_v17 = vld [vmem:[#allocation5 + $0x3e0] sm:$0xff] }
 0x9aa   :  { %3002 = vmatpush1.bf16.msra.mxu1 %v2142_v26  ;;  %3166 = vmatpush1.bf16.msra.mxu0 %v2144_v13  ;;  %v2240_v26 = vld [vmem:[#allocation5 + $0x3f0] sm:$0xff]  ;;  %v2247_v13 = vld [vmem:[#allocation5 + $0x428] sm:$0xff] }
 0x9ab   :  { %3003 = vmatprep.subr.bf16.mxu1 %v2151_v9  ;;  %3167 = vmatprep.subr.bf16.mxu0 %v2153_v18  ;;  %v2249_v9 = vld [vmem:[#allocation5 + $0x438] sm:$0xff]  ;;  %v2246_v18 = vld [vmem:[#allocation5 + $0x420] sm:$0xff] }
 0x9ae   :  { %3004 = vmatpush1.bf16.msra.mxu1 %v2150_v42  ;;  %3168 = vmatpush1.bf16.msra.mxu0 %v2152_v23  ;;  %v2248_v42 = vld [vmem:[#allocation5 + $0x430] sm:$0xff]  ;;  %v2255_v23 = vld [vmem:[#allocation5 + $0x468] sm:$0xff] }
 0x9af   :  { %3005 = vmatprep.subr.bf16.mxu1 %v2159_v32  ;;  %3169 = vmatprep.subr.bf16.mxu0 %v2161_v61  ;;  %v2257_v32 = vld [vmem:[#allocation5 + $0x478] sm:$0xff]  ;;  %v2254_v61 = vld [vmem:[#allocation5 + $0x460] sm:$0xff] }
 0x9b2   :  { %3006 = vmatpush1.bf16.msra.mxu1 %v2158_v47  ;;  %3170 = vmatpush1.bf16.msra.mxu0 %v2160_v63  ;;  %v2256_v47 = vld [vmem:[#allocation5 + $0x470] sm:$0xff]  ;;  %v2263_v63 = vld [vmem:[#allocation5 + $0x4a8] sm:$0xff] }
 0x9b3   :  { %3007 = vmatprep.subr.bf16.mxu1 %v2167_v39  ;;  %3171 = vmatprep.subr.bf16.mxu0 %v2169_v40  ;;  %v2265_v39 = vld [vmem:[#allocation5 + $0x4b8] sm:$0xff]  ;;  %v2262_v40 = vld [vmem:[#allocation5 + $0x4a0] sm:$0xff] }
 0x9b6   :  { %3008 = vmatpush1.bf16.msra.mxu1 %v2166_v46  ;;  %3172 = vmatpush1.bf16.msra.mxu0 %v2168_v45  ;;  %v2264_v46 = vld [vmem:[#allocation5 + $0x4b0] sm:$0xff]  ;;  %v2271_v45 = vld [vmem:[#allocation5 + $0x4e8] sm:$0xff] }
 0x9b7   :  { %3009 = vmatprep.subr.bf16.mxu1 %v2175_v1  ;;  %3173 = vmatprep.subr.bf16.mxu0 %v2177_v48  ;;  %v2270_v1 = vld [vmem:[#allocation5 + $0x4e0] sm:$0xff]  ;;  %v2272_v48 = vld [vmem:[#allocation5 + $0x4f0] sm:$0xff] }
 0x9ba   :  { %3010 = vmatpush1.bf16.msra.mxu1 %v2174_v56  ;;  %3174 = vmatpush1.bf16.msra.mxu0 %v2176_v22  ;;  %v2279_v56 = vld [vmem:[#allocation5 + $0x528] sm:$0xff]  ;;  %v2281_v22 = vld [vmem:[#allocation5 + $0x538] sm:$0xff] }
 0x9bb   :  { %3011 = vmatprep.subr.bf16.mxu1 %v2183_v49  ;;  %3175 = vmatprep.subr.bf16.mxu0 %v2185_v38  ;;  %v2280_v49 = vld [vmem:[#allocation5 + $0x530] sm:$0xff]  ;;  %v2287_v38 = vld [vmem:[#allocation5 + $0x568] sm:$0xff] }
 0x9be   :  { %3012 = vmatpush1.bf16.msra.mxu1 %v2182_v14  ;;  %3176 = vmatpush1.bf16.msra.mxu0 %v2184_v52  ;;  %v2289_v14 = vld [vmem:[#allocation5 + $0x578] sm:$0xff]  ;;  %v2286_v52 = vld [vmem:[#allocation5 + $0x560] sm:$0xff] }
 0x9bf   :  { %3013 = vmatprep.subr.bf16.mxu1 %v2191_v21  ;;  %3177 = vmatprep.subr.bf16.mxu0 %v2193_v30  ;;  %v2288_v21 = vld [vmem:[#allocation5 + $0x570] sm:$0xff]  ;;  %v2295_v30 = vld [vmem:[#allocation5 + $0x5a8] sm:$0xff] }
 0x9c2   :  { %3014 = vmatpush1.bf16.msra.mxu1 %v2190_v0  ;;  %3178 = vmatpush1.bf16.msra.mxu0 %v2192_v27  ;;  %v2297_v0 = vld [vmem:[#allocation5 + $0x5b8] sm:$0xff]  ;;  %v2294_v27 = vld [vmem:[#allocation5 + $0x5a0] sm:$0xff] }
 0x9c3   :  { %3015 = vmatprep.subr.bf16.mxu1 %v2199_v36  ;;  %3179 = vmatprep.subr.bf16.mxu0 %v2201_v6  ;;  %v2296_v36 = vld [vmem:[#allocation5 + $0x5b0] sm:$0xff]  ;;  %v2303_v6 = vld [vmem:[#allocation5 + $0x5e8] sm:$0xff] }
 0x9c6   :  { %3016 = vmatpush1.bf16.msra.mxu1 %v2198_v53  ;;  %3180 = vmatpush1.bf16.msra.mxu0 %v2200_v3  ;;  %v2305_v53 = vld [vmem:[#allocation5 + $0x5f8] sm:$0xff]  ;;  %v2302_v3 = vld [vmem:[#allocation5 + $0x5e0] sm:$0xff] }
 0x9c7   :  { %3017 = vmatprep.subr.bf16.mxu1 %v2207_v55  ;;  %3181 = vmatprep.subr.bf16.mxu0 %v2209_v28  ;;  %v2304_v55 = vld [vmem:[#allocation5 + $0x5f0] sm:$0xff]  ;;  %v2311_v28 = vld [vmem:[#allocation5 + $0x628] sm:$0xff] }
 0x9ca   :  { %3018 = vmatpush1.bf16.msra.mxu1 %v2206_v37  ;;  %3182 = vmatpush1.bf16.msra.mxu0 %v2208_v16  ;;  %v2313_v37 = vld [vmem:[#allocation5 + $0x638] sm:$0xff]  ;;  %v2310_v16 = vld [vmem:[#allocation5 + $0x620] sm:$0xff] }
 0x9cb   :  { %3019 = vmatprep.subr.bf16.mxu1 %v2215_v34  ;;  %3183 = vmatprep.subr.bf16.mxu0 %v2217_v43  ;;  %v2312_v34 = vld [vmem:[#allocation5 + $0x630] sm:$0xff]  ;;  %v2319_v43 = vld [vmem:[#allocation5 + $0x668] sm:$0xff] }
 0x9ce   :  { %3020 = vmatpush1.bf16.msra.mxu1 %v2214_v25  ;;  %3184 = vmatpush1.bf16.msra.mxu0 %v2216_v35  ;;  %v2321_v25 = vld [vmem:[#allocation5 + $0x678] sm:$0xff]  ;;  %v2318_v35 = vld [vmem:[#allocation5 + $0x660] sm:$0xff] }
 0x9cf   :  { %3021 = vmatprep.subr.bf16.mxu1 %v2223_v44  ;;  %3185 = vmatprep.subr.bf16.mxu0 %v2225_v57  ;;  %v2320_v44 = vld [vmem:[#allocation5 + $0x670] sm:$0xff]  ;;  %v2327_v57 = vld [vmem:[#allocation5 + $0x6a8] sm:$0xff] }
 0x9d2   :  { %3022 = vmatpush1.bf16.msra.mxu1 %v2222_v2  ;;  %3186 = vmatpush1.bf16.msra.mxu0 %v2224_v41  ;;  %v2329_v2 = vld [vmem:[#allocation5 + $0x6b8] sm:$0xff]  ;;  %v2326_v41 = vld [vmem:[#allocation5 + $0x6a0] sm:$0xff] }
 0x9d3   :  { %3023 = vmatprep.subr.bf16.mxu1 %v2231_v31  ;;  %3187 = vmatprep.subr.bf16.mxu0 %v2233_v8  ;;  %v2328_v31 = vld [vmem:[#allocation5 + $0x6b0] sm:$0xff]  ;;  %v2335_v8 = vld [vmem:[#allocation5 + $0x6e8] sm:$0xff] }
 0x9d6   :  { %3024 = vmatpush1.bf16.msra.mxu1 %v2230_v59  ;;  %3188 = vmatpush1.bf16.msra.mxu0 %v2232_v5  ;;  %v2337_v59 = vld [vmem:[#allocation5 + $0x6f8] sm:$0xff]  ;;  %v2334_v5 = vld [vmem:[#allocation5 + $0x6e0] sm:$0xff] }
 0x9d7   :  { %3025 = vmatprep.subr.bf16.mxu1 %v2239_v60  ;;  %3189 = vmatprep.subr.bf16.mxu0 %v2241_v4  ;;  %v2336_v60 = vld [vmem:[#allocation5 + $0x6f0] sm:$0xff]  ;;  %v2343_v4 = vld [vmem:[#allocation5 + $0x728] sm:$0xff] }
 0x9da   :  { %3026 = vmatpush1.bf16.msra.mxu1 %v2238_v17  ;;  %3190 = vmatpush1.bf16.msra.mxu0 %v2240_v26  ;;  %v2345_v17 = vld [vmem:[#allocation5 + $0x738] sm:$0xff]  ;;  %v2342_v26 = vld [vmem:[#allocation5 + $0x720] sm:$0xff] }
 0x9db   :  { %3036 = vmatprep.subr.bf16.mxu1 %v2247_v13  ;;  %3200 = vmatprep.subr.bf16.mxu0 %v2249_v9  ;;  %v2344_v13 = vld [vmem:[#allocation5 + $0x730] sm:$0xff]  ;;  %v2351_v9 = vld [vmem:[#allocation5 + $0x768] sm:$0xff] }
 0x9dd   :  { %3028 = vmatmul.mubr.bf16.vlgmr.msra.gmra.mrb[28].mxu1 %v8635_v33  ;;  %3192 = vmatmul.mubr.bf16.vlgmr.msra.gmra.mrb[8].mxu0 %v8635_v33  ;;  %v2273_v33 = vld [vmem:[#allocation5 + $0x4f8] sm:$0xff] }
 0x9de   :  { %3037 = vmatpush1.bf16.msra.mxu1 %v2246_v18  ;;  %3201 = vmatpush1.bf16.msra.mxu0 %v2248_v42  ;;  %v2353_v18 = vld [vmem:[#allocation5 + $0x778] sm:$0xff]  ;;  %v2350_v42 = vld [vmem:[#allocation5 + $0x760] sm:$0xff] }
 0x9df   :  { %3038 = vmatprep.subr.bf16.mxu1 %v2255_v23  ;;  %3202 = vmatprep.subr.bf16.mxu0 %v2257_v32  ;;  %v2352_v23 = vld [vmem:[#allocation5 + $0x770] sm:$0xff]  ;;  %v2359_v32 = vld [vmem:[#allocation5 + $0x7a8] sm:$0xff] }
 0x9e0   :  { %3068 = vmatprep.mubr.bf16.mxu1 %v8649_v54  ;;  %3232 = vmatprep.mubr.bf16.mxu0 %v8649_v54  ;;  %v2278_v54 = vld [vmem:[#allocation5 + $0x520] sm:$0xff] }
 0x9e2   :  { %3039 = vmatpush1.bf16.msra.mxu1 %v2254_v61  ;;  %3203 = vmatpush1.bf16.msra.mxu0 %v2256_v47  ;;  %v2361_v61 = vld [vmem:[#allocation5 + $0x7b8] sm:$0xff]  ;;  %v2358_v47 = vld [vmem:[#allocation5 + $0x7a0] sm:$0xff] }
 0x9e3   :  { %3040 = vmatprep.subr.bf16.mxu1 %v2263_v63  ;;  %3204 = vmatprep.subr.bf16.mxu0 %v2265_v39  ;;  %v2360_v63 = vld [vmem:[#allocation5 + $0x7b0] sm:$0xff]  ;;  %v2367_v39 = vld [vmem:[#allocation5 + $0x7e8] sm:$0xff] }
 0x9e6   :  { %3041 = vmatpush1.bf16.msra.mxu1 %v2262_v40  ;;  %3205 = vmatpush1.bf16.msra.mxu0 %v2264_v46  ;;  %v2369_v40 = vld [vmem:[#allocation5 + $0x7f8] sm:$0xff]  ;;  %v2366_v46 = vld [vmem:[#allocation5 + $0x7e0] sm:$0xff] }
 0x9e7   :  { %3042 = vmatprep.subr.bf16.mxu1 %v2271_v45  ;;  %3206 = vmatprep.subr.bf16.mxu0 %v2273_v33  ;;  %v2368_v45 = vld [vmem:[#allocation5 + $0x7f0] sm:$0xff]  ;;  %v2375_v33 = vld [vmem:[#allocation5 + $0x828] sm:$0xff] }
 0x9ea   :  { %3043 = vmatpush1.bf16.msra.mxu1 %v2270_v1  ;;  %3207 = vmatpush1.bf16.msra.mxu0 %v2272_v48  ;;  %v2377_v1 = vld [vmem:[#allocation5 + $0x838] sm:$0xff]  ;;  %v2374_v48 = vld [vmem:[#allocation5 + $0x820] sm:$0xff] }
 0x9eb   :  { %3044 = vmatprep.subr.bf16.mxu1 %v2279_v56  ;;  %3208 = vmatprep.subr.bf16.mxu0 %v2281_v22  ;;  %v2376_v56 = vld [vmem:[#allocation5 + $0x830] sm:$0xff]  ;;  %v2383_v22 = vld [vmem:[#allocation5 + $0x868] sm:$0xff] }
 0x9ee   :  { %3045 = vmatpush1.bf16.msra.mxu1 %v2278_v54  ;;  %3209 = vmatpush1.bf16.msra.mxu0 %v2280_v49  ;;  %v2385_v54 = vld [vmem:[#allocation5 + $0x878] sm:$0xff]  ;;  %v2382_v49 = vld [vmem:[#allocation5 + $0x860] sm:$0xff] }
 0x9ef   :  { %3046 = vmatprep.subr.bf16.mxu1 %v2287_v38  ;;  %3210 = vmatprep.subr.bf16.mxu0 %v2289_v14  ;;  %v2384_v38 = vld [vmem:[#allocation5 + $0x870] sm:$0xff]  ;;  %v2391_v14 = vld [vmem:[#allocation5 + $0x8a8] sm:$0xff] }
 0x9f2   :  { %3047 = vmatpush1.bf16.msra.mxu1 %v2286_v52  ;;  %3211 = vmatpush1.bf16.msra.mxu0 %v2288_v21  ;;  %v2393_v52 = vld [vmem:[#allocation5 + $0x8b8] sm:$0xff]  ;;  %v2390_v21 = vld [vmem:[#allocation5 + $0x8a0] sm:$0xff] }
 0x9f3   :  { %3048 = vmatprep.subr.bf16.mxu1 %v2295_v30  ;;  %3212 = vmatprep.subr.bf16.mxu0 %v2297_v0  ;;  %v2392_v30 = vld [vmem:[#allocation5 + $0x8b0] sm:$0xff]  ;;  %v2399_v0 = vld [vmem:[#allocation5 + $0x8e8] sm:$0xff] }
 0x9f6   :  { %3049 = vmatpush1.bf16.msra.mxu1 %v2294_v27  ;;  %3213 = vmatpush1.bf16.msra.mxu0 %v2296_v36  ;;  %v2398_v27 = vld [vmem:[#allocation5 + $0x8e0] sm:$0xff]  ;;  %v2400_v36 = vld [vmem:[#allocation5 + $0x8f0] sm:$0xff] }
 0x9f7   :  { %3050 = vmatprep.subr.bf16.mxu1 %v2303_v6  ;;  %3214 = vmatprep.subr.bf16.mxu0 %v2305_v53  ;;  %v2407_v6 = vld [vmem:[#allocation5 + $0x928] sm:$0xff]  ;;  %v2409_v53 = vld [vmem:[#allocation5 + $0x938] sm:$0xff] }
 0x9fa   :  { %3051 = vmatpush1.bf16.msra.mxu1 %v2302_v3  ;;  %3215 = vmatpush1.bf16.msra.mxu0 %v2304_v55  ;;  %v2408_v3 = vld [vmem:[#allocation5 + $0x930] sm:$0xff]  ;;  %v2415_v55 = vld [vmem:[#allocation5 + $0x968] sm:$0xff] }
 0x9fb   :  { %3052 = vmatprep.subr.bf16.mxu1 %v2311_v28  ;;  %3216 = vmatprep.subr.bf16.mxu0 %v2313_v37  ;;  %v2417_v28 = vld [vmem:[#allocation5 + $0x978] sm:$0xff]  ;;  %v2414_v37 = vld [vmem:[#allocation5 + $0x960] sm:$0xff] }
 0x9fe   :  { %3053 = vmatpush1.bf16.msra.mxu1 %v2310_v16  ;;  %3217 = vmatpush1.bf16.msra.mxu0 %v2312_v34  ;;  %v2416_v16 = vld [vmem:[#allocation5 + $0x970] sm:$0xff]  ;;  %v2423_v34 = vld [vmem:[#allocation5 + $0x9a8] sm:$0xff] }
 0x9ff   :  { %3054 = vmatprep.subr.bf16.mxu1 %v2319_v43  ;;  %3218 = vmatprep.subr.bf16.mxu0 %v2321_v25  ;;  %v2425_v43 = vld [vmem:[#allocation5 + $0x9b8] sm:$0xff]  ;;  %v2422_v25 = vld [vmem:[#allocation5 + $0x9a0] sm:$0xff] }
 0xa02   :  { %3055 = vmatpush1.bf16.msra.mxu1 %v2318_v35  ;;  %3219 = vmatpush1.bf16.msra.mxu0 %v2320_v44  ;;  %v2424_v35 = vld [vmem:[#allocation5 + $0x9b0] sm:$0xff]  ;;  %v2431_v44 = vld [vmem:[#allocation5 + $0x9e8] sm:$0xff] }
 0xa03   :  { %3056 = vmatprep.subr.bf16.mxu1 %v2327_v57  ;;  %3220 = vmatprep.subr.bf16.mxu0 %v2329_v2  ;;  %v2433_v57 = vld [vmem:[#allocation5 + $0x9f8] sm:$0xff]  ;;  %v2430_v2 = vld [vmem:[#allocation5 + $0x9e0] sm:$0xff] }
 0xa06   :  { %3057 = vmatpush1.bf16.msra.mxu1 %v2326_v41  ;;  %3221 = vmatpush1.bf16.msra.mxu0 %v2328_v31  ;;  %v2432_v41 = vld [vmem:[#allocation5 + $0x9f0] sm:$0xff]  ;;  %v2439_v31 = vld [vmem:[#allocation5 + $0xa28] sm:$0xff] }
 0xa07   :  { %3058 = vmatprep.subr.bf16.mxu1 %v2335_v8  ;;  %3222 = vmatprep.subr.bf16.mxu0 %v2337_v59  ;;  %v2441_v8 = vld [vmem:[#allocation5 + $0xa38] sm:$0xff]  ;;  %v2438_v59 = vld [vmem:[#allocation5 + $0xa20] sm:$0xff] }
 0xa0a   :  { %3059 = vmatpush1.bf16.msra.mxu1 %v2334_v5  ;;  %3223 = vmatpush1.bf16.msra.mxu0 %v2336_v60  ;;  %v2440_v5 = vld [vmem:[#allocation5 + $0xa30] sm:$0xff]  ;;  %v2447_v60 = vld [vmem:[#allocation5 + $0xa68] sm:$0xff] }
 0xa0b   :  { %3060 = vmatprep.subr.bf16.mxu1 %v2343_v4  ;;  %3224 = vmatprep.subr.bf16.mxu0 %v2345_v17  ;;  %v2449_v4 = vld [vmem:[#allocation5 + $0xa78] sm:$0xff]  ;;  %v2446_v17 = vld [vmem:[#allocation5 + $0xa60] sm:$0xff] }
 0xa0e   :  { %3061 = vmatpush1.bf16.msra.mxu1 %v2342_v26  ;;  %3225 = vmatpush1.bf16.msra.mxu0 %v2344_v13  ;;  %v2448_v26 = vld [vmem:[#allocation5 + $0xa70] sm:$0xff]  ;;  %v2455_v13 = vld [vmem:[#allocation5 + $0xaa8] sm:$0xff] }
 0xa0f   :  { %3062 = vmatprep.subr.bf16.mxu1 %v2351_v9  ;;  %3226 = vmatprep.subr.bf16.mxu0 %v2353_v18  ;;  %v2457_v9 = vld [vmem:[#allocation5 + $0xab8] sm:$0xff]  ;;  %v2454_v18 = vld [vmem:[#allocation5 + $0xaa0] sm:$0xff] }
 0xa12   :  { %3063 = vmatpush1.bf16.msra.mxu1 %v2350_v42  ;;  %3227 = vmatpush1.bf16.msra.mxu0 %v2352_v23  ;;  %v2456_v42 = vld [vmem:[#allocation5 + $0xab0] sm:$0xff]  ;;  %v2463_v23 = vld [vmem:[#allocation5 + $0xae8] sm:$0xff] }
 0xa13   :  { %3064 = vmatprep.subr.bf16.mxu1 %v2359_v32  ;;  %3228 = vmatprep.subr.bf16.mxu0 %v2361_v61  ;;  %v2465_v32 = vld [vmem:[#allocation5 + $0xaf8] sm:$0xff]  ;;  %v2462_v61 = vld [vmem:[#allocation5 + $0xae0] sm:$0xff] }
 0xa16   :  { %3065 = vmatpush1.bf16.msra.mxu1 %v2358_v47  ;;  %3229 = vmatpush1.bf16.msra.mxu0 %v2360_v63  ;;  %v2464_v47 = vld [vmem:[#allocation5 + $0xaf0] sm:$0xff]  ;;  %v2471_v63 = vld [vmem:[#allocation5 + $0xb28] sm:$0xff] }
 0xa17   :  { %3066 = vmatprep.subr.bf16.mxu1 %v2367_v39  ;;  %3230 = vmatprep.subr.bf16.mxu0 %v2369_v40  ;;  %v2473_v39 = vld [vmem:[#allocation5 + $0xb38] sm:$0xff]  ;;  %v2470_v40 = vld [vmem:[#allocation5 + $0xb20] sm:$0xff] }
 0xa1a   :  { %3067 = vmatpush1.bf16.msra.mxu1 %v2366_v46  ;;  %3231 = vmatpush1.bf16.msra.mxu0 %v2368_v45  ;;  %v2472_v46 = vld [vmem:[#allocation5 + $0xb30] sm:$0xff]  ;;  %v2479_v45 = vld [vmem:[#allocation5 + $0xb68] sm:$0xff] }
 0xa1b   :  { %3077 = vmatprep.subr.bf16.mxu1 %v2375_v33  ;;  %3241 = vmatprep.subr.bf16.mxu0 %v2377_v1  ;;  %v2481_v33 = vld [vmem:[#allocation5 + $0xb78] sm:$0xff]  ;;  %v2478_v1 = vld [vmem:[#allocation5 + $0xb60] sm:$0xff] }
 0xa1d   :  { %3069 = vmatmul.mubr.bf16.vlgmr.msra.gmra.mrb[28].mxu1 %v8647_v12  ;;  %3233 = vmatmul.mubr.bf16.vlgmr.msra.gmra.mrb[8].mxu0 %v8647_v12  ;;  %v2401_v12 = vld [vmem:[#allocation5 + $0x8f8] sm:$0xff] }
 0xa1e   :  { %3078 = vmatpush1.bf16.msra.mxu1 %v2374_v48  ;;  %3242 = vmatpush1.bf16.msra.mxu0 %v2376_v56  ;;  %v2480_v48 = vld [vmem:[#allocation5 + $0xb70] sm:$0xff]  ;;  %v2487_v56 = vld [vmem:[#allocation5 + $0xba8] sm:$0xff] }
 0xa1f   :  { %3079 = vmatprep.subr.bf16.mxu1 %v2383_v22  ;;  %3243 = vmatprep.subr.bf16.mxu0 %v2385_v54  ;;  %v2489_v22 = vld [vmem:[#allocation5 + $0xbb8] sm:$0xff]  ;;  %v2486_v54 = vld [vmem:[#allocation5 + $0xba0] sm:$0xff] }
 0xa20   :  { %3109 = vmatprep.mubr.bf16.mxu1 %v8664_v24  ;;  %3273 = vmatprep.mubr.bf16.mxu0 %v8664_v24  ;;  %v2406_v24 = vld [vmem:[#allocation5 + $0x920] sm:$0xff] }
 0xa22   :  { %3080 = vmatpush1.bf16.msra.mxu1 %v2382_v49  ;;  %3244 = vmatpush1.bf16.msra.mxu0 %v2384_v38  ;;  %v2488_v49 = vld [vmem:[#allocation5 + $0xbb0] sm:$0xff]  ;;  %v2495_v38 = vld [vmem:[#allocation5 + $0xbe8] sm:$0xff] }
 0xa23   :  { %3081 = vmatprep.subr.bf16.mxu1 %v2391_v14  ;;  %3245 = vmatprep.subr.bf16.mxu0 %v2393_v52  ;;  %v2497_v14 = vld [vmem:[#allocation5 + $0xbf8] sm:$0xff]  ;;  %v2494_v52 = vld [vmem:[#allocation5 + $0xbe0] sm:$0xff] }
 0xa26   :  { %3082 = vmatpush1.bf16.msra.mxu1 %v2390_v21  ;;  %3246 = vmatpush1.bf16.msra.mxu0 %v2392_v30  ;;  %v2496_v21 = vld [vmem:[#allocation5 + $0xbf0] sm:$0xff]  ;;  %v2503_v30 = vld [vmem:[#allocation5 + $0xc28] sm:$0xff] }
 0xa27   :  { %3083 = vmatprep.subr.bf16.mxu1 %v2399_v0  ;;  %3247 = vmatprep.subr.bf16.mxu0 %v2401_v12  ;;  %v2505_v0 = vld [vmem:[#allocation5 + $0xc38] sm:$0xff]  ;;  %v2502_v12 = vld [vmem:[#allocation5 + $0xc20] sm:$0xff] }
 0xa2a   :  { %3084 = vmatpush1.bf16.msra.mxu1 %v2398_v27  ;;  %3248 = vmatpush1.bf16.msra.mxu0 %v2400_v36  ;;  %v2504_v27 = vld [vmem:[#allocation5 + $0xc30] sm:$0xff]  ;;  %v2511_v36 = vld [vmem:[#allocation5 + $0xc68] sm:$0xff] }
 0xa2b   :  { %3085 = vmatprep.subr.bf16.mxu1 %v2407_v6  ;;  %3249 = vmatprep.subr.bf16.mxu0 %v2409_v53  ;;  %v2513_v6 = vld [vmem:[#allocation5 + $0xc78] sm:$0xff]  ;;  %v2510_v53 = vld [vmem:[#allocation5 + $0xc60] sm:$0xff] }
 0xa2e   :  { %3086 = vmatpush1.bf16.msra.mxu1 %v2406_v24  ;;  %3250 = vmatpush1.bf16.msra.mxu0 %v2408_v3  ;;  %v2512_v24 = vld [vmem:[#allocation5 + $0xc70] sm:$0xff]  ;;  %v2519_v3 = vld [vmem:[#allocation5 + $0xca8] sm:$0xff] }
 0xa2f   :  { %3087 = vmatprep.subr.bf16.mxu1 %v2415_v55  ;;  %3251 = vmatprep.subr.bf16.mxu0 %v2417_v28  ;;  %v2521_v55 = vld [vmem:[#allocation5 + $0xcb8] sm:$0xff]  ;;  %v2518_v28 = vld [vmem:[#allocation5 + $0xca0] sm:$0xff] }
 0xa32   :  { %3088 = vmatpush1.bf16.msra.mxu1 %v2414_v37  ;;  %3252 = vmatpush1.bf16.msra.mxu0 %v2416_v16  ;;  %v2520_v37 = vld [vmem:[#allocation5 + $0xcb0] sm:$0xff]  ;;  %v2527_v16 = vld [vmem:[#allocation5 + $0xce8] sm:$0xff] }
 0xa33   :  { %3089 = vmatprep.subr.bf16.mxu1 %v2423_v34  ;;  %3253 = vmatprep.subr.bf16.mxu0 %v2425_v43  ;;  %v2526_v34 = vld [vmem:[#allocation5 + $0xce0] sm:$0xff]  ;;  %v2528_v43 = vld [vmem:[#allocation5 + $0xcf0] sm:$0xff] }
 0xa36   :  { %3090 = vmatpush1.bf16.msra.mxu1 %v2422_v25  ;;  %3254 = vmatpush1.bf16.msra.mxu0 %v2424_v35  ;;  %v2535_v25 = vld [vmem:[#allocation5 + $0xd28] sm:$0xff]  ;;  %v2537_v35 = vld [vmem:[#allocation5 + $0xd38] sm:$0xff] }
 0xa37   :  { %3091 = vmatprep.subr.bf16.mxu1 %v2431_v44  ;;  %3255 = vmatprep.subr.bf16.mxu0 %v2433_v57  ;;  %v8710_v44 = vld [vmem:[#allocation13 + $0xe] sm:$0xff] }
 0xa38   :  { %v2536_v57 = vld [vmem:[#allocation5 + $0xd30] sm:$0xff] }
 0xa3a   :  { %3092 = vmatpush1.bf16.msra.mxu1 %v2430_v2  ;;  %3256 = vmatpush1.bf16.msra.mxu0 %v2432_v41  ;;  %v2543_v2 = vld [vmem:[#allocation5 + $0xd68] sm:$0xff]  ;;  %v2545_v41 = vld [vmem:[#allocation5 + $0xd78] sm:$0xff] }
 0xa3b   :  { %3093 = vmatprep.subr.bf16.mxu1 %v2439_v31  ;;  %3257 = vmatprep.subr.bf16.mxu0 %v2441_v8  ;;  %v2630_v31 = vrot.slane %v8710_v44, %v8585_v15  ;;  %v2638_v8 = vrot.slane %v8710_v44, %v8607_v58 }
 0xa3e   :  { %3094 = vmatpush1.bf16.msra.mxu1 %v2438_v59  ;;  %3258 = vmatpush1.bf16.msra.mxu0 %v2440_v5  ;;  %v2634_v59 = vrot.slane %v8710_v44, %v8588_v10  ;;  %v2642_v5 = vrot.slane %v8710_v44, %v8610_v7 }
 0xa3f   :  { %3095 = vmatprep.subr.bf16.mxu1 %v2447_v60  ;;  %3259 = vmatprep.subr.bf16.mxu0 %v2449_v4  ;;  %v2542_v60 = vld [vmem:[#allocation5 + $0xd60] sm:$0xff]  ;;  %v2544_v4 = vld [vmem:[#allocation5 + $0xd70] sm:$0xff] }
 0xa42   :  { %3096 = vmatpush1.bf16.msra.mxu1 %v2446_v17  ;;  %3260 = vmatpush1.bf16.msra.mxu0 %v2448_v26 }
 0xa43   :  { %3097 = vmatprep.subr.bf16.mxu1 %v2455_v13  ;;  %3261 = vmatprep.subr.bf16.mxu0 %v2457_v9  ;;  %v2551_v13 = vld [vmem:[#allocation5 + $0xda8] sm:$0xff]  ;;  %v2553_v9 = vld [vmem:[#allocation5 + $0xdb8] sm:$0xff] }
 0xa46   :  { %3098 = vmatpush1.bf16.msra.mxu1 %v2454_v18  ;;  %3262 = vmatpush1.bf16.msra.mxu0 %v2456_v42 }
 0xa47   :  { %3099 = vmatprep.subr.bf16.mxu1 %v2463_v23  ;;  %3263 = vmatprep.subr.bf16.mxu0 %v2465_v32 }
 0xa4a   :  { %3100 = vmatpush1.bf16.msra.mxu1 %v2462_v61  ;;  %3264 = vmatpush1.bf16.msra.mxu0 %v2464_v47 }
 0xa4b   :  { %3101 = vmatprep.subr.bf16.mxu1 %v2471_v63  ;;  %3265 = vmatprep.subr.bf16.mxu0 %v2473_v39 }
 0xa4e   :  { %3102 = vmatpush1.bf16.msra.mxu1 %v2470_v40  ;;  %3266 = vmatpush1.bf16.msra.mxu0 %v2472_v46 }
 0xa4f   :  { %3103 = vmatprep.subr.bf16.mxu1 %v2479_v45  ;;  %3267 = vmatprep.subr.bf16.mxu0 %v2481_v33 }
 0xa52   :  { %3104 = vmatpush1.bf16.msra.mxu1 %v2478_v1  ;;  %3268 = vmatpush1.bf16.msra.mxu0 %v2480_v48  ;;  %v2550_v1 = vld [vmem:[#allocation5 + $0xda0] sm:$0xff]  ;;  %v2552_v48 = vld [vmem:[#allocation5 + $0xdb0] sm:$0xff] }
 0xa53   :  { %3105 = vmatprep.subr.bf16.mxu1 %v2487_v56  ;;  %3269 = vmatprep.subr.bf16.mxu0 %v2489_v22 }
 0xa56   :  { %3106 = vmatpush1.bf16.msra.mxu1 %v2486_v54  ;;  %3270 = vmatpush1.bf16.msra.mxu0 %v2488_v49  ;;  %v2559_v54 = vld [vmem:[#allocation5 + $0xde8] sm:$0xff]  ;;  %v2561_v49 = vld [vmem:[#allocation5 + $0xdf8] sm:$0xff] }
 0xa57   :  { %3107 = vmatprep.subr.bf16.mxu1 %v2495_v38  ;;  %3271 = vmatprep.subr.bf16.mxu0 %v2497_v14 }
 0xa5a   :  { %3108 = vmatpush1.bf16.msra.mxu1 %v2494_v52  ;;  %3272 = vmatpush1.bf16.msra.mxu0 %v2496_v21 }
 0xa5b   :  { %3118 = vmatprep.subr.bf16.mxu1 %v2503_v30  ;;  %3282 = vmatprep.subr.bf16.mxu0 %v2505_v0  ;;  %v2558_v30 = vld [vmem:[#allocation5 + $0xde0] sm:$0xff]  ;;  %v2560_v0 = vld [vmem:[#allocation5 + $0xdf0] sm:$0xff] }
 0xa5d   :  { %3110 = vmatmul.mubr.bf16.vlgmr.msra.gmra.mrb[28].mxu1 %v8662_v29  ;;  %3274 = vmatmul.mubr.bf16.vlgmr.msra.gmra.mrb[8].mxu0 %v8662_v29  ;;  %v2529_v29 = vld [vmem:[#allocation5 + $0xcf8] sm:$0xff] }
 0xa5e   :  { %3119 = vmatpush1.bf16.msra.mxu1 %v2502_v12  ;;  %3283 = vmatpush1.bf16.msra.mxu0 %v2504_v27  ;;  %v2567_v12 = vld [vmem:[#allocation5 + $0xe28] sm:$0xff]  ;;  %v2569_v27 = vld [vmem:[#allocation5 + $0xe38] sm:$0xff] }
 0xa5f   :  { %3120 = vmatprep.subr.bf16.mxu1 %v2511_v36  ;;  %3284 = vmatprep.subr.bf16.mxu0 %v2513_v6  ;;  %v2566_v36 = vld [vmem:[#allocation5 + $0xe20] sm:$0xff]  ;;  %v2568_v6 = vld [vmem:[#allocation5 + $0xe30] sm:$0xff] }
 0xa60   :  { %3150 = vmatprep.mubr.bf16.mxu1 %v8678_v51  ;;  %3314 = vmatprep.mubr.bf16.mxu0 %v8678_v51  ;;  %v2534_v51 = vld [vmem:[#allocation5 + $0xd20] sm:$0xff] }
 0xa62   :  { %3121 = vmatpush1.bf16.msra.mxu1 %v2510_v53  ;;  %3285 = vmatpush1.bf16.msra.mxu0 %v2512_v24  ;;  %v2575_v53 = vld [vmem:[#allocation5 + $0xe68] sm:$0xff]  ;;  %v2577_v24 = vld [vmem:[#allocation5 + $0xe78] sm:$0xff] }
 0xa63   :  { %3122 = vmatprep.subr.bf16.mxu1 %v2519_v3  ;;  %3286 = vmatprep.subr.bf16.mxu0 %v2521_v55  ;;  %v2574_v3 = vld [vmem:[#allocation5 + $0xe60] sm:$0xff]  ;;  %v2576_v55 = vld [vmem:[#allocation5 + $0xe70] sm:$0xff] }
 0xa66   :  { %3123 = vmatpush1.bf16.msra.mxu1 %v2518_v28  ;;  %3287 = vmatpush1.bf16.msra.mxu0 %v2520_v37  ;;  %v2583_v28 = vld [vmem:[#allocation5 + $0xea8] sm:$0xff]  ;;  %v2585_v37 = vld [vmem:[#allocation5 + $0xeb8] sm:$0xff] }
 0xa67   :  { %3124 = vmatprep.subr.bf16.mxu1 %v2527_v16  ;;  %3288 = vmatprep.subr.bf16.mxu0 %v2529_v29  ;;  %v2582_v16 = vld [vmem:[#allocation5 + $0xea0] sm:$0xff]  ;;  %v2584_v29 = vld [vmem:[#allocation5 + $0xeb0] sm:$0xff] }
 0xa6a   :  { %3125 = vmatpush1.bf16.msra.mxu1 %v2526_v34  ;;  %3289 = vmatpush1.bf16.msra.mxu0 %v2528_v43  ;;  %v2591_v34 = vld [vmem:[#allocation5 + $0xee8] sm:$0xff]  ;;  %v2593_v43 = vld [vmem:[#allocation5 + $0xef8] sm:$0xff] }
 0xa6b   :  { %3126 = vmatprep.subr.bf16.mxu1 %v2535_v25  ;;  %3290 = vmatprep.subr.bf16.mxu0 %v2537_v35  ;;  %v2590_v25 = vld [vmem:[#allocation5 + $0xee0] sm:$0xff]  ;;  %v2592_v35 = vld [vmem:[#allocation5 + $0xef0] sm:$0xff] }
 0xa6e   :  { %3127 = vmatpush1.bf16.msra.mxu1 %v2534_v51  ;;  %3291 = vmatpush1.bf16.msra.mxu0 %v2536_v57  ;;  %v2599_v51 = vld [vmem:[#allocation5 + $0xf28] sm:$0xff]  ;;  %v2601_v57 = vld [vmem:[#allocation5 + $0xf38] sm:$0xff] }
 0xa6f   :  { %3128 = vmatprep.subr.bf16.mxu1 %v2543_v2  ;;  %3292 = vmatprep.subr.bf16.mxu0 %v2545_v41  ;;  %v2598_v2 = vld [vmem:[#allocation5 + $0xf20] sm:$0xff]  ;;  %v2600_v41 = vld [vmem:[#allocation5 + $0xf30] sm:$0xff] }
 0xa70   :  { %v2824_v17 = vpop.f32.mrb[24].mxu1  ;;  %v2988_v26 = vpop.f32.mrb[4].mxu0 }
 0xa71   :  { %v7645_v18 = vadd.f32 %v2824_v17, %v2630_v31  ;;  %v7647_v42 = vadd.f32 %v2988_v26, %v2638_v8  ;;  %v2826_v23 = vpop.f32.mrb[25].mxu1  ;;  %v2990_v32 = vpop.f32.mrb[5].mxu0  ;;  %v2607_v31 = vld [vmem:[#allocation5 + $0xf68] sm:$0xff]  ;;  %v2609_v8 = vld [vmem:[#allocation5 + $0xf78] sm:$0xff]  ;;  %v2614_v17 = vld [vmem:[#allocation5 + $0xfa0] sm:$0xff] }
 0xa72   :  { %v7646_v61 = vadd.f32 %v2826_v23, %v2634_v59  ;;  %v7648_v47 = vadd.f32 %v2990_v32, %v2642_v5  ;;  %v2828_v63 = vpop.f32.mrb[26].mxu1  ;;  %v2992_v39 = vpop.f32.mrb[6].mxu0  ;;  %3129 = vmatpush1.bf16.msra.mxu1 %v2542_v60  ;;  %3293 = vmatpush1.bf16.msra.mxu0 %v2544_v4  ;;  %v2606_v59 = vld [vmem:[#allocation5 + $0xf60] sm:$0xff]  ;;  %v2608_v5 = vld [vmem:[#allocation5 + $0xf70] sm:$0xff]  ;;  %v2615_v60 = vld [vmem:[#allocation5 + $0xfa8] sm:$0xff]  ;;  %v2646_v23 = vrot.slane %v8710_v44, %v8653_v11 }
 0xa73   :  { %v3323_v40 = vmax.f32 %v7645_v18, 0.0  ;;  %v3325_v46 = vmax.f32 %v7647_v42, 0.0  ;;  %v2829_v45 = vpop.f32.mrb[27].mxu1  ;;  %v2993_v33 = vpop.f32.mrb[7].mxu0  ;;  %3130 = vmatprep.subr.bf16.mxu1 %v2551_v13  ;;  %3294 = vmatprep.subr.bf16.mxu0 %v2553_v9  ;;  %v2617_v4 = vld [vmem:[#allocation5 + $0xfb8] sm:$0xff]  ;;  %v2616_v26 = vld [vmem:[#allocation5 + $0xfb0] sm:$0xff]  ;;  %v2654_v32 = vrot.slane %v8710_v44, %v8667_v19 }
 0xa74   :  { %v3324_v56 = vmax.f32 %v7646_v61, 0.0  ;;  %v3326_v22 = vmax.f32 %v7648_v47, 0.0  ;;  %v2623_v13 = vld [vmem:[#allocation5 + $0xfe8] sm:$0xff]  ;;  %v2625_v9 = vld [vmem:[#allocation5 + $0xff8] sm:$0xff]  ;;  %v2622_v18 = vld [vmem:[#allocation5 + $0xfe0] sm:$0xff]  ;;  %v2650_v61 = vrot.slane %v8710_v44, %v8656_v20  ;;  %v2658_v47 = vrot.slane %v8710_v44, %v8670_v62 }
 0xa75   :  { %v8720_v38 = vpack.c.bf16 %v3323_v40, %v3323_v40  ;;  %v8722_v14 = vpack.c.bf16 %v3325_v46, %v3325_v46  ;;  %v2624_v42 = vld [vmem:[#allocation5 + $0xff0] sm:$0xff] }
 0xa76   :  { %v8724_v52 = vpack.c.bf16 %v3324_v56, %v3324_v56  ;;  %v8726_v21 = vpack.c.bf16 %v3326_v22, %v3326_v22  ;;  %3131 = vmatpush1.bf16.msra.mxu1 %v2550_v1  ;;  %3295 = vmatpush1.bf16.msra.mxu0 %v2552_v48 }
 0xa77   :  { %3132 = vmatprep.subr.bf16.mxu1 %v2559_v54  ;;  %3296 = vmatprep.subr.bf16.mxu0 %v2561_v49 }
 0xa7a   :  { %3133 = vmatpush1.bf16.msra.mxu1 %v2558_v30  ;;  %3297 = vmatpush1.bf16.msra.mxu0 %v2560_v0 }
 0xa7b   :  { %3134 = vmatprep.subr.bf16.mxu1 %v2567_v12  ;;  %3298 = vmatprep.subr.bf16.mxu0 %v2569_v27 }
 0xa7e   :  { %3135 = vmatpush1.bf16.msra.mxu1 %v2566_v36  ;;  %3299 = vmatpush1.bf16.msra.mxu0 %v2568_v6 }
 0xa7f   :  { %3136 = vmatprep.subr.bf16.mxu1 %v2575_v53  ;;  %3300 = vmatprep.subr.bf16.mxu0 %v2577_v24 }
 0xa82   :  { %3137 = vmatpush1.bf16.msra.mxu1 %v2574_v3  ;;  %3301 = vmatpush1.bf16.msra.mxu0 %v2576_v55 }
 0xa83   :  { %3138 = vmatprep.subr.bf16.mxu1 %v2583_v28  ;;  %3302 = vmatprep.subr.bf16.mxu0 %v2585_v37 }
 0xa86   :  { %3139 = vmatpush1.bf16.msra.mxu1 %v2582_v16  ;;  %3303 = vmatpush1.bf16.msra.mxu0 %v2584_v29 }
 0xa87   :  { %3140 = vmatprep.subr.bf16.mxu1 %v2591_v34  ;;  %3304 = vmatprep.subr.bf16.mxu0 %v2593_v43 }
 0xa8a   :  { %3141 = vmatpush1.bf16.msra.mxu1 %v2590_v25  ;;  %3305 = vmatpush1.bf16.msra.mxu0 %v2592_v35 }
 0xa8b   :  { %3142 = vmatprep.subr.bf16.mxu1 %v2599_v51  ;;  %3306 = vmatprep.subr.bf16.mxu0 %v2601_v57 }
 0xa8e   :  { %3143 = vmatpush1.bf16.msra.mxu1 %v2598_v2  ;;  %3307 = vmatpush1.bf16.msra.mxu0 %v2600_v41 }
 0xa8f   :  { %3144 = vmatprep.subr.bf16.mxu1 %v2607_v31  ;;  %3308 = vmatprep.subr.bf16.mxu0 %v2609_v8 }
 0xa92   :  { %3145 = vmatpush1.bf16.msra.mxu1 %v2606_v59  ;;  %3309 = vmatpush1.bf16.msra.mxu0 %v2608_v5 }
 0xa93   :  { %3146 = vmatprep.subr.bf16.mxu1 %v2615_v60  ;;  %3310 = vmatprep.subr.bf16.mxu0 %v2617_v4 }
 0xa96   :  { %3147 = vmatpush1.bf16.msra.mxu1 %v2614_v17  ;;  %3311 = vmatpush1.bf16.msra.mxu0 %v2616_v26 }
 0xa97   :  { %3148 = vmatprep.subr.bf16.mxu1 %v2623_v13  ;;  %3312 = vmatprep.subr.bf16.mxu0 %v2625_v9 }
 0xa9a   :  { %3149 = vmatpush1.bf16.msra.mxu1 %v2622_v18  ;;  %3313 = vmatpush1.bf16.msra.mxu0 %v2624_v42 }
 0xa9d   :  { %3151 = vmatmul.mubr.bf16.vlgmr.msra.gmra.mrb[28].mxu1 %v8676_v50  ;;  %3315 = vmatmul.mubr.bf16.vlgmr.msra.gmra.mrb[8].mxu0 %v8676_v50 }
 0xb70   :  { %v3152_v63 = vpop.f32.mrb[28].mxu1  ;;  %v3316_v39 = vpop.f32.mrb[8].mxu0 }
 0xb71   :  { %v7649_v40 = vadd.f32 %v3152_v63, %v2646_v23  ;;  %v7651_v46 = vadd.f32 %v3316_v39, %v2654_v32  ;;  %v3154_v45 = vpop.f32.mrb[29].mxu1  ;;  %v3318_v33 = vpop.f32.mrb[9].mxu0 }
 0xb72   :  { %v7650_v1 = vadd.f32 %v3154_v45, %v2650_v61  ;;  %v7652_v50 = vadd.f32 %v3318_v33, %v2658_v47  ;;  %v3156_v48 = vpop.f32.mrb[30].mxu1  ;;  %v3320_v56 = vpop.f32.mrb[10].mxu0 }
 0xb73   :  { %v3327_v22 = vmax.f32 %v7649_v40, 0.0  ;;  %v3329_v54 = vmax.f32 %v7651_v46, 0.0  ;;  %v3157_v49 = vpop.f32.mrb[31].mxu1  ;;  %v3321_v30 = vpop.f32.mrb[11].mxu0 }
 0xb74   :  { %v3328_v0 = vmax.f32 %v7650_v1, 0.0  ;;  %v3330_v12 = vmax.f32 %v7652_v50, 0.0 }
 0xb75   :  { %v8738_v27 = vpack.c.bf16 %v3327_v22, %v3327_v22  ;;  %v8740_v36 = vpack.c.bf16 %v3329_v54, %v3329_v54 }
 0xb76   :  { %v8742_v44 = vpack.c.bf16 %v3328_v0, %v3328_v0  ;;  %v8744_v6 = vpack.c.bf16 %v3330_v12, %v3330_v12 }
 0xb77   :  { %8083 = dma.done.wait [#allocation12 + $0x4], 65536 }
 0xb78   :  { %8084 = vsyncadd [#allocation12 + $0x4], 4294901760  ;;  %3927 = vmatprep.mubr.bf16.mxu1 %v8724_v52  ;;  %4091 = vmatprep.mubr.bf16.mxu0 %v8724_v52  ;;  %v3343_v53 = vld [vmem:[#allocation6 + $0x8] sm:$0xff]  ;;  %v3345_v24 = vld [vmem:[#allocation6 + $0x18] sm:$0xff] }
 0xb79   :  { %v3342_v3 = vld [vmem:[#allocation6] sm:$0xff]  ;;  %3895 = vmatprep.subr.bf16.mxu1 %v3343_v53  ;;  %4059 = vmatprep.subr.bf16.mxu0 %v3345_v24  ;;  %v3344_v55 = vld [vmem:[#allocation6 + $0x10] sm:$0xff]  ;;  %v3351_v28 = vld [vmem:[#allocation6 + $0x48] sm:$0xff] }
 0xb7a   :  { %v3353_v37 = vld [vmem:[#allocation6 + $0x58] sm:$0xff]  ;;  %3896 = vmatpush1.bf16.msra.mxu1 %v3342_v3  ;;  %4060 = vmatpush1.bf16.msra.mxu0 %v3344_v55  ;;  %v3350_v16 = vld [vmem:[#allocation6 + $0x40] sm:$0xff]  ;;  %v3352_v29 = vld [vmem:[#allocation6 + $0x50] sm:$0xff] }
 0xb7b   :  { %3897 = vmatprep.subr.bf16.mxu1 %v3351_v28  ;;  %4061 = vmatprep.subr.bf16.mxu0 %v3353_v37  ;;  %v3359_v34 = vld [vmem:[#allocation6 + $0x88] sm:$0xff]  ;;  %v3361_v43 = vld [vmem:[#allocation6 + $0x98] sm:$0xff]  ;;  %v3358_v25 = vld [vmem:[#allocation6 + $0x80] sm:$0xff] }
 0xb7c   :  { %v3360_v35 = vld [vmem:[#allocation6 + $0x90] sm:$0xff]  ;;  %v3367_v51 = vld [vmem:[#allocation6 + $0xc8] sm:$0xff]  ;;  %v3369_v57 = vld [vmem:[#allocation6 + $0xd8] sm:$0xff] }
 0xb7d   :  { %v3366_v2 = vld [vmem:[#allocation6 + $0xc0] sm:$0xff]  ;;  %v3368_v41 = vld [vmem:[#allocation6 + $0xd0] sm:$0xff]  ;;  %v3375_v31 = vld [vmem:[#allocation6 + $0x108] sm:$0xff] }
 0xb7e   :  { %3898 = vmatpush1.bf16.msra.mxu1 %v3350_v16  ;;  %4062 = vmatpush1.bf16.msra.mxu0 %v3352_v29  ;;  %v3377_v8 = vld [vmem:[#allocation6 + $0x118] sm:$0xff]  ;;  %v3374_v59 = vld [vmem:[#allocation6 + $0x100] sm:$0xff]  ;;  %v3376_v5 = vld [vmem:[#allocation6 + $0x110] sm:$0xff] }
 0xb7f   :  { %3899 = vmatprep.subr.bf16.mxu1 %v3359_v34  ;;  %4063 = vmatprep.subr.bf16.mxu0 %v3361_v43  ;;  %v3383_v60 = vld [vmem:[#allocation6 + $0x148] sm:$0xff]  ;;  %v3385_v4 = vld [vmem:[#allocation6 + $0x158] sm:$0xff]  ;;  %v3382_v17 = vld [vmem:[#allocation6 + $0x140] sm:$0xff] }
 0xb80   :  { %v3384_v26 = vld [vmem:[#allocation6 + $0x150] sm:$0xff]  ;;  %v3391_v13 = vld [vmem:[#allocation6 + $0x188] sm:$0xff]  ;;  %v3393_v9 = vld [vmem:[#allocation6 + $0x198] sm:$0xff] }
 0xb81   :  { %v3390_v18 = vld [vmem:[#allocation6 + $0x180] sm:$0xff]  ;;  %v3392_v42 = vld [vmem:[#allocation6 + $0x190] sm:$0xff]  ;;  %v3399_v23 = vld [vmem:[#allocation6 + $0x1c8] sm:$0xff] }
 0xb82   :  { %3900 = vmatpush1.bf16.msra.mxu1 %v3358_v25  ;;  %4064 = vmatpush1.bf16.msra.mxu0 %v3360_v35  ;;  %v3401_v32 = vld [vmem:[#allocation6 + $0x1d8] sm:$0xff]  ;;  %v3398_v61 = vld [vmem:[#allocation6 + $0x1c0] sm:$0xff]  ;;  %v3400_v47 = vld [vmem:[#allocation6 + $0x1d0] sm:$0xff] }
 0xb83   :  { %3901 = vmatprep.subr.bf16.mxu1 %v3367_v51  ;;  %4065 = vmatprep.subr.bf16.mxu0 %v3369_v57  ;;  %v3407_v63 = vld [vmem:[#allocation6 + $0x208] sm:$0xff]  ;;  %v3409_v39 = vld [vmem:[#allocation6 + $0x218] sm:$0xff]  ;;  %v3406_v40 = vld [vmem:[#allocation6 + $0x200] sm:$0xff] }
 0xb84   :  { %v3408_v46 = vld [vmem:[#allocation6 + $0x210] sm:$0xff]  ;;  %v3415_v45 = vld [vmem:[#allocation6 + $0x248] sm:$0xff]  ;;  %v3417_v33 = vld [vmem:[#allocation6 + $0x258] sm:$0xff] }
 0xb85   :  { %v3414_v1 = vld [vmem:[#allocation6 + $0x240] sm:$0xff]  ;;  %v3416_v50 = vld [vmem:[#allocation6 + $0x250] sm:$0xff]  ;;  %v3423_v48 = vld [vmem:[#allocation6 + $0x288] sm:$0xff] }
 0xb86   :  { %3902 = vmatpush1.bf16.msra.mxu1 %v3366_v2  ;;  %4066 = vmatpush1.bf16.msra.mxu0 %v3368_v41  ;;  %v3425_v56 = vld [vmem:[#allocation6 + $0x298] sm:$0xff]  ;;  %v3422_v22 = vld [vmem:[#allocation6 + $0x280] sm:$0xff]  ;;  %v3424_v54 = vld [vmem:[#allocation6 + $0x290] sm:$0xff] }
 0xb87   :  { %3903 = vmatprep.subr.bf16.mxu1 %v3375_v31  ;;  %4067 = vmatprep.subr.bf16.mxu0 %v3377_v8  ;;  %v3431_v49 = vld [vmem:[#allocation6 + $0x2c8] sm:$0xff]  ;;  %v3433_v30 = vld [vmem:[#allocation6 + $0x2d8] sm:$0xff]  ;;  %v3430_v0 = vld [vmem:[#allocation6 + $0x2c0] sm:$0xff] }
 0xb88   :  { %v3432_v12 = vld [vmem:[#allocation6 + $0x2d0] sm:$0xff]  ;;  %v3439_v53 = vld [vmem:[#allocation6 + $0x308] sm:$0xff]  ;;  %v3441_v24 = vld [vmem:[#allocation6 + $0x318] sm:$0xff] }
 0xb89   :  { %v3438_v3 = vld [vmem:[#allocation6 + $0x300] sm:$0xff]  ;;  %v3440_v55 = vld [vmem:[#allocation6 + $0x310] sm:$0xff]  ;;  %v3447_v28 = vld [vmem:[#allocation6 + $0x348] sm:$0xff] }
 0xb8a   :  { %3904 = vmatpush1.bf16.msra.mxu1 %v3374_v59  ;;  %4068 = vmatpush1.bf16.msra.mxu0 %v3376_v5  ;;  %v3449_v37 = vld [vmem:[#allocation6 + $0x358] sm:$0xff]  ;;  %v3446_v16 = vld [vmem:[#allocation6 + $0x340] sm:$0xff]  ;;  %v3448_v29 = vld [vmem:[#allocation6 + $0x350] sm:$0xff] }
 0xb8b   :  { %3905 = vmatprep.subr.bf16.mxu1 %v3383_v60  ;;  %4069 = vmatprep.subr.bf16.mxu0 %v3385_v4  ;;  %v3455_v34 = vld [vmem:[#allocation6 + $0x388] sm:$0xff]  ;;  %v3457_v43 = vld [vmem:[#allocation6 + $0x398] sm:$0xff]  ;;  %v3454_v25 = vld [vmem:[#allocation6 + $0x380] sm:$0xff] }
 0xb8c   :  { %v3456_v35 = vld [vmem:[#allocation6 + $0x390] sm:$0xff]  ;;  %v3463_v51 = vld [vmem:[#allocation6 + $0x3c8] sm:$0xff]  ;;  %v3465_v57 = vld [vmem:[#allocation6 + $0x3d8] sm:$0xff] }
 0xb8d   :  { %v3462_v2 = vld [vmem:[#allocation6 + $0x3c0] sm:$0xff]  ;;  %v3464_v41 = vld [vmem:[#allocation6 + $0x3d0] sm:$0xff]  ;;  %v3471_v31 = vld [vmem:[#allocation6 + $0x408] sm:$0xff] }
 0xb8e   :  { %3906 = vmatpush1.bf16.msra.mxu1 %v3382_v17  ;;  %4070 = vmatpush1.bf16.msra.mxu0 %v3384_v26  ;;  %v3473_v8 = vld [vmem:[#allocation6 + $0x418] sm:$0xff]  ;;  %v3470_v59 = vld [vmem:[#allocation6 + $0x400] sm:$0xff]  ;;  %v3472_v5 = vld [vmem:[#allocation6 + $0x410] sm:$0xff] }
 0xb8f   :  { %3907 = vmatprep.subr.bf16.mxu1 %v3391_v13  ;;  %4071 = vmatprep.subr.bf16.mxu0 %v3393_v9  ;;  %v3479_v60 = vld [vmem:[#allocation6 + $0x448] sm:$0xff]  ;;  %v3481_v4 = vld [vmem:[#allocation6 + $0x458] sm:$0xff]  ;;  %v3478_v17 = vld [vmem:[#allocation6 + $0x440] sm:$0xff] }
 0xb90   :  { %v3480_v26 = vld [vmem:[#allocation6 + $0x450] sm:$0xff]  ;;  %v3487_v13 = vld [vmem:[#allocation6 + $0x488] sm:$0xff]  ;;  %v3489_v9 = vld [vmem:[#allocation6 + $0x498] sm:$0xff] }
 0xb92   :  { %3908 = vmatpush1.bf16.msra.mxu1 %v3390_v18  ;;  %4072 = vmatpush1.bf16.msra.mxu0 %v3392_v42  ;;  %v3486_v18 = vld [vmem:[#allocation6 + $0x480] sm:$0xff]  ;;  %v3488_v42 = vld [vmem:[#allocation6 + $0x490] sm:$0xff] }
 0xb93   :  { %3909 = vmatprep.subr.bf16.mxu1 %v3399_v23  ;;  %4073 = vmatprep.subr.bf16.mxu0 %v3401_v32  ;;  %v3495_v23 = vld [vmem:[#allocation6 + $0x4c8] sm:$0xff]  ;;  %v3497_v32 = vld [vmem:[#allocation6 + $0x4d8] sm:$0xff] }
 0xb96   :  { %3910 = vmatpush1.bf16.msra.mxu1 %v3398_v61  ;;  %4074 = vmatpush1.bf16.msra.mxu0 %v3400_v47  ;;  %v3494_v61 = vld [vmem:[#allocation6 + $0x4c0] sm:$0xff]  ;;  %v3496_v47 = vld [vmem:[#allocation6 + $0x4d0] sm:$0xff] }
 0xb97   :  { %3911 = vmatprep.subr.bf16.mxu1 %v3407_v63  ;;  %4075 = vmatprep.subr.bf16.mxu0 %v3409_v39  ;;  %v3503_v63 = vld [vmem:[#allocation6 + $0x508] sm:$0xff]  ;;  %v3505_v39 = vld [vmem:[#allocation6 + $0x518] sm:$0xff] }
 0xb9a   :  { %3912 = vmatpush1.bf16.msra.mxu1 %v3406_v40  ;;  %4076 = vmatpush1.bf16.msra.mxu0 %v3408_v46  ;;  %v3502_v40 = vld [vmem:[#allocation6 + $0x500] sm:$0xff]  ;;  %v3504_v46 = vld [vmem:[#allocation6 + $0x510] sm:$0xff] }
 0xb9b   :  { %3913 = vmatprep.subr.bf16.mxu1 %v3415_v45  ;;  %4077 = vmatprep.subr.bf16.mxu0 %v3417_v33  ;;  %v3511_v45 = vld [vmem:[#allocation6 + $0x548] sm:$0xff]  ;;  %v3513_v33 = vld [vmem:[#allocation6 + $0x558] sm:$0xff] }
 0xb9e   :  { %3914 = vmatpush1.bf16.msra.mxu1 %v3414_v1  ;;  %4078 = vmatpush1.bf16.msra.mxu0 %v3416_v50  ;;  %v3510_v1 = vld [vmem:[#allocation6 + $0x540] sm:$0xff]  ;;  %v3512_v50 = vld [vmem:[#allocation6 + $0x550] sm:$0xff] }
 0xb9f   :  { %3915 = vmatprep.subr.bf16.mxu1 %v3423_v48  ;;  %4079 = vmatprep.subr.bf16.mxu0 %v3425_v56  ;;  %v3519_v48 = vld [vmem:[#allocation6 + $0x588] sm:$0xff]  ;;  %v3521_v56 = vld [vmem:[#allocation6 + $0x598] sm:$0xff] }
 0xba2   :  { %3916 = vmatpush1.bf16.msra.mxu1 %v3422_v22  ;;  %4080 = vmatpush1.bf16.msra.mxu0 %v3424_v54  ;;  %v3518_v22 = vld [vmem:[#allocation6 + $0x580] sm:$0xff]  ;;  %v3520_v54 = vld [vmem:[#allocation6 + $0x590] sm:$0xff] }
 0xba3   :  { %3917 = vmatprep.subr.bf16.mxu1 %v3431_v49  ;;  %4081 = vmatprep.subr.bf16.mxu0 %v3433_v30  ;;  %v3527_v49 = vld [vmem:[#allocation6 + $0x5c8] sm:$0xff]  ;;  %v3529_v30 = vld [vmem:[#allocation6 + $0x5d8] sm:$0xff] }
 0xba6   :  { %3918 = vmatpush1.bf16.msra.mxu1 %v3430_v0  ;;  %4082 = vmatpush1.bf16.msra.mxu0 %v3432_v12  ;;  %v3526_v0 = vld [vmem:[#allocation6 + $0x5c0] sm:$0xff]  ;;  %v3528_v12 = vld [vmem:[#allocation6 + $0x5d0] sm:$0xff] }
 0xba7   :  { %3919 = vmatprep.subr.bf16.mxu1 %v3439_v53  ;;  %4083 = vmatprep.subr.bf16.mxu0 %v3441_v24  ;;  %v3535_v53 = vld [vmem:[#allocation6 + $0x608] sm:$0xff]  ;;  %v3537_v24 = vld [vmem:[#allocation6 + $0x618] sm:$0xff] }
 0xbaa   :  { %3920 = vmatpush1.bf16.msra.mxu1 %v3438_v3  ;;  %4084 = vmatpush1.bf16.msra.mxu0 %v3440_v55  ;;  %v3534_v3 = vld [vmem:[#allocation6 + $0x600] sm:$0xff]  ;;  %v3536_v55 = vld [vmem:[#allocation6 + $0x610] sm:$0xff] }
 0xbab   :  { %3921 = vmatprep.subr.bf16.mxu1 %v3447_v28  ;;  %4085 = vmatprep.subr.bf16.mxu0 %v3449_v37  ;;  %v3543_v28 = vld [vmem:[#allocation6 + $0x648] sm:$0xff]  ;;  %v3545_v37 = vld [vmem:[#allocation6 + $0x658] sm:$0xff] }
 0xbae   :  { %3922 = vmatpush1.bf16.msra.mxu1 %v3446_v16  ;;  %4086 = vmatpush1.bf16.msra.mxu0 %v3448_v29  ;;  %v3542_v16 = vld [vmem:[#allocation6 + $0x640] sm:$0xff]  ;;  %v3544_v29 = vld [vmem:[#allocation6 + $0x650] sm:$0xff] }
 0xbaf   :  { %3923 = vmatprep.subr.bf16.mxu1 %v3455_v34  ;;  %4087 = vmatprep.subr.bf16.mxu0 %v3457_v43  ;;  %v3551_v34 = vld [vmem:[#allocation6 + $0x688] sm:$0xff]  ;;  %v3553_v43 = vld [vmem:[#allocation6 + $0x698] sm:$0xff] }
 0xbb2   :  { %3924 = vmatpush1.bf16.msra.mxu1 %v3454_v25  ;;  %4088 = vmatpush1.bf16.msra.mxu0 %v3456_v35  ;;  %v3550_v25 = vld [vmem:[#allocation6 + $0x680] sm:$0xff]  ;;  %v3552_v35 = vld [vmem:[#allocation6 + $0x690] sm:$0xff] }
 0xbb3   :  { %3925 = vmatprep.subr.bf16.mxu1 %v3463_v51  ;;  %4089 = vmatprep.subr.bf16.mxu0 %v3465_v57  ;;  %v3559_v51 = vld [vmem:[#allocation6 + $0x6c8] sm:$0xff]  ;;  %v3561_v57 = vld [vmem:[#allocation6 + $0x6d8] sm:$0xff] }
 0xbb6   :  { %3926 = vmatpush1.bf16.msra.mxu1 %v3462_v2  ;;  %4090 = vmatpush1.bf16.msra.mxu0 %v3464_v41  ;;  %v3558_v2 = vld [vmem:[#allocation6 + $0x6c0] sm:$0xff]  ;;  %v3560_v41 = vld [vmem:[#allocation6 + $0x6d0] sm:$0xff] }
 0xbb7   :  { %3936 = vmatprep.subr.bf16.mxu1 %v3471_v31  ;;  %4100 = vmatprep.subr.bf16.mxu0 %v3473_v8  ;;  %v3567_v31 = vld [vmem:[#allocation6 + $0x708] sm:$0xff]  ;;  %v3569_v8 = vld [vmem:[#allocation6 + $0x718] sm:$0xff] }
 0xbb9   :  { %3928 = vmatmul.mubr.bf16.vlgmr.msra.gmra.mrb[32].mxu1 %v8720_v38  ;;  %4092 = vmatmul.mubr.bf16.vlgmr.msra.gmra.mrb[12].mxu0 %v8720_v38 }
 0xbba   :  { %3937 = vmatpush1.bf16.msra.mxu1 %v3470_v59  ;;  %4101 = vmatpush1.bf16.msra.mxu0 %v3472_v5  ;;  %v3566_v59 = vld [vmem:[#allocation6 + $0x700] sm:$0xff]  ;;  %v3568_v5 = vld [vmem:[#allocation6 + $0x710] sm:$0xff] }
 0xbbb   :  { %3938 = vmatprep.subr.bf16.mxu1 %v3479_v60  ;;  %4102 = vmatprep.subr.bf16.mxu0 %v3481_v4  ;;  %v3575_v60 = vld [vmem:[#allocation6 + $0x748] sm:$0xff]  ;;  %v3577_v4 = vld [vmem:[#allocation6 + $0x758] sm:$0xff] }
 0xbbc   :  { %3968 = vmatprep.mubr.bf16.mxu1 %v8726_v21  ;;  %4132 = vmatprep.mubr.bf16.mxu0 %v8726_v21 }
 0xbbe   :  { %3939 = vmatpush1.bf16.msra.mxu1 %v3478_v17  ;;  %4103 = vmatpush1.bf16.msra.mxu0 %v3480_v26  ;;  %v3574_v17 = vld [vmem:[#allocation6 + $0x740] sm:$0xff]  ;;  %v3576_v26 = vld [vmem:[#allocation6 + $0x750] sm:$0xff] }
 0xbbf   :  { %3940 = vmatprep.subr.bf16.mxu1 %v3487_v13  ;;  %4104 = vmatprep.subr.bf16.mxu0 %v3489_v9  ;;  %v3583_v13 = vld [vmem:[#allocation6 + $0x788] sm:$0xff]  ;;  %v3585_v9 = vld [vmem:[#allocation6 + $0x798] sm:$0xff] }
 0xbc2   :  { %3941 = vmatpush1.bf16.msra.mxu1 %v3486_v18  ;;  %4105 = vmatpush1.bf16.msra.mxu0 %v3488_v42  ;;  %v3582_v18 = vld [vmem:[#allocation6 + $0x780] sm:$0xff]  ;;  %v3584_v42 = vld [vmem:[#allocation6 + $0x790] sm:$0xff] }
 0xbc3   :  { %3942 = vmatprep.subr.bf16.mxu1 %v3495_v23  ;;  %4106 = vmatprep.subr.bf16.mxu0 %v3497_v32  ;;  %v3591_v23 = vld [vmem:[#allocation6 + $0x7c8] sm:$0xff]  ;;  %v3593_v32 = vld [vmem:[#allocation6 + $0x7d8] sm:$0xff] }
 0xbc6   :  { %3943 = vmatpush1.bf16.msra.mxu1 %v3494_v61  ;;  %4107 = vmatpush1.bf16.msra.mxu0 %v3496_v47  ;;  %v3590_v61 = vld [vmem:[#allocation6 + $0x7c0] sm:$0xff]  ;;  %v3592_v47 = vld [vmem:[#allocation6 + $0x7d0] sm:$0xff] }
 0xbc7   :  { %3944 = vmatprep.subr.bf16.mxu1 %v3503_v63  ;;  %4108 = vmatprep.subr.bf16.mxu0 %v3505_v39  ;;  %v3599_v63 = vld [vmem:[#allocation6 + $0x808] sm:$0xff]  ;;  %v3601_v39 = vld [vmem:[#allocation6 + $0x818] sm:$0xff] }
 0xbca   :  { %3945 = vmatpush1.bf16.msra.mxu1 %v3502_v40  ;;  %4109 = vmatpush1.bf16.msra.mxu0 %v3504_v46  ;;  %v3598_v40 = vld [vmem:[#allocation6 + $0x800] sm:$0xff]  ;;  %v3600_v46 = vld [vmem:[#allocation6 + $0x810] sm:$0xff] }
 0xbcb   :  { %3946 = vmatprep.subr.bf16.mxu1 %v3511_v45  ;;  %4110 = vmatprep.subr.bf16.mxu0 %v3513_v33  ;;  %v3607_v45 = vld [vmem:[#allocation6 + $0x848] sm:$0xff]  ;;  %v3609_v33 = vld [vmem:[#allocation6 + $0x858] sm:$0xff] }
 0xbce   :  { %3947 = vmatpush1.bf16.msra.mxu1 %v3510_v1  ;;  %4111 = vmatpush1.bf16.msra.mxu0 %v3512_v50  ;;  %v3606_v1 = vld [vmem:[#allocation6 + $0x840] sm:$0xff]  ;;  %v3608_v50 = vld [vmem:[#allocation6 + $0x850] sm:$0xff] }
 0xbcf   :  { %3948 = vmatprep.subr.bf16.mxu1 %v3519_v48  ;;  %4112 = vmatprep.subr.bf16.mxu0 %v3521_v56  ;;  %v3615_v48 = vld [vmem:[#allocation6 + $0x888] sm:$0xff]  ;;  %v3617_v56 = vld [vmem:[#allocation6 + $0x898] sm:$0xff] }
 0xbd2   :  { %3949 = vmatpush1.bf16.msra.mxu1 %v3518_v22  ;;  %4113 = vmatpush1.bf16.msra.mxu0 %v3520_v54  ;;  %v3614_v22 = vld [vmem:[#allocation6 + $0x880] sm:$0xff]  ;;  %v3616_v54 = vld [vmem:[#allocation6 + $0x890] sm:$0xff] }
 0xbd3   :  { %3950 = vmatprep.subr.bf16.mxu1 %v3527_v49  ;;  %4114 = vmatprep.subr.bf16.mxu0 %v3529_v30  ;;  %v3623_v49 = vld [vmem:[#allocation6 + $0x8c8] sm:$0xff]  ;;  %v3625_v30 = vld [vmem:[#allocation6 + $0x8d8] sm:$0xff] }
 0xbd6   :  { %3951 = vmatpush1.bf16.msra.mxu1 %v3526_v0  ;;  %4115 = vmatpush1.bf16.msra.mxu0 %v3528_v12  ;;  %v3622_v0 = vld [vmem:[#allocation6 + $0x8c0] sm:$0xff]  ;;  %v3624_v12 = vld [vmem:[#allocation6 + $0x8d0] sm:$0xff] }
 0xbd7   :  { %3952 = vmatprep.subr.bf16.mxu1 %v3535_v53  ;;  %4116 = vmatprep.subr.bf16.mxu0 %v3537_v24  ;;  %v3631_v53 = vld [vmem:[#allocation6 + $0x908] sm:$0xff]  ;;  %v3633_v24 = vld [vmem:[#allocation6 + $0x918] sm:$0xff] }
 0xbda   :  { %3953 = vmatpush1.bf16.msra.mxu1 %v3534_v3  ;;  %4117 = vmatpush1.bf16.msra.mxu0 %v3536_v55  ;;  %v3630_v3 = vld [vmem:[#allocation6 + $0x900] sm:$0xff]  ;;  %v3632_v55 = vld [vmem:[#allocation6 + $0x910] sm:$0xff] }
 0xbdb   :  { %3954 = vmatprep.subr.bf16.mxu1 %v3543_v28  ;;  %4118 = vmatprep.subr.bf16.mxu0 %v3545_v37  ;;  %v3639_v28 = vld [vmem:[#allocation6 + $0x948] sm:$0xff]  ;;  %v3641_v37 = vld [vmem:[#allocation6 + $0x958] sm:$0xff] }
 0xbde   :  { %3955 = vmatpush1.bf16.msra.mxu1 %v3542_v16  ;;  %4119 = vmatpush1.bf16.msra.mxu0 %v3544_v29  ;;  %v3638_v16 = vld [vmem:[#allocation6 + $0x940] sm:$0xff]  ;;  %v3640_v29 = vld [vmem:[#allocation6 + $0x950] sm:$0xff] }
 0xbdf   :  { %3956 = vmatprep.subr.bf16.mxu1 %v3551_v34  ;;  %4120 = vmatprep.subr.bf16.mxu0 %v3553_v43  ;;  %v3647_v34 = vld [vmem:[#allocation6 + $0x988] sm:$0xff]  ;;  %v3649_v43 = vld [vmem:[#allocation6 + $0x998] sm:$0xff] }
 0xbe2   :  { %3957 = vmatpush1.bf16.msra.mxu1 %v3550_v25  ;;  %4121 = vmatpush1.bf16.msra.mxu0 %v3552_v35  ;;  %v3646_v25 = vld [vmem:[#allocation6 + $0x980] sm:$0xff]  ;;  %v3648_v35 = vld [vmem:[#allocation6 + $0x990] sm:$0xff] }
 0xbe3   :  { %3958 = vmatprep.subr.bf16.mxu1 %v3559_v51  ;;  %4122 = vmatprep.subr.bf16.mxu0 %v3561_v57  ;;  %v3655_v51 = vld [vmem:[#allocation6 + $0x9c8] sm:$0xff]  ;;  %v3657_v57 = vld [vmem:[#allocation6 + $0x9d8] sm:$0xff] }
 0xbe6   :  { %3959 = vmatpush1.bf16.msra.mxu1 %v3558_v2  ;;  %4123 = vmatpush1.bf16.msra.mxu0 %v3560_v41  ;;  %v3654_v2 = vld [vmem:[#allocation6 + $0x9c0] sm:$0xff]  ;;  %v3656_v41 = vld [vmem:[#allocation6 + $0x9d0] sm:$0xff] }
 0xbe7   :  { %3960 = vmatprep.subr.bf16.mxu1 %v3567_v31  ;;  %4124 = vmatprep.subr.bf16.mxu0 %v3569_v8  ;;  %v3663_v31 = vld [vmem:[#allocation6 + $0xa08] sm:$0xff]  ;;  %v3665_v8 = vld [vmem:[#allocation6 + $0xa18] sm:$0xff] }
 0xbea   :  { %3961 = vmatpush1.bf16.msra.mxu1 %v3566_v59  ;;  %4125 = vmatpush1.bf16.msra.mxu0 %v3568_v5  ;;  %v3662_v59 = vld [vmem:[#allocation6 + $0xa00] sm:$0xff]  ;;  %v3664_v5 = vld [vmem:[#allocation6 + $0xa10] sm:$0xff] }
 0xbeb   :  { %3962 = vmatprep.subr.bf16.mxu1 %v3575_v60  ;;  %4126 = vmatprep.subr.bf16.mxu0 %v3577_v4  ;;  %v3671_v60 = vld [vmem:[#allocation6 + $0xa48] sm:$0xff]  ;;  %v3673_v4 = vld [vmem:[#allocation6 + $0xa58] sm:$0xff] }
 0xbee   :  { %3963 = vmatpush1.bf16.msra.mxu1 %v3574_v17  ;;  %4127 = vmatpush1.bf16.msra.mxu0 %v3576_v26  ;;  %v3670_v17 = vld [vmem:[#allocation6 + $0xa40] sm:$0xff]  ;;  %v3672_v26 = vld [vmem:[#allocation6 + $0xa50] sm:$0xff] }
 0xbef   :  { %3964 = vmatprep.subr.bf16.mxu1 %v3583_v13  ;;  %4128 = vmatprep.subr.bf16.mxu0 %v3585_v9  ;;  %v3679_v13 = vld [vmem:[#allocation6 + $0xa88] sm:$0xff]  ;;  %v3681_v9 = vld [vmem:[#allocation6 + $0xa98] sm:$0xff] }
 0xbf2   :  { %3965 = vmatpush1.bf16.msra.mxu1 %v3582_v18  ;;  %4129 = vmatpush1.bf16.msra.mxu0 %v3584_v42  ;;  %v3678_v18 = vld [vmem:[#allocation6 + $0xa80] sm:$0xff]  ;;  %v3680_v42 = vld [vmem:[#allocation6 + $0xa90] sm:$0xff] }
 0xbf3   :  { %3966 = vmatprep.subr.bf16.mxu1 %v3591_v23  ;;  %4130 = vmatprep.subr.bf16.mxu0 %v3593_v32  ;;  %v3687_v23 = vld [vmem:[#allocation6 + $0xac8] sm:$0xff]  ;;  %v3689_v32 = vld [vmem:[#allocation6 + $0xad8] sm:$0xff] }
 0xbf6   :  { %3967 = vmatpush1.bf16.msra.mxu1 %v3590_v61  ;;  %4131 = vmatpush1.bf16.msra.mxu0 %v3592_v47  ;;  %v3686_v61 = vld [vmem:[#allocation6 + $0xac0] sm:$0xff]  ;;  %v3688_v47 = vld [vmem:[#allocation6 + $0xad0] sm:$0xff] }
 0xbf7   :  { %3977 = vmatprep.subr.bf16.mxu1 %v3599_v63  ;;  %4141 = vmatprep.subr.bf16.mxu0 %v3601_v39  ;;  %v3695_v63 = vld [vmem:[#allocation6 + $0xb08] sm:$0xff]  ;;  %v3697_v39 = vld [vmem:[#allocation6 + $0xb18] sm:$0xff] }
 0xbf9   :  { %3969 = vmatmul.mubr.bf16.vlgmr.msra.gmra.mrb[32].mxu1 %v8722_v14  ;;  %4133 = vmatmul.mubr.bf16.vlgmr.msra.gmra.mrb[12].mxu0 %v8722_v14 }
 0xbfa   :  { %3978 = vmatpush1.bf16.msra.mxu1 %v3598_v40  ;;  %4142 = vmatpush1.bf16.msra.mxu0 %v3600_v46  ;;  %v3694_v40 = vld [vmem:[#allocation6 + $0xb00] sm:$0xff]  ;;  %v3696_v46 = vld [vmem:[#allocation6 + $0xb10] sm:$0xff] }
 0xbfb   :  { %3979 = vmatprep.subr.bf16.mxu1 %v3607_v45  ;;  %4143 = vmatprep.subr.bf16.mxu0 %v3609_v33  ;;  %v3703_v45 = vld [vmem:[#allocation6 + $0xb48] sm:$0xff]  ;;  %v3705_v33 = vld [vmem:[#allocation6 + $0xb58] sm:$0xff] }
 0xbfc   :  { %4009 = vmatprep.mubr.bf16.mxu1 %v8742_v44  ;;  %4173 = vmatprep.mubr.bf16.mxu0 %v8742_v44 }
 0xbfe   :  { %3980 = vmatpush1.bf16.msra.mxu1 %v3606_v1  ;;  %4144 = vmatpush1.bf16.msra.mxu0 %v3608_v50  ;;  %v3702_v1 = vld [vmem:[#allocation6 + $0xb40] sm:$0xff]  ;;  %v3704_v50 = vld [vmem:[#allocation6 + $0xb50] sm:$0xff] }
 0xbff   :  { %3981 = vmatprep.subr.bf16.mxu1 %v3615_v48  ;;  %4145 = vmatprep.subr.bf16.mxu0 %v3617_v56  ;;  %v3711_v48 = vld [vmem:[#allocation6 + $0xb88] sm:$0xff]  ;;  %v3713_v56 = vld [vmem:[#allocation6 + $0xb98] sm:$0xff] }
 0xc02   :  { %3982 = vmatpush1.bf16.msra.mxu1 %v3614_v22  ;;  %4146 = vmatpush1.bf16.msra.mxu0 %v3616_v54  ;;  %v3710_v22 = vld [vmem:[#allocation6 + $0xb80] sm:$0xff]  ;;  %v3712_v54 = vld [vmem:[#allocation6 + $0xb90] sm:$0xff] }
 0xc03   :  { %3983 = vmatprep.subr.bf16.mxu1 %v3623_v49  ;;  %4147 = vmatprep.subr.bf16.mxu0 %v3625_v30  ;;  %v3719_v49 = vld [vmem:[#allocation6 + $0xbc8] sm:$0xff]  ;;  %v3721_v30 = vld [vmem:[#allocation6 + $0xbd8] sm:$0xff] }
 0xc06   :  { %3984 = vmatpush1.bf16.msra.mxu1 %v3622_v0  ;;  %4148 = vmatpush1.bf16.msra.mxu0 %v3624_v12  ;;  %v3718_v0 = vld [vmem:[#allocation6 + $0xbc0] sm:$0xff]  ;;  %v3720_v12 = vld [vmem:[#allocation6 + $0xbd0] sm:$0xff] }
 0xc07   :  { %3985 = vmatprep.subr.bf16.mxu1 %v3631_v53  ;;  %4149 = vmatprep.subr.bf16.mxu0 %v3633_v24  ;;  %v3727_v53 = vld [vmem:[#allocation6 + $0xc08] sm:$0xff]  ;;  %v3729_v24 = vld [vmem:[#allocation6 + $0xc18] sm:$0xff] }
 0xc0a   :  { %3986 = vmatpush1.bf16.msra.mxu1 %v3630_v3  ;;  %4150 = vmatpush1.bf16.msra.mxu0 %v3632_v55  ;;  %v3726_v3 = vld [vmem:[#allocation6 + $0xc00] sm:$0xff]  ;;  %v3728_v55 = vld [vmem:[#allocation6 + $0xc10] sm:$0xff] }
 0xc0b   :  { %3987 = vmatprep.subr.bf16.mxu1 %v3639_v28  ;;  %4151 = vmatprep.subr.bf16.mxu0 %v3641_v37  ;;  %v3735_v28 = vld [vmem:[#allocation6 + $0xc48] sm:$0xff]  ;;  %v3737_v37 = vld [vmem:[#allocation6 + $0xc58] sm:$0xff] }
 0xc0e   :  { %3988 = vmatpush1.bf16.msra.mxu1 %v3638_v16  ;;  %4152 = vmatpush1.bf16.msra.mxu0 %v3640_v29  ;;  %v3734_v16 = vld [vmem:[#allocation6 + $0xc40] sm:$0xff]  ;;  %v3736_v29 = vld [vmem:[#allocation6 + $0xc50] sm:$0xff] }
 0xc0f   :  { %3989 = vmatprep.subr.bf16.mxu1 %v3647_v34  ;;  %4153 = vmatprep.subr.bf16.mxu0 %v3649_v43  ;;  %v3743_v34 = vld [vmem:[#allocation6 + $0xc88] sm:$0xff]  ;;  %v3745_v43 = vld [vmem:[#allocation6 + $0xc98] sm:$0xff] }
 0xc12   :  { %3990 = vmatpush1.bf16.msra.mxu1 %v3646_v25  ;;  %4154 = vmatpush1.bf16.msra.mxu0 %v3648_v35  ;;  %v3742_v25 = vld [vmem:[#allocation6 + $0xc80] sm:$0xff]  ;;  %v3744_v35 = vld [vmem:[#allocation6 + $0xc90] sm:$0xff] }
 0xc13   :  { %3991 = vmatprep.subr.bf16.mxu1 %v3655_v51  ;;  %4155 = vmatprep.subr.bf16.mxu0 %v3657_v57  ;;  %v3751_v51 = vld [vmem:[#allocation6 + $0xcc8] sm:$0xff]  ;;  %v3753_v57 = vld [vmem:[#allocation6 + $0xcd8] sm:$0xff] }
 0xc16   :  { %3992 = vmatpush1.bf16.msra.mxu1 %v3654_v2  ;;  %4156 = vmatpush1.bf16.msra.mxu0 %v3656_v41  ;;  %v3750_v2 = vld [vmem:[#allocation6 + $0xcc0] sm:$0xff]  ;;  %v3752_v41 = vld [vmem:[#allocation6 + $0xcd0] sm:$0xff] }
 0xc17   :  { %3993 = vmatprep.subr.bf16.mxu1 %v3663_v31  ;;  %4157 = vmatprep.subr.bf16.mxu0 %v3665_v8  ;;  %v3759_v31 = vld [vmem:[#allocation6 + $0xd08] sm:$0xff]  ;;  %v3761_v8 = vld [vmem:[#allocation6 + $0xd18] sm:$0xff] }
 0xc1a   :  { %3994 = vmatpush1.bf16.msra.mxu1 %v3662_v59  ;;  %4158 = vmatpush1.bf16.msra.mxu0 %v3664_v5  ;;  %v3758_v59 = vld [vmem:[#allocation6 + $0xd00] sm:$0xff]  ;;  %v3760_v5 = vld [vmem:[#allocation6 + $0xd10] sm:$0xff] }
 0xc1b   :  { %3995 = vmatprep.subr.bf16.mxu1 %v3671_v60  ;;  %4159 = vmatprep.subr.bf16.mxu0 %v3673_v4  ;;  %v3767_v60 = vld [vmem:[#allocation6 + $0xd48] sm:$0xff]  ;;  %v3769_v4 = vld [vmem:[#allocation6 + $0xd58] sm:$0xff] }
 0xc1e   :  { %3996 = vmatpush1.bf16.msra.mxu1 %v3670_v17  ;;  %4160 = vmatpush1.bf16.msra.mxu0 %v3672_v26  ;;  %v3766_v17 = vld [vmem:[#allocation6 + $0xd40] sm:$0xff]  ;;  %v3768_v26 = vld [vmem:[#allocation6 + $0xd50] sm:$0xff] }
 0xc1f   :  { %3997 = vmatprep.subr.bf16.mxu1 %v3679_v13  ;;  %4161 = vmatprep.subr.bf16.mxu0 %v3681_v9  ;;  %v3775_v13 = vld [vmem:[#allocation6 + $0xd88] sm:$0xff]  ;;  %v3777_v9 = vld [vmem:[#allocation6 + $0xd98] sm:$0xff] }
 0xc22   :  { %3998 = vmatpush1.bf16.msra.mxu1 %v3678_v18  ;;  %4162 = vmatpush1.bf16.msra.mxu0 %v3680_v42  ;;  %v3774_v18 = vld [vmem:[#allocation6 + $0xd80] sm:$0xff]  ;;  %v3776_v42 = vld [vmem:[#allocation6 + $0xd90] sm:$0xff] }
 0xc23   :  { %3999 = vmatprep.subr.bf16.mxu1 %v3687_v23  ;;  %4163 = vmatprep.subr.bf16.mxu0 %v3689_v32  ;;  %v3783_v23 = vld [vmem:[#allocation6 + $0xdc8] sm:$0xff]  ;;  %v3785_v32 = vld [vmem:[#allocation6 + $0xdd8] sm:$0xff] }
 0xc26   :  { %4000 = vmatpush1.bf16.msra.mxu1 %v3686_v61  ;;  %4164 = vmatpush1.bf16.msra.mxu0 %v3688_v47  ;;  %v3782_v61 = vld [vmem:[#allocation6 + $0xdc0] sm:$0xff]  ;;  %v3784_v47 = vld [vmem:[#allocation6 + $0xdd0] sm:$0xff] }
 0xc27   :  { %4001 = vmatprep.subr.bf16.mxu1 %v3695_v63  ;;  %4165 = vmatprep.subr.bf16.mxu0 %v3697_v39  ;;  %v3791_v63 = vld [vmem:[#allocation6 + $0xe08] sm:$0xff]  ;;  %v3793_v39 = vld [vmem:[#allocation6 + $0xe18] sm:$0xff] }
 0xc2a   :  { %4002 = vmatpush1.bf16.msra.mxu1 %v3694_v40  ;;  %4166 = vmatpush1.bf16.msra.mxu0 %v3696_v46  ;;  %v3790_v40 = vld [vmem:[#allocation6 + $0xe00] sm:$0xff]  ;;  %v3792_v46 = vld [vmem:[#allocation6 + $0xe10] sm:$0xff] }
 0xc2b   :  { %4003 = vmatprep.subr.bf16.mxu1 %v3703_v45  ;;  %4167 = vmatprep.subr.bf16.mxu0 %v3705_v33  ;;  %v3799_v45 = vld [vmem:[#allocation6 + $0xe48] sm:$0xff]  ;;  %v3801_v33 = vld [vmem:[#allocation6 + $0xe58] sm:$0xff] }
 0xc2e   :  { %4004 = vmatpush1.bf16.msra.mxu1 %v3702_v1  ;;  %4168 = vmatpush1.bf16.msra.mxu0 %v3704_v50  ;;  %v3798_v1 = vld [vmem:[#allocation6 + $0xe40] sm:$0xff]  ;;  %v3800_v50 = vld [vmem:[#allocation6 + $0xe50] sm:$0xff] }
 0xc2f   :  { %4005 = vmatprep.subr.bf16.mxu1 %v3711_v48  ;;  %4169 = vmatprep.subr.bf16.mxu0 %v3713_v56  ;;  %v3807_v48 = vld [vmem:[#allocation6 + $0xe88] sm:$0xff]  ;;  %v3809_v56 = vld [vmem:[#allocation6 + $0xe98] sm:$0xff] }
 0xc32   :  { %4006 = vmatpush1.bf16.msra.mxu1 %v3710_v22  ;;  %4170 = vmatpush1.bf16.msra.mxu0 %v3712_v54  ;;  %v3806_v22 = vld [vmem:[#allocation6 + $0xe80] sm:$0xff]  ;;  %v3808_v54 = vld [vmem:[#allocation6 + $0xe90] sm:$0xff] }
 0xc33   :  { %4007 = vmatprep.subr.bf16.mxu1 %v3719_v49  ;;  %4171 = vmatprep.subr.bf16.mxu0 %v3721_v30  ;;  %v3815_v49 = vld [vmem:[#allocation6 + $0xec8] sm:$0xff]  ;;  %v3817_v30 = vld [vmem:[#allocation6 + $0xed8] sm:$0xff] }
 0xc36   :  { %4008 = vmatpush1.bf16.msra.mxu1 %v3718_v0  ;;  %4172 = vmatpush1.bf16.msra.mxu0 %v3720_v12  ;;  %v3814_v0 = vld [vmem:[#allocation6 + $0xec0] sm:$0xff]  ;;  %v3816_v12 = vld [vmem:[#allocation6 + $0xed0] sm:$0xff] }
 0xc37   :  { %4018 = vmatprep.subr.bf16.mxu1 %v3727_v53  ;;  %4182 = vmatprep.subr.bf16.mxu0 %v3729_v24  ;;  %v3823_v53 = vld [vmem:[#allocation6 + $0xf08] sm:$0xff]  ;;  %v3825_v24 = vld [vmem:[#allocation6 + $0xf18] sm:$0xff] }
 0xc39   :  { %4010 = vmatmul.mubr.bf16.vlgmr.msra.gmra.mrb[32].mxu1 %v8738_v27  ;;  %4174 = vmatmul.mubr.bf16.vlgmr.msra.gmra.mrb[12].mxu0 %v8738_v27 }
 0xc3a   :  { %4019 = vmatpush1.bf16.msra.mxu1 %v3726_v3  ;;  %4183 = vmatpush1.bf16.msra.mxu0 %v3728_v55  ;;  %v3822_v3 = vld [vmem:[#allocation6 + $0xf00] sm:$0xff]  ;;  %v3824_v55 = vld [vmem:[#allocation6 + $0xf10] sm:$0xff] }
 0xc3b   :  { %4020 = vmatprep.subr.bf16.mxu1 %v3735_v28  ;;  %4184 = vmatprep.subr.bf16.mxu0 %v3737_v37  ;;  %v3831_v28 = vld [vmem:[#allocation6 + $0xf48] sm:$0xff]  ;;  %v3833_v37 = vld [vmem:[#allocation6 + $0xf58] sm:$0xff] }
 0xc3c   :  { %4050 = vmatprep.mubr.bf16.mxu1 %v8744_v6  ;;  %4214 = vmatprep.mubr.bf16.mxu0 %v8744_v6 }
 0xc3e   :  { %4021 = vmatpush1.bf16.msra.mxu1 %v3734_v16  ;;  %4185 = vmatpush1.bf16.msra.mxu0 %v3736_v29  ;;  %v3830_v16 = vld [vmem:[#allocation6 + $0xf40] sm:$0xff]  ;;  %v3832_v29 = vld [vmem:[#allocation6 + $0xf50] sm:$0xff] }
 0xc3f   :  { %4022 = vmatprep.subr.bf16.mxu1 %v3743_v34  ;;  %4186 = vmatprep.subr.bf16.mxu0 %v3745_v43  ;;  %v3839_v34 = vld [vmem:[#allocation6 + $0xf88] sm:$0xff]  ;;  %v3841_v43 = vld [vmem:[#allocation6 + $0xf98] sm:$0xff] }
 0xc42   :  { %4023 = vmatpush1.bf16.msra.mxu1 %v3742_v25  ;;  %4187 = vmatpush1.bf16.msra.mxu0 %v3744_v35  ;;  %v3838_v25 = vld [vmem:[#allocation6 + $0xf80] sm:$0xff]  ;;  %v3840_v35 = vld [vmem:[#allocation6 + $0xf90] sm:$0xff] }
 0xc43   :  { %4024 = vmatprep.subr.bf16.mxu1 %v3751_v51  ;;  %4188 = vmatprep.subr.bf16.mxu0 %v3753_v57  ;;  %v3847_v51 = vld [vmem:[#allocation6 + $0xfc8] sm:$0xff]  ;;  %v3849_v57 = vld [vmem:[#allocation6 + $0xfd8] sm:$0xff] }
 0xc46   :  { %4025 = vmatpush1.bf16.msra.mxu1 %v3750_v2  ;;  %4189 = vmatpush1.bf16.msra.mxu0 %v3752_v41  ;;  %v3846_v2 = vld [vmem:[#allocation6 + $0xfc0] sm:$0xff]  ;;  %v3848_v41 = vld [vmem:[#allocation6 + $0xfd0] sm:$0xff] }
 0xc47   :  { %4026 = vmatprep.subr.bf16.mxu1 %v3759_v31  ;;  %4190 = vmatprep.subr.bf16.mxu0 %v3761_v8  ;;  %v3347_v31 = vld [vmem:[#allocation6 + $0x28] sm:$0xff]  ;;  %v3349_v8 = vld [vmem:[#allocation6 + $0x38] sm:$0xff] }
 0xc4a   :  { %4027 = vmatpush1.bf16.msra.mxu1 %v3758_v59  ;;  %4191 = vmatpush1.bf16.msra.mxu0 %v3760_v5  ;;  %v3346_v59 = vld [vmem:[#allocation6 + $0x20] sm:$0xff]  ;;  %v3348_v5 = vld [vmem:[#allocation6 + $0x30] sm:$0xff] }
 0xc4b   :  { %4028 = vmatprep.subr.bf16.mxu1 %v3767_v60  ;;  %4192 = vmatprep.subr.bf16.mxu0 %v3769_v4  ;;  %v3355_v60 = vld [vmem:[#allocation6 + $0x68] sm:$0xff]  ;;  %v3357_v4 = vld [vmem:[#allocation6 + $0x78] sm:$0xff] }
 0xc4e   :  { %4029 = vmatpush1.bf16.msra.mxu1 %v3766_v17  ;;  %4193 = vmatpush1.bf16.msra.mxu0 %v3768_v26  ;;  %v3354_v17 = vld [vmem:[#allocation6 + $0x60] sm:$0xff]  ;;  %v3356_v26 = vld [vmem:[#allocation6 + $0x70] sm:$0xff] }
 0xc4f   :  { %4030 = vmatprep.subr.bf16.mxu1 %v3775_v13  ;;  %4194 = vmatprep.subr.bf16.mxu0 %v3777_v9  ;;  %v3363_v13 = vld [vmem:[#allocation6 + $0xa8] sm:$0xff]  ;;  %v3365_v9 = vld [vmem:[#allocation6 + $0xb8] sm:$0xff] }
 0xc52   :  { %4031 = vmatpush1.bf16.msra.mxu1 %v3774_v18  ;;  %4195 = vmatpush1.bf16.msra.mxu0 %v3776_v42  ;;  %v3362_v18 = vld [vmem:[#allocation6 + $0xa0] sm:$0xff]  ;;  %v3364_v42 = vld [vmem:[#allocation6 + $0xb0] sm:$0xff] }
 0xc53   :  { %4032 = vmatprep.subr.bf16.mxu1 %v3783_v23  ;;  %4196 = vmatprep.subr.bf16.mxu0 %v3785_v32  ;;  %v3371_v23 = vld [vmem:[#allocation6 + $0xe8] sm:$0xff]  ;;  %v3373_v32 = vld [vmem:[#allocation6 + $0xf8] sm:$0xff] }
 0xc56   :  { %4033 = vmatpush1.bf16.msra.mxu1 %v3782_v61  ;;  %4197 = vmatpush1.bf16.msra.mxu0 %v3784_v47  ;;  %v3370_v61 = vld [vmem:[#allocation6 + $0xe0] sm:$0xff]  ;;  %v3372_v47 = vld [vmem:[#allocation6 + $0xf0] sm:$0xff] }
 0xc57   :  { %4034 = vmatprep.subr.bf16.mxu1 %v3791_v63  ;;  %4198 = vmatprep.subr.bf16.mxu0 %v3793_v39  ;;  %v3379_v63 = vld [vmem:[#allocation6 + $0x128] sm:$0xff]  ;;  %v3381_v39 = vld [vmem:[#allocation6 + $0x138] sm:$0xff] }
 0xc5a   :  { %4035 = vmatpush1.bf16.msra.mxu1 %v3790_v40  ;;  %4199 = vmatpush1.bf16.msra.mxu0 %v3792_v46  ;;  %v3380_v40 = vld [vmem:[#allocation6 + $0x130] sm:$0xff]  ;;  %v3387_v46 = vld [vmem:[#allocation6 + $0x168] sm:$0xff] }
 0xc5b   :  { %4036 = vmatprep.subr.bf16.mxu1 %v3799_v45  ;;  %4200 = vmatprep.subr.bf16.mxu0 %v3801_v33  ;;  %v3389_v45 = vld [vmem:[#allocation6 + $0x178] sm:$0xff]  ;;  %v3386_v33 = vld [vmem:[#allocation6 + $0x160] sm:$0xff] }
 0xc5e   :  { %4037 = vmatpush1.bf16.msra.mxu1 %v3798_v1  ;;  %4201 = vmatpush1.bf16.msra.mxu0 %v3800_v50  ;;  %v3388_v1 = vld [vmem:[#allocation6 + $0x170] sm:$0xff]  ;;  %v3395_v50 = vld [vmem:[#allocation6 + $0x1a8] sm:$0xff] }
 0xc5f   :  { %4038 = vmatprep.subr.bf16.mxu1 %v3807_v48  ;;  %4202 = vmatprep.subr.bf16.mxu0 %v3809_v56  ;;  %v3397_v48 = vld [vmem:[#allocation6 + $0x1b8] sm:$0xff]  ;;  %v3394_v56 = vld [vmem:[#allocation6 + $0x1a0] sm:$0xff] }
 0xc62   :  { %4039 = vmatpush1.bf16.msra.mxu1 %v3806_v22  ;;  %4203 = vmatpush1.bf16.msra.mxu0 %v3808_v54  ;;  %v3396_v22 = vld [vmem:[#allocation6 + $0x1b0] sm:$0xff]  ;;  %v3403_v54 = vld [vmem:[#allocation6 + $0x1e8] sm:$0xff] }
 0xc63   :  { %4040 = vmatprep.subr.bf16.mxu1 %v3815_v49  ;;  %4204 = vmatprep.subr.bf16.mxu0 %v3817_v30  ;;  %v3405_v49 = vld [vmem:[#allocation6 + $0x1f8] sm:$0xff]  ;;  %v3402_v30 = vld [vmem:[#allocation6 + $0x1e0] sm:$0xff] }
 0xc66   :  { %4041 = vmatpush1.bf16.msra.mxu1 %v3814_v0  ;;  %4205 = vmatpush1.bf16.msra.mxu0 %v3816_v12  ;;  %v3404_v0 = vld [vmem:[#allocation6 + $0x1f0] sm:$0xff]  ;;  %v3411_v12 = vld [vmem:[#allocation6 + $0x228] sm:$0xff] }
 0xc67   :  { %4042 = vmatprep.subr.bf16.mxu1 %v3823_v53  ;;  %4206 = vmatprep.subr.bf16.mxu0 %v3825_v24  ;;  %v3413_v53 = vld [vmem:[#allocation6 + $0x238] sm:$0xff]  ;;  %v3410_v24 = vld [vmem:[#allocation6 + $0x220] sm:$0xff] }
 0xc6a   :  { %4043 = vmatpush1.bf16.msra.mxu1 %v3822_v3  ;;  %4207 = vmatpush1.bf16.msra.mxu0 %v3824_v55  ;;  %v3412_v3 = vld [vmem:[#allocation6 + $0x230] sm:$0xff]  ;;  %v3419_v55 = vld [vmem:[#allocation6 + $0x268] sm:$0xff] }
 0xc6b   :  { %4044 = vmatprep.subr.bf16.mxu1 %v3831_v28  ;;  %4208 = vmatprep.subr.bf16.mxu0 %v3833_v37  ;;  %v3421_v28 = vld [vmem:[#allocation6 + $0x278] sm:$0xff]  ;;  %v3418_v37 = vld [vmem:[#allocation6 + $0x260] sm:$0xff] }
 0xc6e   :  { %4045 = vmatpush1.bf16.msra.mxu1 %v3830_v16  ;;  %4209 = vmatpush1.bf16.msra.mxu0 %v3832_v29  ;;  %v3420_v16 = vld [vmem:[#allocation6 + $0x270] sm:$0xff]  ;;  %v3427_v29 = vld [vmem:[#allocation6 + $0x2a8] sm:$0xff] }
 0xc6f   :  { %4046 = vmatprep.subr.bf16.mxu1 %v3839_v34  ;;  %4210 = vmatprep.subr.bf16.mxu0 %v3841_v43  ;;  %v3429_v34 = vld [vmem:[#allocation6 + $0x2b8] sm:$0xff]  ;;  %v3426_v43 = vld [vmem:[#allocation6 + $0x2a0] sm:$0xff] }
 0xc72   :  { %4047 = vmatpush1.bf16.msra.mxu1 %v3838_v25  ;;  %4211 = vmatpush1.bf16.msra.mxu0 %v3840_v35  ;;  %v3428_v25 = vld [vmem:[#allocation6 + $0x2b0] sm:$0xff]  ;;  %v3435_v35 = vld [vmem:[#allocation6 + $0x2e8] sm:$0xff] }
 0xc73   :  { %4048 = vmatprep.subr.bf16.mxu1 %v3847_v51  ;;  %4212 = vmatprep.subr.bf16.mxu0 %v3849_v57  ;;  %v3437_v51 = vld [vmem:[#allocation6 + $0x2f8] sm:$0xff]  ;;  %v3434_v57 = vld [vmem:[#allocation6 + $0x2e0] sm:$0xff] }
 0xc76   :  { %4049 = vmatpush1.bf16.msra.mxu1 %v3846_v2  ;;  %4213 = vmatpush1.bf16.msra.mxu0 %v3848_v41  ;;  %v3436_v2 = vld [vmem:[#allocation6 + $0x2f0] sm:$0xff]  ;;  %v3443_v41 = vld [vmem:[#allocation6 + $0x328] sm:$0xff] }
 0xc77   :  { %4223 = vmatprep.subr.bf16.mxu1 %v3347_v31  ;;  %4387 = vmatprep.subr.bf16.mxu0 %v3349_v8  ;;  %v3445_v31 = vld [vmem:[#allocation6 + $0x338] sm:$0xff]  ;;  %v3442_v8 = vld [vmem:[#allocation6 + $0x320] sm:$0xff] }
 0xc79   :  { %4051 = vmatmul.mubr.bf16.vlgmr.msra.gmra.mrb[32].mxu1 %v8740_v36  ;;  %4215 = vmatmul.mubr.bf16.vlgmr.msra.gmra.mrb[12].mxu0 %v8740_v36 }
 0xc7a   :  { %4224 = vmatpush1.bf16.msra.mxu1 %v3346_v59  ;;  %4388 = vmatpush1.bf16.msra.mxu0 %v3348_v5  ;;  %v3444_v59 = vld [vmem:[#allocation6 + $0x330] sm:$0xff]  ;;  %v3451_v5 = vld [vmem:[#allocation6 + $0x368] sm:$0xff] }
 0xc7b   :  { %4225 = vmatprep.subr.bf16.mxu1 %v3355_v60  ;;  %4389 = vmatprep.subr.bf16.mxu0 %v3357_v4  ;;  %v3453_v60 = vld [vmem:[#allocation6 + $0x378] sm:$0xff]  ;;  %v3450_v4 = vld [vmem:[#allocation6 + $0x360] sm:$0xff] }
 0xc7c   :  { %4255 = vmatprep.mubr.bf16.mxu1 %v8724_v52  ;;  %4419 = vmatprep.mubr.bf16.mxu0 %v8724_v52  ;;  %v3378_v52 = vld [vmem:[#allocation6 + $0x120] sm:$0xff] }
 0xc7e   :  { %4226 = vmatpush1.bf16.msra.mxu1 %v3354_v17  ;;  %4390 = vmatpush1.bf16.msra.mxu0 %v3356_v26  ;;  %v3452_v17 = vld [vmem:[#allocation6 + $0x370] sm:$0xff]  ;;  %v3459_v26 = vld [vmem:[#allocation6 + $0x3a8] sm:$0xff] }
 0xc7f   :  { %4227 = vmatprep.subr.bf16.mxu1 %v3363_v13  ;;  %4391 = vmatprep.subr.bf16.mxu0 %v3365_v9  ;;  %v3461_v13 = vld [vmem:[#allocation6 + $0x3b8] sm:$0xff]  ;;  %v3458_v9 = vld [vmem:[#allocation6 + $0x3a0] sm:$0xff] }
 0xc82   :  { %4228 = vmatpush1.bf16.msra.mxu1 %v3362_v18  ;;  %4392 = vmatpush1.bf16.msra.mxu0 %v3364_v42  ;;  %v3460_v18 = vld [vmem:[#allocation6 + $0x3b0] sm:$0xff]  ;;  %v3467_v42 = vld [vmem:[#allocation6 + $0x3e8] sm:$0xff] }
 0xc83   :  { %4229 = vmatprep.subr.bf16.mxu1 %v3371_v23  ;;  %4393 = vmatprep.subr.bf16.mxu0 %v3373_v32  ;;  %v3469_v23 = vld [vmem:[#allocation6 + $0x3f8] sm:$0xff]  ;;  %v3466_v32 = vld [vmem:[#allocation6 + $0x3e0] sm:$0xff] }
 0xc86   :  { %4230 = vmatpush1.bf16.msra.mxu1 %v3370_v61  ;;  %4394 = vmatpush1.bf16.msra.mxu0 %v3372_v47  ;;  %v3468_v61 = vld [vmem:[#allocation6 + $0x3f0] sm:$0xff]  ;;  %v3475_v47 = vld [vmem:[#allocation6 + $0x428] sm:$0xff] }
 0xc87   :  { %4231 = vmatprep.subr.bf16.mxu1 %v3379_v63  ;;  %4395 = vmatprep.subr.bf16.mxu0 %v3381_v39  ;;  %v3477_v63 = vld [vmem:[#allocation6 + $0x438] sm:$0xff]  ;;  %v3474_v39 = vld [vmem:[#allocation6 + $0x420] sm:$0xff] }
 0xc8a   :  { %4232 = vmatpush1.bf16.msra.mxu1 %v3378_v52  ;;  %4396 = vmatpush1.bf16.msra.mxu0 %v3380_v40  ;;  %v3476_v52 = vld [vmem:[#allocation6 + $0x430] sm:$0xff]  ;;  %v3483_v40 = vld [vmem:[#allocation6 + $0x468] sm:$0xff] }
 0xc8b   :  { %4233 = vmatprep.subr.bf16.mxu1 %v3387_v46  ;;  %4397 = vmatprep.subr.bf16.mxu0 %v3389_v45  ;;  %v3485_v46 = vld [vmem:[#allocation6 + $0x478] sm:$0xff]  ;;  %v3482_v45 = vld [vmem:[#allocation6 + $0x460] sm:$0xff] }
 0xc8e   :  { %4234 = vmatpush1.bf16.msra.mxu1 %v3386_v33  ;;  %4398 = vmatpush1.bf16.msra.mxu0 %v3388_v1  ;;  %v3484_v33 = vld [vmem:[#allocation6 + $0x470] sm:$0xff]  ;;  %v3491_v1 = vld [vmem:[#allocation6 + $0x4a8] sm:$0xff] }
 0xc8f   :  { %4235 = vmatprep.subr.bf16.mxu1 %v3395_v50  ;;  %4399 = vmatprep.subr.bf16.mxu0 %v3397_v48  ;;  %v3493_v50 = vld [vmem:[#allocation6 + $0x4b8] sm:$0xff]  ;;  %v3490_v48 = vld [vmem:[#allocation6 + $0x4a0] sm:$0xff] }
 0xc92   :  { %4236 = vmatpush1.bf16.msra.mxu1 %v3394_v56  ;;  %4400 = vmatpush1.bf16.msra.mxu0 %v3396_v22  ;;  %v3492_v56 = vld [vmem:[#allocation6 + $0x4b0] sm:$0xff]  ;;  %v3499_v22 = vld [vmem:[#allocation6 + $0x4e8] sm:$0xff] }
 0xc93   :  { %4237 = vmatprep.subr.bf16.mxu1 %v3403_v54  ;;  %4401 = vmatprep.subr.bf16.mxu0 %v3405_v49  ;;  %v3498_v54 = vld [vmem:[#allocation6 + $0x4e0] sm:$0xff]  ;;  %v3500_v49 = vld [vmem:[#allocation6 + $0x4f0] sm:$0xff] }
 0xc96   :  { %4238 = vmatpush1.bf16.msra.mxu1 %v3402_v30  ;;  %4402 = vmatpush1.bf16.msra.mxu0 %v3404_v0  ;;  %v3507_v30 = vld [vmem:[#allocation6 + $0x528] sm:$0xff]  ;;  %v3509_v0 = vld [vmem:[#allocation6 + $0x538] sm:$0xff] }
 0xc97   :  { %4239 = vmatprep.subr.bf16.mxu1 %v3411_v12  ;;  %4403 = vmatprep.subr.bf16.mxu0 %v3413_v53  ;;  %v3508_v12 = vld [vmem:[#allocation6 + $0x530] sm:$0xff]  ;;  %v3515_v53 = vld [vmem:[#allocation6 + $0x568] sm:$0xff] }
 0xc9a   :  { %4240 = vmatpush1.bf16.msra.mxu1 %v3410_v24  ;;  %4404 = vmatpush1.bf16.msra.mxu0 %v3412_v3  ;;  %v3517_v24 = vld [vmem:[#allocation6 + $0x578] sm:$0xff]  ;;  %v3514_v3 = vld [vmem:[#allocation6 + $0x560] sm:$0xff] }
 0xc9b   :  { %4241 = vmatprep.subr.bf16.mxu1 %v3419_v55  ;;  %4405 = vmatprep.subr.bf16.mxu0 %v3421_v28  ;;  %v3516_v55 = vld [vmem:[#allocation6 + $0x570] sm:$0xff]  ;;  %v3523_v28 = vld [vmem:[#allocation6 + $0x5a8] sm:$0xff] }
 0xc9e   :  { %4242 = vmatpush1.bf16.msra.mxu1 %v3418_v37  ;;  %4406 = vmatpush1.bf16.msra.mxu0 %v3420_v16  ;;  %v3525_v37 = vld [vmem:[#allocation6 + $0x5b8] sm:$0xff]  ;;  %v3522_v16 = vld [vmem:[#allocation6 + $0x5a0] sm:$0xff] }
 0xc9f   :  { %4243 = vmatprep.subr.bf16.mxu1 %v3427_v29  ;;  %4407 = vmatprep.subr.bf16.mxu0 %v3429_v34  ;;  %v3524_v29 = vld [vmem:[#allocation6 + $0x5b0] sm:$0xff]  ;;  %v3531_v34 = vld [vmem:[#allocation6 + $0x5e8] sm:$0xff] }
 0xca2   :  { %4244 = vmatpush1.bf16.msra.mxu1 %v3426_v43  ;;  %4408 = vmatpush1.bf16.msra.mxu0 %v3428_v25  ;;  %v3533_v43 = vld [vmem:[#allocation6 + $0x5f8] sm:$0xff]  ;;  %v3530_v25 = vld [vmem:[#allocation6 + $0x5e0] sm:$0xff] }
 0xca3   :  { %4245 = vmatprep.subr.bf16.mxu1 %v3435_v35  ;;  %4409 = vmatprep.subr.bf16.mxu0 %v3437_v51  ;;  %v3532_v35 = vld [vmem:[#allocation6 + $0x5f0] sm:$0xff]  ;;  %v3539_v51 = vld [vmem:[#allocation6 + $0x628] sm:$0xff] }
 0xca6   :  { %4246 = vmatpush1.bf16.msra.mxu1 %v3434_v57  ;;  %4410 = vmatpush1.bf16.msra.mxu0 %v3436_v2  ;;  %v3541_v57 = vld [vmem:[#allocation6 + $0x638] sm:$0xff]  ;;  %v3538_v2 = vld [vmem:[#allocation6 + $0x620] sm:$0xff] }
 0xca7   :  { %4247 = vmatprep.subr.bf16.mxu1 %v3443_v41  ;;  %4411 = vmatprep.subr.bf16.mxu0 %v3445_v31  ;;  %v3540_v41 = vld [vmem:[#allocation6 + $0x630] sm:$0xff]  ;;  %v3547_v31 = vld [vmem:[#allocation6 + $0x668] sm:$0xff] }
 0xcaa   :  { %4248 = vmatpush1.bf16.msra.mxu1 %v3442_v8  ;;  %4412 = vmatpush1.bf16.msra.mxu0 %v3444_v59  ;;  %v3549_v8 = vld [vmem:[#allocation6 + $0x678] sm:$0xff]  ;;  %v3546_v59 = vld [vmem:[#allocation6 + $0x660] sm:$0xff] }
 0xcab   :  { %4249 = vmatprep.subr.bf16.mxu1 %v3451_v5  ;;  %4413 = vmatprep.subr.bf16.mxu0 %v3453_v60  ;;  %v3548_v5 = vld [vmem:[#allocation6 + $0x670] sm:$0xff]  ;;  %v3555_v60 = vld [vmem:[#allocation6 + $0x6a8] sm:$0xff] }
 0xcae   :  { %4250 = vmatpush1.bf16.msra.mxu1 %v3450_v4  ;;  %4414 = vmatpush1.bf16.msra.mxu0 %v3452_v17  ;;  %v3557_v4 = vld [vmem:[#allocation6 + $0x6b8] sm:$0xff]  ;;  %v3554_v17 = vld [vmem:[#allocation6 + $0x6a0] sm:$0xff] }
 0xcaf   :  { %4251 = vmatprep.subr.bf16.mxu1 %v3459_v26  ;;  %4415 = vmatprep.subr.bf16.mxu0 %v3461_v13  ;;  %v3556_v26 = vld [vmem:[#allocation6 + $0x6b0] sm:$0xff]  ;;  %v3563_v13 = vld [vmem:[#allocation6 + $0x6e8] sm:$0xff] }
 0xcb2   :  { %4252 = vmatpush1.bf16.msra.mxu1 %v3458_v9  ;;  %4416 = vmatpush1.bf16.msra.mxu0 %v3460_v18  ;;  %v3565_v9 = vld [vmem:[#allocation6 + $0x6f8] sm:$0xff]  ;;  %v3562_v18 = vld [vmem:[#allocation6 + $0x6e0] sm:$0xff] }
 0xcb3   :  { %4253 = vmatprep.subr.bf16.mxu1 %v3467_v42  ;;  %4417 = vmatprep.subr.bf16.mxu0 %v3469_v23  ;;  %v3564_v42 = vld [vmem:[#allocation6 + $0x6f0] sm:$0xff]  ;;  %v3571_v23 = vld [vmem:[#allocation6 + $0x728] sm:$0xff] }
 0xcb6   :  { %4254 = vmatpush1.bf16.msra.mxu1 %v3466_v32  ;;  %4418 = vmatpush1.bf16.msra.mxu0 %v3468_v61  ;;  %v3573_v32 = vld [vmem:[#allocation6 + $0x738] sm:$0xff]  ;;  %v3570_v61 = vld [vmem:[#allocation6 + $0x720] sm:$0xff] }
 0xcb7   :  { %4264 = vmatprep.subr.bf16.mxu1 %v3475_v47  ;;  %4428 = vmatprep.subr.bf16.mxu0 %v3477_v63  ;;  %v3572_v47 = vld [vmem:[#allocation6 + $0x730] sm:$0xff]  ;;  %v3579_v63 = vld [vmem:[#allocation6 + $0x768] sm:$0xff] }
 0xcb9   :  { %4256 = vmatmul.mubr.bf16.vlgmr.msra.gmra.mrb[36].mxu1 %v8720_v38  ;;  %4420 = vmatmul.mubr.bf16.vlgmr.msra.gmra.mrb[16].mxu0 %v8720_v38  ;;  %v3501_v38 = vld [vmem:[#allocation6 + $0x4f8] sm:$0xff] }
 0xcba   :  { %4265 = vmatpush1.bf16.msra.mxu1 %v3474_v39  ;;  %4429 = vmatpush1.bf16.msra.mxu0 %v3476_v52  ;;  %v3581_v39 = vld [vmem:[#allocation6 + $0x778] sm:$0xff]  ;;  %v3578_v52 = vld [vmem:[#allocation6 + $0x760] sm:$0xff] }
 0xcbb   :  { %4266 = vmatprep.subr.bf16.mxu1 %v3483_v40  ;;  %4430 = vmatprep.subr.bf16.mxu0 %v3485_v46  ;;  %v3580_v40 = vld [vmem:[#allocation6 + $0x770] sm:$0xff]  ;;  %v3587_v46 = vld [vmem:[#allocation6 + $0x7a8] sm:$0xff] }
 0xcbc   :  { %4296 = vmatprep.mubr.bf16.mxu1 %v8726_v21  ;;  %4460 = vmatprep.mubr.bf16.mxu0 %v8726_v21  ;;  %v3506_v21 = vld [vmem:[#allocation6 + $0x520] sm:$0xff] }
 0xcbe   :  { %4267 = vmatpush1.bf16.msra.mxu1 %v3482_v45  ;;  %4431 = vmatpush1.bf16.msra.mxu0 %v3484_v33  ;;  %v3589_v45 = vld [vmem:[#allocation6 + $0x7b8] sm:$0xff]  ;;  %v3586_v33 = vld [vmem:[#allocation6 + $0x7a0] sm:$0xff] }
 0xcbf   :  { %4268 = vmatprep.subr.bf16.mxu1 %v3491_v1  ;;  %4432 = vmatprep.subr.bf16.mxu0 %v3493_v50  ;;  %v3588_v1 = vld [vmem:[#allocation6 + $0x7b0] sm:$0xff]  ;;  %v3595_v50 = vld [vmem:[#allocation6 + $0x7e8] sm:$0xff] }
 0xcc2   :  { %4269 = vmatpush1.bf16.msra.mxu1 %v3490_v48  ;;  %4433 = vmatpush1.bf16.msra.mxu0 %v3492_v56  ;;  %v3597_v48 = vld [vmem:[#allocation6 + $0x7f8] sm:$0xff]  ;;  %v3594_v56 = vld [vmem:[#allocation6 + $0x7e0] sm:$0xff] }
 0xcc3   :  { %4270 = vmatprep.subr.bf16.mxu1 %v3499_v22  ;;  %4434 = vmatprep.subr.bf16.mxu0 %v3501_v38  ;;  %v3596_v22 = vld [vmem:[#allocation6 + $0x7f0] sm:$0xff]  ;;  %v3603_v38 = vld [vmem:[#allocation6 + $0x828] sm:$0xff] }
 0xcc6   :  { %4271 = vmatpush1.bf16.msra.mxu1 %v3498_v54  ;;  %4435 = vmatpush1.bf16.msra.mxu0 %v3500_v49  ;;  %v3605_v54 = vld [vmem:[#allocation6 + $0x838] sm:$0xff]  ;;  %v3602_v49 = vld [vmem:[#allocation6 + $0x820] sm:$0xff] }
 0xcc7   :  { %4272 = vmatprep.subr.bf16.mxu1 %v3507_v30  ;;  %4436 = vmatprep.subr.bf16.mxu0 %v3509_v0  ;;  %v3604_v30 = vld [vmem:[#allocation6 + $0x830] sm:$0xff]  ;;  %v3611_v0 = vld [vmem:[#allocation6 + $0x868] sm:$0xff] }
 0xcca   :  { %4273 = vmatpush1.bf16.msra.mxu1 %v3506_v21  ;;  %4437 = vmatpush1.bf16.msra.mxu0 %v3508_v12  ;;  %v3613_v21 = vld [vmem:[#allocation6 + $0x878] sm:$0xff]  ;;  %v3610_v12 = vld [vmem:[#allocation6 + $0x860] sm:$0xff] }
 0xccb   :  { %4274 = vmatprep.subr.bf16.mxu1 %v3515_v53  ;;  %4438 = vmatprep.subr.bf16.mxu0 %v3517_v24  ;;  %v3612_v53 = vld [vmem:[#allocation6 + $0x870] sm:$0xff]  ;;  %v3619_v24 = vld [vmem:[#allocation6 + $0x8a8] sm:$0xff] }
 0xcce   :  { %4275 = vmatpush1.bf16.msra.mxu1 %v3514_v3  ;;  %4439 = vmatpush1.bf16.msra.mxu0 %v3516_v55  ;;  %v3621_v3 = vld [vmem:[#allocation6 + $0x8b8] sm:$0xff]  ;;  %v3618_v55 = vld [vmem:[#allocation6 + $0x8a0] sm:$0xff] }
 0xccf   :  { %4276 = vmatprep.subr.bf16.mxu1 %v3523_v28  ;;  %4440 = vmatprep.subr.bf16.mxu0 %v3525_v37  ;;  %v3620_v28 = vld [vmem:[#allocation6 + $0x8b0] sm:$0xff]  ;;  %v3627_v37 = vld [vmem:[#allocation6 + $0x8e8] sm:$0xff] }
 0xcd2   :  { %4277 = vmatpush1.bf16.msra.mxu1 %v3522_v16  ;;  %4441 = vmatpush1.bf16.msra.mxu0 %v3524_v29  ;;  %v3626_v16 = vld [vmem:[#allocation6 + $0x8e0] sm:$0xff]  ;;  %v3628_v29 = vld [vmem:[#allocation6 + $0x8f0] sm:$0xff] }
 0xcd3   :  { %4278 = vmatprep.subr.bf16.mxu1 %v3531_v34  ;;  %4442 = vmatprep.subr.bf16.mxu0 %v3533_v43  ;;  %v3635_v34 = vld [vmem:[#allocation6 + $0x928] sm:$0xff]  ;;  %v3637_v43 = vld [vmem:[#allocation6 + $0x938] sm:$0xff] }
 0xcd6   :  { %4279 = vmatpush1.bf16.msra.mxu1 %v3530_v25  ;;  %4443 = vmatpush1.bf16.msra.mxu0 %v3532_v35  ;;  %v3636_v25 = vld [vmem:[#allocation6 + $0x930] sm:$0xff]  ;;  %v3643_v35 = vld [vmem:[#allocation6 + $0x968] sm:$0xff] }
 0xcd7   :  { %4280 = vmatprep.subr.bf16.mxu1 %v3539_v51  ;;  %4444 = vmatprep.subr.bf16.mxu0 %v3541_v57  ;;  %v3645_v51 = vld [vmem:[#allocation6 + $0x978] sm:$0xff]  ;;  %v3642_v57 = vld [vmem:[#allocation6 + $0x960] sm:$0xff] }
 0xcda   :  { %4281 = vmatpush1.bf16.msra.mxu1 %v3538_v2  ;;  %4445 = vmatpush1.bf16.msra.mxu0 %v3540_v41  ;;  %v3644_v2 = vld [vmem:[#allocation6 + $0x970] sm:$0xff]  ;;  %v3651_v41 = vld [vmem:[#allocation6 + $0x9a8] sm:$0xff] }
 0xcdb   :  { %4282 = vmatprep.subr.bf16.mxu1 %v3547_v31  ;;  %4446 = vmatprep.subr.bf16.mxu0 %v3549_v8  ;;  %v3653_v31 = vld [vmem:[#allocation6 + $0x9b8] sm:$0xff]  ;;  %v3650_v8 = vld [vmem:[#allocation6 + $0x9a0] sm:$0xff] }
 0xcde   :  { %4283 = vmatpush1.bf16.msra.mxu1 %v3546_v59  ;;  %4447 = vmatpush1.bf16.msra.mxu0 %v3548_v5  ;;  %v3652_v59 = vld [vmem:[#allocation6 + $0x9b0] sm:$0xff]  ;;  %v3659_v5 = vld [vmem:[#allocation6 + $0x9e8] sm:$0xff] }
 0xcdf   :  { %4284 = vmatprep.subr.bf16.mxu1 %v3555_v60  ;;  %4448 = vmatprep.subr.bf16.mxu0 %v3557_v4  ;;  %v3661_v60 = vld [vmem:[#allocation6 + $0x9f8] sm:$0xff]  ;;  %v3658_v4 = vld [vmem:[#allocation6 + $0x9e0] sm:$0xff] }
 0xce2   :  { %4285 = vmatpush1.bf16.msra.mxu1 %v3554_v17  ;;  %4449 = vmatpush1.bf16.msra.mxu0 %v3556_v26  ;;  %v3660_v17 = vld [vmem:[#allocation6 + $0x9f0] sm:$0xff]  ;;  %v3667_v26 = vld [vmem:[#allocation6 + $0xa28] sm:$0xff] }
 0xce3   :  { %4286 = vmatprep.subr.bf16.mxu1 %v3563_v13  ;;  %4450 = vmatprep.subr.bf16.mxu0 %v3565_v9  ;;  %v3669_v13 = vld [vmem:[#allocation6 + $0xa38] sm:$0xff]  ;;  %v3666_v9 = vld [vmem:[#allocation6 + $0xa20] sm:$0xff] }
 0xce6   :  { %4287 = vmatpush1.bf16.msra.mxu1 %v3562_v18  ;;  %4451 = vmatpush1.bf16.msra.mxu0 %v3564_v42  ;;  %v3668_v18 = vld [vmem:[#allocation6 + $0xa30] sm:$0xff]  ;;  %v3675_v42 = vld [vmem:[#allocation6 + $0xa68] sm:$0xff] }
 0xce7   :  { %4288 = vmatprep.subr.bf16.mxu1 %v3571_v23  ;;  %4452 = vmatprep.subr.bf16.mxu0 %v3573_v32  ;;  %v3677_v23 = vld [vmem:[#allocation6 + $0xa78] sm:$0xff]  ;;  %v3674_v32 = vld [vmem:[#allocation6 + $0xa60] sm:$0xff] }
 0xcea   :  { %4289 = vmatpush1.bf16.msra.mxu1 %v3570_v61  ;;  %4453 = vmatpush1.bf16.msra.mxu0 %v3572_v47  ;;  %v3676_v61 = vld [vmem:[#allocation6 + $0xa70] sm:$0xff]  ;;  %v3683_v47 = vld [vmem:[#allocation6 + $0xaa8] sm:$0xff] }
 0xceb   :  { %4290 = vmatprep.subr.bf16.mxu1 %v3579_v63  ;;  %4454 = vmatprep.subr.bf16.mxu0 %v3581_v39  ;;  %v3685_v63 = vld [vmem:[#allocation6 + $0xab8] sm:$0xff]  ;;  %v3682_v39 = vld [vmem:[#allocation6 + $0xaa0] sm:$0xff] }
 0xcee   :  { %4291 = vmatpush1.bf16.msra.mxu1 %v3578_v52  ;;  %4455 = vmatpush1.bf16.msra.mxu0 %v3580_v40  ;;  %v3684_v52 = vld [vmem:[#allocation6 + $0xab0] sm:$0xff]  ;;  %v3691_v40 = vld [vmem:[#allocation6 + $0xae8] sm:$0xff] }
 0xcef   :  { %4292 = vmatprep.subr.bf16.mxu1 %v3587_v46  ;;  %4456 = vmatprep.subr.bf16.mxu0 %v3589_v45  ;;  %v3693_v46 = vld [vmem:[#allocation6 + $0xaf8] sm:$0xff]  ;;  %v3690_v45 = vld [vmem:[#allocation6 + $0xae0] sm:$0xff] }
 0xcf2   :  { %4293 = vmatpush1.bf16.msra.mxu1 %v3586_v33  ;;  %4457 = vmatpush1.bf16.msra.mxu0 %v3588_v1  ;;  %v3692_v33 = vld [vmem:[#allocation6 + $0xaf0] sm:$0xff]  ;;  %v3699_v1 = vld [vmem:[#allocation6 + $0xb28] sm:$0xff] }
 0xcf3   :  { %4294 = vmatprep.subr.bf16.mxu1 %v3595_v50  ;;  %4458 = vmatprep.subr.bf16.mxu0 %v3597_v48  ;;  %v3701_v50 = vld [vmem:[#allocation6 + $0xb38] sm:$0xff]  ;;  %v3698_v48 = vld [vmem:[#allocation6 + $0xb20] sm:$0xff] }
 0xcf6   :  { %4295 = vmatpush1.bf16.msra.mxu1 %v3594_v56  ;;  %4459 = vmatpush1.bf16.msra.mxu0 %v3596_v22  ;;  %v3700_v56 = vld [vmem:[#allocation6 + $0xb30] sm:$0xff]  ;;  %v3707_v22 = vld [vmem:[#allocation6 + $0xb68] sm:$0xff] }
 0xcf7   :  { %4305 = vmatprep.subr.bf16.mxu1 %v3603_v38  ;;  %4469 = vmatprep.subr.bf16.mxu0 %v3605_v54  ;;  %v3709_v38 = vld [vmem:[#allocation6 + $0xb78] sm:$0xff]  ;;  %v3706_v54 = vld [vmem:[#allocation6 + $0xb60] sm:$0xff] }
 0xcf9   :  { %4297 = vmatmul.mubr.bf16.vlgmr.msra.gmra.mrb[36].mxu1 %v8722_v14  ;;  %4461 = vmatmul.mubr.bf16.vlgmr.msra.gmra.mrb[16].mxu0 %v8722_v14  ;;  %v3629_v14 = vld [vmem:[#allocation6 + $0x8f8] sm:$0xff] }
 0xcfa   :  { %4306 = vmatpush1.bf16.msra.mxu1 %v3602_v49  ;;  %4470 = vmatpush1.bf16.msra.mxu0 %v3604_v30  ;;  %v3708_v49 = vld [vmem:[#allocation6 + $0xb70] sm:$0xff]  ;;  %v3715_v30 = vld [vmem:[#allocation6 + $0xba8] sm:$0xff] }
 0xcfb   :  { %4307 = vmatprep.subr.bf16.mxu1 %v3611_v0  ;;  %4471 = vmatprep.subr.bf16.mxu0 %v3613_v21  ;;  %v3717_v0 = vld [vmem:[#allocation6 + $0xbb8] sm:$0xff]  ;;  %v3714_v21 = vld [vmem:[#allocation6 + $0xba0] sm:$0xff] }
 0xcfc   :  { %4337 = vmatprep.mubr.bf16.mxu1 %v8742_v44  ;;  %4501 = vmatprep.mubr.bf16.mxu0 %v8742_v44  ;;  %v3634_v44 = vld [vmem:[#allocation6 + $0x920] sm:$0xff] }
 0xcfe   :  { %4308 = vmatpush1.bf16.msra.mxu1 %v3610_v12  ;;  %4472 = vmatpush1.bf16.msra.mxu0 %v3612_v53  ;;  %v3716_v12 = vld [vmem:[#allocation6 + $0xbb0] sm:$0xff]  ;;  %v3723_v53 = vld [vmem:[#allocation6 + $0xbe8] sm:$0xff] }
 0xcff   :  { %4309 = vmatprep.subr.bf16.mxu1 %v3619_v24  ;;  %4473 = vmatprep.subr.bf16.mxu0 %v3621_v3  ;;  %v3725_v24 = vld [vmem:[#allocation6 + $0xbf8] sm:$0xff]  ;;  %v3722_v3 = vld [vmem:[#allocation6 + $0xbe0] sm:$0xff] }
 0xd02   :  { %4310 = vmatpush1.bf16.msra.mxu1 %v3618_v55  ;;  %4474 = vmatpush1.bf16.msra.mxu0 %v3620_v28  ;;  %v3724_v55 = vld [vmem:[#allocation6 + $0xbf0] sm:$0xff]  ;;  %v3731_v28 = vld [vmem:[#allocation6 + $0xc28] sm:$0xff] }
 0xd03   :  { %4311 = vmatprep.subr.bf16.mxu1 %v3627_v37  ;;  %4475 = vmatprep.subr.bf16.mxu0 %v3629_v14  ;;  %v3733_v37 = vld [vmem:[#allocation6 + $0xc38] sm:$0xff]  ;;  %v3730_v14 = vld [vmem:[#allocation6 + $0xc20] sm:$0xff] }
 0xd06   :  { %4312 = vmatpush1.bf16.msra.mxu1 %v3626_v16  ;;  %4476 = vmatpush1.bf16.msra.mxu0 %v3628_v29  ;;  %v3732_v16 = vld [vmem:[#allocation6 + $0xc30] sm:$0xff]  ;;  %v3739_v29 = vld [vmem:[#allocation6 + $0xc68] sm:$0xff] }
 0xd07   :  { %4313 = vmatprep.subr.bf16.mxu1 %v3635_v34  ;;  %4477 = vmatprep.subr.bf16.mxu0 %v3637_v43  ;;  %v3741_v34 = vld [vmem:[#allocation6 + $0xc78] sm:$0xff]  ;;  %v3738_v43 = vld [vmem:[#allocation6 + $0xc60] sm:$0xff] }
 0xd0a   :  { %4314 = vmatpush1.bf16.msra.mxu1 %v3634_v44  ;;  %4478 = vmatpush1.bf16.msra.mxu0 %v3636_v25  ;;  %v3740_v44 = vld [vmem:[#allocation6 + $0xc70] sm:$0xff]  ;;  %v3747_v25 = vld [vmem:[#allocation6 + $0xca8] sm:$0xff] }
 0xd0b   :  { %4315 = vmatprep.subr.bf16.mxu1 %v3643_v35  ;;  %4479 = vmatprep.subr.bf16.mxu0 %v3645_v51  ;;  %v3749_v35 = vld [vmem:[#allocation6 + $0xcb8] sm:$0xff]  ;;  %v3746_v51 = vld [vmem:[#allocation6 + $0xca0] sm:$0xff] }
 0xd0e   :  { %4316 = vmatpush1.bf16.msra.mxu1 %v3642_v57  ;;  %4480 = vmatpush1.bf16.msra.mxu0 %v3644_v2  ;;  %v3748_v57 = vld [vmem:[#allocation6 + $0xcb0] sm:$0xff]  ;;  %v3755_v2 = vld [vmem:[#allocation6 + $0xce8] sm:$0xff] }
 0xd0f   :  { %4317 = vmatprep.subr.bf16.mxu1 %v3651_v41  ;;  %4481 = vmatprep.subr.bf16.mxu0 %v3653_v31  ;;  %v3754_v41 = vld [vmem:[#allocation6 + $0xce0] sm:$0xff]  ;;  %v3756_v31 = vld [vmem:[#allocation6 + $0xcf0] sm:$0xff] }
 0xd12   :  { %4318 = vmatpush1.bf16.msra.mxu1 %v3650_v8  ;;  %4482 = vmatpush1.bf16.msra.mxu0 %v3652_v59  ;;  %v3763_v8 = vld [vmem:[#allocation6 + $0xd28] sm:$0xff]  ;;  %v3765_v59 = vld [vmem:[#allocation6 + $0xd38] sm:$0xff] }
 0xd13   :  { %4319 = vmatprep.subr.bf16.mxu1 %v3659_v5  ;;  %4483 = vmatprep.subr.bf16.mxu0 %v3661_v60  ;;  %v8776_v5 = vld [vmem:[#allocation13 + $0x16] sm:$0xff] }
 0xd14   :  { %v3764_v60 = vld [vmem:[#allocation6 + $0xd30] sm:$0xff] }
 0xd16   :  { %4320 = vmatpush1.bf16.msra.mxu1 %v3658_v4  ;;  %4484 = vmatpush1.bf16.msra.mxu0 %v3660_v17  ;;  %v3771_v4 = vld [vmem:[#allocation6 + $0xd68] sm:$0xff]  ;;  %v3773_v17 = vld [vmem:[#allocation6 + $0xd78] sm:$0xff] }
 0xd17   :  { %4321 = vmatprep.subr.bf16.mxu1 %v3667_v26  ;;  %4485 = vmatprep.subr.bf16.mxu0 %v3669_v13  ;;  %v3858_v26 = vrot.slane %v8776_v5, %v8585_v15  ;;  %v3866_v13 = vrot.slane %v8776_v5, %v8607_v58 }
 0xd1a   :  { %4322 = vmatpush1.bf16.msra.mxu1 %v3666_v9  ;;  %4486 = vmatpush1.bf16.msra.mxu0 %v3668_v18  ;;  %v3862_v9 = vrot.slane %v8776_v5, %v8588_v10  ;;  %v3870_v18 = vrot.slane %v8776_v5, %v8610_v7 }
 0xd1b   :  { %4323 = vmatprep.subr.bf16.mxu1 %v3675_v42  ;;  %4487 = vmatprep.subr.bf16.mxu0 %v3677_v23  ;;  %v3770_v42 = vld [vmem:[#allocation6 + $0xd60] sm:$0xff]  ;;  %v3772_v23 = vld [vmem:[#allocation6 + $0xd70] sm:$0xff] }
 0xd1e   :  { %4324 = vmatpush1.bf16.msra.mxu1 %v3674_v32  ;;  %4488 = vmatpush1.bf16.msra.mxu0 %v3676_v61 }
 0xd1f   :  { %4325 = vmatprep.subr.bf16.mxu1 %v3683_v47  ;;  %4489 = vmatprep.subr.bf16.mxu0 %v3685_v63  ;;  %v3779_v47 = vld [vmem:[#allocation6 + $0xda8] sm:$0xff]  ;;  %v3781_v63 = vld [vmem:[#allocation6 + $0xdb8] sm:$0xff] }
 0xd22   :  { %4326 = vmatpush1.bf16.msra.mxu1 %v3682_v39  ;;  %4490 = vmatpush1.bf16.msra.mxu0 %v3684_v52 }
 0xd23   :  { %4327 = vmatprep.subr.bf16.mxu1 %v3691_v40  ;;  %4491 = vmatprep.subr.bf16.mxu0 %v3693_v46 }
 0xd26   :  { %4328 = vmatpush1.bf16.msra.mxu1 %v3690_v45  ;;  %4492 = vmatpush1.bf16.msra.mxu0 %v3692_v33 }
 0xd27   :  { %4329 = vmatprep.subr.bf16.mxu1 %v3699_v1  ;;  %4493 = vmatprep.subr.bf16.mxu0 %v3701_v50 }
 0xd2a   :  { %4330 = vmatpush1.bf16.msra.mxu1 %v3698_v48  ;;  %4494 = vmatpush1.bf16.msra.mxu0 %v3700_v56 }
 0xd2b   :  { %4331 = vmatprep.subr.bf16.mxu1 %v3707_v22  ;;  %4495 = vmatprep.subr.bf16.mxu0 %v3709_v38 }
 0xd2e   :  { %4332 = vmatpush1.bf16.msra.mxu1 %v3706_v54  ;;  %4496 = vmatpush1.bf16.msra.mxu0 %v3708_v49  ;;  %v3778_v54 = vld [vmem:[#allocation6 + $0xda0] sm:$0xff]  ;;  %v3780_v49 = vld [vmem:[#allocation6 + $0xdb0] sm:$0xff] }
 0xd2f   :  { %4333 = vmatprep.subr.bf16.mxu1 %v3715_v30  ;;  %4497 = vmatprep.subr.bf16.mxu0 %v3717_v0 }
 0xd32   :  { %4334 = vmatpush1.bf16.msra.mxu1 %v3714_v21  ;;  %4498 = vmatpush1.bf16.msra.mxu0 %v3716_v12  ;;  %v3787_v21 = vld [vmem:[#allocation6 + $0xde8] sm:$0xff]  ;;  %v3789_v12 = vld [vmem:[#allocation6 + $0xdf8] sm:$0xff] }
 0xd33   :  { %4335 = vmatprep.subr.bf16.mxu1 %v3723_v53  ;;  %4499 = vmatprep.subr.bf16.mxu0 %v3725_v24 }
 0xd36   :  { %4336 = vmatpush1.bf16.msra.mxu1 %v3722_v3  ;;  %4500 = vmatpush1.bf16.msra.mxu0 %v3724_v55 }
 0xd37   :  { %4346 = vmatprep.subr.bf16.mxu1 %v3731_v28  ;;  %4510 = vmatprep.subr.bf16.mxu0 %v3733_v37  ;;  %v3786_v28 = vld [vmem:[#allocation6 + $0xde0] sm:$0xff]  ;;  %v3788_v37 = vld [vmem:[#allocation6 + $0xdf0] sm:$0xff] }
 0xd39   :  { %4338 = vmatmul.mubr.bf16.vlgmr.msra.gmra.mrb[36].mxu1 %v8738_v27  ;;  %4502 = vmatmul.mubr.bf16.vlgmr.msra.gmra.mrb[16].mxu0 %v8738_v27  ;;  %v3757_v27 = vld [vmem:[#allocation6 + $0xcf8] sm:$0xff] }
 0xd3a   :  { %4347 = vmatpush1.bf16.msra.mxu1 %v3730_v14  ;;  %4511 = vmatpush1.bf16.msra.mxu0 %v3732_v16  ;;  %v3795_v14 = vld [vmem:[#allocation6 + $0xe28] sm:$0xff]  ;;  %v3797_v16 = vld [vmem:[#allocation6 + $0xe38] sm:$0xff] }
 0xd3b   :  { %4348 = vmatprep.subr.bf16.mxu1 %v3739_v29  ;;  %4512 = vmatprep.subr.bf16.mxu0 %v3741_v34  ;;  %v3794_v29 = vld [vmem:[#allocation6 + $0xe20] sm:$0xff]  ;;  %v3796_v34 = vld [vmem:[#allocation6 + $0xe30] sm:$0xff] }
 0xd3c   :  { %4378 = vmatprep.mubr.bf16.mxu1 %v8744_v6  ;;  %4542 = vmatprep.mubr.bf16.mxu0 %v8744_v6  ;;  %v3762_v6 = vld [vmem:[#allocation6 + $0xd20] sm:$0xff] }
 0xd3e   :  { %4349 = vmatpush1.bf16.msra.mxu1 %v3738_v43  ;;  %4513 = vmatpush1.bf16.msra.mxu0 %v3740_v44  ;;  %v3803_v43 = vld [vmem:[#allocation6 + $0xe68] sm:$0xff]  ;;  %v3805_v44 = vld [vmem:[#allocation6 + $0xe78] sm:$0xff] }
 0xd3f   :  { %4350 = vmatprep.subr.bf16.mxu1 %v3747_v25  ;;  %4514 = vmatprep.subr.bf16.mxu0 %v3749_v35  ;;  %v3802_v25 = vld [vmem:[#allocation6 + $0xe60] sm:$0xff]  ;;  %v3804_v35 = vld [vmem:[#allocation6 + $0xe70] sm:$0xff] }
 0xd42   :  { %4351 = vmatpush1.bf16.msra.mxu1 %v3746_v51  ;;  %4515 = vmatpush1.bf16.msra.mxu0 %v3748_v57  ;;  %v3811_v51 = vld [vmem:[#allocation6 + $0xea8] sm:$0xff]  ;;  %v3813_v57 = vld [vmem:[#allocation6 + $0xeb8] sm:$0xff] }
 0xd43   :  { %4352 = vmatprep.subr.bf16.mxu1 %v3755_v2  ;;  %4516 = vmatprep.subr.bf16.mxu0 %v3757_v27  ;;  %v3810_v2 = vld [vmem:[#allocation6 + $0xea0] sm:$0xff]  ;;  %v3812_v27 = vld [vmem:[#allocation6 + $0xeb0] sm:$0xff] }
 0xd46   :  { %4353 = vmatpush1.bf16.msra.mxu1 %v3754_v41  ;;  %4517 = vmatpush1.bf16.msra.mxu0 %v3756_v31  ;;  %v3819_v41 = vld [vmem:[#allocation6 + $0xee8] sm:$0xff]  ;;  %v3821_v31 = vld [vmem:[#allocation6 + $0xef8] sm:$0xff] }
 0xd47   :  { %4354 = vmatprep.subr.bf16.mxu1 %v3763_v8  ;;  %4518 = vmatprep.subr.bf16.mxu0 %v3765_v59  ;;  %v3818_v8 = vld [vmem:[#allocation6 + $0xee0] sm:$0xff]  ;;  %v3820_v59 = vld [vmem:[#allocation6 + $0xef0] sm:$0xff] }
 0xd4a   :  { %4355 = vmatpush1.bf16.msra.mxu1 %v3762_v6  ;;  %4519 = vmatpush1.bf16.msra.mxu0 %v3764_v60  ;;  %v3827_v6 = vld [vmem:[#allocation6 + $0xf28] sm:$0xff]  ;;  %v3829_v60 = vld [vmem:[#allocation6 + $0xf38] sm:$0xff] }
 0xd4b   :  { %4356 = vmatprep.subr.bf16.mxu1 %v3771_v4  ;;  %4520 = vmatprep.subr.bf16.mxu0 %v3773_v17  ;;  %v3826_v4 = vld [vmem:[#allocation6 + $0xf20] sm:$0xff]  ;;  %v3828_v17 = vld [vmem:[#allocation6 + $0xf30] sm:$0xff] }
 0xd4c   :  { %v4052_v32 = vpop.f32.mrb[32].mxu1  ;;  %v4216_v61 = vpop.f32.mrb[12].mxu0 }
 0xd4d   :  { %v7653_v39 = vadd.f32 %v4052_v32, %v3858_v26  ;;  %v7655_v52 = vadd.f32 %v4216_v61, %v3866_v13  ;;  %v4054_v40 = vpop.f32.mrb[33].mxu1  ;;  %v4218_v46 = vpop.f32.mrb[13].mxu0  ;;  %v3835_v26 = vld [vmem:[#allocation6 + $0xf68] sm:$0xff]  ;;  %v3837_v13 = vld [vmem:[#allocation6 + $0xf78] sm:$0xff]  ;;  %v3842_v32 = vld [vmem:[#allocation6 + $0xfa0] sm:$0xff] }
 0xd4e   :  { %v7654_v45 = vadd.f32 %v4054_v40, %v3862_v9  ;;  %v7656_v33 = vadd.f32 %v4218_v46, %v3870_v18  ;;  %v4056_v1 = vpop.f32.mrb[34].mxu1  ;;  %v4220_v50 = vpop.f32.mrb[14].mxu0  ;;  %4357 = vmatpush1.bf16.msra.mxu1 %v3770_v42  ;;  %4521 = vmatpush1.bf16.msra.mxu0 %v3772_v23  ;;  %v3834_v9 = vld [vmem:[#allocation6 + $0xf60] sm:$0xff]  ;;  %v3836_v18 = vld [vmem:[#allocation6 + $0xf70] sm:$0xff]  ;;  %v3843_v42 = vld [vmem:[#allocation6 + $0xfa8] sm:$0xff]  ;;  %v3874_v40 = vrot.slane %v8776_v5, %v8653_v11 }
 0xd4f   :  { %v4551_v48 = vmax.f32 %v7653_v39, 0.0  ;;  %v4553_v56 = vmax.f32 %v7655_v52, 0.0  ;;  %v4057_v22 = vpop.f32.mrb[35].mxu1  ;;  %v4221_v38 = vpop.f32.mrb[15].mxu0  ;;  %4358 = vmatprep.subr.bf16.mxu1 %v3779_v47  ;;  %4522 = vmatprep.subr.bf16.mxu0 %v3781_v63  ;;  %v3845_v23 = vld [vmem:[#allocation6 + $0xfb8] sm:$0xff]  ;;  %v3844_v61 = vld [vmem:[#allocation6 + $0xfb0] sm:$0xff]  ;;  %v3882_v46 = vrot.slane %v8776_v5, %v8667_v19 }
 0xd50   :  { %v4552_v30 = vmax.f32 %v7654_v45, 0.0  ;;  %v4554_v0 = vmax.f32 %v7656_v33, 0.0  ;;  %v3851_v47 = vld [vmem:[#allocation6 + $0xfe8] sm:$0xff]  ;;  %v3853_v63 = vld [vmem:[#allocation6 + $0xff8] sm:$0xff]  ;;  %v3850_v39 = vld [vmem:[#allocation6 + $0xfe0] sm:$0xff]  ;;  %v3878_v45 = vrot.slane %v8776_v5, %v8656_v20  ;;  %v3886_v33 = vrot.slane %v8776_v5, %v8670_v62 }
 0xd51   :  { %v8786_v53 = vpack.c.bf16 %v4551_v48, %v4551_v48  ;;  %v8788_v24 = vpack.c.bf16 %v4553_v56, %v4553_v56  ;;  %v3852_v52 = vld [vmem:[#allocation6 + $0xff0] sm:$0xff] }
 0xd52   :  { %v8790_v3 = vpack.c.bf16 %v4552_v30, %v4552_v30  ;;  %v8792_v55 = vpack.c.bf16 %v4554_v0, %v4554_v0  ;;  %4359 = vmatpush1.bf16.msra.mxu1 %v3778_v54  ;;  %4523 = vmatpush1.bf16.msra.mxu0 %v3780_v49 }
 0xd53   :  { %4360 = vmatprep.subr.bf16.mxu1 %v3787_v21  ;;  %4524 = vmatprep.subr.bf16.mxu0 %v3789_v12 }
 0xd56   :  { %4361 = vmatpush1.bf16.msra.mxu1 %v3786_v28  ;;  %4525 = vmatpush1.bf16.msra.mxu0 %v3788_v37 }
 0xd57   :  { %4362 = vmatprep.subr.bf16.mxu1 %v3795_v14  ;;  %4526 = vmatprep.subr.bf16.mxu0 %v3797_v16 }
 0xd5a   :  { %4363 = vmatpush1.bf16.msra.mxu1 %v3794_v29  ;;  %4527 = vmatpush1.bf16.msra.mxu0 %v3796_v34 }
 0xd5b   :  { %4364 = vmatprep.subr.bf16.mxu1 %v3803_v43  ;;  %4528 = vmatprep.subr.bf16.mxu0 %v3805_v44 }
 0xd5e   :  { %4365 = vmatpush1.bf16.msra.mxu1 %v3802_v25  ;;  %4529 = vmatpush1.bf16.msra.mxu0 %v3804_v35 }
 0xd5f   :  { %4366 = vmatprep.subr.bf16.mxu1 %v3811_v51  ;;  %4530 = vmatprep.subr.bf16.mxu0 %v3813_v57 }
 0xd62   :  { %4367 = vmatpush1.bf16.msra.mxu1 %v3810_v2  ;;  %4531 = vmatpush1.bf16.msra.mxu0 %v3812_v27 }
 0xd63   :  { %4368 = vmatprep.subr.bf16.mxu1 %v3819_v41  ;;  %4532 = vmatprep.subr.bf16.mxu0 %v3821_v31 }
 0xd66   :  { %4369 = vmatpush1.bf16.msra.mxu1 %v3818_v8  ;;  %4533 = vmatpush1.bf16.msra.mxu0 %v3820_v59 }
 0xd67   :  { %4370 = vmatprep.subr.bf16.mxu1 %v3827_v6  ;;  %4534 = vmatprep.subr.bf16.mxu0 %v3829_v60 }
 0xd6a   :  { %4371 = vmatpush1.bf16.msra.mxu1 %v3826_v4  ;;  %4535 = vmatpush1.bf16.msra.mxu0 %v3828_v17 }
 0xd6b   :  { %4372 = vmatprep.subr.bf16.mxu1 %v3835_v26  ;;  %4536 = vmatprep.subr.bf16.mxu0 %v3837_v13 }
 0xd6e   :  { %4373 = vmatpush1.bf16.msra.mxu1 %v3834_v9  ;;  %4537 = vmatpush1.bf16.msra.mxu0 %v3836_v18 }
 0xd6f   :  { %4374 = vmatprep.subr.bf16.mxu1 %v3843_v42  ;;  %4538 = vmatprep.subr.bf16.mxu0 %v3845_v23 }
 0xd72   :  { %4375 = vmatpush1.bf16.msra.mxu1 %v3842_v32  ;;  %4539 = vmatpush1.bf16.msra.mxu0 %v3844_v61 }
 0xd73   :  { %4376 = vmatprep.subr.bf16.mxu1 %v3851_v47  ;;  %4540 = vmatprep.subr.bf16.mxu0 %v3853_v63 }
 0xd76   :  { %4377 = vmatpush1.bf16.msra.mxu1 %v3850_v39  ;;  %4541 = vmatpush1.bf16.msra.mxu0 %v3852_v52 }
 0xd79   :  { %4379 = vmatmul.mubr.bf16.vlgmr.msra.gmra.mrb[36].mxu1 %v8740_v36  ;;  %4543 = vmatmul.mubr.bf16.vlgmr.msra.gmra.mrb[16].mxu0 %v8740_v36 }
 0xe4c   :  { %v4380_v1 = vpop.f32.mrb[36].mxu1  ;;  %v4544_v50 = vpop.f32.mrb[16].mxu0 }
 0xe4d   :  { %v7657_v48 = vadd.f32 %v4380_v1, %v3874_v40  ;;  %v7659_v56 = vadd.f32 %v4544_v50, %v3882_v46  ;;  %v4382_v22 = vpop.f32.mrb[37].mxu1  ;;  %v4546_v38 = vpop.f32.mrb[17].mxu0 }
 0xe4e   :  { %v7658_v54 = vadd.f32 %v4382_v22, %v3878_v45  ;;  %v7660_v36 = vadd.f32 %v4546_v38, %v3886_v33  ;;  %v4384_v49 = vpop.f32.mrb[38].mxu1  ;;  %v4548_v30 = vpop.f32.mrb[18].mxu0 }
 0xe4f   :  { %v4555_v0 = vmax.f32 %v7657_v48, 0.0  ;;  %v4557_v21 = vmax.f32 %v7659_v56, 0.0  ;;  %v4385_v12 = vpop.f32.mrb[39].mxu1  ;;  %v4549_v28 = vpop.f32.mrb[19].mxu0 }
 0xe50   :  { %v4556_v37 = vmax.f32 %v7658_v54, 0.0  ;;  %v4558_v14 = vmax.f32 %v7660_v36, 0.0 }
 0xe51   :  { %v8804_v16 = vpack.c.bf16 %v4555_v0, %v4555_v0  ;;  %v8806_v29 = vpack.c.bf16 %v4557_v21, %v4557_v21 }
 0xe52   :  { %v8808_v5 = vpack.c.bf16 %v4556_v37, %v4556_v37  ;;  %v8810_v34 = vpack.c.bf16 %v4558_v14, %v4558_v14 }
 0xe53   :  { %8085 = dma.done.wait [#allocation12 + $0x5], 65536 }
 0xe54   :  { %8086 = vsyncadd [#allocation12 + $0x5], 4294901760  ;;  %5155 = vmatprep.mubr.bf16.mxu1 %v8790_v3  ;;  %5319 = vmatprep.mubr.bf16.mxu0 %v8790_v3  ;;  %v4571_v43 = vld [vmem:[#allocation7 + $0x8] sm:$0xff]  ;;  %v4573_v44 = vld [vmem:[#allocation7 + $0x18] sm:$0xff] }
 0xe55   :  { %v4570_v25 = vld [vmem:[#allocation7] sm:$0xff]  ;;  %5123 = vmatprep.subr.bf16.mxu1 %v4571_v43  ;;  %5287 = vmatprep.subr.bf16.mxu0 %v4573_v44  ;;  %v4572_v35 = vld [vmem:[#allocation7 + $0x10] sm:$0xff]  ;;  %v4579_v51 = vld [vmem:[#allocation7 + $0x48] sm:$0xff] }
 0xe56   :  { %v4581_v57 = vld [vmem:[#allocation7 + $0x58] sm:$0xff]  ;;  %5124 = vmatpush1.bf16.msra.mxu1 %v4570_v25  ;;  %5288 = vmatpush1.bf16.msra.mxu0 %v4572_v35  ;;  %v4578_v2 = vld [vmem:[#allocation7 + $0x40] sm:$0xff]  ;;  %v4580_v27 = vld [vmem:[#allocation7 + $0x50] sm:$0xff] }
 0xe57   :  { %5125 = vmatprep.subr.bf16.mxu1 %v4579_v51  ;;  %5289 = vmatprep.subr.bf16.mxu0 %v4581_v57  ;;  %v4587_v41 = vld [vmem:[#allocation7 + $0x88] sm:$0xff]  ;;  %v4589_v31 = vld [vmem:[#allocation7 + $0x98] sm:$0xff]  ;;  %v4586_v8 = vld [vmem:[#allocation7 + $0x80] sm:$0xff] }
 0xe58   :  { %v4588_v59 = vld [vmem:[#allocation7 + $0x90] sm:$0xff]  ;;  %v4595_v6 = vld [vmem:[#allocation7 + $0xc8] sm:$0xff]  ;;  %v4597_v60 = vld [vmem:[#allocation7 + $0xd8] sm:$0xff] }
 0xe59   :  { %v4594_v4 = vld [vmem:[#allocation7 + $0xc0] sm:$0xff]  ;;  %v4596_v17 = vld [vmem:[#allocation7 + $0xd0] sm:$0xff]  ;;  %v4603_v26 = vld [vmem:[#allocation7 + $0x108] sm:$0xff] }
 0xe5a   :  { %5126 = vmatpush1.bf16.msra.mxu1 %v4578_v2  ;;  %5290 = vmatpush1.bf16.msra.mxu0 %v4580_v27  ;;  %v4605_v13 = vld [vmem:[#allocation7 + $0x118] sm:$0xff]  ;;  %v4602_v9 = vld [vmem:[#allocation7 + $0x100] sm:$0xff]  ;;  %v4604_v18 = vld [vmem:[#allocation7 + $0x110] sm:$0xff] }
 0xe5b   :  { %5127 = vmatprep.subr.bf16.mxu1 %v4587_v41  ;;  %5291 = vmatprep.subr.bf16.mxu0 %v4589_v31  ;;  %v4611_v42 = vld [vmem:[#allocation7 + $0x148] sm:$0xff]  ;;  %v4613_v23 = vld [vmem:[#allocation7 + $0x158] sm:$0xff]  ;;  %v4610_v32 = vld [vmem:[#allocation7 + $0x140] sm:$0xff] }
 0xe5c   :  { %v4612_v61 = vld [vmem:[#allocation7 + $0x150] sm:$0xff]  ;;  %v4619_v47 = vld [vmem:[#allocation7 + $0x188] sm:$0xff]  ;;  %v4621_v63 = vld [vmem:[#allocation7 + $0x198] sm:$0xff] }
 0xe5d   :  { %v4618_v39 = vld [vmem:[#allocation7 + $0x180] sm:$0xff]  ;;  %v4620_v52 = vld [vmem:[#allocation7 + $0x190] sm:$0xff]  ;;  %v4627_v40 = vld [vmem:[#allocation7 + $0x1c8] sm:$0xff] }
 0xe5e   :  { %5128 = vmatpush1.bf16.msra.mxu1 %v4586_v8  ;;  %5292 = vmatpush1.bf16.msra.mxu0 %v4588_v59  ;;  %v4629_v46 = vld [vmem:[#allocation7 + $0x1d8] sm:$0xff]  ;;  %v4626_v45 = vld [vmem:[#allocation7 + $0x1c0] sm:$0xff]  ;;  %v4628_v33 = vld [vmem:[#allocation7 + $0x1d0] sm:$0xff] }
 0xe5f   :  { %5129 = vmatprep.subr.bf16.mxu1 %v4595_v6  ;;  %5293 = vmatprep.subr.bf16.mxu0 %v4597_v60  ;;  %v4635_v1 = vld [vmem:[#allocation7 + $0x208] sm:$0xff]  ;;  %v4637_v50 = vld [vmem:[#allocation7 + $0x218] sm:$0xff]  ;;  %v4634_v48 = vld [vmem:[#allocation7 + $0x200] sm:$0xff] }
 0xe60   :  { %v4636_v56 = vld [vmem:[#allocation7 + $0x210] sm:$0xff]  ;;  %v4643_v22 = vld [vmem:[#allocation7 + $0x248] sm:$0xff]  ;;  %v4645_v38 = vld [vmem:[#allocation7 + $0x258] sm:$0xff] }
 0xe61   :  { %v4642_v54 = vld [vmem:[#allocation7 + $0x240] sm:$0xff]  ;;  %v4644_v36 = vld [vmem:[#allocation7 + $0x250] sm:$0xff]  ;;  %v4651_v49 = vld [vmem:[#allocation7 + $0x288] sm:$0xff] }
 0xe62   :  { %5130 = vmatpush1.bf16.msra.mxu1 %v4594_v4  ;;  %5294 = vmatpush1.bf16.msra.mxu0 %v4596_v17  ;;  %v4653_v30 = vld [vmem:[#allocation7 + $0x298] sm:$0xff]  ;;  %v4650_v0 = vld [vmem:[#allocation7 + $0x280] sm:$0xff]  ;;  %v4652_v21 = vld [vmem:[#allocation7 + $0x290] sm:$0xff] }
 0xe63   :  { %5131 = vmatprep.subr.bf16.mxu1 %v4603_v26  ;;  %5295 = vmatprep.subr.bf16.mxu0 %v4605_v13  ;;  %v4659_v12 = vld [vmem:[#allocation7 + $0x2c8] sm:$0xff]  ;;  %v4661_v28 = vld [vmem:[#allocation7 + $0x2d8] sm:$0xff]  ;;  %v4658_v37 = vld [vmem:[#allocation7 + $0x2c0] sm:$0xff] }
 0xe64   :  { %v4660_v14 = vld [vmem:[#allocation7 + $0x2d0] sm:$0xff]  ;;  %v4667_v43 = vld [vmem:[#allocation7 + $0x308] sm:$0xff]  ;;  %v4669_v44 = vld [vmem:[#allocation7 + $0x318] sm:$0xff] }
 0xe65   :  { %v4666_v25 = vld [vmem:[#allocation7 + $0x300] sm:$0xff]  ;;  %v4668_v35 = vld [vmem:[#allocation7 + $0x310] sm:$0xff]  ;;  %v4675_v51 = vld [vmem:[#allocation7 + $0x348] sm:$0xff] }
 0xe66   :  { %5132 = vmatpush1.bf16.msra.mxu1 %v4602_v9  ;;  %5296 = vmatpush1.bf16.msra.mxu0 %v4604_v18  ;;  %v4677_v57 = vld [vmem:[#allocation7 + $0x358] sm:$0xff]  ;;  %v4674_v2 = vld [vmem:[#allocation7 + $0x340] sm:$0xff]  ;;  %v4676_v27 = vld [vmem:[#allocation7 + $0x350] sm:$0xff] }
 0xe67   :  { %5133 = vmatprep.subr.bf16.mxu1 %v4611_v42  ;;  %5297 = vmatprep.subr.bf16.mxu0 %v4613_v23  ;;  %v4683_v41 = vld [vmem:[#allocation7 + $0x388] sm:$0xff]  ;;  %v4685_v31 = vld [vmem:[#allocation7 + $0x398] sm:$0xff]  ;;  %v4682_v8 = vld [vmem:[#allocation7 + $0x380] sm:$0xff] }
 0xe68   :  { %v4684_v59 = vld [vmem:[#allocation7 + $0x390] sm:$0xff]  ;;  %v4691_v6 = vld [vmem:[#allocation7 + $0x3c8] sm:$0xff]  ;;  %v4693_v60 = vld [vmem:[#allocation7 + $0x3d8] sm:$0xff] }
 0xe69   :  { %v4690_v4 = vld [vmem:[#allocation7 + $0x3c0] sm:$0xff]  ;;  %v4692_v17 = vld [vmem:[#allocation7 + $0x3d0] sm:$0xff]  ;;  %v4699_v26 = vld [vmem:[#allocation7 + $0x408] sm:$0xff] }
 0xe6a   :  { %5134 = vmatpush1.bf16.msra.mxu1 %v4610_v32  ;;  %5298 = vmatpush1.bf16.msra.mxu0 %v4612_v61  ;;  %v4701_v13 = vld [vmem:[#allocation7 + $0x418] sm:$0xff]  ;;  %v4698_v9 = vld [vmem:[#allocation7 + $0x400] sm:$0xff]  ;;  %v4700_v18 = vld [vmem:[#allocation7 + $0x410] sm:$0xff] }
 0xe6b   :  { %5135 = vmatprep.subr.bf16.mxu1 %v4619_v47  ;;  %5299 = vmatprep.subr.bf16.mxu0 %v4621_v63  ;;  %v4707_v42 = vld [vmem:[#allocation7 + $0x448] sm:$0xff]  ;;  %v4709_v23 = vld [vmem:[#allocation7 + $0x458] sm:$0xff]  ;;  %v4706_v32 = vld [vmem:[#allocation7 + $0x440] sm:$0xff] }
 0xe6c   :  { %v4708_v61 = vld [vmem:[#allocation7 + $0x450] sm:$0xff]  ;;  %v4715_v47 = vld [vmem:[#allocation7 + $0x488] sm:$0xff]  ;;  %v4717_v63 = vld [vmem:[#allocation7 + $0x498] sm:$0xff] }
 0xe6e   :  { %5136 = vmatpush1.bf16.msra.mxu1 %v4618_v39  ;;  %5300 = vmatpush1.bf16.msra.mxu0 %v4620_v52  ;;  %v4714_v39 = vld [vmem:[#allocation7 + $0x480] sm:$0xff]  ;;  %v4716_v52 = vld [vmem:[#allocation7 + $0x490] sm:$0xff] }
 0xe6f   :  { %5137 = vmatprep.subr.bf16.mxu1 %v4627_v40  ;;  %5301 = vmatprep.subr.bf16.mxu0 %v4629_v46  ;;  %v4723_v40 = vld [vmem:[#allocation7 + $0x4c8] sm:$0xff]  ;;  %v4725_v46 = vld [vmem:[#allocation7 + $0x4d8] sm:$0xff] }
 0xe72   :  { %5138 = vmatpush1.bf16.msra.mxu1 %v4626_v45  ;;  %5302 = vmatpush1.bf16.msra.mxu0 %v4628_v33  ;;  %v4722_v45 = vld [vmem:[#allocation7 + $0x4c0] sm:$0xff]  ;;  %v4724_v33 = vld [vmem:[#allocation7 + $0x4d0] sm:$0xff] }
 0xe73   :  { %5139 = vmatprep.subr.bf16.mxu1 %v4635_v1  ;;  %5303 = vmatprep.subr.bf16.mxu0 %v4637_v50  ;;  %v4731_v1 = vld [vmem:[#allocation7 + $0x508] sm:$0xff]  ;;  %v4733_v50 = vld [vmem:[#allocation7 + $0x518] sm:$0xff] }
 0xe76   :  { %5140 = vmatpush1.bf16.msra.mxu1 %v4634_v48  ;;  %5304 = vmatpush1.bf16.msra.mxu0 %v4636_v56  ;;  %v4730_v48 = vld [vmem:[#allocation7 + $0x500] sm:$0xff]  ;;  %v4732_v56 = vld [vmem:[#allocation7 + $0x510] sm:$0xff] }
 0xe77   :  { %5141 = vmatprep.subr.bf16.mxu1 %v4643_v22  ;;  %5305 = vmatprep.subr.bf16.mxu0 %v4645_v38  ;;  %v4739_v22 = vld [vmem:[#allocation7 + $0x548] sm:$0xff]  ;;  %v4741_v38 = vld [vmem:[#allocation7 + $0x558] sm:$0xff] }
 0xe7a   :  { %5142 = vmatpush1.bf16.msra.mxu1 %v4642_v54  ;;  %5306 = vmatpush1.bf16.msra.mxu0 %v4644_v36  ;;  %v4738_v54 = vld [vmem:[#allocation7 + $0x540] sm:$0xff]  ;;  %v4740_v36 = vld [vmem:[#allocation7 + $0x550] sm:$0xff] }
 0xe7b   :  { %5143 = vmatprep.subr.bf16.mxu1 %v4651_v49  ;;  %5307 = vmatprep.subr.bf16.mxu0 %v4653_v30  ;;  %v4747_v49 = vld [vmem:[#allocation7 + $0x588] sm:$0xff]  ;;  %v4749_v30 = vld [vmem:[#allocation7 + $0x598] sm:$0xff] }
 0xe7e   :  { %5144 = vmatpush1.bf16.msra.mxu1 %v4650_v0  ;;  %5308 = vmatpush1.bf16.msra.mxu0 %v4652_v21  ;;  %v4746_v0 = vld [vmem:[#allocation7 + $0x580] sm:$0xff]  ;;  %v4748_v21 = vld [vmem:[#allocation7 + $0x590] sm:$0xff] }
 0xe7f   :  { %5145 = vmatprep.subr.bf16.mxu1 %v4659_v12  ;;  %5309 = vmatprep.subr.bf16.mxu0 %v4661_v28  ;;  %v4755_v12 = vld [vmem:[#allocation7 + $0x5c8] sm:$0xff]  ;;  %v4757_v28 = vld [vmem:[#allocation7 + $0x5d8] sm:$0xff] }
 0xe82   :  { %5146 = vmatpush1.bf16.msra.mxu1 %v4658_v37  ;;  %5310 = vmatpush1.bf16.msra.mxu0 %v4660_v14  ;;  %v4754_v37 = vld [vmem:[#allocation7 + $0x5c0] sm:$0xff]  ;;  %v4756_v14 = vld [vmem:[#allocation7 + $0x5d0] sm:$0xff] }
 0xe83   :  { %5147 = vmatprep.subr.bf16.mxu1 %v4667_v43  ;;  %5311 = vmatprep.subr.bf16.mxu0 %v4669_v44  ;;  %v4763_v43 = vld [vmem:[#allocation7 + $0x608] sm:$0xff]  ;;  %v4765_v44 = vld [vmem:[#allocation7 + $0x618] sm:$0xff] }
 0xe86   :  { %5148 = vmatpush1.bf16.msra.mxu1 %v4666_v25  ;;  %5312 = vmatpush1.bf16.msra.mxu0 %v4668_v35  ;;  %v4762_v25 = vld [vmem:[#allocation7 + $0x600] sm:$0xff]  ;;  %v4764_v35 = vld [vmem:[#allocation7 + $0x610] sm:$0xff] }
 0xe87   :  { %5149 = vmatprep.subr.bf16.mxu1 %v4675_v51  ;;  %5313 = vmatprep.subr.bf16.mxu0 %v4677_v57  ;;  %v4771_v51 = vld [vmem:[#allocation7 + $0x648] sm:$0xff]  ;;  %v4773_v57 = vld [vmem:[#allocation7 + $0x658] sm:$0xff] }
 0xe8a   :  { %5150 = vmatpush1.bf16.msra.mxu1 %v4674_v2  ;;  %5314 = vmatpush1.bf16.msra.mxu0 %v4676_v27  ;;  %v4770_v2 = vld [vmem:[#allocation7 + $0x640] sm:$0xff]  ;;  %v4772_v27 = vld [vmem:[#allocation7 + $0x650] sm:$0xff] }
 0xe8b   :  { %5151 = vmatprep.subr.bf16.mxu1 %v4683_v41  ;;  %5315 = vmatprep.subr.bf16.mxu0 %v4685_v31  ;;  %v4779_v41 = vld [vmem:[#allocation7 + $0x688] sm:$0xff]  ;;  %v4781_v31 = vld [vmem:[#allocation7 + $0x698] sm:$0xff] }
 0xe8e   :  { %5152 = vmatpush1.bf16.msra.mxu1 %v4682_v8  ;;  %5316 = vmatpush1.bf16.msra.mxu0 %v4684_v59  ;;  %v4778_v8 = vld [vmem:[#allocation7 + $0x680] sm:$0xff]  ;;  %v4780_v59 = vld [vmem:[#allocation7 + $0x690] sm:$0xff] }
 0xe8f   :  { %5153 = vmatprep.subr.bf16.mxu1 %v4691_v6  ;;  %5317 = vmatprep.subr.bf16.mxu0 %v4693_v60  ;;  %v4787_v6 = vld [vmem:[#allocation7 + $0x6c8] sm:$0xff]  ;;  %v4789_v60 = vld [vmem:[#allocation7 + $0x6d8] sm:$0xff] }
 0xe92   :  { %5154 = vmatpush1.bf16.msra.mxu1 %v4690_v4  ;;  %5318 = vmatpush1.bf16.msra.mxu0 %v4692_v17  ;;  %v4786_v4 = vld [vmem:[#allocation7 + $0x6c0] sm:$0xff]  ;;  %v4788_v17 = vld [vmem:[#allocation7 + $0x6d0] sm:$0xff] }
 0xe93   :  { %5164 = vmatprep.subr.bf16.mxu1 %v4699_v26  ;;  %5328 = vmatprep.subr.bf16.mxu0 %v4701_v13  ;;  %v4795_v26 = vld [vmem:[#allocation7 + $0x708] sm:$0xff]  ;;  %v4797_v13 = vld [vmem:[#allocation7 + $0x718] sm:$0xff] }
 0xe95   :  { %5156 = vmatmul.mubr.bf16.vlgmr.msra.gmra.mrb[40].mxu1 %v8786_v53  ;;  %5320 = vmatmul.mubr.bf16.vlgmr.msra.gmra.mrb[20].mxu0 %v8786_v53 }
 0xe96   :  { %5165 = vmatpush1.bf16.msra.mxu1 %v4698_v9  ;;  %5329 = vmatpush1.bf16.msra.mxu0 %v4700_v18  ;;  %v4794_v9 = vld [vmem:[#allocation7 + $0x700] sm:$0xff]  ;;  %v4796_v18 = vld [vmem:[#allocation7 + $0x710] sm:$0xff] }
 0xe97   :  { %5166 = vmatprep.subr.bf16.mxu1 %v4707_v42  ;;  %5330 = vmatprep.subr.bf16.mxu0 %v4709_v23  ;;  %v4803_v42 = vld [vmem:[#allocation7 + $0x748] sm:$0xff]  ;;  %v4805_v23 = vld [vmem:[#allocation7 + $0x758] sm:$0xff] }
 0xe98   :  { %5196 = vmatprep.mubr.bf16.mxu1 %v8792_v55  ;;  %5360 = vmatprep.mubr.bf16.mxu0 %v8792_v55 }
 0xe9a   :  { %5167 = vmatpush1.bf16.msra.mxu1 %v4706_v32  ;;  %5331 = vmatpush1.bf16.msra.mxu0 %v4708_v61  ;;  %v4802_v32 = vld [vmem:[#allocation7 + $0x740] sm:$0xff]  ;;  %v4804_v61 = vld [vmem:[#allocation7 + $0x750] sm:$0xff] }
 0xe9b   :  { %5168 = vmatprep.subr.bf16.mxu1 %v4715_v47  ;;  %5332 = vmatprep.subr.bf16.mxu0 %v4717_v63  ;;  %v4811_v47 = vld [vmem:[#allocation7 + $0x788] sm:$0xff]  ;;  %v4813_v63 = vld [vmem:[#allocation7 + $0x798] sm:$0xff] }
 0xe9e   :  { %5169 = vmatpush1.bf16.msra.mxu1 %v4714_v39  ;;  %5333 = vmatpush1.bf16.msra.mxu0 %v4716_v52  ;;  %v4810_v39 = vld [vmem:[#allocation7 + $0x780] sm:$0xff]  ;;  %v4812_v52 = vld [vmem:[#allocation7 + $0x790] sm:$0xff] }
 0xe9f   :  { %5170 = vmatprep.subr.bf16.mxu1 %v4723_v40  ;;  %5334 = vmatprep.subr.bf16.mxu0 %v4725_v46  ;;  %v4819_v40 = vld [vmem:[#allocation7 + $0x7c8] sm:$0xff]  ;;  %v4821_v46 = vld [vmem:[#allocation7 + $0x7d8] sm:$0xff] }
 0xea2   :  { %5171 = vmatpush1.bf16.msra.mxu1 %v4722_v45  ;;  %5335 = vmatpush1.bf16.msra.mxu0 %v4724_v33  ;;  %v4818_v45 = vld [vmem:[#allocation7 + $0x7c0] sm:$0xff]  ;;  %v4820_v33 = vld [vmem:[#allocation7 + $0x7d0] sm:$0xff] }
 0xea3   :  { %5172 = vmatprep.subr.bf16.mxu1 %v4731_v1  ;;  %5336 = vmatprep.subr.bf16.mxu0 %v4733_v50  ;;  %v4827_v1 = vld [vmem:[#allocation7 + $0x808] sm:$0xff]  ;;  %v4829_v50 = vld [vmem:[#allocation7 + $0x818] sm:$0xff] }
 0xea6   :  { %5173 = vmatpush1.bf16.msra.mxu1 %v4730_v48  ;;  %5337 = vmatpush1.bf16.msra.mxu0 %v4732_v56  ;;  %v4826_v48 = vld [vmem:[#allocation7 + $0x800] sm:$0xff]  ;;  %v4828_v56 = vld [vmem:[#allocation7 + $0x810] sm:$0xff] }
 0xea7   :  { %5174 = vmatprep.subr.bf16.mxu1 %v4739_v22  ;;  %5338 = vmatprep.subr.bf16.mxu0 %v4741_v38  ;;  %v4835_v22 = vld [vmem:[#allocation7 + $0x848] sm:$0xff]  ;;  %v4837_v38 = vld [vmem:[#allocation7 + $0x858] sm:$0xff] }
 0xeaa   :  { %5175 = vmatpush1.bf16.msra.mxu1 %v4738_v54  ;;  %5339 = vmatpush1.bf16.msra.mxu0 %v4740_v36  ;;  %v4834_v54 = vld [vmem:[#allocation7 + $0x840] sm:$0xff]  ;;  %v4836_v36 = vld [vmem:[#allocation7 + $0x850] sm:$0xff] }
 0xeab   :  { %5176 = vmatprep.subr.bf16.mxu1 %v4747_v49  ;;  %5340 = vmatprep.subr.bf16.mxu0 %v4749_v30  ;;  %v4843_v49 = vld [vmem:[#allocation7 + $0x888] sm:$0xff]  ;;  %v4845_v30 = vld [vmem:[#allocation7 + $0x898] sm:$0xff] }
 0xeae   :  { %5177 = vmatpush1.bf16.msra.mxu1 %v4746_v0  ;;  %5341 = vmatpush1.bf16.msra.mxu0 %v4748_v21  ;;  %v4842_v0 = vld [vmem:[#allocation7 + $0x880] sm:$0xff]  ;;  %v4844_v21 = vld [vmem:[#allocation7 + $0x890] sm:$0xff] }
 0xeaf   :  { %5178 = vmatprep.subr.bf16.mxu1 %v4755_v12  ;;  %5342 = vmatprep.subr.bf16.mxu0 %v4757_v28  ;;  %v4851_v12 = vld [vmem:[#allocation7 + $0x8c8] sm:$0xff]  ;;  %v4853_v28 = vld [vmem:[#allocation7 + $0x8d8] sm:$0xff] }
 0xeb2   :  { %5179 = vmatpush1.bf16.msra.mxu1 %v4754_v37  ;;  %5343 = vmatpush1.bf16.msra.mxu0 %v4756_v14  ;;  %v4850_v37 = vld [vmem:[#allocation7 + $0x8c0] sm:$0xff]  ;;  %v4852_v14 = vld [vmem:[#allocation7 + $0x8d0] sm:$0xff] }
 0xeb3   :  { %5180 = vmatprep.subr.bf16.mxu1 %v4763_v43  ;;  %5344 = vmatprep.subr.bf16.mxu0 %v4765_v44  ;;  %v4859_v43 = vld [vmem:[#allocation7 + $0x908] sm:$0xff]  ;;  %v4861_v44 = vld [vmem:[#allocation7 + $0x918] sm:$0xff] }
 0xeb6   :  { %5181 = vmatpush1.bf16.msra.mxu1 %v4762_v25  ;;  %5345 = vmatpush1.bf16.msra.mxu0 %v4764_v35  ;;  %v4858_v25 = vld [vmem:[#allocation7 + $0x900] sm:$0xff]  ;;  %v4860_v35 = vld [vmem:[#allocation7 + $0x910] sm:$0xff] }
 0xeb7   :  { %5182 = vmatprep.subr.bf16.mxu1 %v4771_v51  ;;  %5346 = vmatprep.subr.bf16.mxu0 %v4773_v57  ;;  %v4867_v51 = vld [vmem:[#allocation7 + $0x948] sm:$0xff]  ;;  %v4869_v57 = vld [vmem:[#allocation7 + $0x958] sm:$0xff] }
 0xeba   :  { %5183 = vmatpush1.bf16.msra.mxu1 %v4770_v2  ;;  %5347 = vmatpush1.bf16.msra.mxu0 %v4772_v27  ;;  %v4866_v2 = vld [vmem:[#allocation7 + $0x940] sm:$0xff]  ;;  %v4868_v27 = vld [vmem:[#allocation7 + $0x950] sm:$0xff] }
 0xebb   :  { %5184 = vmatprep.subr.bf16.mxu1 %v4779_v41  ;;  %5348 = vmatprep.subr.bf16.mxu0 %v4781_v31  ;;  %v4875_v41 = vld [vmem:[#allocation7 + $0x988] sm:$0xff]  ;;  %v4877_v31 = vld [vmem:[#allocation7 + $0x998] sm:$0xff] }
 0xebe   :  { %5185 = vmatpush1.bf16.msra.mxu1 %v4778_v8  ;;  %5349 = vmatpush1.bf16.msra.mxu0 %v4780_v59  ;;  %v4874_v8 = vld [vmem:[#allocation7 + $0x980] sm:$0xff]  ;;  %v4876_v59 = vld [vmem:[#allocation7 + $0x990] sm:$0xff] }
 0xebf   :  { %5186 = vmatprep.subr.bf16.mxu1 %v4787_v6  ;;  %5350 = vmatprep.subr.bf16.mxu0 %v4789_v60  ;;  %v4883_v6 = vld [vmem:[#allocation7 + $0x9c8] sm:$0xff]  ;;  %v4885_v60 = vld [vmem:[#allocation7 + $0x9d8] sm:$0xff] }
 0xec2   :  { %5187 = vmatpush1.bf16.msra.mxu1 %v4786_v4  ;;  %5351 = vmatpush1.bf16.msra.mxu0 %v4788_v17  ;;  %v4882_v4 = vld [vmem:[#allocation7 + $0x9c0] sm:$0xff]  ;;  %v4884_v17 = vld [vmem:[#allocation7 + $0x9d0] sm:$0xff] }
 0xec3   :  { %5188 = vmatprep.subr.bf16.mxu1 %v4795_v26  ;;  %5352 = vmatprep.subr.bf16.mxu0 %v4797_v13  ;;  %v4891_v26 = vld [vmem:[#allocation7 + $0xa08] sm:$0xff]  ;;  %v4893_v13 = vld [vmem:[#allocation7 + $0xa18] sm:$0xff] }
 0xec6   :  { %5189 = vmatpush1.bf16.msra.mxu1 %v4794_v9  ;;  %5353 = vmatpush1.bf16.msra.mxu0 %v4796_v18  ;;  %v4890_v9 = vld [vmem:[#allocation7 + $0xa00] sm:$0xff]  ;;  %v4892_v18 = vld [vmem:[#allocation7 + $0xa10] sm:$0xff] }
 0xec7   :  { %5190 = vmatprep.subr.bf16.mxu1 %v4803_v42  ;;  %5354 = vmatprep.subr.bf16.mxu0 %v4805_v23  ;;  %v4899_v42 = vld [vmem:[#allocation7 + $0xa48] sm:$0xff]  ;;  %v4901_v23 = vld [vmem:[#allocation7 + $0xa58] sm:$0xff] }
 0xeca   :  { %5191 = vmatpush1.bf16.msra.mxu1 %v4802_v32  ;;  %5355 = vmatpush1.bf16.msra.mxu0 %v4804_v61  ;;  %v4898_v32 = vld [vmem:[#allocation7 + $0xa40] sm:$0xff]  ;;  %v4900_v61 = vld [vmem:[#allocation7 + $0xa50] sm:$0xff] }
 0xecb   :  { %5192 = vmatprep.subr.bf16.mxu1 %v4811_v47  ;;  %5356 = vmatprep.subr.bf16.mxu0 %v4813_v63  ;;  %v4907_v47 = vld [vmem:[#allocation7 + $0xa88] sm:$0xff]  ;;  %v4909_v63 = vld [vmem:[#allocation7 + $0xa98] sm:$0xff] }
 0xece   :  { %5193 = vmatpush1.bf16.msra.mxu1 %v4810_v39  ;;  %5357 = vmatpush1.bf16.msra.mxu0 %v4812_v52  ;;  %v4906_v39 = vld [vmem:[#allocation7 + $0xa80] sm:$0xff]  ;;  %v4908_v52 = vld [vmem:[#allocation7 + $0xa90] sm:$0xff] }
 0xecf   :  { %5194 = vmatprep.subr.bf16.mxu1 %v4819_v40  ;;  %5358 = vmatprep.subr.bf16.mxu0 %v4821_v46  ;;  %v4915_v40 = vld [vmem:[#allocation7 + $0xac8] sm:$0xff]  ;;  %v4917_v46 = vld [vmem:[#allocation7 + $0xad8] sm:$0xff] }
 0xed2   :  { %5195 = vmatpush1.bf16.msra.mxu1 %v4818_v45  ;;  %5359 = vmatpush1.bf16.msra.mxu0 %v4820_v33  ;;  %v4914_v45 = vld [vmem:[#allocation7 + $0xac0] sm:$0xff]  ;;  %v4916_v33 = vld [vmem:[#allocation7 + $0xad0] sm:$0xff] }
 0xed3   :  { %5205 = vmatprep.subr.bf16.mxu1 %v4827_v1  ;;  %5369 = vmatprep.subr.bf16.mxu0 %v4829_v50  ;;  %v4923_v1 = vld [vmem:[#allocation7 + $0xb08] sm:$0xff]  ;;  %v4925_v50 = vld [vmem:[#allocation7 + $0xb18] sm:$0xff] }
 0xed5   :  { %5197 = vmatmul.mubr.bf16.vlgmr.msra.gmra.mrb[40].mxu1 %v8788_v24  ;;  %5361 = vmatmul.mubr.bf16.vlgmr.msra.gmra.mrb[20].mxu0 %v8788_v24 }
 0xed6   :  { %5206 = vmatpush1.bf16.msra.mxu1 %v4826_v48  ;;  %5370 = vmatpush1.bf16.msra.mxu0 %v4828_v56  ;;  %v4922_v48 = vld [vmem:[#allocation7 + $0xb00] sm:$0xff]  ;;  %v4924_v56 = vld [vmem:[#allocation7 + $0xb10] sm:$0xff] }
 0xed7   :  { %5207 = vmatprep.subr.bf16.mxu1 %v4835_v22  ;;  %5371 = vmatprep.subr.bf16.mxu0 %v4837_v38  ;;  %v4931_v22 = vld [vmem:[#allocation7 + $0xb48] sm:$0xff]  ;;  %v4933_v38 = vld [vmem:[#allocation7 + $0xb58] sm:$0xff] }
 0xed8   :  { %5237 = vmatprep.mubr.bf16.mxu1 %v8808_v5  ;;  %5401 = vmatprep.mubr.bf16.mxu0 %v8808_v5 }
 0xeda   :  { %5208 = vmatpush1.bf16.msra.mxu1 %v4834_v54  ;;  %5372 = vmatpush1.bf16.msra.mxu0 %v4836_v36  ;;  %v4930_v54 = vld [vmem:[#allocation7 + $0xb40] sm:$0xff]  ;;  %v4932_v36 = vld [vmem:[#allocation7 + $0xb50] sm:$0xff] }
 0xedb   :  { %5209 = vmatprep.subr.bf16.mxu1 %v4843_v49  ;;  %5373 = vmatprep.subr.bf16.mxu0 %v4845_v30  ;;  %v4939_v49 = vld [vmem:[#allocation7 + $0xb88] sm:$0xff]  ;;  %v4941_v30 = vld [vmem:[#allocation7 + $0xb98] sm:$0xff] }
 0xede   :  { %5210 = vmatpush1.bf16.msra.mxu1 %v4842_v0  ;;  %5374 = vmatpush1.bf16.msra.mxu0 %v4844_v21  ;;  %v4938_v0 = vld [vmem:[#allocation7 + $0xb80] sm:$0xff]  ;;  %v4940_v21 = vld [vmem:[#allocation7 + $0xb90] sm:$0xff] }
 0xedf   :  { %5211 = vmatprep.subr.bf16.mxu1 %v4851_v12  ;;  %5375 = vmatprep.subr.bf16.mxu0 %v4853_v28  ;;  %v4947_v12 = vld [vmem:[#allocation7 + $0xbc8] sm:$0xff]  ;;  %v4949_v28 = vld [vmem:[#allocation7 + $0xbd8] sm:$0xff] }
 0xee2   :  { %5212 = vmatpush1.bf16.msra.mxu1 %v4850_v37  ;;  %5376 = vmatpush1.bf16.msra.mxu0 %v4852_v14  ;;  %v4946_v37 = vld [vmem:[#allocation7 + $0xbc0] sm:$0xff]  ;;  %v4948_v14 = vld [vmem:[#allocation7 + $0xbd0] sm:$0xff] }
 0xee3   :  { %5213 = vmatprep.subr.bf16.mxu1 %v4859_v43  ;;  %5377 = vmatprep.subr.bf16.mxu0 %v4861_v44  ;;  %v4955_v43 = vld [vmem:[#allocation7 + $0xc08] sm:$0xff]  ;;  %v4957_v44 = vld [vmem:[#allocation7 + $0xc18] sm:$0xff] }
 0xee6   :  { %5214 = vmatpush1.bf16.msra.mxu1 %v4858_v25  ;;  %5378 = vmatpush1.bf16.msra.mxu0 %v4860_v35  ;;  %v4954_v25 = vld [vmem:[#allocation7 + $0xc00] sm:$0xff]  ;;  %v4956_v35 = vld [vmem:[#allocation7 + $0xc10] sm:$0xff] }
 0xee7   :  { %5215 = vmatprep.subr.bf16.mxu1 %v4867_v51  ;;  %5379 = vmatprep.subr.bf16.mxu0 %v4869_v57  ;;  %v4963_v51 = vld [vmem:[#allocation7 + $0xc48] sm:$0xff]  ;;  %v4965_v57 = vld [vmem:[#allocation7 + $0xc58] sm:$0xff] }
 0xeea   :  { %5216 = vmatpush1.bf16.msra.mxu1 %v4866_v2  ;;  %5380 = vmatpush1.bf16.msra.mxu0 %v4868_v27  ;;  %v4962_v2 = vld [vmem:[#allocation7 + $0xc40] sm:$0xff]  ;;  %v4964_v27 = vld [vmem:[#allocation7 + $0xc50] sm:$0xff] }
 0xeeb   :  { %5217 = vmatprep.subr.bf16.mxu1 %v4875_v41  ;;  %5381 = vmatprep.subr.bf16.mxu0 %v4877_v31  ;;  %v4971_v41 = vld [vmem:[#allocation7 + $0xc88] sm:$0xff]  ;;  %v4973_v31 = vld [vmem:[#allocation7 + $0xc98] sm:$0xff] }
 0xeee   :  { %5218 = vmatpush1.bf16.msra.mxu1 %v4874_v8  ;;  %5382 = vmatpush1.bf16.msra.mxu0 %v4876_v59  ;;  %v4970_v8 = vld [vmem:[#allocation7 + $0xc80] sm:$0xff]  ;;  %v4972_v59 = vld [vmem:[#allocation7 + $0xc90] sm:$0xff] }
 0xeef   :  { %5219 = vmatprep.subr.bf16.mxu1 %v4883_v6  ;;  %5383 = vmatprep.subr.bf16.mxu0 %v4885_v60  ;;  %v4979_v6 = vld [vmem:[#allocation7 + $0xcc8] sm:$0xff]  ;;  %v4981_v60 = vld [vmem:[#allocation7 + $0xcd8] sm:$0xff] }
 0xef2   :  { %5220 = vmatpush1.bf16.msra.mxu1 %v4882_v4  ;;  %5384 = vmatpush1.bf16.msra.mxu0 %v4884_v17  ;;  %v4978_v4 = vld [vmem:[#allocation7 + $0xcc0] sm:$0xff]  ;;  %v4980_v17 = vld [vmem:[#allocation7 + $0xcd0] sm:$0xff] }
 0xef3   :  { %5221 = vmatprep.subr.bf16.mxu1 %v4891_v26  ;;  %5385 = vmatprep.subr.bf16.mxu0 %v4893_v13  ;;  %v4987_v26 = vld [vmem:[#allocation7 + $0xd08] sm:$0xff]  ;;  %v4989_v13 = vld [vmem:[#allocation7 + $0xd18] sm:$0xff] }
 0xef6   :  { %5222 = vmatpush1.bf16.msra.mxu1 %v4890_v9  ;;  %5386 = vmatpush1.bf16.msra.mxu0 %v4892_v18  ;;  %v4986_v9 = vld [vmem:[#allocation7 + $0xd00] sm:$0xff]  ;;  %v4988_v18 = vld [vmem:[#allocation7 + $0xd10] sm:$0xff] }
 0xef7   :  { %5223 = vmatprep.subr.bf16.mxu1 %v4899_v42  ;;  %5387 = vmatprep.subr.bf16.mxu0 %v4901_v23  ;;  %v4995_v42 = vld [vmem:[#allocation7 + $0xd48] sm:$0xff]  ;;  %v4997_v23 = vld [vmem:[#allocation7 + $0xd58] sm:$0xff] }
 0xefa   :  { %5224 = vmatpush1.bf16.msra.mxu1 %v4898_v32  ;;  %5388 = vmatpush1.bf16.msra.mxu0 %v4900_v61  ;;  %v4994_v32 = vld [vmem:[#allocation7 + $0xd40] sm:$0xff]  ;;  %v4996_v61 = vld [vmem:[#allocation7 + $0xd50] sm:$0xff] }
 0xefb   :  { %5225 = vmatprep.subr.bf16.mxu1 %v4907_v47  ;;  %5389 = vmatprep.subr.bf16.mxu0 %v4909_v63  ;;  %v5003_v47 = vld [vmem:[#allocation7 + $0xd88] sm:$0xff]  ;;  %v5005_v63 = vld [vmem:[#allocation7 + $0xd98] sm:$0xff] }
 0xefe   :  { %5226 = vmatpush1.bf16.msra.mxu1 %v4906_v39  ;;  %5390 = vmatpush1.bf16.msra.mxu0 %v4908_v52  ;;  %v5002_v39 = vld [vmem:[#allocation7 + $0xd80] sm:$0xff]  ;;  %v5004_v52 = vld [vmem:[#allocation7 + $0xd90] sm:$0xff] }
 0xeff   :  { %5227 = vmatprep.subr.bf16.mxu1 %v4915_v40  ;;  %5391 = vmatprep.subr.bf16.mxu0 %v4917_v46  ;;  %v5011_v40 = vld [vmem:[#allocation7 + $0xdc8] sm:$0xff]  ;;  %v5013_v46 = vld [vmem:[#allocation7 + $0xdd8] sm:$0xff] }
 0xf02   :  { %5228 = vmatpush1.bf16.msra.mxu1 %v4914_v45  ;;  %5392 = vmatpush1.bf16.msra.mxu0 %v4916_v33  ;;  %v5010_v45 = vld [vmem:[#allocation7 + $0xdc0] sm:$0xff]  ;;  %v5012_v33 = vld [vmem:[#allocation7 + $0xdd0] sm:$0xff] }
 0xf03   :  { %5229 = vmatprep.subr.bf16.mxu1 %v4923_v1  ;;  %5393 = vmatprep.subr.bf16.mxu0 %v4925_v50  ;;  %v5019_v1 = vld [vmem:[#allocation7 + $0xe08] sm:$0xff]  ;;  %v5021_v50 = vld [vmem:[#allocation7 + $0xe18] sm:$0xff] }
 0xf06   :  { %5230 = vmatpush1.bf16.msra.mxu1 %v4922_v48  ;;  %5394 = vmatpush1.bf16.msra.mxu0 %v4924_v56  ;;  %v5018_v48 = vld [vmem:[#allocation7 + $0xe00] sm:$0xff]  ;;  %v5020_v56 = vld [vmem:[#allocation7 + $0xe10] sm:$0xff] }
 0xf07   :  { %5231 = vmatprep.subr.bf16.mxu1 %v4931_v22  ;;  %5395 = vmatprep.subr.bf16.mxu0 %v4933_v38  ;;  %v5027_v22 = vld [vmem:[#allocation7 + $0xe48] sm:$0xff]  ;;  %v5029_v38 = vld [vmem:[#allocation7 + $0xe58] sm:$0xff] }
 0xf0a   :  { %5232 = vmatpush1.bf16.msra.mxu1 %v4930_v54  ;;  %5396 = vmatpush1.bf16.msra.mxu0 %v4932_v36  ;;  %v5026_v54 = vld [vmem:[#allocation7 + $0xe40] sm:$0xff]  ;;  %v5028_v36 = vld [vmem:[#allocation7 + $0xe50] sm:$0xff] }
 0xf0b   :  { %5233 = vmatprep.subr.bf16.mxu1 %v4939_v49  ;;  %5397 = vmatprep.subr.bf16.mxu0 %v4941_v30  ;;  %v5035_v49 = vld [vmem:[#allocation7 + $0xe88] sm:$0xff]  ;;  %v5037_v30 = vld [vmem:[#allocation7 + $0xe98] sm:$0xff] }
 0xf0e   :  { %5234 = vmatpush1.bf16.msra.mxu1 %v4938_v0  ;;  %5398 = vmatpush1.bf16.msra.mxu0 %v4940_v21  ;;  %v5034_v0 = vld [vmem:[#allocation7 + $0xe80] sm:$0xff]  ;;  %v5036_v21 = vld [vmem:[#allocation7 + $0xe90] sm:$0xff] }
 0xf0f   :  { %5235 = vmatprep.subr.bf16.mxu1 %v4947_v12  ;;  %5399 = vmatprep.subr.bf16.mxu0 %v4949_v28  ;;  %v5043_v12 = vld [vmem:[#allocation7 + $0xec8] sm:$0xff]  ;;  %v5045_v28 = vld [vmem:[#allocation7 + $0xed8] sm:$0xff] }
 0xf12   :  { %5236 = vmatpush1.bf16.msra.mxu1 %v4946_v37  ;;  %5400 = vmatpush1.bf16.msra.mxu0 %v4948_v14  ;;  %v5042_v37 = vld [vmem:[#allocation7 + $0xec0] sm:$0xff]  ;;  %v5044_v14 = vld [vmem:[#allocation7 + $0xed0] sm:$0xff] }
 0xf13   :  { %5246 = vmatprep.subr.bf16.mxu1 %v4955_v43  ;;  %5410 = vmatprep.subr.bf16.mxu0 %v4957_v44  ;;  %v5051_v43 = vld [vmem:[#allocation7 + $0xf08] sm:$0xff]  ;;  %v5053_v44 = vld [vmem:[#allocation7 + $0xf18] sm:$0xff] }
 0xf15   :  { %5238 = vmatmul.mubr.bf16.vlgmr.msra.gmra.mrb[40].mxu1 %v8804_v16  ;;  %5402 = vmatmul.mubr.bf16.vlgmr.msra.gmra.mrb[20].mxu0 %v8804_v16 }
 0xf16   :  { %5247 = vmatpush1.bf16.msra.mxu1 %v4954_v25  ;;  %5411 = vmatpush1.bf16.msra.mxu0 %v4956_v35  ;;  %v5050_v25 = vld [vmem:[#allocation7 + $0xf00] sm:$0xff]  ;;  %v5052_v35 = vld [vmem:[#allocation7 + $0xf10] sm:$0xff] }
 0xf17   :  { %5248 = vmatprep.subr.bf16.mxu1 %v4963_v51  ;;  %5412 = vmatprep.subr.bf16.mxu0 %v4965_v57  ;;  %v5059_v51 = vld [vmem:[#allocation7 + $0xf48] sm:$0xff]  ;;  %v5061_v57 = vld [vmem:[#allocation7 + $0xf58] sm:$0xff] }
 0xf18   :  { %5278 = vmatprep.mubr.bf16.mxu1 %v8810_v34  ;;  %5442 = vmatprep.mubr.bf16.mxu0 %v8810_v34 }
 0xf1a   :  { %5249 = vmatpush1.bf16.msra.mxu1 %v4962_v2  ;;  %5413 = vmatpush1.bf16.msra.mxu0 %v4964_v27  ;;  %v5058_v2 = vld [vmem:[#allocation7 + $0xf40] sm:$0xff]  ;;  %v5060_v27 = vld [vmem:[#allocation7 + $0xf50] sm:$0xff] }
 0xf1b   :  { %5250 = vmatprep.subr.bf16.mxu1 %v4971_v41  ;;  %5414 = vmatprep.subr.bf16.mxu0 %v4973_v31  ;;  %v5067_v41 = vld [vmem:[#allocation7 + $0xf88] sm:$0xff]  ;;  %v5069_v31 = vld [vmem:[#allocation7 + $0xf98] sm:$0xff] }
 0xf1e   :  { %5251 = vmatpush1.bf16.msra.mxu1 %v4970_v8  ;;  %5415 = vmatpush1.bf16.msra.mxu0 %v4972_v59  ;;  %v5066_v8 = vld [vmem:[#allocation7 + $0xf80] sm:$0xff]  ;;  %v5068_v59 = vld [vmem:[#allocation7 + $0xf90] sm:$0xff] }
 0xf1f   :  { %5252 = vmatprep.subr.bf16.mxu1 %v4979_v6  ;;  %5416 = vmatprep.subr.bf16.mxu0 %v4981_v60  ;;  %v5075_v6 = vld [vmem:[#allocation7 + $0xfc8] sm:$0xff]  ;;  %v5077_v60 = vld [vmem:[#allocation7 + $0xfd8] sm:$0xff] }
 0xf22   :  { %5253 = vmatpush1.bf16.msra.mxu1 %v4978_v4  ;;  %5417 = vmatpush1.bf16.msra.mxu0 %v4980_v17  ;;  %v5074_v4 = vld [vmem:[#allocation7 + $0xfc0] sm:$0xff]  ;;  %v5076_v17 = vld [vmem:[#allocation7 + $0xfd0] sm:$0xff] }
 0xf23   :  { %5254 = vmatprep.subr.bf16.mxu1 %v4987_v26  ;;  %5418 = vmatprep.subr.bf16.mxu0 %v4989_v13  ;;  %v4575_v26 = vld [vmem:[#allocation7 + $0x28] sm:$0xff]  ;;  %v4577_v13 = vld [vmem:[#allocation7 + $0x38] sm:$0xff] }
 0xf26   :  { %5255 = vmatpush1.bf16.msra.mxu1 %v4986_v9  ;;  %5419 = vmatpush1.bf16.msra.mxu0 %v4988_v18  ;;  %v4574_v9 = vld [vmem:[#allocation7 + $0x20] sm:$0xff]  ;;  %v4576_v18 = vld [vmem:[#allocation7 + $0x30] sm:$0xff] }
 0xf27   :  { %5256 = vmatprep.subr.bf16.mxu1 %v4995_v42  ;;  %5420 = vmatprep.subr.bf16.mxu0 %v4997_v23  ;;  %v4583_v42 = vld [vmem:[#allocation7 + $0x68] sm:$0xff]  ;;  %v4585_v23 = vld [vmem:[#allocation7 + $0x78] sm:$0xff] }
 0xf2a   :  { %5257 = vmatpush1.bf16.msra.mxu1 %v4994_v32  ;;  %5421 = vmatpush1.bf16.msra.mxu0 %v4996_v61  ;;  %v4582_v32 = vld [vmem:[#allocation7 + $0x60] sm:$0xff]  ;;  %v4584_v61 = vld [vmem:[#allocation7 + $0x70] sm:$0xff] }
 0xf2b   :  { %5258 = vmatprep.subr.bf16.mxu1 %v5003_v47  ;;  %5422 = vmatprep.subr.bf16.mxu0 %v5005_v63  ;;  %v4591_v47 = vld [vmem:[#allocation7 + $0xa8] sm:$0xff]  ;;  %v4593_v63 = vld [vmem:[#allocation7 + $0xb8] sm:$0xff] }
 0xf2e   :  { %5259 = vmatpush1.bf16.msra.mxu1 %v5002_v39  ;;  %5423 = vmatpush1.bf16.msra.mxu0 %v5004_v52  ;;  %v4590_v39 = vld [vmem:[#allocation7 + $0xa0] sm:$0xff]  ;;  %v4592_v52 = vld [vmem:[#allocation7 + $0xb0] sm:$0xff] }
 0xf2f   :  { %5260 = vmatprep.subr.bf16.mxu1 %v5011_v40  ;;  %5424 = vmatprep.subr.bf16.mxu0 %v5013_v46  ;;  %v4599_v40 = vld [vmem:[#allocation7 + $0xe8] sm:$0xff]  ;;  %v4601_v46 = vld [vmem:[#allocation7 + $0xf8] sm:$0xff] }
 0xf32   :  { %5261 = vmatpush1.bf16.msra.mxu1 %v5010_v45  ;;  %5425 = vmatpush1.bf16.msra.mxu0 %v5012_v33  ;;  %v4598_v45 = vld [vmem:[#allocation7 + $0xe0] sm:$0xff]  ;;  %v4600_v33 = vld [vmem:[#allocation7 + $0xf0] sm:$0xff] }
 0xf33   :  { %5262 = vmatprep.subr.bf16.mxu1 %v5019_v1  ;;  %5426 = vmatprep.subr.bf16.mxu0 %v5021_v50  ;;  %v4607_v1 = vld [vmem:[#allocation7 + $0x128] sm:$0xff]  ;;  %v4609_v50 = vld [vmem:[#allocation7 + $0x138] sm:$0xff] }
 0xf36   :  { %5263 = vmatpush1.bf16.msra.mxu1 %v5018_v48  ;;  %5427 = vmatpush1.bf16.msra.mxu0 %v5020_v56  ;;  %v4608_v48 = vld [vmem:[#allocation7 + $0x130] sm:$0xff]  ;;  %v4615_v56 = vld [vmem:[#allocation7 + $0x168] sm:$0xff] }
 0xf37   :  { %5264 = vmatprep.subr.bf16.mxu1 %v5027_v22  ;;  %5428 = vmatprep.subr.bf16.mxu0 %v5029_v38  ;;  %v4617_v22 = vld [vmem:[#allocation7 + $0x178] sm:$0xff]  ;;  %v4614_v38 = vld [vmem:[#allocation7 + $0x160] sm:$0xff] }
 0xf3a   :  { %5265 = vmatpush1.bf16.msra.mxu1 %v5026_v54  ;;  %5429 = vmatpush1.bf16.msra.mxu0 %v5028_v36  ;;  %v4616_v54 = vld [vmem:[#allocation7 + $0x170] sm:$0xff]  ;;  %v4623_v36 = vld [vmem:[#allocation7 + $0x1a8] sm:$0xff] }
 0xf3b   :  { %5266 = vmatprep.subr.bf16.mxu1 %v5035_v49  ;;  %5430 = vmatprep.subr.bf16.mxu0 %v5037_v30  ;;  %v4625_v49 = vld [vmem:[#allocation7 + $0x1b8] sm:$0xff]  ;;  %v4622_v30 = vld [vmem:[#allocation7 + $0x1a0] sm:$0xff] }
 0xf3e   :  { %5267 = vmatpush1.bf16.msra.mxu1 %v5034_v0  ;;  %5431 = vmatpush1.bf16.msra.mxu0 %v5036_v21  ;;  %v4624_v0 = vld [vmem:[#allocation7 + $0x1b0] sm:$0xff]  ;;  %v4631_v21 = vld [vmem:[#allocation7 + $0x1e8] sm:$0xff] }
 0xf3f   :  { %5268 = vmatprep.subr.bf16.mxu1 %v5043_v12  ;;  %5432 = vmatprep.subr.bf16.mxu0 %v5045_v28  ;;  %v4633_v12 = vld [vmem:[#allocation7 + $0x1f8] sm:$0xff]  ;;  %v4630_v28 = vld [vmem:[#allocation7 + $0x1e0] sm:$0xff] }
 0xf42   :  { %5269 = vmatpush1.bf16.msra.mxu1 %v5042_v37  ;;  %5433 = vmatpush1.bf16.msra.mxu0 %v5044_v14  ;;  %v4632_v37 = vld [vmem:[#allocation7 + $0x1f0] sm:$0xff]  ;;  %v4639_v14 = vld [vmem:[#allocation7 + $0x228] sm:$0xff] }
 0xf43   :  { %5270 = vmatprep.subr.bf16.mxu1 %v5051_v43  ;;  %5434 = vmatprep.subr.bf16.mxu0 %v5053_v44  ;;  %v4641_v43 = vld [vmem:[#allocation7 + $0x238] sm:$0xff]  ;;  %v4638_v44 = vld [vmem:[#allocation7 + $0x220] sm:$0xff] }
 0xf46   :  { %5271 = vmatpush1.bf16.msra.mxu1 %v5050_v25  ;;  %5435 = vmatpush1.bf16.msra.mxu0 %v5052_v35  ;;  %v4640_v25 = vld [vmem:[#allocation7 + $0x230] sm:$0xff]  ;;  %v4647_v35 = vld [vmem:[#allocation7 + $0x268] sm:$0xff] }
 0xf47   :  { %5272 = vmatprep.subr.bf16.mxu1 %v5059_v51  ;;  %5436 = vmatprep.subr.bf16.mxu0 %v5061_v57  ;;  %v4649_v51 = vld [vmem:[#allocation7 + $0x278] sm:$0xff]  ;;  %v4646_v57 = vld [vmem:[#allocation7 + $0x260] sm:$0xff] }
 0xf4a   :  { %5273 = vmatpush1.bf16.msra.mxu1 %v5058_v2  ;;  %5437 = vmatpush1.bf16.msra.mxu0 %v5060_v27  ;;  %v4648_v2 = vld [vmem:[#allocation7 + $0x270] sm:$0xff]  ;;  %v4655_v27 = vld [vmem:[#allocation7 + $0x2a8] sm:$0xff] }
 0xf4b   :  { %5274 = vmatprep.subr.bf16.mxu1 %v5067_v41  ;;  %5438 = vmatprep.subr.bf16.mxu0 %v5069_v31  ;;  %v4657_v41 = vld [vmem:[#allocation7 + $0x2b8] sm:$0xff]  ;;  %v4654_v31 = vld [vmem:[#allocation7 + $0x2a0] sm:$0xff] }
 0xf4e   :  { %5275 = vmatpush1.bf16.msra.mxu1 %v5066_v8  ;;  %5439 = vmatpush1.bf16.msra.mxu0 %v5068_v59  ;;  %v4656_v8 = vld [vmem:[#allocation7 + $0x2b0] sm:$0xff]  ;;  %v4663_v59 = vld [vmem:[#allocation7 + $0x2e8] sm:$0xff] }
 0xf4f   :  { %5276 = vmatprep.subr.bf16.mxu1 %v5075_v6  ;;  %5440 = vmatprep.subr.bf16.mxu0 %v5077_v60  ;;  %v4665_v6 = vld [vmem:[#allocation7 + $0x2f8] sm:$0xff]  ;;  %v4662_v60 = vld [vmem:[#allocation7 + $0x2e0] sm:$0xff] }
 0xf52   :  { %5277 = vmatpush1.bf16.msra.mxu1 %v5074_v4  ;;  %5441 = vmatpush1.bf16.msra.mxu0 %v5076_v17  ;;  %v4664_v4 = vld [vmem:[#allocation7 + $0x2f0] sm:$0xff]  ;;  %v4671_v17 = vld [vmem:[#allocation7 + $0x328] sm:$0xff] }
 0xf53   :  { %5451 = vmatprep.subr.bf16.mxu1 %v4575_v26  ;;  %5615 = vmatprep.subr.bf16.mxu0 %v4577_v13  ;;  %v4673_v26 = vld [vmem:[#allocation7 + $0x338] sm:$0xff]  ;;  %v4670_v13 = vld [vmem:[#allocation7 + $0x320] sm:$0xff] }
 0xf55   :  { %5279 = vmatmul.mubr.bf16.vlgmr.msra.gmra.mrb[40].mxu1 %v8806_v29  ;;  %5443 = vmatmul.mubr.bf16.vlgmr.msra.gmra.mrb[20].mxu0 %v8806_v29 }
 0xf56   :  { %5452 = vmatpush1.bf16.msra.mxu1 %v4574_v9  ;;  %5616 = vmatpush1.bf16.msra.mxu0 %v4576_v18  ;;  %v4672_v9 = vld [vmem:[#allocation7 + $0x330] sm:$0xff]  ;;  %v4679_v18 = vld [vmem:[#allocation7 + $0x368] sm:$0xff] }
 0xf57   :  { %5453 = vmatprep.subr.bf16.mxu1 %v4583_v42  ;;  %5617 = vmatprep.subr.bf16.mxu0 %v4585_v23  ;;  %v4681_v42 = vld [vmem:[#allocation7 + $0x378] sm:$0xff]  ;;  %v4678_v23 = vld [vmem:[#allocation7 + $0x360] sm:$0xff] }
 0xf58   :  { %5483 = vmatprep.mubr.bf16.mxu1 %v8790_v3  ;;  %5647 = vmatprep.mubr.bf16.mxu0 %v8790_v3  ;;  %v4606_v3 = vld [vmem:[#allocation7 + $0x120] sm:$0xff] }
 0xf5a   :  { %5454 = vmatpush1.bf16.msra.mxu1 %v4582_v32  ;;  %5618 = vmatpush1.bf16.msra.mxu0 %v4584_v61  ;;  %v4680_v32 = vld [vmem:[#allocation7 + $0x370] sm:$0xff]  ;;  %v4687_v61 = vld [vmem:[#allocation7 + $0x3a8] sm:$0xff] }
 0xf5b   :  { %5455 = vmatprep.subr.bf16.mxu1 %v4591_v47  ;;  %5619 = vmatprep.subr.bf16.mxu0 %v4593_v63  ;;  %v4689_v47 = vld [vmem:[#allocation7 + $0x3b8] sm:$0xff]  ;;  %v4686_v63 = vld [vmem:[#allocation7 + $0x3a0] sm:$0xff] }
 0xf5e   :  { %5456 = vmatpush1.bf16.msra.mxu1 %v4590_v39  ;;  %5620 = vmatpush1.bf16.msra.mxu0 %v4592_v52  ;;  %v4688_v39 = vld [vmem:[#allocation7 + $0x3b0] sm:$0xff]  ;;  %v4695_v52 = vld [vmem:[#allocation7 + $0x3e8] sm:$0xff] }
 0xf5f   :  { %5457 = vmatprep.subr.bf16.mxu1 %v4599_v40  ;;  %5621 = vmatprep.subr.bf16.mxu0 %v4601_v46  ;;  %v4697_v40 = vld [vmem:[#allocation7 + $0x3f8] sm:$0xff]  ;;  %v4694_v46 = vld [vmem:[#allocation7 + $0x3e0] sm:$0xff] }
 0xf62   :  { %5458 = vmatpush1.bf16.msra.mxu1 %v4598_v45  ;;  %5622 = vmatpush1.bf16.msra.mxu0 %v4600_v33  ;;  %v4696_v45 = vld [vmem:[#allocation7 + $0x3f0] sm:$0xff]  ;;  %v4703_v33 = vld [vmem:[#allocation7 + $0x428] sm:$0xff] }
 0xf63   :  { %5459 = vmatprep.subr.bf16.mxu1 %v4607_v1  ;;  %5623 = vmatprep.subr.bf16.mxu0 %v4609_v50  ;;  %v4705_v1 = vld [vmem:[#allocation7 + $0x438] sm:$0xff]  ;;  %v4702_v50 = vld [vmem:[#allocation7 + $0x420] sm:$0xff] }
 0xf66   :  { %5460 = vmatpush1.bf16.msra.mxu1 %v4606_v3  ;;  %5624 = vmatpush1.bf16.msra.mxu0 %v4608_v48  ;;  %v4704_v3 = vld [vmem:[#allocation7 + $0x430] sm:$0xff]  ;;  %v4711_v48 = vld [vmem:[#allocation7 + $0x468] sm:$0xff] }
 0xf67   :  { %5461 = vmatprep.subr.bf16.mxu1 %v4615_v56  ;;  %5625 = vmatprep.subr.bf16.mxu0 %v4617_v22  ;;  %v4713_v56 = vld [vmem:[#allocation7 + $0x478] sm:$0xff]  ;;  %v4710_v22 = vld [vmem:[#allocation7 + $0x460] sm:$0xff] }
 0xf6a   :  { %5462 = vmatpush1.bf16.msra.mxu1 %v4614_v38  ;;  %5626 = vmatpush1.bf16.msra.mxu0 %v4616_v54  ;;  %v4712_v38 = vld [vmem:[#allocation7 + $0x470] sm:$0xff]  ;;  %v4719_v54 = vld [vmem:[#allocation7 + $0x4a8] sm:$0xff] }
 0xf6b   :  { %5463 = vmatprep.subr.bf16.mxu1 %v4623_v36  ;;  %5627 = vmatprep.subr.bf16.mxu0 %v4625_v49  ;;  %v4721_v36 = vld [vmem:[#allocation7 + $0x4b8] sm:$0xff]  ;;  %v4718_v49 = vld [vmem:[#allocation7 + $0x4a0] sm:$0xff] }
 0xf6e   :  { %5464 = vmatpush1.bf16.msra.mxu1 %v4622_v30  ;;  %5628 = vmatpush1.bf16.msra.mxu0 %v4624_v0  ;;  %v4720_v30 = vld [vmem:[#allocation7 + $0x4b0] sm:$0xff]  ;;  %v4727_v0 = vld [vmem:[#allocation7 + $0x4e8] sm:$0xff] }
 0xf6f   :  { %5465 = vmatprep.subr.bf16.mxu1 %v4631_v21  ;;  %5629 = vmatprep.subr.bf16.mxu0 %v4633_v12  ;;  %v4726_v21 = vld [vmem:[#allocation7 + $0x4e0] sm:$0xff]  ;;  %v4728_v12 = vld [vmem:[#allocation7 + $0x4f0] sm:$0xff] }
 0xf72   :  { %5466 = vmatpush1.bf16.msra.mxu1 %v4630_v28  ;;  %5630 = vmatpush1.bf16.msra.mxu0 %v4632_v37  ;;  %v4735_v28 = vld [vmem:[#allocation7 + $0x528] sm:$0xff]  ;;  %v4737_v37 = vld [vmem:[#allocation7 + $0x538] sm:$0xff] }
 0xf73   :  { %5467 = vmatprep.subr.bf16.mxu1 %v4639_v14  ;;  %5631 = vmatprep.subr.bf16.mxu0 %v4641_v43  ;;  %v4736_v14 = vld [vmem:[#allocation7 + $0x530] sm:$0xff]  ;;  %v4743_v43 = vld [vmem:[#allocation7 + $0x568] sm:$0xff] }
 0xf76   :  { %5468 = vmatpush1.bf16.msra.mxu1 %v4638_v44  ;;  %5632 = vmatpush1.bf16.msra.mxu0 %v4640_v25  ;;  %v4745_v44 = vld [vmem:[#allocation7 + $0x578] sm:$0xff]  ;;  %v4742_v25 = vld [vmem:[#allocation7 + $0x560] sm:$0xff] }
 0xf77   :  { %5469 = vmatprep.subr.bf16.mxu1 %v4647_v35  ;;  %5633 = vmatprep.subr.bf16.mxu0 %v4649_v51  ;;  %v4744_v35 = vld [vmem:[#allocation7 + $0x570] sm:$0xff]  ;;  %v4751_v51 = vld [vmem:[#allocation7 + $0x5a8] sm:$0xff] }
 0xf7a   :  { %5470 = vmatpush1.bf16.msra.mxu1 %v4646_v57  ;;  %5634 = vmatpush1.bf16.msra.mxu0 %v4648_v2  ;;  %v4753_v57 = vld [vmem:[#allocation7 + $0x5b8] sm:$0xff]  ;;  %v4750_v2 = vld [vmem:[#allocation7 + $0x5a0] sm:$0xff] }
 0xf7b   :  { %5471 = vmatprep.subr.bf16.mxu1 %v4655_v27  ;;  %5635 = vmatprep.subr.bf16.mxu0 %v4657_v41  ;;  %v4752_v27 = vld [vmem:[#allocation7 + $0x5b0] sm:$0xff]  ;;  %v4759_v41 = vld [vmem:[#allocation7 + $0x5e8] sm:$0xff] }
 0xf7e   :  { %5472 = vmatpush1.bf16.msra.mxu1 %v4654_v31  ;;  %5636 = vmatpush1.bf16.msra.mxu0 %v4656_v8  ;;  %v4761_v31 = vld [vmem:[#allocation7 + $0x5f8] sm:$0xff]  ;;  %v4758_v8 = vld [vmem:[#allocation7 + $0x5e0] sm:$0xff] }
 0xf7f   :  { %5473 = vmatprep.subr.bf16.mxu1 %v4663_v59  ;;  %5637 = vmatprep.subr.bf16.mxu0 %v4665_v6  ;;  %v4760_v59 = vld [vmem:[#allocation7 + $0x5f0] sm:$0xff]  ;;  %v4767_v6 = vld [vmem:[#allocation7 + $0x628] sm:$0xff] }
 0xf82   :  { %5474 = vmatpush1.bf16.msra.mxu1 %v4662_v60  ;;  %5638 = vmatpush1.bf16.msra.mxu0 %v4664_v4  ;;  %v4769_v60 = vld [vmem:[#allocation7 + $0x638] sm:$0xff]  ;;  %v4766_v4 = vld [vmem:[#allocation7 + $0x620] sm:$0xff] }
 0xf83   :  { %5475 = vmatprep.subr.bf16.mxu1 %v4671_v17  ;;  %5639 = vmatprep.subr.bf16.mxu0 %v4673_v26  ;;  %v4768_v17 = vld [vmem:[#allocation7 + $0x630] sm:$0xff]  ;;  %v4775_v26 = vld [vmem:[#allocation7 + $0x668] sm:$0xff] }
 0xf86   :  { %5476 = vmatpush1.bf16.msra.mxu1 %v4670_v13  ;;  %5640 = vmatpush1.bf16.msra.mxu0 %v4672_v9  ;;  %v4777_v13 = vld [vmem:[#allocation7 + $0x678] sm:$0xff]  ;;  %v4774_v9 = vld [vmem:[#allocation7 + $0x660] sm:$0xff] }
 0xf87   :  { %5477 = vmatprep.subr.bf16.mxu1 %v4679_v18  ;;  %5641 = vmatprep.subr.bf16.mxu0 %v4681_v42  ;;  %v4776_v18 = vld [vmem:[#allocation7 + $0x670] sm:$0xff]  ;;  %v4783_v42 = vld [vmem:[#allocation7 + $0x6a8] sm:$0xff] }
 0xf8a   :  { %5478 = vmatpush1.bf16.msra.mxu1 %v4678_v23  ;;  %5642 = vmatpush1.bf16.msra.mxu0 %v4680_v32  ;;  %v4785_v23 = vld [vmem:[#allocation7 + $0x6b8] sm:$0xff]  ;;  %v4782_v32 = vld [vmem:[#allocation7 + $0x6a0] sm:$0xff] }
 0xf8b   :  { %5479 = vmatprep.subr.bf16.mxu1 %v4687_v61  ;;  %5643 = vmatprep.subr.bf16.mxu0 %v4689_v47  ;;  %v4784_v61 = vld [vmem:[#allocation7 + $0x6b0] sm:$0xff]  ;;  %v4791_v47 = vld [vmem:[#allocation7 + $0x6e8] sm:$0xff] }
 0xf8e   :  { %5480 = vmatpush1.bf16.msra.mxu1 %v4686_v63  ;;  %5644 = vmatpush1.bf16.msra.mxu0 %v4688_v39  ;;  %v4793_v63 = vld [vmem:[#allocation7 + $0x6f8] sm:$0xff]  ;;  %v4790_v39 = vld [vmem:[#allocation7 + $0x6e0] sm:$0xff] }
 0xf8f   :  { %5481 = vmatprep.subr.bf16.mxu1 %v4695_v52  ;;  %5645 = vmatprep.subr.bf16.mxu0 %v4697_v40  ;;  %v4792_v52 = vld [vmem:[#allocation7 + $0x6f0] sm:$0xff]  ;;  %v4799_v40 = vld [vmem:[#allocation7 + $0x728] sm:$0xff] }
 0xf92   :  { %5482 = vmatpush1.bf16.msra.mxu1 %v4694_v46  ;;  %5646 = vmatpush1.bf16.msra.mxu0 %v4696_v45  ;;  %v4801_v46 = vld [vmem:[#allocation7 + $0x738] sm:$0xff]  ;;  %v4798_v45 = vld [vmem:[#allocation7 + $0x720] sm:$0xff] }
 0xf93   :  { %5492 = vmatprep.subr.bf16.mxu1 %v4703_v33  ;;  %5656 = vmatprep.subr.bf16.mxu0 %v4705_v1  ;;  %v4800_v33 = vld [vmem:[#allocation7 + $0x730] sm:$0xff]  ;;  %v4807_v1 = vld [vmem:[#allocation7 + $0x768] sm:$0xff] }
 0xf95   :  { %5484 = vmatmul.mubr.bf16.vlgmr.msra.gmra.mrb[44].mxu1 %v8786_v53  ;;  %5648 = vmatmul.mubr.bf16.vlgmr.msra.gmra.mrb[24].mxu0 %v8786_v53  ;;  %v4729_v53 = vld [vmem:[#allocation7 + $0x4f8] sm:$0xff] }
 0xf96   :  { %5493 = vmatpush1.bf16.msra.mxu1 %v4702_v50  ;;  %5657 = vmatpush1.bf16.msra.mxu0 %v4704_v3  ;;  %v4809_v50 = vld [vmem:[#allocation7 + $0x778] sm:$0xff]  ;;  %v4806_v3 = vld [vmem:[#allocation7 + $0x760] sm:$0xff] }
 0xf97   :  { %5494 = vmatprep.subr.bf16.mxu1 %v4711_v48  ;;  %5658 = vmatprep.subr.bf16.mxu0 %v4713_v56  ;;  %v4808_v48 = vld [vmem:[#allocation7 + $0x770] sm:$0xff]  ;;  %v4815_v56 = vld [vmem:[#allocation7 + $0x7a8] sm:$0xff] }
 0xf98   :  { %5524 = vmatprep.mubr.bf16.mxu1 %v8792_v55  ;;  %5688 = vmatprep.mubr.bf16.mxu0 %v8792_v55  ;;  %v4734_v55 = vld [vmem:[#allocation7 + $0x520] sm:$0xff] }
 0xf9a   :  { %5495 = vmatpush1.bf16.msra.mxu1 %v4710_v22  ;;  %5659 = vmatpush1.bf16.msra.mxu0 %v4712_v38  ;;  %v4817_v22 = vld [vmem:[#allocation7 + $0x7b8] sm:$0xff]  ;;  %v4814_v38 = vld [vmem:[#allocation7 + $0x7a0] sm:$0xff] }
 0xf9b   :  { %5496 = vmatprep.subr.bf16.mxu1 %v4719_v54  ;;  %5660 = vmatprep.subr.bf16.mxu0 %v4721_v36  ;;  %v4816_v54 = vld [vmem:[#allocation7 + $0x7b0] sm:$0xff]  ;;  %v4823_v36 = vld [vmem:[#allocation7 + $0x7e8] sm:$0xff] }
 0xf9e   :  { %5497 = vmatpush1.bf16.msra.mxu1 %v4718_v49  ;;  %5661 = vmatpush1.bf16.msra.mxu0 %v4720_v30  ;;  %v4825_v49 = vld [vmem:[#allocation7 + $0x7f8] sm:$0xff]  ;;  %v4822_v30 = vld [vmem:[#allocation7 + $0x7e0] sm:$0xff] }
 0xf9f   :  { %5498 = vmatprep.subr.bf16.mxu1 %v4727_v0  ;;  %5662 = vmatprep.subr.bf16.mxu0 %v4729_v53  ;;  %v4824_v0 = vld [vmem:[#allocation7 + $0x7f0] sm:$0xff]  ;;  %v4831_v53 = vld [vmem:[#allocation7 + $0x828] sm:$0xff] }
 0xfa2   :  { %5499 = vmatpush1.bf16.msra.mxu1 %v4726_v21  ;;  %5663 = vmatpush1.bf16.msra.mxu0 %v4728_v12  ;;  %v4833_v21 = vld [vmem:[#allocation7 + $0x838] sm:$0xff]  ;;  %v4830_v12 = vld [vmem:[#allocation7 + $0x820] sm:$0xff] }
 0xfa3   :  { %5500 = vmatprep.subr.bf16.mxu1 %v4735_v28  ;;  %5664 = vmatprep.subr.bf16.mxu0 %v4737_v37  ;;  %v4832_v28 = vld [vmem:[#allocation7 + $0x830] sm:$0xff]  ;;  %v4839_v37 = vld [vmem:[#allocation7 + $0x868] sm:$0xff] }
 0xfa6   :  { %5501 = vmatpush1.bf16.msra.mxu1 %v4734_v55  ;;  %5665 = vmatpush1.bf16.msra.mxu0 %v4736_v14  ;;  %v4841_v55 = vld [vmem:[#allocation7 + $0x878] sm:$0xff]  ;;  %v4838_v14 = vld [vmem:[#allocation7 + $0x860] sm:$0xff] }
 0xfa7   :  { %5502 = vmatprep.subr.bf16.mxu1 %v4743_v43  ;;  %5666 = vmatprep.subr.bf16.mxu0 %v4745_v44  ;;  %v4840_v43 = vld [vmem:[#allocation7 + $0x870] sm:$0xff]  ;;  %v4847_v44 = vld [vmem:[#allocation7 + $0x8a8] sm:$0xff] }
 0xfaa   :  { %5503 = vmatpush1.bf16.msra.mxu1 %v4742_v25  ;;  %5667 = vmatpush1.bf16.msra.mxu0 %v4744_v35  ;;  %v4849_v25 = vld [vmem:[#allocation7 + $0x8b8] sm:$0xff]  ;;  %v4846_v35 = vld [vmem:[#allocation7 + $0x8a0] sm:$0xff] }
 0xfab   :  { %5504 = vmatprep.subr.bf16.mxu1 %v4751_v51  ;;  %5668 = vmatprep.subr.bf16.mxu0 %v4753_v57  ;;  %v4848_v51 = vld [vmem:[#allocation7 + $0x8b0] sm:$0xff]  ;;  %v4855_v57 = vld [vmem:[#allocation7 + $0x8e8] sm:$0xff] }
 0xfae   :  { %5505 = vmatpush1.bf16.msra.mxu1 %v4750_v2  ;;  %5669 = vmatpush1.bf16.msra.mxu0 %v4752_v27  ;;  %v4854_v2 = vld [vmem:[#allocation7 + $0x8e0] sm:$0xff]  ;;  %v4856_v27 = vld [vmem:[#allocation7 + $0x8f0] sm:$0xff] }
 0xfaf   :  { %5506 = vmatprep.subr.bf16.mxu1 %v4759_v41  ;;  %5670 = vmatprep.subr.bf16.mxu0 %v4761_v31  ;;  %v4863_v41 = vld [vmem:[#allocation7 + $0x928] sm:$0xff]  ;;  %v4865_v31 = vld [vmem:[#allocation7 + $0x938] sm:$0xff] }
 0xfb2   :  { %5507 = vmatpush1.bf16.msra.mxu1 %v4758_v8  ;;  %5671 = vmatpush1.bf16.msra.mxu0 %v4760_v59  ;;  %v4864_v8 = vld [vmem:[#allocation7 + $0x930] sm:$0xff]  ;;  %v4871_v59 = vld [vmem:[#allocation7 + $0x968] sm:$0xff] }
 0xfb3   :  { %5508 = vmatprep.subr.bf16.mxu1 %v4767_v6  ;;  %5672 = vmatprep.subr.bf16.mxu0 %v4769_v60  ;;  %v4873_v6 = vld [vmem:[#allocation7 + $0x978] sm:$0xff]  ;;  %v4870_v60 = vld [vmem:[#allocation7 + $0x960] sm:$0xff] }
 0xfb6   :  { %5509 = vmatpush1.bf16.msra.mxu1 %v4766_v4  ;;  %5673 = vmatpush1.bf16.msra.mxu0 %v4768_v17  ;;  %v4872_v4 = vld [vmem:[#allocation7 + $0x970] sm:$0xff]  ;;  %v4879_v17 = vld [vmem:[#allocation7 + $0x9a8] sm:$0xff] }
 0xfb7   :  { %5510 = vmatprep.subr.bf16.mxu1 %v4775_v26  ;;  %5674 = vmatprep.subr.bf16.mxu0 %v4777_v13  ;;  %v4881_v26 = vld [vmem:[#allocation7 + $0x9b8] sm:$0xff]  ;;  %v4878_v13 = vld [vmem:[#allocation7 + $0x9a0] sm:$0xff] }
 0xfba   :  { %5511 = vmatpush1.bf16.msra.mxu1 %v4774_v9  ;;  %5675 = vmatpush1.bf16.msra.mxu0 %v4776_v18  ;;  %v4880_v9 = vld [vmem:[#allocation7 + $0x9b0] sm:$0xff]  ;;  %v4887_v18 = vld [vmem:[#allocation7 + $0x9e8] sm:$0xff] }
 0xfbb   :  { %5512 = vmatprep.subr.bf16.mxu1 %v4783_v42  ;;  %5676 = vmatprep.subr.bf16.mxu0 %v4785_v23  ;;  %v4889_v42 = vld [vmem:[#allocation7 + $0x9f8] sm:$0xff]  ;;  %v4886_v23 = vld [vmem:[#allocation7 + $0x9e0] sm:$0xff] }
 0xfbe   :  { %5513 = vmatpush1.bf16.msra.mxu1 %v4782_v32  ;;  %5677 = vmatpush1.bf16.msra.mxu0 %v4784_v61  ;;  %v4888_v32 = vld [vmem:[#allocation7 + $0x9f0] sm:$0xff]  ;;  %v4895_v61 = vld [vmem:[#allocation7 + $0xa28] sm:$0xff] }
 0xfbf   :  { %5514 = vmatprep.subr.bf16.mxu1 %v4791_v47  ;;  %5678 = vmatprep.subr.bf16.mxu0 %v4793_v63  ;;  %v4897_v47 = vld [vmem:[#allocation7 + $0xa38] sm:$0xff]  ;;  %v4894_v63 = vld [vmem:[#allocation7 + $0xa20] sm:$0xff] }
 0xfc2   :  { %5515 = vmatpush1.bf16.msra.mxu1 %v4790_v39  ;;  %5679 = vmatpush1.bf16.msra.mxu0 %v4792_v52  ;;  %v4896_v39 = vld [vmem:[#allocation7 + $0xa30] sm:$0xff]  ;;  %v4903_v52 = vld [vmem:[#allocation7 + $0xa68] sm:$0xff] }
 0xfc3   :  { %5516 = vmatprep.subr.bf16.mxu1 %v4799_v40  ;;  %5680 = vmatprep.subr.bf16.mxu0 %v4801_v46  ;;  %v4905_v40 = vld [vmem:[#allocation7 + $0xa78] sm:$0xff]  ;;  %v4902_v46 = vld [vmem:[#allocation7 + $0xa60] sm:$0xff] }
 0xfc6   :  { %5517 = vmatpush1.bf16.msra.mxu1 %v4798_v45  ;;  %5681 = vmatpush1.bf16.msra.mxu0 %v4800_v33  ;;  %v4904_v45 = vld [vmem:[#allocation7 + $0xa70] sm:$0xff]  ;;  %v4911_v33 = vld [vmem:[#allocation7 + $0xaa8] sm:$0xff] }
 0xfc7   :  { %5518 = vmatprep.subr.bf16.mxu1 %v4807_v1  ;;  %5682 = vmatprep.subr.bf16.mxu0 %v4809_v50  ;;  %v4913_v1 = vld [vmem:[#allocation7 + $0xab8] sm:$0xff]  ;;  %v4910_v50 = vld [vmem:[#allocation7 + $0xaa0] sm:$0xff] }
 0xfca   :  { %5519 = vmatpush1.bf16.msra.mxu1 %v4806_v3  ;;  %5683 = vmatpush1.bf16.msra.mxu0 %v4808_v48  ;;  %v4912_v3 = vld [vmem:[#allocation7 + $0xab0] sm:$0xff]  ;;  %v4919_v48 = vld [vmem:[#allocation7 + $0xae8] sm:$0xff] }
 0xfcb   :  { %5520 = vmatprep.subr.bf16.mxu1 %v4815_v56  ;;  %5684 = vmatprep.subr.bf16.mxu0 %v4817_v22  ;;  %v4921_v56 = vld [vmem:[#allocation7 + $0xaf8] sm:$0xff]  ;;  %v4918_v22 = vld [vmem:[#allocation7 + $0xae0] sm:$0xff] }
 0xfce   :  { %5521 = vmatpush1.bf16.msra.mxu1 %v4814_v38  ;;  %5685 = vmatpush1.bf16.msra.mxu0 %v4816_v54  ;;  %v4920_v38 = vld [vmem:[#allocation7 + $0xaf0] sm:$0xff]  ;;  %v4927_v54 = vld [vmem:[#allocation7 + $0xb28] sm:$0xff] }
 0xfcf   :  { %5522 = vmatprep.subr.bf16.mxu1 %v4823_v36  ;;  %5686 = vmatprep.subr.bf16.mxu0 %v4825_v49  ;;  %v4929_v36 = vld [vmem:[#allocation7 + $0xb38] sm:$0xff]  ;;  %v4926_v49 = vld [vmem:[#allocation7 + $0xb20] sm:$0xff] }
 0xfd2   :  { %5523 = vmatpush1.bf16.msra.mxu1 %v4822_v30  ;;  %5687 = vmatpush1.bf16.msra.mxu0 %v4824_v0  ;;  %v4928_v30 = vld [vmem:[#allocation7 + $0xb30] sm:$0xff]  ;;  %v4935_v0 = vld [vmem:[#allocation7 + $0xb68] sm:$0xff] }
 0xfd3   :  { %5533 = vmatprep.subr.bf16.mxu1 %v4831_v53  ;;  %5697 = vmatprep.subr.bf16.mxu0 %v4833_v21  ;;  %v4937_v53 = vld [vmem:[#allocation7 + $0xb78] sm:$0xff]  ;;  %v4934_v21 = vld [vmem:[#allocation7 + $0xb60] sm:$0xff] }
 0xfd5   :  { %5525 = vmatmul.mubr.bf16.vlgmr.msra.gmra.mrb[44].mxu1 %v8788_v24  ;;  %5689 = vmatmul.mubr.bf16.vlgmr.msra.gmra.mrb[24].mxu0 %v8788_v24  ;;  %v4857_v24 = vld [vmem:[#allocation7 + $0x8f8] sm:$0xff] }
 0xfd6   :  { %5534 = vmatpush1.bf16.msra.mxu1 %v4830_v12  ;;  %5698 = vmatpush1.bf16.msra.mxu0 %v4832_v28  ;;  %v4936_v12 = vld [vmem:[#allocation7 + $0xb70] sm:$0xff]  ;;  %v4943_v28 = vld [vmem:[#allocation7 + $0xba8] sm:$0xff] }
 0xfd7   :  { %5535 = vmatprep.subr.bf16.mxu1 %v4839_v37  ;;  %5699 = vmatprep.subr.bf16.mxu0 %v4841_v55  ;;  %v4945_v37 = vld [vmem:[#allocation7 + $0xbb8] sm:$0xff]  ;;  %v4942_v55 = vld [vmem:[#allocation7 + $0xba0] sm:$0xff] }
 0xfd8   :  { %5565 = vmatprep.mubr.bf16.mxu1 %v8808_v5  ;;  %5729 = vmatprep.mubr.bf16.mxu0 %v8808_v5  ;;  %v4862_v5 = vld [vmem:[#allocation7 + $0x920] sm:$0xff] }
 0xfda   :  { %5536 = vmatpush1.bf16.msra.mxu1 %v4838_v14  ;;  %5700 = vmatpush1.bf16.msra.mxu0 %v4840_v43  ;;  %v4944_v14 = vld [vmem:[#allocation7 + $0xbb0] sm:$0xff]  ;;  %v4951_v43 = vld [vmem:[#allocation7 + $0xbe8] sm:$0xff] }
 0xfdb   :  { %5537 = vmatprep.subr.bf16.mxu1 %v4847_v44  ;;  %5701 = vmatprep.subr.bf16.mxu0 %v4849_v25  ;;  %v4953_v44 = vld [vmem:[#allocation7 + $0xbf8] sm:$0xff]  ;;  %v4950_v25 = vld [vmem:[#allocation7 + $0xbe0] sm:$0xff] }
 0xfde   :  { %5538 = vmatpush1.bf16.msra.mxu1 %v4846_v35  ;;  %5702 = vmatpush1.bf16.msra.mxu0 %v4848_v51  ;;  %v4952_v35 = vld [vmem:[#allocation7 + $0xbf0] sm:$0xff]  ;;  %v4959_v51 = vld [vmem:[#allocation7 + $0xc28] sm:$0xff] }
 0xfdf   :  { %5539 = vmatprep.subr.bf16.mxu1 %v4855_v57  ;;  %5703 = vmatprep.subr.bf16.mxu0 %v4857_v24  ;;  %v4961_v57 = vld [vmem:[#allocation7 + $0xc38] sm:$0xff]  ;;  %v4958_v24 = vld [vmem:[#allocation7 + $0xc20] sm:$0xff] }
 0xfe2   :  { %5540 = vmatpush1.bf16.msra.mxu1 %v4854_v2  ;;  %5704 = vmatpush1.bf16.msra.mxu0 %v4856_v27  ;;  %v4960_v2 = vld [vmem:[#allocation7 + $0xc30] sm:$0xff]  ;;  %v4967_v27 = vld [vmem:[#allocation7 + $0xc68] sm:$0xff] }
 0xfe3   :  { %5541 = vmatprep.subr.bf16.mxu1 %v4863_v41  ;;  %5705 = vmatprep.subr.bf16.mxu0 %v4865_v31  ;;  %v4969_v41 = vld [vmem:[#allocation7 + $0xc78] sm:$0xff]  ;;  %v4966_v31 = vld [vmem:[#allocation7 + $0xc60] sm:$0xff] }
 0xfe6   :  { %5542 = vmatpush1.bf16.msra.mxu1 %v4862_v5  ;;  %5706 = vmatpush1.bf16.msra.mxu0 %v4864_v8  ;;  %v4968_v5 = vld [vmem:[#allocation7 + $0xc70] sm:$0xff]  ;;  %v4975_v8 = vld [vmem:[#allocation7 + $0xca8] sm:$0xff] }
 0xfe7   :  { %5543 = vmatprep.subr.bf16.mxu1 %v4871_v59  ;;  %5707 = vmatprep.subr.bf16.mxu0 %v4873_v6  ;;  %v4977_v59 = vld [vmem:[#allocation7 + $0xcb8] sm:$0xff]  ;;  %v4974_v6 = vld [vmem:[#allocation7 + $0xca0] sm:$0xff] }
 0xfea   :  { %5544 = vmatpush1.bf16.msra.mxu1 %v4870_v60  ;;  %5708 = vmatpush1.bf16.msra.mxu0 %v4872_v4  ;;  %v4976_v60 = vld [vmem:[#allocation7 + $0xcb0] sm:$0xff]  ;;  %v4983_v4 = vld [vmem:[#allocation7 + $0xce8] sm:$0xff] }
 0xfeb   :  { %5545 = vmatprep.subr.bf16.mxu1 %v4879_v17  ;;  %5709 = vmatprep.subr.bf16.mxu0 %v4881_v26  ;;  %v4982_v17 = vld [vmem:[#allocation7 + $0xce0] sm:$0xff]  ;;  %v4984_v26 = vld [vmem:[#allocation7 + $0xcf0] sm:$0xff] }
 0xfee   :  { %5546 = vmatpush1.bf16.msra.mxu1 %v4878_v13  ;;  %5710 = vmatpush1.bf16.msra.mxu0 %v4880_v9  ;;  %v4991_v13 = vld [vmem:[#allocation7 + $0xd28] sm:$0xff]  ;;  %v4993_v9 = vld [vmem:[#allocation7 + $0xd38] sm:$0xff] }
 0xfef   :  { %5547 = vmatprep.subr.bf16.mxu1 %v4887_v18  ;;  %5711 = vmatprep.subr.bf16.mxu0 %v4889_v42  ;;  %v8842_v18 = vld [vmem:[#allocation13 + $0x1e] sm:$0xff]  ;;  %v4992_v42 = vld [vmem:[#allocation7 + $0xd30] sm:$0xff] }
 0xff2   :  { %5548 = vmatpush1.bf16.msra.mxu1 %v4886_v23  ;;  %5712 = vmatpush1.bf16.msra.mxu0 %v4888_v32  ;;  %v4999_v23 = vld [vmem:[#allocation7 + $0xd68] sm:$0xff]  ;;  %v5001_v32 = vld [vmem:[#allocation7 + $0xd78] sm:$0xff] }
 0xff3   :  { %5549 = vmatprep.subr.bf16.mxu1 %v4895_v61  ;;  %5713 = vmatprep.subr.bf16.mxu0 %v4897_v47  ;;  %v5086_v61 = vrot.slane %v8842_v18, %v8585_v15  ;;  %v5094_v47 = vrot.slane %v8842_v18, %v8607_v58 }
 0xff6   :  { %5550 = vmatpush1.bf16.msra.mxu1 %v4894_v63  ;;  %5714 = vmatpush1.bf16.msra.mxu0 %v4896_v39  ;;  %v5090_v63 = vrot.slane %v8842_v18, %v8588_v10  ;;  %v5098_v39 = vrot.slane %v8842_v18, %v8610_v7 }
 0xff7   :  { %5551 = vmatprep.subr.bf16.mxu1 %v4903_v52  ;;  %5715 = vmatprep.subr.bf16.mxu0 %v4905_v40  ;;  %v4998_v52 = vld [vmem:[#allocation7 + $0xd60] sm:$0xff]  ;;  %v5000_v40 = vld [vmem:[#allocation7 + $0xd70] sm:$0xff] }
 0xffa   :  { %5552 = vmatpush1.bf16.msra.mxu1 %v4902_v46  ;;  %5716 = vmatpush1.bf16.msra.mxu0 %v4904_v45 }
 0xffb   :  { %5553 = vmatprep.subr.bf16.mxu1 %v4911_v33  ;;  %5717 = vmatprep.subr.bf16.mxu0 %v4913_v1  ;;  %v5007_v33 = vld [vmem:[#allocation7 + $0xda8] sm:$0xff]  ;;  %v5009_v1 = vld [vmem:[#allocation7 + $0xdb8] sm:$0xff] }
 0xffe   :  { %5554 = vmatpush1.bf16.msra.mxu1 %v4910_v50  ;;  %5718 = vmatpush1.bf16.msra.mxu0 %v4912_v3 }
 0xfff   :  { %5555 = vmatprep.subr.bf16.mxu1 %v4919_v48  ;;  %5719 = vmatprep.subr.bf16.mxu0 %v4921_v56 }
0x1002   :  { %5556 = vmatpush1.bf16.msra.mxu1 %v4918_v22  ;;  %5720 = vmatpush1.bf16.msra.mxu0 %v4920_v38 }
0x1003   :  { %5557 = vmatprep.subr.bf16.mxu1 %v4927_v54  ;;  %5721 = vmatprep.subr.bf16.mxu0 %v4929_v36 }
0x1006   :  { %5558 = vmatpush1.bf16.msra.mxu1 %v4926_v49  ;;  %5722 = vmatpush1.bf16.msra.mxu0 %v4928_v30 }
0x1007   :  { %5559 = vmatprep.subr.bf16.mxu1 %v4935_v0  ;;  %5723 = vmatprep.subr.bf16.mxu0 %v4937_v53 }
0x100a   :  { %5560 = vmatpush1.bf16.msra.mxu1 %v4934_v21  ;;  %5724 = vmatpush1.bf16.msra.mxu0 %v4936_v12  ;;  %v5006_v21 = vld [vmem:[#allocation7 + $0xda0] sm:$0xff]  ;;  %v5008_v12 = vld [vmem:[#allocation7 + $0xdb0] sm:$0xff] }
0x100b   :  { %5561 = vmatprep.subr.bf16.mxu1 %v4943_v28  ;;  %5725 = vmatprep.subr.bf16.mxu0 %v4945_v37 }
0x100e   :  { %5562 = vmatpush1.bf16.msra.mxu1 %v4942_v55  ;;  %5726 = vmatpush1.bf16.msra.mxu0 %v4944_v14  ;;  %v5015_v55 = vld [vmem:[#allocation7 + $0xde8] sm:$0xff]  ;;  %v5017_v14 = vld [vmem:[#allocation7 + $0xdf8] sm:$0xff] }
0x100f   :  { %5563 = vmatprep.subr.bf16.mxu1 %v4951_v43  ;;  %5727 = vmatprep.subr.bf16.mxu0 %v4953_v44 }
0x1012   :  { %5564 = vmatpush1.bf16.msra.mxu1 %v4950_v25  ;;  %5728 = vmatpush1.bf16.msra.mxu0 %v4952_v35 }
0x1013   :  { %5574 = vmatprep.subr.bf16.mxu1 %v4959_v51  ;;  %5738 = vmatprep.subr.bf16.mxu0 %v4961_v57  ;;  %v5014_v51 = vld [vmem:[#allocation7 + $0xde0] sm:$0xff]  ;;  %v5016_v57 = vld [vmem:[#allocation7 + $0xdf0] sm:$0xff] }
0x1015   :  { %5566 = vmatmul.mubr.bf16.vlgmr.msra.gmra.mrb[44].mxu1 %v8804_v16  ;;  %5730 = vmatmul.mubr.bf16.vlgmr.msra.gmra.mrb[24].mxu0 %v8804_v16  ;;  %v4985_v16 = vld [vmem:[#allocation7 + $0xcf8] sm:$0xff] }
0x1016   :  { %5575 = vmatpush1.bf16.msra.mxu1 %v4958_v24  ;;  %5739 = vmatpush1.bf16.msra.mxu0 %v4960_v2  ;;  %v5023_v24 = vld [vmem:[#allocation7 + $0xe28] sm:$0xff]  ;;  %v5025_v2 = vld [vmem:[#allocation7 + $0xe38] sm:$0xff] }
0x1017   :  { %5576 = vmatprep.subr.bf16.mxu1 %v4967_v27  ;;  %5740 = vmatprep.subr.bf16.mxu0 %v4969_v41  ;;  %v5022_v27 = vld [vmem:[#allocation7 + $0xe20] sm:$0xff]  ;;  %v5024_v41 = vld [vmem:[#allocation7 + $0xe30] sm:$0xff] }
0x1018   :  { %5606 = vmatprep.mubr.bf16.mxu1 %v8810_v34  ;;  %5770 = vmatprep.mubr.bf16.mxu0 %v8810_v34  ;;  %v4990_v34 = vld [vmem:[#allocation7 + $0xd20] sm:$0xff] }
0x101a   :  { %5577 = vmatpush1.bf16.msra.mxu1 %v4966_v31  ;;  %5741 = vmatpush1.bf16.msra.mxu0 %v4968_v5  ;;  %v5031_v31 = vld [vmem:[#allocation7 + $0xe68] sm:$0xff]  ;;  %v5033_v5 = vld [vmem:[#allocation7 + $0xe78] sm:$0xff] }
0x101b   :  { %5578 = vmatprep.subr.bf16.mxu1 %v4975_v8  ;;  %5742 = vmatprep.subr.bf16.mxu0 %v4977_v59  ;;  %v5030_v8 = vld [vmem:[#allocation7 + $0xe60] sm:$0xff]  ;;  %v5032_v59 = vld [vmem:[#allocation7 + $0xe70] sm:$0xff] }
0x101e   :  { %5579 = vmatpush1.bf16.msra.mxu1 %v4974_v6  ;;  %5743 = vmatpush1.bf16.msra.mxu0 %v4976_v60  ;;  %v5039_v6 = vld [vmem:[#allocation7 + $0xea8] sm:$0xff]  ;;  %v5041_v60 = vld [vmem:[#allocation7 + $0xeb8] sm:$0xff] }
0x101f   :  { %5580 = vmatprep.subr.bf16.mxu1 %v4983_v4  ;;  %5744 = vmatprep.subr.bf16.mxu0 %v4985_v16  ;;  %v5038_v4 = vld [vmem:[#allocation7 + $0xea0] sm:$0xff]  ;;  %v5040_v16 = vld [vmem:[#allocation7 + $0xeb0] sm:$0xff] }
0x1022   :  { %5581 = vmatpush1.bf16.msra.mxu1 %v4982_v17  ;;  %5745 = vmatpush1.bf16.msra.mxu0 %v4984_v26  ;;  %v5047_v17 = vld [vmem:[#allocation7 + $0xee8] sm:$0xff]  ;;  %v5049_v26 = vld [vmem:[#allocation7 + $0xef8] sm:$0xff] }
0x1023   :  { %5582 = vmatprep.subr.bf16.mxu1 %v4991_v13  ;;  %5746 = vmatprep.subr.bf16.mxu0 %v4993_v9  ;;  %v5046_v13 = vld [vmem:[#allocation7 + $0xee0] sm:$0xff]  ;;  %v5048_v9 = vld [vmem:[#allocation7 + $0xef0] sm:$0xff] }
0x1026   :  { %5583 = vmatpush1.bf16.msra.mxu1 %v4990_v34  ;;  %5747 = vmatpush1.bf16.msra.mxu0 %v4992_v42  ;;  %v5055_v34 = vld [vmem:[#allocation7 + $0xf28] sm:$0xff]  ;;  %v5057_v42 = vld [vmem:[#allocation7 + $0xf38] sm:$0xff] }
0x1027   :  { %5584 = vmatprep.subr.bf16.mxu1 %v4999_v23  ;;  %5748 = vmatprep.subr.bf16.mxu0 %v5001_v32  ;;  %v5054_v23 = vld [vmem:[#allocation7 + $0xf20] sm:$0xff]  ;;  %v5056_v32 = vld [vmem:[#allocation7 + $0xf30] sm:$0xff] }
0x1028   :  { %v5280_v46 = vpop.f32.mrb[40].mxu1  ;;  %v5444_v45 = vpop.f32.mrb[20].mxu0 }
0x1029   :  { %v7661_v50 = vadd.f32 %v5280_v46, %v5086_v61  ;;  %v7663_v3 = vadd.f32 %v5444_v45, %v5094_v47  ;;  %v5282_v48 = vpop.f32.mrb[41].mxu1  ;;  %v5446_v56 = vpop.f32.mrb[21].mxu0  ;;  %v5063_v61 = vld [vmem:[#allocation7 + $0xf68] sm:$0xff]  ;;  %v5065_v47 = vld [vmem:[#allocation7 + $0xf78] sm:$0xff]  ;;  %v5070_v46 = vld [vmem:[#allocation7 + $0xfa0] sm:$0xff] }
0x102a   :  { %v7662_v22 = vadd.f32 %v5282_v48, %v5090_v63  ;;  %v7664_v38 = vadd.f32 %v5446_v56, %v5098_v39  ;;  %v5284_v54 = vpop.f32.mrb[42].mxu1  ;;  %v5448_v36 = vpop.f32.mrb[22].mxu0  ;;  %5585 = vmatpush1.bf16.msra.mxu1 %v4998_v52  ;;  %5749 = vmatpush1.bf16.msra.mxu0 %v5000_v40  ;;  %v5062_v63 = vld [vmem:[#allocation7 + $0xf60] sm:$0xff]  ;;  %v5064_v39 = vld [vmem:[#allocation7 + $0xf70] sm:$0xff]  ;;  %v5071_v52 = vld [vmem:[#allocation7 + $0xfa8] sm:$0xff]  ;;  %v5102_v48 = vrot.slane %v8842_v18, %v8653_v11 }
0x102b   :  { %v5779_v49 = vmax.f32 %v7661_v50, 0.0  ;;  %v5781_v30 = vmax.f32 %v7663_v3, 0.0  ;;  %v5285_v0 = vpop.f32.mrb[43].mxu1  ;;  %v5449_v53 = vpop.f32.mrb[23].mxu0  ;;  %5586 = vmatprep.subr.bf16.mxu1 %v5007_v33  ;;  %5750 = vmatprep.subr.bf16.mxu0 %v5009_v1  ;;  %v5073_v40 = vld [vmem:[#allocation7 + $0xfb8] sm:$0xff]  ;;  %v5072_v45 = vld [vmem:[#allocation7 + $0xfb0] sm:$0xff]  ;;  %v5110_v56 = vrot.slane %v8842_v18, %v8667_v19 }
0x102c   :  { %v5780_v28 = vmax.f32 %v7662_v22, 0.0  ;;  %v5782_v37 = vmax.f32 %v7664_v38, 0.0  ;;  %v5079_v33 = vld [vmem:[#allocation7 + $0xfe8] sm:$0xff]  ;;  %v5081_v1 = vld [vmem:[#allocation7 + $0xff8] sm:$0xff]  ;;  %v5078_v50 = vld [vmem:[#allocation7 + $0xfe0] sm:$0xff]  ;;  %v5106_v22 = vrot.slane %v8842_v18, %v8656_v20  ;;  %v5114_v38 = vrot.slane %v8842_v18, %v8670_v62 }
0x102d   :  { %v8852_v43 = vpack.c.bf16 %v5779_v49, %v5779_v49  ;;  %v8854_v44 = vpack.c.bf16 %v5781_v30, %v5781_v30  ;;  %v5080_v3 = vld [vmem:[#allocation7 + $0xff0] sm:$0xff] }
0x102e   :  { %v8856_v25 = vpack.c.bf16 %v5780_v28, %v5780_v28  ;;  %v8858_v35 = vpack.c.bf16 %v5782_v37, %v5782_v37  ;;  %5587 = vmatpush1.bf16.msra.mxu1 %v5006_v21  ;;  %5751 = vmatpush1.bf16.msra.mxu0 %v5008_v12 }
0x102f   :  { %5588 = vmatprep.subr.bf16.mxu1 %v5015_v55  ;;  %5752 = vmatprep.subr.bf16.mxu0 %v5017_v14 }
0x1032   :  { %5589 = vmatpush1.bf16.msra.mxu1 %v5014_v51  ;;  %5753 = vmatpush1.bf16.msra.mxu0 %v5016_v57 }
0x1033   :  { %5590 = vmatprep.subr.bf16.mxu1 %v5023_v24  ;;  %5754 = vmatprep.subr.bf16.mxu0 %v5025_v2 }
0x1036   :  { %5591 = vmatpush1.bf16.msra.mxu1 %v5022_v27  ;;  %5755 = vmatpush1.bf16.msra.mxu0 %v5024_v41 }
0x1037   :  { %5592 = vmatprep.subr.bf16.mxu1 %v5031_v31  ;;  %5756 = vmatprep.subr.bf16.mxu0 %v5033_v5 }
0x103a   :  { %5593 = vmatpush1.bf16.msra.mxu1 %v5030_v8  ;;  %5757 = vmatpush1.bf16.msra.mxu0 %v5032_v59 }
0x103b   :  { %5594 = vmatprep.subr.bf16.mxu1 %v5039_v6  ;;  %5758 = vmatprep.subr.bf16.mxu0 %v5041_v60 }
0x103e   :  { %5595 = vmatpush1.bf16.msra.mxu1 %v5038_v4  ;;  %5759 = vmatpush1.bf16.msra.mxu0 %v5040_v16 }
0x103f   :  { %5596 = vmatprep.subr.bf16.mxu1 %v5047_v17  ;;  %5760 = vmatprep.subr.bf16.mxu0 %v5049_v26 }
0x1042   :  { %5597 = vmatpush1.bf16.msra.mxu1 %v5046_v13  ;;  %5761 = vmatpush1.bf16.msra.mxu0 %v5048_v9 }
0x1043   :  { %5598 = vmatprep.subr.bf16.mxu1 %v5055_v34  ;;  %5762 = vmatprep.subr.bf16.mxu0 %v5057_v42 }
0x1046   :  { %5599 = vmatpush1.bf16.msra.mxu1 %v5054_v23  ;;  %5763 = vmatpush1.bf16.msra.mxu0 %v5056_v32 }
0x1047   :  { %5600 = vmatprep.subr.bf16.mxu1 %v5063_v61  ;;  %5764 = vmatprep.subr.bf16.mxu0 %v5065_v47 }
0x104a   :  { %5601 = vmatpush1.bf16.msra.mxu1 %v5062_v63  ;;  %5765 = vmatpush1.bf16.msra.mxu0 %v5064_v39 }
0x104b   :  { %5602 = vmatprep.subr.bf16.mxu1 %v5071_v52  ;;  %5766 = vmatprep.subr.bf16.mxu0 %v5073_v40 }
0x104e   :  { %5603 = vmatpush1.bf16.msra.mxu1 %v5070_v46  ;;  %5767 = vmatpush1.bf16.msra.mxu0 %v5072_v45 }
0x104f   :  { %5604 = vmatprep.subr.bf16.mxu1 %v5079_v33  ;;  %5768 = vmatprep.subr.bf16.mxu0 %v5081_v1 }
0x1052   :  { %5605 = vmatpush1.bf16.msra.mxu1 %v5078_v50  ;;  %5769 = vmatpush1.bf16.msra.mxu0 %v5080_v3 }
0x1055   :  { %5607 = vmatmul.mubr.bf16.vlgmr.msra.gmra.mrb[44].mxu1 %v8806_v29  ;;  %5771 = vmatmul.mubr.bf16.vlgmr.msra.gmra.mrb[24].mxu0 %v8806_v29 }
0x1128   :  { %v5608_v54 = vpop.f32.mrb[44].mxu1  ;;  %v5772_v36 = vpop.f32.mrb[24].mxu0 }
0x1129   :  { %v7665_v49 = vadd.f32 %v5608_v54, %v5102_v48  ;;  %v7667_v30 = vadd.f32 %v5772_v36, %v5110_v56  ;;  %v5610_v0 = vpop.f32.mrb[45].mxu1  ;;  %v5774_v53 = vpop.f32.mrb[25].mxu0 }
0x112a   :  { %v7666_v21 = vadd.f32 %v5610_v0, %v5106_v22  ;;  %v7668_v29 = vadd.f32 %v5774_v53, %v5114_v38  ;;  %v5612_v12 = vpop.f32.mrb[46].mxu1  ;;  %v5776_v28 = vpop.f32.mrb[26].mxu0 }
0x112b   :  { %v5783_v37 = vmax.f32 %v7665_v49, 0.0  ;;  %v5785_v55 = vmax.f32 %v7667_v30, 0.0  ;;  %v5613_v14 = vpop.f32.mrb[47].mxu1  ;;  %v5777_v51 = vpop.f32.mrb[27].mxu0 }
0x112c   :  { %v5784_v57 = vmax.f32 %v7666_v21, 0.0  ;;  %v5786_v24 = vmax.f32 %v7668_v29, 0.0 }
0x112d   :  { %v8870_v2 = vpack.c.bf16 %v5783_v37, %v5783_v37  ;;  %v8872_v27 = vpack.c.bf16 %v5785_v55, %v5785_v55 }
0x112e   :  { %v8874_v18 = vpack.c.bf16 %v5784_v57, %v5784_v57  ;;  %v8876_v41 = vpack.c.bf16 %v5786_v24, %v5786_v24 }
0x112f   :  { %8087 = dma.done.wait [#allocation12 + $0x6], 65536 }
0x1130   :  { %8088 = vsyncadd [#allocation12 + $0x6], 4294901760  ;;  %6383 = vmatprep.mubr.bf16.mxu1 %v8856_v25  ;;  %6547 = vmatprep.mubr.bf16.mxu0 %v8856_v25  ;;  %v5799_v31 = vld [vmem:[#allocation8 + $0x8] sm:$0xff]  ;;  %v5801_v5 = vld [vmem:[#allocation8 + $0x18] sm:$0xff] }
0x1131   :  { %v5798_v8 = vld [vmem:[#allocation8] sm:$0xff]  ;;  %6351 = vmatprep.subr.bf16.mxu1 %v5799_v31  ;;  %6515 = vmatprep.subr.bf16.mxu0 %v5801_v5  ;;  %v5800_v59 = vld [vmem:[#allocation8 + $0x10] sm:$0xff]  ;;  %v5807_v6 = vld [vmem:[#allocation8 + $0x48] sm:$0xff] }
0x1132   :  { %v5809_v60 = vld [vmem:[#allocation8 + $0x58] sm:$0xff]  ;;  %6352 = vmatpush1.bf16.msra.mxu1 %v5798_v8  ;;  %6516 = vmatpush1.bf16.msra.mxu0 %v5800_v59  ;;  %v5806_v4 = vld [vmem:[#allocation8 + $0x40] sm:$0xff]  ;;  %v5808_v16 = vld [vmem:[#allocation8 + $0x50] sm:$0xff] }
0x1133   :  { %6353 = vmatprep.subr.bf16.mxu1 %v5807_v6  ;;  %6517 = vmatprep.subr.bf16.mxu0 %v5809_v60  ;;  %v5815_v17 = vld [vmem:[#allocation8 + $0x88] sm:$0xff]  ;;  %v5817_v26 = vld [vmem:[#allocation8 + $0x98] sm:$0xff]  ;;  %v5814_v13 = vld [vmem:[#allocation8 + $0x80] sm:$0xff] }
0x1134   :  { %v5816_v9 = vld [vmem:[#allocation8 + $0x90] sm:$0xff]  ;;  %v5823_v34 = vld [vmem:[#allocation8 + $0xc8] sm:$0xff]  ;;  %v5825_v42 = vld [vmem:[#allocation8 + $0xd8] sm:$0xff] }
0x1135   :  { %v5822_v23 = vld [vmem:[#allocation8 + $0xc0] sm:$0xff]  ;;  %v5824_v32 = vld [vmem:[#allocation8 + $0xd0] sm:$0xff]  ;;  %v5831_v61 = vld [vmem:[#allocation8 + $0x108] sm:$0xff] }
0x1136   :  { %6354 = vmatpush1.bf16.msra.mxu1 %v5806_v4  ;;  %6518 = vmatpush1.bf16.msra.mxu0 %v5808_v16  ;;  %v5833_v47 = vld [vmem:[#allocation8 + $0x118] sm:$0xff]  ;;  %v5830_v63 = vld [vmem:[#allocation8 + $0x100] sm:$0xff]  ;;  %v5832_v39 = vld [vmem:[#allocation8 + $0x110] sm:$0xff] }
0x1137   :  { %6355 = vmatprep.subr.bf16.mxu1 %v5815_v17  ;;  %6519 = vmatprep.subr.bf16.mxu0 %v5817_v26  ;;  %v5839_v52 = vld [vmem:[#allocation8 + $0x148] sm:$0xff]  ;;  %v5841_v40 = vld [vmem:[#allocation8 + $0x158] sm:$0xff]  ;;  %v5838_v46 = vld [vmem:[#allocation8 + $0x140] sm:$0xff] }
0x1138   :  { %v5840_v45 = vld [vmem:[#allocation8 + $0x150] sm:$0xff]  ;;  %v5847_v33 = vld [vmem:[#allocation8 + $0x188] sm:$0xff]  ;;  %v5849_v1 = vld [vmem:[#allocation8 + $0x198] sm:$0xff] }
0x1139   :  { %v5846_v50 = vld [vmem:[#allocation8 + $0x180] sm:$0xff]  ;;  %v5848_v3 = vld [vmem:[#allocation8 + $0x190] sm:$0xff]  ;;  %v5855_v48 = vld [vmem:[#allocation8 + $0x1c8] sm:$0xff] }
0x113a   :  { %6356 = vmatpush1.bf16.msra.mxu1 %v5814_v13  ;;  %6520 = vmatpush1.bf16.msra.mxu0 %v5816_v9  ;;  %v5857_v56 = vld [vmem:[#allocation8 + $0x1d8] sm:$0xff]  ;;  %v5854_v22 = vld [vmem:[#allocation8 + $0x1c0] sm:$0xff]  ;;  %v5856_v38 = vld [vmem:[#allocation8 + $0x1d0] sm:$0xff] }
0x113b   :  { %6357 = vmatprep.subr.bf16.mxu1 %v5823_v34  ;;  %6521 = vmatprep.subr.bf16.mxu0 %v5825_v42  ;;  %v5863_v54 = vld [vmem:[#allocation8 + $0x208] sm:$0xff]  ;;  %v5865_v36 = vld [vmem:[#allocation8 + $0x218] sm:$0xff]  ;;  %v5862_v49 = vld [vmem:[#allocation8 + $0x200] sm:$0xff] }
0x113c   :  { %v5864_v30 = vld [vmem:[#allocation8 + $0x210] sm:$0xff]  ;;  %v5871_v0 = vld [vmem:[#allocation8 + $0x248] sm:$0xff]  ;;  %v5873_v53 = vld [vmem:[#allocation8 + $0x258] sm:$0xff] }
0x113d   :  { %v5870_v21 = vld [vmem:[#allocation8 + $0x240] sm:$0xff]  ;;  %v5872_v29 = vld [vmem:[#allocation8 + $0x250] sm:$0xff]  ;;  %v5879_v12 = vld [vmem:[#allocation8 + $0x288] sm:$0xff] }
0x113e   :  { %6358 = vmatpush1.bf16.msra.mxu1 %v5822_v23  ;;  %6522 = vmatpush1.bf16.msra.mxu0 %v5824_v32  ;;  %v5881_v28 = vld [vmem:[#allocation8 + $0x298] sm:$0xff]  ;;  %v5878_v37 = vld [vmem:[#allocation8 + $0x280] sm:$0xff]  ;;  %v5880_v55 = vld [vmem:[#allocation8 + $0x290] sm:$0xff] }
0x113f   :  { %6359 = vmatprep.subr.bf16.mxu1 %v5831_v61  ;;  %6523 = vmatprep.subr.bf16.mxu0 %v5833_v47  ;;  %v5887_v14 = vld [vmem:[#allocation8 + $0x2c8] sm:$0xff]  ;;  %v5889_v51 = vld [vmem:[#allocation8 + $0x2d8] sm:$0xff]  ;;  %v5886_v57 = vld [vmem:[#allocation8 + $0x2c0] sm:$0xff] }
0x1140   :  { %v5888_v24 = vld [vmem:[#allocation8 + $0x2d0] sm:$0xff]  ;;  %v5895_v31 = vld [vmem:[#allocation8 + $0x308] sm:$0xff]  ;;  %v5897_v5 = vld [vmem:[#allocation8 + $0x318] sm:$0xff] }
0x1141   :  { %v5894_v8 = vld [vmem:[#allocation8 + $0x300] sm:$0xff]  ;;  %v5896_v59 = vld [vmem:[#allocation8 + $0x310] sm:$0xff]  ;;  %v5903_v6 = vld [vmem:[#allocation8 + $0x348] sm:$0xff] }
0x1142   :  { %6360 = vmatpush1.bf16.msra.mxu1 %v5830_v63  ;;  %6524 = vmatpush1.bf16.msra.mxu0 %v5832_v39  ;;  %v5905_v60 = vld [vmem:[#allocation8 + $0x358] sm:$0xff]  ;;  %v5902_v4 = vld [vmem:[#allocation8 + $0x340] sm:$0xff]  ;;  %v5904_v16 = vld [vmem:[#allocation8 + $0x350] sm:$0xff] }
0x1143   :  { %6361 = vmatprep.subr.bf16.mxu1 %v5839_v52  ;;  %6525 = vmatprep.subr.bf16.mxu0 %v5841_v40  ;;  %v5911_v17 = vld [vmem:[#allocation8 + $0x388] sm:$0xff]  ;;  %v5913_v26 = vld [vmem:[#allocation8 + $0x398] sm:$0xff]  ;;  %v5910_v13 = vld [vmem:[#allocation8 + $0x380] sm:$0xff] }
0x1144   :  { %v5912_v9 = vld [vmem:[#allocation8 + $0x390] sm:$0xff]  ;;  %v5919_v34 = vld [vmem:[#allocation8 + $0x3c8] sm:$0xff]  ;;  %v5921_v42 = vld [vmem:[#allocation8 + $0x3d8] sm:$0xff] }
0x1145   :  { %v5918_v23 = vld [vmem:[#allocation8 + $0x3c0] sm:$0xff]  ;;  %v5920_v32 = vld [vmem:[#allocation8 + $0x3d0] sm:$0xff]  ;;  %v5927_v61 = vld [vmem:[#allocation8 + $0x408] sm:$0xff] }
0x1146   :  { %6362 = vmatpush1.bf16.msra.mxu1 %v5838_v46  ;;  %6526 = vmatpush1.bf16.msra.mxu0 %v5840_v45  ;;  %v5929_v47 = vld [vmem:[#allocation8 + $0x418] sm:$0xff]  ;;  %v5926_v63 = vld [vmem:[#allocation8 + $0x400] sm:$0xff]  ;;  %v5928_v39 = vld [vmem:[#allocation8 + $0x410] sm:$0xff] }
0x1147   :  { %6363 = vmatprep.subr.bf16.mxu1 %v5847_v33  ;;  %6527 = vmatprep.subr.bf16.mxu0 %v5849_v1  ;;  %v5935_v52 = vld [vmem:[#allocation8 + $0x448] sm:$0xff]  ;;  %v5937_v40 = vld [vmem:[#allocation8 + $0x458] sm:$0xff]  ;;  %v5934_v46 = vld [vmem:[#allocation8 + $0x440] sm:$0xff] }
0x1148   :  { %v5936_v45 = vld [vmem:[#allocation8 + $0x450] sm:$0xff]  ;;  %v5943_v33 = vld [vmem:[#allocation8 + $0x488] sm:$0xff]  ;;  %v5945_v1 = vld [vmem:[#allocation8 + $0x498] sm:$0xff] }
0x114a   :  { %6364 = vmatpush1.bf16.msra.mxu1 %v5846_v50  ;;  %6528 = vmatpush1.bf16.msra.mxu0 %v5848_v3  ;;  %v5942_v50 = vld [vmem:[#allocation8 + $0x480] sm:$0xff]  ;;  %v5944_v3 = vld [vmem:[#allocation8 + $0x490] sm:$0xff] }
0x114b   :  { %6365 = vmatprep.subr.bf16.mxu1 %v5855_v48  ;;  %6529 = vmatprep.subr.bf16.mxu0 %v5857_v56  ;;  %v5951_v48 = vld [vmem:[#allocation8 + $0x4c8] sm:$0xff]  ;;  %v5953_v56 = vld [vmem:[#allocation8 + $0x4d8] sm:$0xff] }
0x114e   :  { %6366 = vmatpush1.bf16.msra.mxu1 %v5854_v22  ;;  %6530 = vmatpush1.bf16.msra.mxu0 %v5856_v38  ;;  %v5950_v22 = vld [vmem:[#allocation8 + $0x4c0] sm:$0xff]  ;;  %v5952_v38 = vld [vmem:[#allocation8 + $0x4d0] sm:$0xff] }
0x114f   :  { %6367 = vmatprep.subr.bf16.mxu1 %v5863_v54  ;;  %6531 = vmatprep.subr.bf16.mxu0 %v5865_v36  ;;  %v5959_v54 = vld [vmem:[#allocation8 + $0x508] sm:$0xff]  ;;  %v5961_v36 = vld [vmem:[#allocation8 + $0x518] sm:$0xff] }
0x1152   :  { %6368 = vmatpush1.bf16.msra.mxu1 %v5862_v49  ;;  %6532 = vmatpush1.bf16.msra.mxu0 %v5864_v30  ;;  %v5958_v49 = vld [vmem:[#allocation8 + $0x500] sm:$0xff]  ;;  %v5960_v30 = vld [vmem:[#allocation8 + $0x510] sm:$0xff] }
0x1153   :  { %6369 = vmatprep.subr.bf16.mxu1 %v5871_v0  ;;  %6533 = vmatprep.subr.bf16.mxu0 %v5873_v53  ;;  %v5967_v0 = vld [vmem:[#allocation8 + $0x548] sm:$0xff]  ;;  %v5969_v53 = vld [vmem:[#allocation8 + $0x558] sm:$0xff] }
0x1156   :  { %6370 = vmatpush1.bf16.msra.mxu1 %v5870_v21  ;;  %6534 = vmatpush1.bf16.msra.mxu0 %v5872_v29  ;;  %v5966_v21 = vld [vmem:[#allocation8 + $0x540] sm:$0xff]  ;;  %v5968_v29 = vld [vmem:[#allocation8 + $0x550] sm:$0xff] }
0x1157   :  { %6371 = vmatprep.subr.bf16.mxu1 %v5879_v12  ;;  %6535 = vmatprep.subr.bf16.mxu0 %v5881_v28  ;;  %v5975_v12 = vld [vmem:[#allocation8 + $0x588] sm:$0xff]  ;;  %v5977_v28 = vld [vmem:[#allocation8 + $0x598] sm:$0xff] }
0x115a   :  { %6372 = vmatpush1.bf16.msra.mxu1 %v5878_v37  ;;  %6536 = vmatpush1.bf16.msra.mxu0 %v5880_v55  ;;  %v5974_v37 = vld [vmem:[#allocation8 + $0x580] sm:$0xff]  ;;  %v5976_v55 = vld [vmem:[#allocation8 + $0x590] sm:$0xff] }
0x115b   :  { %6373 = vmatprep.subr.bf16.mxu1 %v5887_v14  ;;  %6537 = vmatprep.subr.bf16.mxu0 %v5889_v51  ;;  %v5983_v14 = vld [vmem:[#allocation8 + $0x5c8] sm:$0xff]  ;;  %v5985_v51 = vld [vmem:[#allocation8 + $0x5d8] sm:$0xff] }
0x115e   :  { %6374 = vmatpush1.bf16.msra.mxu1 %v5886_v57  ;;  %6538 = vmatpush1.bf16.msra.mxu0 %v5888_v24  ;;  %v5982_v57 = vld [vmem:[#allocation8 + $0x5c0] sm:$0xff]  ;;  %v5984_v24 = vld [vmem:[#allocation8 + $0x5d0] sm:$0xff] }
0x115f   :  { %6375 = vmatprep.subr.bf16.mxu1 %v5895_v31  ;;  %6539 = vmatprep.subr.bf16.mxu0 %v5897_v5  ;;  %v5991_v31 = vld [vmem:[#allocation8 + $0x608] sm:$0xff]  ;;  %v5993_v5 = vld [vmem:[#allocation8 + $0x618] sm:$0xff] }
0x1162   :  { %6376 = vmatpush1.bf16.msra.mxu1 %v5894_v8  ;;  %6540 = vmatpush1.bf16.msra.mxu0 %v5896_v59  ;;  %v5990_v8 = vld [vmem:[#allocation8 + $0x600] sm:$0xff]  ;;  %v5992_v59 = vld [vmem:[#allocation8 + $0x610] sm:$0xff] }
0x1163   :  { %6377 = vmatprep.subr.bf16.mxu1 %v5903_v6  ;;  %6541 = vmatprep.subr.bf16.mxu0 %v5905_v60  ;;  %v5999_v6 = vld [vmem:[#allocation8 + $0x648] sm:$0xff]  ;;  %v6001_v60 = vld [vmem:[#allocation8 + $0x658] sm:$0xff] }
0x1166   :  { %6378 = vmatpush1.bf16.msra.mxu1 %v5902_v4  ;;  %6542 = vmatpush1.bf16.msra.mxu0 %v5904_v16  ;;  %v5998_v4 = vld [vmem:[#allocation8 + $0x640] sm:$0xff]  ;;  %v6000_v16 = vld [vmem:[#allocation8 + $0x650] sm:$0xff] }
0x1167   :  { %6379 = vmatprep.subr.bf16.mxu1 %v5911_v17  ;;  %6543 = vmatprep.subr.bf16.mxu0 %v5913_v26  ;;  %v6007_v17 = vld [vmem:[#allocation8 + $0x688] sm:$0xff]  ;;  %v6009_v26 = vld [vmem:[#allocation8 + $0x698] sm:$0xff] }
0x116a   :  { %6380 = vmatpush1.bf16.msra.mxu1 %v5910_v13  ;;  %6544 = vmatpush1.bf16.msra.mxu0 %v5912_v9  ;;  %v6006_v13 = vld [vmem:[#allocation8 + $0x680] sm:$0xff]  ;;  %v6008_v9 = vld [vmem:[#allocation8 + $0x690] sm:$0xff] }
0x116b   :  { %6381 = vmatprep.subr.bf16.mxu1 %v5919_v34  ;;  %6545 = vmatprep.subr.bf16.mxu0 %v5921_v42  ;;  %v6015_v34 = vld [vmem:[#allocation8 + $0x6c8] sm:$0xff]  ;;  %v6017_v42 = vld [vmem:[#allocation8 + $0x6d8] sm:$0xff] }
0x116e   :  { %6382 = vmatpush1.bf16.msra.mxu1 %v5918_v23  ;;  %6546 = vmatpush1.bf16.msra.mxu0 %v5920_v32  ;;  %v6014_v23 = vld [vmem:[#allocation8 + $0x6c0] sm:$0xff]  ;;  %v6016_v32 = vld [vmem:[#allocation8 + $0x6d0] sm:$0xff] }
0x116f   :  { %6392 = vmatprep.subr.bf16.mxu1 %v5927_v61  ;;  %6556 = vmatprep.subr.bf16.mxu0 %v5929_v47  ;;  %v6023_v61 = vld [vmem:[#allocation8 + $0x708] sm:$0xff]  ;;  %v6025_v47 = vld [vmem:[#allocation8 + $0x718] sm:$0xff] }
0x1171   :  { %6384 = vmatmul.mubr.bf16.vlgmr.msra.gmra.mrb[48].mxu1 %v8852_v43  ;;  %6548 = vmatmul.mubr.bf16.vlgmr.msra.gmra.mrb[28].mxu0 %v8852_v43 }
0x1172   :  { %6393 = vmatpush1.bf16.msra.mxu1 %v5926_v63  ;;  %6557 = vmatpush1.bf16.msra.mxu0 %v5928_v39  ;;  %v6022_v63 = vld [vmem:[#allocation8 + $0x700] sm:$0xff]  ;;  %v6024_v39 = vld [vmem:[#allocation8 + $0x710] sm:$0xff] }
0x1173   :  { %6394 = vmatprep.subr.bf16.mxu1 %v5935_v52  ;;  %6558 = vmatprep.subr.bf16.mxu0 %v5937_v40  ;;  %v6031_v52 = vld [vmem:[#allocation8 + $0x748] sm:$0xff]  ;;  %v6033_v40 = vld [vmem:[#allocation8 + $0x758] sm:$0xff] }
0x1174   :  { %6424 = vmatprep.mubr.bf16.mxu1 %v8858_v35  ;;  %6588 = vmatprep.mubr.bf16.mxu0 %v8858_v35 }
0x1176   :  { %6395 = vmatpush1.bf16.msra.mxu1 %v5934_v46  ;;  %6559 = vmatpush1.bf16.msra.mxu0 %v5936_v45  ;;  %v6030_v46 = vld [vmem:[#allocation8 + $0x740] sm:$0xff]  ;;  %v6032_v45 = vld [vmem:[#allocation8 + $0x750] sm:$0xff] }
0x1177   :  { %6396 = vmatprep.subr.bf16.mxu1 %v5943_v33  ;;  %6560 = vmatprep.subr.bf16.mxu0 %v5945_v1  ;;  %v6039_v33 = vld [vmem:[#allocation8 + $0x788] sm:$0xff]  ;;  %v6041_v1 = vld [vmem:[#allocation8 + $0x798] sm:$0xff] }
0x117a   :  { %6397 = vmatpush1.bf16.msra.mxu1 %v5942_v50  ;;  %6561 = vmatpush1.bf16.msra.mxu0 %v5944_v3  ;;  %v6038_v50 = vld [vmem:[#allocation8 + $0x780] sm:$0xff]  ;;  %v6040_v3 = vld [vmem:[#allocation8 + $0x790] sm:$0xff] }
0x117b   :  { %6398 = vmatprep.subr.bf16.mxu1 %v5951_v48  ;;  %6562 = vmatprep.subr.bf16.mxu0 %v5953_v56  ;;  %v6047_v48 = vld [vmem:[#allocation8 + $0x7c8] sm:$0xff]  ;;  %v6049_v56 = vld [vmem:[#allocation8 + $0x7d8] sm:$0xff] }
0x117e   :  { %6399 = vmatpush1.bf16.msra.mxu1 %v5950_v22  ;;  %6563 = vmatpush1.bf16.msra.mxu0 %v5952_v38  ;;  %v6046_v22 = vld [vmem:[#allocation8 + $0x7c0] sm:$0xff]  ;;  %v6048_v38 = vld [vmem:[#allocation8 + $0x7d0] sm:$0xff] }
0x117f   :  { %6400 = vmatprep.subr.bf16.mxu1 %v5959_v54  ;;  %6564 = vmatprep.subr.bf16.mxu0 %v5961_v36  ;;  %v6055_v54 = vld [vmem:[#allocation8 + $0x808] sm:$0xff]  ;;  %v6057_v36 = vld [vmem:[#allocation8 + $0x818] sm:$0xff] }
0x1182   :  { %6401 = vmatpush1.bf16.msra.mxu1 %v5958_v49  ;;  %6565 = vmatpush1.bf16.msra.mxu0 %v5960_v30  ;;  %v6054_v49 = vld [vmem:[#allocation8 + $0x800] sm:$0xff]  ;;  %v6056_v30 = vld [vmem:[#allocation8 + $0x810] sm:$0xff] }
0x1183   :  { %6402 = vmatprep.subr.bf16.mxu1 %v5967_v0  ;;  %6566 = vmatprep.subr.bf16.mxu0 %v5969_v53  ;;  %v6063_v0 = vld [vmem:[#allocation8 + $0x848] sm:$0xff]  ;;  %v6065_v53 = vld [vmem:[#allocation8 + $0x858] sm:$0xff] }
0x1186   :  { %6403 = vmatpush1.bf16.msra.mxu1 %v5966_v21  ;;  %6567 = vmatpush1.bf16.msra.mxu0 %v5968_v29  ;;  %v6062_v21 = vld [vmem:[#allocation8 + $0x840] sm:$0xff]  ;;  %v6064_v29 = vld [vmem:[#allocation8 + $0x850] sm:$0xff] }
0x1187   :  { %6404 = vmatprep.subr.bf16.mxu1 %v5975_v12  ;;  %6568 = vmatprep.subr.bf16.mxu0 %v5977_v28  ;;  %v6071_v12 = vld [vmem:[#allocation8 + $0x888] sm:$0xff]  ;;  %v6073_v28 = vld [vmem:[#allocation8 + $0x898] sm:$0xff] }
0x118a   :  { %6405 = vmatpush1.bf16.msra.mxu1 %v5974_v37  ;;  %6569 = vmatpush1.bf16.msra.mxu0 %v5976_v55  ;;  %v6070_v37 = vld [vmem:[#allocation8 + $0x880] sm:$0xff]  ;;  %v6072_v55 = vld [vmem:[#allocation8 + $0x890] sm:$0xff] }
0x118b   :  { %6406 = vmatprep.subr.bf16.mxu1 %v5983_v14  ;;  %6570 = vmatprep.subr.bf16.mxu0 %v5985_v51  ;;  %v6079_v14 = vld [vmem:[#allocation8 + $0x8c8] sm:$0xff]  ;;  %v6081_v51 = vld [vmem:[#allocation8 + $0x8d8] sm:$0xff] }
0x118e   :  { %6407 = vmatpush1.bf16.msra.mxu1 %v5982_v57  ;;  %6571 = vmatpush1.bf16.msra.mxu0 %v5984_v24  ;;  %v6078_v57 = vld [vmem:[#allocation8 + $0x8c0] sm:$0xff]  ;;  %v6080_v24 = vld [vmem:[#allocation8 + $0x8d0] sm:$0xff] }
0x118f   :  { %6408 = vmatprep.subr.bf16.mxu1 %v5991_v31  ;;  %6572 = vmatprep.subr.bf16.mxu0 %v5993_v5  ;;  %v6087_v31 = vld [vmem:[#allocation8 + $0x908] sm:$0xff]  ;;  %v6089_v5 = vld [vmem:[#allocation8 + $0x918] sm:$0xff] }
0x1192   :  { %6409 = vmatpush1.bf16.msra.mxu1 %v5990_v8  ;;  %6573 = vmatpush1.bf16.msra.mxu0 %v5992_v59  ;;  %v6086_v8 = vld [vmem:[#allocation8 + $0x900] sm:$0xff]  ;;  %v6088_v59 = vld [vmem:[#allocation8 + $0x910] sm:$0xff] }
0x1193   :  { %6410 = vmatprep.subr.bf16.mxu1 %v5999_v6  ;;  %6574 = vmatprep.subr.bf16.mxu0 %v6001_v60  ;;  %v6095_v6 = vld [vmem:[#allocation8 + $0x948] sm:$0xff]  ;;  %v6097_v60 = vld [vmem:[#allocation8 + $0x958] sm:$0xff] }
0x1196   :  { %6411 = vmatpush1.bf16.msra.mxu1 %v5998_v4  ;;  %6575 = vmatpush1.bf16.msra.mxu0 %v6000_v16  ;;  %v6094_v4 = vld [vmem:[#allocation8 + $0x940] sm:$0xff]  ;;  %v6096_v16 = vld [vmem:[#allocation8 + $0x950] sm:$0xff] }
0x1197   :  { %6412 = vmatprep.subr.bf16.mxu1 %v6007_v17  ;;  %6576 = vmatprep.subr.bf16.mxu0 %v6009_v26  ;;  %v6103_v17 = vld [vmem:[#allocation8 + $0x988] sm:$0xff]  ;;  %v6105_v26 = vld [vmem:[#allocation8 + $0x998] sm:$0xff] }
0x119a   :  { %6413 = vmatpush1.bf16.msra.mxu1 %v6006_v13  ;;  %6577 = vmatpush1.bf16.msra.mxu0 %v6008_v9  ;;  %v6102_v13 = vld [vmem:[#allocation8 + $0x980] sm:$0xff]  ;;  %v6104_v9 = vld [vmem:[#allocation8 + $0x990] sm:$0xff] }
0x119b   :  { %6414 = vmatprep.subr.bf16.mxu1 %v6015_v34  ;;  %6578 = vmatprep.subr.bf16.mxu0 %v6017_v42  ;;  %v6111_v34 = vld [vmem:[#allocation8 + $0x9c8] sm:$0xff]  ;;  %v6113_v42 = vld [vmem:[#allocation8 + $0x9d8] sm:$0xff] }
0x119e   :  { %6415 = vmatpush1.bf16.msra.mxu1 %v6014_v23  ;;  %6579 = vmatpush1.bf16.msra.mxu0 %v6016_v32  ;;  %v6110_v23 = vld [vmem:[#allocation8 + $0x9c0] sm:$0xff]  ;;  %v6112_v32 = vld [vmem:[#allocation8 + $0x9d0] sm:$0xff] }
0x119f   :  { %6416 = vmatprep.subr.bf16.mxu1 %v6023_v61  ;;  %6580 = vmatprep.subr.bf16.mxu0 %v6025_v47  ;;  %v6119_v61 = vld [vmem:[#allocation8 + $0xa08] sm:$0xff]  ;;  %v6121_v47 = vld [vmem:[#allocation8 + $0xa18] sm:$0xff] }
0x11a2   :  { %6417 = vmatpush1.bf16.msra.mxu1 %v6022_v63  ;;  %6581 = vmatpush1.bf16.msra.mxu0 %v6024_v39  ;;  %v6118_v63 = vld [vmem:[#allocation8 + $0xa00] sm:$0xff]  ;;  %v6120_v39 = vld [vmem:[#allocation8 + $0xa10] sm:$0xff] }
0x11a3   :  { %6418 = vmatprep.subr.bf16.mxu1 %v6031_v52  ;;  %6582 = vmatprep.subr.bf16.mxu0 %v6033_v40  ;;  %v6127_v52 = vld [vmem:[#allocation8 + $0xa48] sm:$0xff]  ;;  %v6129_v40 = vld [vmem:[#allocation8 + $0xa58] sm:$0xff] }
0x11a6   :  { %6419 = vmatpush1.bf16.msra.mxu1 %v6030_v46  ;;  %6583 = vmatpush1.bf16.msra.mxu0 %v6032_v45  ;;  %v6126_v46 = vld [vmem:[#allocation8 + $0xa40] sm:$0xff]  ;;  %v6128_v45 = vld [vmem:[#allocation8 + $0xa50] sm:$0xff] }
0x11a7   :  { %6420 = vmatprep.subr.bf16.mxu1 %v6039_v33  ;;  %6584 = vmatprep.subr.bf16.mxu0 %v6041_v1  ;;  %v6135_v33 = vld [vmem:[#allocation8 + $0xa88] sm:$0xff]  ;;  %v6137_v1 = vld [vmem:[#allocation8 + $0xa98] sm:$0xff] }
0x11aa   :  { %6421 = vmatpush1.bf16.msra.mxu1 %v6038_v50  ;;  %6585 = vmatpush1.bf16.msra.mxu0 %v6040_v3  ;;  %v6134_v50 = vld [vmem:[#allocation8 + $0xa80] sm:$0xff]  ;;  %v6136_v3 = vld [vmem:[#allocation8 + $0xa90] sm:$0xff] }
0x11ab   :  { %6422 = vmatprep.subr.bf16.mxu1 %v6047_v48  ;;  %6586 = vmatprep.subr.bf16.mxu0 %v6049_v56  ;;  %v6143_v48 = vld [vmem:[#allocation8 + $0xac8] sm:$0xff]  ;;  %v6145_v56 = vld [vmem:[#allocation8 + $0xad8] sm:$0xff] }
0x11ae   :  { %6423 = vmatpush1.bf16.msra.mxu1 %v6046_v22  ;;  %6587 = vmatpush1.bf16.msra.mxu0 %v6048_v38  ;;  %v6142_v22 = vld [vmem:[#allocation8 + $0xac0] sm:$0xff]  ;;  %v6144_v38 = vld [vmem:[#allocation8 + $0xad0] sm:$0xff] }
0x11af   :  { %6433 = vmatprep.subr.bf16.mxu1 %v6055_v54  ;;  %6597 = vmatprep.subr.bf16.mxu0 %v6057_v36  ;;  %v6151_v54 = vld [vmem:[#allocation8 + $0xb08] sm:$0xff]  ;;  %v6153_v36 = vld [vmem:[#allocation8 + $0xb18] sm:$0xff] }
0x11b1   :  { %6425 = vmatmul.mubr.bf16.vlgmr.msra.gmra.mrb[48].mxu1 %v8854_v44  ;;  %6589 = vmatmul.mubr.bf16.vlgmr.msra.gmra.mrb[28].mxu0 %v8854_v44 }
0x11b2   :  { %6434 = vmatpush1.bf16.msra.mxu1 %v6054_v49  ;;  %6598 = vmatpush1.bf16.msra.mxu0 %v6056_v30  ;;  %v6150_v49 = vld [vmem:[#allocation8 + $0xb00] sm:$0xff]  ;;  %v6152_v30 = vld [vmem:[#allocation8 + $0xb10] sm:$0xff] }
0x11b3   :  { %6435 = vmatprep.subr.bf16.mxu1 %v6063_v0  ;;  %6599 = vmatprep.subr.bf16.mxu0 %v6065_v53  ;;  %v6159_v0 = vld [vmem:[#allocation8 + $0xb48] sm:$0xff]  ;;  %v6161_v53 = vld [vmem:[#allocation8 + $0xb58] sm:$0xff] }
0x11b4   :  { %6465 = vmatprep.mubr.bf16.mxu1 %v8874_v18  ;;  %6629 = vmatprep.mubr.bf16.mxu0 %v8874_v18 }
0x11b6   :  { %6436 = vmatpush1.bf16.msra.mxu1 %v6062_v21  ;;  %6600 = vmatpush1.bf16.msra.mxu0 %v6064_v29  ;;  %v6158_v21 = vld [vmem:[#allocation8 + $0xb40] sm:$0xff]  ;;  %v6160_v29 = vld [vmem:[#allocation8 + $0xb50] sm:$0xff] }
0x11b7   :  { %6437 = vmatprep.subr.bf16.mxu1 %v6071_v12  ;;  %6601 = vmatprep.subr.bf16.mxu0 %v6073_v28  ;;  %v6167_v12 = vld [vmem:[#allocation8 + $0xb88] sm:$0xff]  ;;  %v6169_v28 = vld [vmem:[#allocation8 + $0xb98] sm:$0xff] }
0x11ba   :  { %6438 = vmatpush1.bf16.msra.mxu1 %v6070_v37  ;;  %6602 = vmatpush1.bf16.msra.mxu0 %v6072_v55  ;;  %v6166_v37 = vld [vmem:[#allocation8 + $0xb80] sm:$0xff]  ;;  %v6168_v55 = vld [vmem:[#allocation8 + $0xb90] sm:$0xff] }
0x11bb   :  { %6439 = vmatprep.subr.bf16.mxu1 %v6079_v14  ;;  %6603 = vmatprep.subr.bf16.mxu0 %v6081_v51  ;;  %v6175_v14 = vld [vmem:[#allocation8 + $0xbc8] sm:$0xff]  ;;  %v6177_v51 = vld [vmem:[#allocation8 + $0xbd8] sm:$0xff] }
0x11be   :  { %6440 = vmatpush1.bf16.msra.mxu1 %v6078_v57  ;;  %6604 = vmatpush1.bf16.msra.mxu0 %v6080_v24  ;;  %v6174_v57 = vld [vmem:[#allocation8 + $0xbc0] sm:$0xff]  ;;  %v6176_v24 = vld [vmem:[#allocation8 + $0xbd0] sm:$0xff] }
0x11bf   :  { %6441 = vmatprep.subr.bf16.mxu1 %v6087_v31  ;;  %6605 = vmatprep.subr.bf16.mxu0 %v6089_v5  ;;  %v6183_v31 = vld [vmem:[#allocation8 + $0xc08] sm:$0xff]  ;;  %v6185_v5 = vld [vmem:[#allocation8 + $0xc18] sm:$0xff] }
0x11c2   :  { %6442 = vmatpush1.bf16.msra.mxu1 %v6086_v8  ;;  %6606 = vmatpush1.bf16.msra.mxu0 %v6088_v59  ;;  %v6182_v8 = vld [vmem:[#allocation8 + $0xc00] sm:$0xff]  ;;  %v6184_v59 = vld [vmem:[#allocation8 + $0xc10] sm:$0xff] }
0x11c3   :  { %6443 = vmatprep.subr.bf16.mxu1 %v6095_v6  ;;  %6607 = vmatprep.subr.bf16.mxu0 %v6097_v60  ;;  %v6191_v6 = vld [vmem:[#allocation8 + $0xc48] sm:$0xff]  ;;  %v6193_v60 = vld [vmem:[#allocation8 + $0xc58] sm:$0xff] }
0x11c6   :  { %6444 = vmatpush1.bf16.msra.mxu1 %v6094_v4  ;;  %6608 = vmatpush1.bf16.msra.mxu0 %v6096_v16  ;;  %v6190_v4 = vld [vmem:[#allocation8 + $0xc40] sm:$0xff]  ;;  %v6192_v16 = vld [vmem:[#allocation8 + $0xc50] sm:$0xff] }
0x11c7   :  { %6445 = vmatprep.subr.bf16.mxu1 %v6103_v17  ;;  %6609 = vmatprep.subr.bf16.mxu0 %v6105_v26  ;;  %v6199_v17 = vld [vmem:[#allocation8 + $0xc88] sm:$0xff]  ;;  %v6201_v26 = vld [vmem:[#allocation8 + $0xc98] sm:$0xff] }
0x11ca   :  { %6446 = vmatpush1.bf16.msra.mxu1 %v6102_v13  ;;  %6610 = vmatpush1.bf16.msra.mxu0 %v6104_v9  ;;  %v6198_v13 = vld [vmem:[#allocation8 + $0xc80] sm:$0xff]  ;;  %v6200_v9 = vld [vmem:[#allocation8 + $0xc90] sm:$0xff] }
0x11cb   :  { %6447 = vmatprep.subr.bf16.mxu1 %v6111_v34  ;;  %6611 = vmatprep.subr.bf16.mxu0 %v6113_v42  ;;  %v6207_v34 = vld [vmem:[#allocation8 + $0xcc8] sm:$0xff]  ;;  %v6209_v42 = vld [vmem:[#allocation8 + $0xcd8] sm:$0xff] }
0x11ce   :  { %6448 = vmatpush1.bf16.msra.mxu1 %v6110_v23  ;;  %6612 = vmatpush1.bf16.msra.mxu0 %v6112_v32  ;;  %v6206_v23 = vld [vmem:[#allocation8 + $0xcc0] sm:$0xff]  ;;  %v6208_v32 = vld [vmem:[#allocation8 + $0xcd0] sm:$0xff] }
0x11cf   :  { %6449 = vmatprep.subr.bf16.mxu1 %v6119_v61  ;;  %6613 = vmatprep.subr.bf16.mxu0 %v6121_v47  ;;  %v6215_v61 = vld [vmem:[#allocation8 + $0xd08] sm:$0xff]  ;;  %v6217_v47 = vld [vmem:[#allocation8 + $0xd18] sm:$0xff] }
0x11d2   :  { %6450 = vmatpush1.bf16.msra.mxu1 %v6118_v63  ;;  %6614 = vmatpush1.bf16.msra.mxu0 %v6120_v39  ;;  %v6214_v63 = vld [vmem:[#allocation8 + $0xd00] sm:$0xff]  ;;  %v6216_v39 = vld [vmem:[#allocation8 + $0xd10] sm:$0xff] }
0x11d3   :  { %6451 = vmatprep.subr.bf16.mxu1 %v6127_v52  ;;  %6615 = vmatprep.subr.bf16.mxu0 %v6129_v40  ;;  %v6223_v52 = vld [vmem:[#allocation8 + $0xd48] sm:$0xff]  ;;  %v6225_v40 = vld [vmem:[#allocation8 + $0xd58] sm:$0xff] }
0x11d6   :  { %6452 = vmatpush1.bf16.msra.mxu1 %v6126_v46  ;;  %6616 = vmatpush1.bf16.msra.mxu0 %v6128_v45  ;;  %v6222_v46 = vld [vmem:[#allocation8 + $0xd40] sm:$0xff]  ;;  %v6224_v45 = vld [vmem:[#allocation8 + $0xd50] sm:$0xff] }
0x11d7   :  { %6453 = vmatprep.subr.bf16.mxu1 %v6135_v33  ;;  %6617 = vmatprep.subr.bf16.mxu0 %v6137_v1  ;;  %v6231_v33 = vld [vmem:[#allocation8 + $0xd88] sm:$0xff]  ;;  %v6233_v1 = vld [vmem:[#allocation8 + $0xd98] sm:$0xff] }
0x11da   :  { %6454 = vmatpush1.bf16.msra.mxu1 %v6134_v50  ;;  %6618 = vmatpush1.bf16.msra.mxu0 %v6136_v3  ;;  %v6230_v50 = vld [vmem:[#allocation8 + $0xd80] sm:$0xff]  ;;  %v6232_v3 = vld [vmem:[#allocation8 + $0xd90] sm:$0xff] }
0x11db   :  { %6455 = vmatprep.subr.bf16.mxu1 %v6143_v48  ;;  %6619 = vmatprep.subr.bf16.mxu0 %v6145_v56  ;;  %v6239_v48 = vld [vmem:[#allocation8 + $0xdc8] sm:$0xff]  ;;  %v6241_v56 = vld [vmem:[#allocation8 + $0xdd8] sm:$0xff] }
0x11de   :  { %6456 = vmatpush1.bf16.msra.mxu1 %v6142_v22  ;;  %6620 = vmatpush1.bf16.msra.mxu0 %v6144_v38  ;;  %v6238_v22 = vld [vmem:[#allocation8 + $0xdc0] sm:$0xff]  ;;  %v6240_v38 = vld [vmem:[#allocation8 + $0xdd0] sm:$0xff] }
0x11df   :  { %6457 = vmatprep.subr.bf16.mxu1 %v6151_v54  ;;  %6621 = vmatprep.subr.bf16.mxu0 %v6153_v36  ;;  %v6247_v54 = vld [vmem:[#allocation8 + $0xe08] sm:$0xff]  ;;  %v6249_v36 = vld [vmem:[#allocation8 + $0xe18] sm:$0xff] }
0x11e2   :  { %6458 = vmatpush1.bf16.msra.mxu1 %v6150_v49  ;;  %6622 = vmatpush1.bf16.msra.mxu0 %v6152_v30  ;;  %v6246_v49 = vld [vmem:[#allocation8 + $0xe00] sm:$0xff]  ;;  %v6248_v30 = vld [vmem:[#allocation8 + $0xe10] sm:$0xff] }
0x11e3   :  { %6459 = vmatprep.subr.bf16.mxu1 %v6159_v0  ;;  %6623 = vmatprep.subr.bf16.mxu0 %v6161_v53  ;;  %v6255_v0 = vld [vmem:[#allocation8 + $0xe48] sm:$0xff]  ;;  %v6257_v53 = vld [vmem:[#allocation8 + $0xe58] sm:$0xff] }
0x11e6   :  { %6460 = vmatpush1.bf16.msra.mxu1 %v6158_v21  ;;  %6624 = vmatpush1.bf16.msra.mxu0 %v6160_v29  ;;  %v6254_v21 = vld [vmem:[#allocation8 + $0xe40] sm:$0xff]  ;;  %v6256_v29 = vld [vmem:[#allocation8 + $0xe50] sm:$0xff] }
0x11e7   :  { %6461 = vmatprep.subr.bf16.mxu1 %v6167_v12  ;;  %6625 = vmatprep.subr.bf16.mxu0 %v6169_v28  ;;  %v6263_v12 = vld [vmem:[#allocation8 + $0xe88] sm:$0xff]  ;;  %v6265_v28 = vld [vmem:[#allocation8 + $0xe98] sm:$0xff] }
0x11ea   :  { %6462 = vmatpush1.bf16.msra.mxu1 %v6166_v37  ;;  %6626 = vmatpush1.bf16.msra.mxu0 %v6168_v55  ;;  %v6262_v37 = vld [vmem:[#allocation8 + $0xe80] sm:$0xff]  ;;  %v6264_v55 = vld [vmem:[#allocation8 + $0xe90] sm:$0xff] }
0x11eb   :  { %6463 = vmatprep.subr.bf16.mxu1 %v6175_v14  ;;  %6627 = vmatprep.subr.bf16.mxu0 %v6177_v51  ;;  %v6271_v14 = vld [vmem:[#allocation8 + $0xec8] sm:$0xff]  ;;  %v6273_v51 = vld [vmem:[#allocation8 + $0xed8] sm:$0xff] }
0x11ee   :  { %6464 = vmatpush1.bf16.msra.mxu1 %v6174_v57  ;;  %6628 = vmatpush1.bf16.msra.mxu0 %v6176_v24  ;;  %v6270_v57 = vld [vmem:[#allocation8 + $0xec0] sm:$0xff]  ;;  %v6272_v24 = vld [vmem:[#allocation8 + $0xed0] sm:$0xff] }
0x11ef   :  { %6474 = vmatprep.subr.bf16.mxu1 %v6183_v31  ;;  %6638 = vmatprep.subr.bf16.mxu0 %v6185_v5  ;;  %v6279_v31 = vld [vmem:[#allocation8 + $0xf08] sm:$0xff]  ;;  %v6281_v5 = vld [vmem:[#allocation8 + $0xf18] sm:$0xff] }
0x11f1   :  { %6466 = vmatmul.mubr.bf16.vlgmr.msra.gmra.mrb[48].mxu1 %v8870_v2  ;;  %6630 = vmatmul.mubr.bf16.vlgmr.msra.gmra.mrb[28].mxu0 %v8870_v2 }
0x11f2   :  { %6475 = vmatpush1.bf16.msra.mxu1 %v6182_v8  ;;  %6639 = vmatpush1.bf16.msra.mxu0 %v6184_v59  ;;  %v6278_v8 = vld [vmem:[#allocation8 + $0xf00] sm:$0xff]  ;;  %v6280_v59 = vld [vmem:[#allocation8 + $0xf10] sm:$0xff] }
0x11f3   :  { %6476 = vmatprep.subr.bf16.mxu1 %v6191_v6  ;;  %6640 = vmatprep.subr.bf16.mxu0 %v6193_v60  ;;  %v6287_v6 = vld [vmem:[#allocation8 + $0xf48] sm:$0xff]  ;;  %v6289_v60 = vld [vmem:[#allocation8 + $0xf58] sm:$0xff] }
0x11f4   :  { %6506 = vmatprep.mubr.bf16.mxu1 %v8876_v41  ;;  %6670 = vmatprep.mubr.bf16.mxu0 %v8876_v41 }
0x11f6   :  { %6477 = vmatpush1.bf16.msra.mxu1 %v6190_v4  ;;  %6641 = vmatpush1.bf16.msra.mxu0 %v6192_v16  ;;  %v6286_v4 = vld [vmem:[#allocation8 + $0xf40] sm:$0xff]  ;;  %v6288_v16 = vld [vmem:[#allocation8 + $0xf50] sm:$0xff] }
0x11f7   :  { %6478 = vmatprep.subr.bf16.mxu1 %v6199_v17  ;;  %6642 = vmatprep.subr.bf16.mxu0 %v6201_v26  ;;  %v6295_v17 = vld [vmem:[#allocation8 + $0xf88] sm:$0xff]  ;;  %v6297_v26 = vld [vmem:[#allocation8 + $0xf98] sm:$0xff] }
0x11fa   :  { %6479 = vmatpush1.bf16.msra.mxu1 %v6198_v13  ;;  %6643 = vmatpush1.bf16.msra.mxu0 %v6200_v9  ;;  %v6294_v13 = vld [vmem:[#allocation8 + $0xf80] sm:$0xff]  ;;  %v6296_v9 = vld [vmem:[#allocation8 + $0xf90] sm:$0xff] }
0x11fb   :  { %6480 = vmatprep.subr.bf16.mxu1 %v6207_v34  ;;  %6644 = vmatprep.subr.bf16.mxu0 %v6209_v42  ;;  %v6303_v34 = vld [vmem:[#allocation8 + $0xfc8] sm:$0xff]  ;;  %v6305_v42 = vld [vmem:[#allocation8 + $0xfd8] sm:$0xff] }
0x11fe   :  { %6481 = vmatpush1.bf16.msra.mxu1 %v6206_v23  ;;  %6645 = vmatpush1.bf16.msra.mxu0 %v6208_v32  ;;  %v6302_v23 = vld [vmem:[#allocation8 + $0xfc0] sm:$0xff]  ;;  %v6304_v32 = vld [vmem:[#allocation8 + $0xfd0] sm:$0xff] }
0x11ff   :  { %6482 = vmatprep.subr.bf16.mxu1 %v6215_v61  ;;  %6646 = vmatprep.subr.bf16.mxu0 %v6217_v47  ;;  %v5803_v61 = vld [vmem:[#allocation8 + $0x28] sm:$0xff]  ;;  %v5805_v47 = vld [vmem:[#allocation8 + $0x38] sm:$0xff] }
0x1202   :  { %6483 = vmatpush1.bf16.msra.mxu1 %v6214_v63  ;;  %6647 = vmatpush1.bf16.msra.mxu0 %v6216_v39  ;;  %v5802_v63 = vld [vmem:[#allocation8 + $0x20] sm:$0xff]  ;;  %v5804_v39 = vld [vmem:[#allocation8 + $0x30] sm:$0xff] }
0x1203   :  { %6484 = vmatprep.subr.bf16.mxu1 %v6223_v52  ;;  %6648 = vmatprep.subr.bf16.mxu0 %v6225_v40  ;;  %v5811_v52 = vld [vmem:[#allocation8 + $0x68] sm:$0xff]  ;;  %v5813_v40 = vld [vmem:[#allocation8 + $0x78] sm:$0xff] }
0x1206   :  { %6485 = vmatpush1.bf16.msra.mxu1 %v6222_v46  ;;  %6649 = vmatpush1.bf16.msra.mxu0 %v6224_v45  ;;  %v5810_v46 = vld [vmem:[#allocation8 + $0x60] sm:$0xff]  ;;  %v5812_v45 = vld [vmem:[#allocation8 + $0x70] sm:$0xff] }
0x1207   :  { %6486 = vmatprep.subr.bf16.mxu1 %v6231_v33  ;;  %6650 = vmatprep.subr.bf16.mxu0 %v6233_v1  ;;  %v5819_v33 = vld [vmem:[#allocation8 + $0xa8] sm:$0xff]  ;;  %v5821_v1 = vld [vmem:[#allocation8 + $0xb8] sm:$0xff] }
0x120a   :  { %6487 = vmatpush1.bf16.msra.mxu1 %v6230_v50  ;;  %6651 = vmatpush1.bf16.msra.mxu0 %v6232_v3  ;;  %v5818_v50 = vld [vmem:[#allocation8 + $0xa0] sm:$0xff]  ;;  %v5820_v3 = vld [vmem:[#allocation8 + $0xb0] sm:$0xff] }
0x120b   :  { %6488 = vmatprep.subr.bf16.mxu1 %v6239_v48  ;;  %6652 = vmatprep.subr.bf16.mxu0 %v6241_v56  ;;  %v5827_v48 = vld [vmem:[#allocation8 + $0xe8] sm:$0xff]  ;;  %v5829_v56 = vld [vmem:[#allocation8 + $0xf8] sm:$0xff] }
0x120e   :  { %6489 = vmatpush1.bf16.msra.mxu1 %v6238_v22  ;;  %6653 = vmatpush1.bf16.msra.mxu0 %v6240_v38  ;;  %v5826_v22 = vld [vmem:[#allocation8 + $0xe0] sm:$0xff]  ;;  %v5828_v38 = vld [vmem:[#allocation8 + $0xf0] sm:$0xff] }
0x120f   :  { %6490 = vmatprep.subr.bf16.mxu1 %v6247_v54  ;;  %6654 = vmatprep.subr.bf16.mxu0 %v6249_v36  ;;  %v5835_v54 = vld [vmem:[#allocation8 + $0x128] sm:$0xff]  ;;  %v5837_v36 = vld [vmem:[#allocation8 + $0x138] sm:$0xff] }
0x1212   :  { %6491 = vmatpush1.bf16.msra.mxu1 %v6246_v49  ;;  %6655 = vmatpush1.bf16.msra.mxu0 %v6248_v30  ;;  %v5836_v49 = vld [vmem:[#allocation8 + $0x130] sm:$0xff]  ;;  %v5843_v30 = vld [vmem:[#allocation8 + $0x168] sm:$0xff] }
0x1213   :  { %6492 = vmatprep.subr.bf16.mxu1 %v6255_v0  ;;  %6656 = vmatprep.subr.bf16.mxu0 %v6257_v53  ;;  %v5845_v0 = vld [vmem:[#allocation8 + $0x178] sm:$0xff]  ;;  %v5842_v53 = vld [vmem:[#allocation8 + $0x160] sm:$0xff] }
0x1216   :  { %6493 = vmatpush1.bf16.msra.mxu1 %v6254_v21  ;;  %6657 = vmatpush1.bf16.msra.mxu0 %v6256_v29  ;;  %v5844_v21 = vld [vmem:[#allocation8 + $0x170] sm:$0xff]  ;;  %v5851_v29 = vld [vmem:[#allocation8 + $0x1a8] sm:$0xff] }
0x1217   :  { %6494 = vmatprep.subr.bf16.mxu1 %v6263_v12  ;;  %6658 = vmatprep.subr.bf16.mxu0 %v6265_v28  ;;  %v5853_v12 = vld [vmem:[#allocation8 + $0x1b8] sm:$0xff]  ;;  %v5850_v28 = vld [vmem:[#allocation8 + $0x1a0] sm:$0xff] }
0x121a   :  { %6495 = vmatpush1.bf16.msra.mxu1 %v6262_v37  ;;  %6659 = vmatpush1.bf16.msra.mxu0 %v6264_v55  ;;  %v5852_v37 = vld [vmem:[#allocation8 + $0x1b0] sm:$0xff]  ;;  %v5859_v55 = vld [vmem:[#allocation8 + $0x1e8] sm:$0xff] }
0x121b   :  { %6496 = vmatprep.subr.bf16.mxu1 %v6271_v14  ;;  %6660 = vmatprep.subr.bf16.mxu0 %v6273_v51  ;;  %v5861_v14 = vld [vmem:[#allocation8 + $0x1f8] sm:$0xff]  ;;  %v5858_v51 = vld [vmem:[#allocation8 + $0x1e0] sm:$0xff] }
0x121e   :  { %6497 = vmatpush1.bf16.msra.mxu1 %v6270_v57  ;;  %6661 = vmatpush1.bf16.msra.mxu0 %v6272_v24  ;;  %v5860_v57 = vld [vmem:[#allocation8 + $0x1f0] sm:$0xff]  ;;  %v5867_v24 = vld [vmem:[#allocation8 + $0x228] sm:$0xff] }
0x121f   :  { %6498 = vmatprep.subr.bf16.mxu1 %v6279_v31  ;;  %6662 = vmatprep.subr.bf16.mxu0 %v6281_v5  ;;  %v5869_v31 = vld [vmem:[#allocation8 + $0x238] sm:$0xff]  ;;  %v5866_v5 = vld [vmem:[#allocation8 + $0x220] sm:$0xff] }
0x1222   :  { %6499 = vmatpush1.bf16.msra.mxu1 %v6278_v8  ;;  %6663 = vmatpush1.bf16.msra.mxu0 %v6280_v59  ;;  %v5868_v8 = vld [vmem:[#allocation8 + $0x230] sm:$0xff]  ;;  %v5875_v59 = vld [vmem:[#allocation8 + $0x268] sm:$0xff] }
0x1223   :  { %6500 = vmatprep.subr.bf16.mxu1 %v6287_v6  ;;  %6664 = vmatprep.subr.bf16.mxu0 %v6289_v60  ;;  %v5877_v6 = vld [vmem:[#allocation8 + $0x278] sm:$0xff]  ;;  %v5874_v60 = vld [vmem:[#allocation8 + $0x260] sm:$0xff] }
0x1226   :  { %6501 = vmatpush1.bf16.msra.mxu1 %v6286_v4  ;;  %6665 = vmatpush1.bf16.msra.mxu0 %v6288_v16  ;;  %v5876_v4 = vld [vmem:[#allocation8 + $0x270] sm:$0xff]  ;;  %v5883_v16 = vld [vmem:[#allocation8 + $0x2a8] sm:$0xff] }
0x1227   :  { %6502 = vmatprep.subr.bf16.mxu1 %v6295_v17  ;;  %6666 = vmatprep.subr.bf16.mxu0 %v6297_v26  ;;  %v5885_v17 = vld [vmem:[#allocation8 + $0x2b8] sm:$0xff]  ;;  %v5882_v26 = vld [vmem:[#allocation8 + $0x2a0] sm:$0xff] }
0x122a   :  { %6503 = vmatpush1.bf16.msra.mxu1 %v6294_v13  ;;  %6667 = vmatpush1.bf16.msra.mxu0 %v6296_v9  ;;  %v5884_v13 = vld [vmem:[#allocation8 + $0x2b0] sm:$0xff]  ;;  %v5891_v9 = vld [vmem:[#allocation8 + $0x2e8] sm:$0xff] }
0x122b   :  { %6504 = vmatprep.subr.bf16.mxu1 %v6303_v34  ;;  %6668 = vmatprep.subr.bf16.mxu0 %v6305_v42  ;;  %v5893_v34 = vld [vmem:[#allocation8 + $0x2f8] sm:$0xff]  ;;  %v5890_v42 = vld [vmem:[#allocation8 + $0x2e0] sm:$0xff] }
0x122e   :  { %6505 = vmatpush1.bf16.msra.mxu1 %v6302_v23  ;;  %6669 = vmatpush1.bf16.msra.mxu0 %v6304_v32  ;;  %v5892_v23 = vld [vmem:[#allocation8 + $0x2f0] sm:$0xff]  ;;  %v5899_v32 = vld [vmem:[#allocation8 + $0x328] sm:$0xff] }
0x122f   :  { %6679 = vmatprep.subr.bf16.mxu1 %v5803_v61  ;;  %6843 = vmatprep.subr.bf16.mxu0 %v5805_v47  ;;  %v5901_v61 = vld [vmem:[#allocation8 + $0x338] sm:$0xff]  ;;  %v5898_v47 = vld [vmem:[#allocation8 + $0x320] sm:$0xff] }
0x1231   :  { %6507 = vmatmul.mubr.bf16.vlgmr.msra.gmra.mrb[48].mxu1 %v8872_v27  ;;  %6671 = vmatmul.mubr.bf16.vlgmr.msra.gmra.mrb[28].mxu0 %v8872_v27 }
0x1232   :  { %6680 = vmatpush1.bf16.msra.mxu1 %v5802_v63  ;;  %6844 = vmatpush1.bf16.msra.mxu0 %v5804_v39  ;;  %v5900_v63 = vld [vmem:[#allocation8 + $0x330] sm:$0xff]  ;;  %v5907_v39 = vld [vmem:[#allocation8 + $0x368] sm:$0xff] }
0x1233   :  { %6681 = vmatprep.subr.bf16.mxu1 %v5811_v52  ;;  %6845 = vmatprep.subr.bf16.mxu0 %v5813_v40  ;;  %v5909_v52 = vld [vmem:[#allocation8 + $0x378] sm:$0xff]  ;;  %v5906_v40 = vld [vmem:[#allocation8 + $0x360] sm:$0xff] }
0x1234   :  { %6711 = vmatprep.mubr.bf16.mxu1 %v8856_v25  ;;  %6875 = vmatprep.mubr.bf16.mxu0 %v8856_v25  ;;  %v5834_v25 = vld [vmem:[#allocation8 + $0x120] sm:$0xff] }
0x1236   :  { %6682 = vmatpush1.bf16.msra.mxu1 %v5810_v46  ;;  %6846 = vmatpush1.bf16.msra.mxu0 %v5812_v45  ;;  %v5908_v46 = vld [vmem:[#allocation8 + $0x370] sm:$0xff]  ;;  %v5915_v45 = vld [vmem:[#allocation8 + $0x3a8] sm:$0xff] }
0x1237   :  { %6683 = vmatprep.subr.bf16.mxu1 %v5819_v33  ;;  %6847 = vmatprep.subr.bf16.mxu0 %v5821_v1  ;;  %v5917_v33 = vld [vmem:[#allocation8 + $0x3b8] sm:$0xff]  ;;  %v5914_v1 = vld [vmem:[#allocation8 + $0x3a0] sm:$0xff] }
0x123a   :  { %6684 = vmatpush1.bf16.msra.mxu1 %v5818_v50  ;;  %6848 = vmatpush1.bf16.msra.mxu0 %v5820_v3  ;;  %v5916_v50 = vld [vmem:[#allocation8 + $0x3b0] sm:$0xff]  ;;  %v5923_v3 = vld [vmem:[#allocation8 + $0x3e8] sm:$0xff] }
0x123b   :  { %6685 = vmatprep.subr.bf16.mxu1 %v5827_v48  ;;  %6849 = vmatprep.subr.bf16.mxu0 %v5829_v56  ;;  %v5925_v48 = vld [vmem:[#allocation8 + $0x3f8] sm:$0xff]  ;;  %v5922_v56 = vld [vmem:[#allocation8 + $0x3e0] sm:$0xff] }
0x123e   :  { %6686 = vmatpush1.bf16.msra.mxu1 %v5826_v22  ;;  %6850 = vmatpush1.bf16.msra.mxu0 %v5828_v38  ;;  %v5924_v22 = vld [vmem:[#allocation8 + $0x3f0] sm:$0xff]  ;;  %v5931_v38 = vld [vmem:[#allocation8 + $0x428] sm:$0xff] }
0x123f   :  { %6687 = vmatprep.subr.bf16.mxu1 %v5835_v54  ;;  %6851 = vmatprep.subr.bf16.mxu0 %v5837_v36  ;;  %v5933_v54 = vld [vmem:[#allocation8 + $0x438] sm:$0xff]  ;;  %v5930_v36 = vld [vmem:[#allocation8 + $0x420] sm:$0xff] }
0x1242   :  { %6688 = vmatpush1.bf16.msra.mxu1 %v5834_v25  ;;  %6852 = vmatpush1.bf16.msra.mxu0 %v5836_v49  ;;  %v5932_v25 = vld [vmem:[#allocation8 + $0x430] sm:$0xff]  ;;  %v5939_v49 = vld [vmem:[#allocation8 + $0x468] sm:$0xff] }
0x1243   :  { %6689 = vmatprep.subr.bf16.mxu1 %v5843_v30  ;;  %6853 = vmatprep.subr.bf16.mxu0 %v5845_v0  ;;  %v5941_v30 = vld [vmem:[#allocation8 + $0x478] sm:$0xff]  ;;  %v5938_v0 = vld [vmem:[#allocation8 + $0x460] sm:$0xff] }
0x1246   :  { %6690 = vmatpush1.bf16.msra.mxu1 %v5842_v53  ;;  %6854 = vmatpush1.bf16.msra.mxu0 %v5844_v21  ;;  %v5940_v53 = vld [vmem:[#allocation8 + $0x470] sm:$0xff]  ;;  %v5947_v21 = vld [vmem:[#allocation8 + $0x4a8] sm:$0xff] }
0x1247   :  { %6691 = vmatprep.subr.bf16.mxu1 %v5851_v29  ;;  %6855 = vmatprep.subr.bf16.mxu0 %v5853_v12  ;;  %v5949_v29 = vld [vmem:[#allocation8 + $0x4b8] sm:$0xff]  ;;  %v5946_v12 = vld [vmem:[#allocation8 + $0x4a0] sm:$0xff] }
0x124a   :  { %6692 = vmatpush1.bf16.msra.mxu1 %v5850_v28  ;;  %6856 = vmatpush1.bf16.msra.mxu0 %v5852_v37  ;;  %v5948_v28 = vld [vmem:[#allocation8 + $0x4b0] sm:$0xff]  ;;  %v5955_v37 = vld [vmem:[#allocation8 + $0x4e8] sm:$0xff] }
0x124b   :  { %6693 = vmatprep.subr.bf16.mxu1 %v5859_v55  ;;  %6857 = vmatprep.subr.bf16.mxu0 %v5861_v14  ;;  %v5954_v55 = vld [vmem:[#allocation8 + $0x4e0] sm:$0xff]  ;;  %v5956_v14 = vld [vmem:[#allocation8 + $0x4f0] sm:$0xff] }
0x124e   :  { %6694 = vmatpush1.bf16.msra.mxu1 %v5858_v51  ;;  %6858 = vmatpush1.bf16.msra.mxu0 %v5860_v57  ;;  %v5963_v51 = vld [vmem:[#allocation8 + $0x528] sm:$0xff]  ;;  %v5965_v57 = vld [vmem:[#allocation8 + $0x538] sm:$0xff] }
0x124f   :  { %6695 = vmatprep.subr.bf16.mxu1 %v5867_v24  ;;  %6859 = vmatprep.subr.bf16.mxu0 %v5869_v31  ;;  %v5964_v24 = vld [vmem:[#allocation8 + $0x530] sm:$0xff]  ;;  %v5971_v31 = vld [vmem:[#allocation8 + $0x568] sm:$0xff] }
0x1252   :  { %6696 = vmatpush1.bf16.msra.mxu1 %v5866_v5  ;;  %6860 = vmatpush1.bf16.msra.mxu0 %v5868_v8  ;;  %v5973_v5 = vld [vmem:[#allocation8 + $0x578] sm:$0xff]  ;;  %v5970_v8 = vld [vmem:[#allocation8 + $0x560] sm:$0xff] }
0x1253   :  { %6697 = vmatprep.subr.bf16.mxu1 %v5875_v59  ;;  %6861 = vmatprep.subr.bf16.mxu0 %v5877_v6  ;;  %v5972_v59 = vld [vmem:[#allocation8 + $0x570] sm:$0xff]  ;;  %v5979_v6 = vld [vmem:[#allocation8 + $0x5a8] sm:$0xff] }
0x1256   :  { %6698 = vmatpush1.bf16.msra.mxu1 %v5874_v60  ;;  %6862 = vmatpush1.bf16.msra.mxu0 %v5876_v4  ;;  %v5981_v60 = vld [vmem:[#allocation8 + $0x5b8] sm:$0xff]  ;;  %v5978_v4 = vld [vmem:[#allocation8 + $0x5a0] sm:$0xff] }
0x1257   :  { %6699 = vmatprep.subr.bf16.mxu1 %v5883_v16  ;;  %6863 = vmatprep.subr.bf16.mxu0 %v5885_v17  ;;  %v5980_v16 = vld [vmem:[#allocation8 + $0x5b0] sm:$0xff]  ;;  %v5987_v17 = vld [vmem:[#allocation8 + $0x5e8] sm:$0xff] }
0x125a   :  { %6700 = vmatpush1.bf16.msra.mxu1 %v5882_v26  ;;  %6864 = vmatpush1.bf16.msra.mxu0 %v5884_v13  ;;  %v5989_v26 = vld [vmem:[#allocation8 + $0x5f8] sm:$0xff]  ;;  %v5986_v13 = vld [vmem:[#allocation8 + $0x5e0] sm:$0xff] }
0x125b   :  { %6701 = vmatprep.subr.bf16.mxu1 %v5891_v9  ;;  %6865 = vmatprep.subr.bf16.mxu0 %v5893_v34  ;;  %v5988_v9 = vld [vmem:[#allocation8 + $0x5f0] sm:$0xff]  ;;  %v5995_v34 = vld [vmem:[#allocation8 + $0x628] sm:$0xff] }
0x125e   :  { %6702 = vmatpush1.bf16.msra.mxu1 %v5890_v42  ;;  %6866 = vmatpush1.bf16.msra.mxu0 %v5892_v23  ;;  %v5997_v42 = vld [vmem:[#allocation8 + $0x638] sm:$0xff]  ;;  %v5994_v23 = vld [vmem:[#allocation8 + $0x620] sm:$0xff] }
0x125f   :  { %6703 = vmatprep.subr.bf16.mxu1 %v5899_v32  ;;  %6867 = vmatprep.subr.bf16.mxu0 %v5901_v61  ;;  %v5996_v32 = vld [vmem:[#allocation8 + $0x630] sm:$0xff]  ;;  %v6003_v61 = vld [vmem:[#allocation8 + $0x668] sm:$0xff] }
0x1262   :  { %6704 = vmatpush1.bf16.msra.mxu1 %v5898_v47  ;;  %6868 = vmatpush1.bf16.msra.mxu0 %v5900_v63  ;;  %v6005_v47 = vld [vmem:[#allocation8 + $0x678] sm:$0xff]  ;;  %v6002_v63 = vld [vmem:[#allocation8 + $0x660] sm:$0xff] }
0x1263   :  { %6705 = vmatprep.subr.bf16.mxu1 %v5907_v39  ;;  %6869 = vmatprep.subr.bf16.mxu0 %v5909_v52  ;;  %v6004_v39 = vld [vmem:[#allocation8 + $0x670] sm:$0xff]  ;;  %v6011_v52 = vld [vmem:[#allocation8 + $0x6a8] sm:$0xff] }
0x1266   :  { %6706 = vmatpush1.bf16.msra.mxu1 %v5906_v40  ;;  %6870 = vmatpush1.bf16.msra.mxu0 %v5908_v46  ;;  %v6013_v40 = vld [vmem:[#allocation8 + $0x6b8] sm:$0xff]  ;;  %v6010_v46 = vld [vmem:[#allocation8 + $0x6a0] sm:$0xff] }
0x1267   :  { %6707 = vmatprep.subr.bf16.mxu1 %v5915_v45  ;;  %6871 = vmatprep.subr.bf16.mxu0 %v5917_v33  ;;  %v6012_v45 = vld [vmem:[#allocation8 + $0x6b0] sm:$0xff]  ;;  %v6019_v33 = vld [vmem:[#allocation8 + $0x6e8] sm:$0xff] }
0x126a   :  { %6708 = vmatpush1.bf16.msra.mxu1 %v5914_v1  ;;  %6872 = vmatpush1.bf16.msra.mxu0 %v5916_v50  ;;  %v6021_v1 = vld [vmem:[#allocation8 + $0x6f8] sm:$0xff]  ;;  %v6018_v50 = vld [vmem:[#allocation8 + $0x6e0] sm:$0xff] }
0x126b   :  { %6709 = vmatprep.subr.bf16.mxu1 %v5923_v3  ;;  %6873 = vmatprep.subr.bf16.mxu0 %v5925_v48  ;;  %v6020_v3 = vld [vmem:[#allocation8 + $0x6f0] sm:$0xff]  ;;  %v6027_v48 = vld [vmem:[#allocation8 + $0x728] sm:$0xff] }
0x126e   :  { %6710 = vmatpush1.bf16.msra.mxu1 %v5922_v56  ;;  %6874 = vmatpush1.bf16.msra.mxu0 %v5924_v22  ;;  %v6029_v56 = vld [vmem:[#allocation8 + $0x738] sm:$0xff]  ;;  %v6026_v22 = vld [vmem:[#allocation8 + $0x720] sm:$0xff] }
0x126f   :  { %6720 = vmatprep.subr.bf16.mxu1 %v5931_v38  ;;  %6884 = vmatprep.subr.bf16.mxu0 %v5933_v54  ;;  %v6028_v38 = vld [vmem:[#allocation8 + $0x730] sm:$0xff]  ;;  %v6035_v54 = vld [vmem:[#allocation8 + $0x768] sm:$0xff] }
0x1271   :  { %6712 = vmatmul.mubr.bf16.vlgmr.msra.gmra.mrb[52].mxu1 %v8852_v43  ;;  %6876 = vmatmul.mubr.bf16.vlgmr.msra.gmra.mrb[32].mxu0 %v8852_v43  ;;  %v5957_v43 = vld [vmem:[#allocation8 + $0x4f8] sm:$0xff] }
0x1272   :  { %6721 = vmatpush1.bf16.msra.mxu1 %v5930_v36  ;;  %6885 = vmatpush1.bf16.msra.mxu0 %v5932_v25  ;;  %v6037_v36 = vld [vmem:[#allocation8 + $0x778] sm:$0xff]  ;;  %v6034_v25 = vld [vmem:[#allocation8 + $0x760] sm:$0xff] }
0x1273   :  { %6722 = vmatprep.subr.bf16.mxu1 %v5939_v49  ;;  %6886 = vmatprep.subr.bf16.mxu0 %v5941_v30  ;;  %v6036_v49 = vld [vmem:[#allocation8 + $0x770] sm:$0xff]  ;;  %v6043_v30 = vld [vmem:[#allocation8 + $0x7a8] sm:$0xff] }
0x1274   :  { %6752 = vmatprep.mubr.bf16.mxu1 %v8858_v35  ;;  %6916 = vmatprep.mubr.bf16.mxu0 %v8858_v35  ;;  %v5962_v35 = vld [vmem:[#allocation8 + $0x520] sm:$0xff] }
0x1276   :  { %6723 = vmatpush1.bf16.msra.mxu1 %v5938_v0  ;;  %6887 = vmatpush1.bf16.msra.mxu0 %v5940_v53  ;;  %v6045_v0 = vld [vmem:[#allocation8 + $0x7b8] sm:$0xff]  ;;  %v6042_v53 = vld [vmem:[#allocation8 + $0x7a0] sm:$0xff] }
0x1277   :  { %6724 = vmatprep.subr.bf16.mxu1 %v5947_v21  ;;  %6888 = vmatprep.subr.bf16.mxu0 %v5949_v29  ;;  %v6044_v21 = vld [vmem:[#allocation8 + $0x7b0] sm:$0xff]  ;;  %v6051_v29 = vld [vmem:[#allocation8 + $0x7e8] sm:$0xff] }
0x127a   :  { %6725 = vmatpush1.bf16.msra.mxu1 %v5946_v12  ;;  %6889 = vmatpush1.bf16.msra.mxu0 %v5948_v28  ;;  %v6053_v12 = vld [vmem:[#allocation8 + $0x7f8] sm:$0xff]  ;;  %v6050_v28 = vld [vmem:[#allocation8 + $0x7e0] sm:$0xff] }
0x127b   :  { %6726 = vmatprep.subr.bf16.mxu1 %v5955_v37  ;;  %6890 = vmatprep.subr.bf16.mxu0 %v5957_v43  ;;  %v6052_v37 = vld [vmem:[#allocation8 + $0x7f0] sm:$0xff]  ;;  %v6059_v43 = vld [vmem:[#allocation8 + $0x828] sm:$0xff] }
0x127e   :  { %6727 = vmatpush1.bf16.msra.mxu1 %v5954_v55  ;;  %6891 = vmatpush1.bf16.msra.mxu0 %v5956_v14  ;;  %v6061_v55 = vld [vmem:[#allocation8 + $0x838] sm:$0xff]  ;;  %v6058_v14 = vld [vmem:[#allocation8 + $0x820] sm:$0xff] }
0x127f   :  { %6728 = vmatprep.subr.bf16.mxu1 %v5963_v51  ;;  %6892 = vmatprep.subr.bf16.mxu0 %v5965_v57  ;;  %v6060_v51 = vld [vmem:[#allocation8 + $0x830] sm:$0xff]  ;;  %v6067_v57 = vld [vmem:[#allocation8 + $0x868] sm:$0xff] }
0x1282   :  { %6729 = vmatpush1.bf16.msra.mxu1 %v5962_v35  ;;  %6893 = vmatpush1.bf16.msra.mxu0 %v5964_v24  ;;  %v6069_v35 = vld [vmem:[#allocation8 + $0x878] sm:$0xff]  ;;  %v6066_v24 = vld [vmem:[#allocation8 + $0x860] sm:$0xff] }
0x1283   :  { %6730 = vmatprep.subr.bf16.mxu1 %v5971_v31  ;;  %6894 = vmatprep.subr.bf16.mxu0 %v5973_v5  ;;  %v6068_v31 = vld [vmem:[#allocation8 + $0x870] sm:$0xff]  ;;  %v6075_v5 = vld [vmem:[#allocation8 + $0x8a8] sm:$0xff] }
0x1286   :  { %6731 = vmatpush1.bf16.msra.mxu1 %v5970_v8  ;;  %6895 = vmatpush1.bf16.msra.mxu0 %v5972_v59  ;;  %v6077_v8 = vld [vmem:[#allocation8 + $0x8b8] sm:$0xff]  ;;  %v6074_v59 = vld [vmem:[#allocation8 + $0x8a0] sm:$0xff] }
0x1287   :  { %6732 = vmatprep.subr.bf16.mxu1 %v5979_v6  ;;  %6896 = vmatprep.subr.bf16.mxu0 %v5981_v60  ;;  %v6076_v6 = vld [vmem:[#allocation8 + $0x8b0] sm:$0xff]  ;;  %v6083_v60 = vld [vmem:[#allocation8 + $0x8e8] sm:$0xff] }
0x128a   :  { %6733 = vmatpush1.bf16.msra.mxu1 %v5978_v4  ;;  %6897 = vmatpush1.bf16.msra.mxu0 %v5980_v16  ;;  %v6082_v4 = vld [vmem:[#allocation8 + $0x8e0] sm:$0xff]  ;;  %v6084_v16 = vld [vmem:[#allocation8 + $0x8f0] sm:$0xff] }
0x128b   :  { %6734 = vmatprep.subr.bf16.mxu1 %v5987_v17  ;;  %6898 = vmatprep.subr.bf16.mxu0 %v5989_v26  ;;  %v6091_v17 = vld [vmem:[#allocation8 + $0x928] sm:$0xff]  ;;  %v6093_v26 = vld [vmem:[#allocation8 + $0x938] sm:$0xff] }
0x128e   :  { %6735 = vmatpush1.bf16.msra.mxu1 %v5986_v13  ;;  %6899 = vmatpush1.bf16.msra.mxu0 %v5988_v9  ;;  %v6092_v13 = vld [vmem:[#allocation8 + $0x930] sm:$0xff]  ;;  %v6099_v9 = vld [vmem:[#allocation8 + $0x968] sm:$0xff] }
0x128f   :  { %6736 = vmatprep.subr.bf16.mxu1 %v5995_v34  ;;  %6900 = vmatprep.subr.bf16.mxu0 %v5997_v42  ;;  %v6101_v34 = vld [vmem:[#allocation8 + $0x978] sm:$0xff]  ;;  %v6098_v42 = vld [vmem:[#allocation8 + $0x960] sm:$0xff] }
0x1292   :  { %6737 = vmatpush1.bf16.msra.mxu1 %v5994_v23  ;;  %6901 = vmatpush1.bf16.msra.mxu0 %v5996_v32  ;;  %v6100_v23 = vld [vmem:[#allocation8 + $0x970] sm:$0xff]  ;;  %v6107_v32 = vld [vmem:[#allocation8 + $0x9a8] sm:$0xff] }
0x1293   :  { %6738 = vmatprep.subr.bf16.mxu1 %v6003_v61  ;;  %6902 = vmatprep.subr.bf16.mxu0 %v6005_v47  ;;  %v6109_v61 = vld [vmem:[#allocation8 + $0x9b8] sm:$0xff]  ;;  %v6106_v47 = vld [vmem:[#allocation8 + $0x9a0] sm:$0xff] }
0x1296   :  { %6739 = vmatpush1.bf16.msra.mxu1 %v6002_v63  ;;  %6903 = vmatpush1.bf16.msra.mxu0 %v6004_v39  ;;  %v6108_v63 = vld [vmem:[#allocation8 + $0x9b0] sm:$0xff]  ;;  %v6115_v39 = vld [vmem:[#allocation8 + $0x9e8] sm:$0xff] }
0x1297   :  { %6740 = vmatprep.subr.bf16.mxu1 %v6011_v52  ;;  %6904 = vmatprep.subr.bf16.mxu0 %v6013_v40  ;;  %v6117_v52 = vld [vmem:[#allocation8 + $0x9f8] sm:$0xff]  ;;  %v6114_v40 = vld [vmem:[#allocation8 + $0x9e0] sm:$0xff] }
0x129a   :  { %6741 = vmatpush1.bf16.msra.mxu1 %v6010_v46  ;;  %6905 = vmatpush1.bf16.msra.mxu0 %v6012_v45  ;;  %v6116_v46 = vld [vmem:[#allocation8 + $0x9f0] sm:$0xff]  ;;  %v6123_v45 = vld [vmem:[#allocation8 + $0xa28] sm:$0xff] }
0x129b   :  { %6742 = vmatprep.subr.bf16.mxu1 %v6019_v33  ;;  %6906 = vmatprep.subr.bf16.mxu0 %v6021_v1  ;;  %v6125_v33 = vld [vmem:[#allocation8 + $0xa38] sm:$0xff]  ;;  %v6122_v1 = vld [vmem:[#allocation8 + $0xa20] sm:$0xff] }
0x129e   :  { %6743 = vmatpush1.bf16.msra.mxu1 %v6018_v50  ;;  %6907 = vmatpush1.bf16.msra.mxu0 %v6020_v3  ;;  %v6124_v50 = vld [vmem:[#allocation8 + $0xa30] sm:$0xff]  ;;  %v6131_v3 = vld [vmem:[#allocation8 + $0xa68] sm:$0xff] }
0x129f   :  { %6744 = vmatprep.subr.bf16.mxu1 %v6027_v48  ;;  %6908 = vmatprep.subr.bf16.mxu0 %v6029_v56  ;;  %v6133_v48 = vld [vmem:[#allocation8 + $0xa78] sm:$0xff]  ;;  %v6130_v56 = vld [vmem:[#allocation8 + $0xa60] sm:$0xff] }
0x12a2   :  { %6745 = vmatpush1.bf16.msra.mxu1 %v6026_v22  ;;  %6909 = vmatpush1.bf16.msra.mxu0 %v6028_v38  ;;  %v6132_v22 = vld [vmem:[#allocation8 + $0xa70] sm:$0xff]  ;;  %v6139_v38 = vld [vmem:[#allocation8 + $0xaa8] sm:$0xff] }
0x12a3   :  { %6746 = vmatprep.subr.bf16.mxu1 %v6035_v54  ;;  %6910 = vmatprep.subr.bf16.mxu0 %v6037_v36  ;;  %v6141_v54 = vld [vmem:[#allocation8 + $0xab8] sm:$0xff]  ;;  %v6138_v36 = vld [vmem:[#allocation8 + $0xaa0] sm:$0xff] }
0x12a6   :  { %6747 = vmatpush1.bf16.msra.mxu1 %v6034_v25  ;;  %6911 = vmatpush1.bf16.msra.mxu0 %v6036_v49  ;;  %v6140_v25 = vld [vmem:[#allocation8 + $0xab0] sm:$0xff]  ;;  %v6147_v49 = vld [vmem:[#allocation8 + $0xae8] sm:$0xff] }
0x12a7   :  { %6748 = vmatprep.subr.bf16.mxu1 %v6043_v30  ;;  %6912 = vmatprep.subr.bf16.mxu0 %v6045_v0  ;;  %v6149_v30 = vld [vmem:[#allocation8 + $0xaf8] sm:$0xff]  ;;  %v6146_v0 = vld [vmem:[#allocation8 + $0xae0] sm:$0xff] }
0x12aa   :  { %6749 = vmatpush1.bf16.msra.mxu1 %v6042_v53  ;;  %6913 = vmatpush1.bf16.msra.mxu0 %v6044_v21  ;;  %v6148_v53 = vld [vmem:[#allocation8 + $0xaf0] sm:$0xff]  ;;  %v6155_v21 = vld [vmem:[#allocation8 + $0xb28] sm:$0xff] }
0x12ab   :  { %6750 = vmatprep.subr.bf16.mxu1 %v6051_v29  ;;  %6914 = vmatprep.subr.bf16.mxu0 %v6053_v12  ;;  %v6157_v29 = vld [vmem:[#allocation8 + $0xb38] sm:$0xff]  ;;  %v6154_v12 = vld [vmem:[#allocation8 + $0xb20] sm:$0xff] }
0x12ae   :  { %6751 = vmatpush1.bf16.msra.mxu1 %v6050_v28  ;;  %6915 = vmatpush1.bf16.msra.mxu0 %v6052_v37  ;;  %v6156_v28 = vld [vmem:[#allocation8 + $0xb30] sm:$0xff]  ;;  %v6163_v37 = vld [vmem:[#allocation8 + $0xb68] sm:$0xff] }
0x12af   :  { %6761 = vmatprep.subr.bf16.mxu1 %v6059_v43  ;;  %6925 = vmatprep.subr.bf16.mxu0 %v6061_v55  ;;  %v6165_v43 = vld [vmem:[#allocation8 + $0xb78] sm:$0xff]  ;;  %v6162_v55 = vld [vmem:[#allocation8 + $0xb60] sm:$0xff] }
0x12b1   :  { %6753 = vmatmul.mubr.bf16.vlgmr.msra.gmra.mrb[52].mxu1 %v8854_v44  ;;  %6917 = vmatmul.mubr.bf16.vlgmr.msra.gmra.mrb[32].mxu0 %v8854_v44  ;;  %v6085_v44 = vld [vmem:[#allocation8 + $0x8f8] sm:$0xff] }
0x12b2   :  { %6762 = vmatpush1.bf16.msra.mxu1 %v6058_v14  ;;  %6926 = vmatpush1.bf16.msra.mxu0 %v6060_v51  ;;  %v6164_v14 = vld [vmem:[#allocation8 + $0xb70] sm:$0xff]  ;;  %v6171_v51 = vld [vmem:[#allocation8 + $0xba8] sm:$0xff] }
0x12b3   :  { %6763 = vmatprep.subr.bf16.mxu1 %v6067_v57  ;;  %6927 = vmatprep.subr.bf16.mxu0 %v6069_v35  ;;  %v6173_v57 = vld [vmem:[#allocation8 + $0xbb8] sm:$0xff]  ;;  %v6170_v35 = vld [vmem:[#allocation8 + $0xba0] sm:$0xff] }
0x12b4   :  { %6793 = vmatprep.mubr.bf16.mxu1 %v8874_v18  ;;  %6957 = vmatprep.mubr.bf16.mxu0 %v8874_v18  ;;  %v6090_v18 = vld [vmem:[#allocation8 + $0x920] sm:$0xff] }
0x12b6   :  { %6764 = vmatpush1.bf16.msra.mxu1 %v6066_v24  ;;  %6928 = vmatpush1.bf16.msra.mxu0 %v6068_v31  ;;  %v6172_v24 = vld [vmem:[#allocation8 + $0xbb0] sm:$0xff]  ;;  %v6179_v31 = vld [vmem:[#allocation8 + $0xbe8] sm:$0xff] }
0x12b7   :  { %6765 = vmatprep.subr.bf16.mxu1 %v6075_v5  ;;  %6929 = vmatprep.subr.bf16.mxu0 %v6077_v8  ;;  %v6181_v5 = vld [vmem:[#allocation8 + $0xbf8] sm:$0xff]  ;;  %v6178_v8 = vld [vmem:[#allocation8 + $0xbe0] sm:$0xff] }
0x12ba   :  { %6766 = vmatpush1.bf16.msra.mxu1 %v6074_v59  ;;  %6930 = vmatpush1.bf16.msra.mxu0 %v6076_v6  ;;  %v6180_v59 = vld [vmem:[#allocation8 + $0xbf0] sm:$0xff]  ;;  %v6187_v6 = vld [vmem:[#allocation8 + $0xc28] sm:$0xff] }
0x12bb   :  { %6767 = vmatprep.subr.bf16.mxu1 %v6083_v60  ;;  %6931 = vmatprep.subr.bf16.mxu0 %v6085_v44  ;;  %v6189_v60 = vld [vmem:[#allocation8 + $0xc38] sm:$0xff]  ;;  %v6186_v44 = vld [vmem:[#allocation8 + $0xc20] sm:$0xff] }
0x12be   :  { %6768 = vmatpush1.bf16.msra.mxu1 %v6082_v4  ;;  %6932 = vmatpush1.bf16.msra.mxu0 %v6084_v16  ;;  %v6188_v4 = vld [vmem:[#allocation8 + $0xc30] sm:$0xff]  ;;  %v6195_v16 = vld [vmem:[#allocation8 + $0xc68] sm:$0xff] }
0x12bf   :  { %6769 = vmatprep.subr.bf16.mxu1 %v6091_v17  ;;  %6933 = vmatprep.subr.bf16.mxu0 %v6093_v26  ;;  %v6197_v17 = vld [vmem:[#allocation8 + $0xc78] sm:$0xff]  ;;  %v6194_v26 = vld [vmem:[#allocation8 + $0xc60] sm:$0xff] }
0x12c2   :  { %6770 = vmatpush1.bf16.msra.mxu1 %v6090_v18  ;;  %6934 = vmatpush1.bf16.msra.mxu0 %v6092_v13  ;;  %v6196_v18 = vld [vmem:[#allocation8 + $0xc70] sm:$0xff]  ;;  %v6203_v13 = vld [vmem:[#allocation8 + $0xca8] sm:$0xff] }
0x12c3   :  { %6771 = vmatprep.subr.bf16.mxu1 %v6099_v9  ;;  %6935 = vmatprep.subr.bf16.mxu0 %v6101_v34  ;;  %v6205_v9 = vld [vmem:[#allocation8 + $0xcb8] sm:$0xff]  ;;  %v6202_v34 = vld [vmem:[#allocation8 + $0xca0] sm:$0xff] }
0x12c6   :  { %6772 = vmatpush1.bf16.msra.mxu1 %v6098_v42  ;;  %6936 = vmatpush1.bf16.msra.mxu0 %v6100_v23  ;;  %v6204_v42 = vld [vmem:[#allocation8 + $0xcb0] sm:$0xff]  ;;  %v6211_v23 = vld [vmem:[#allocation8 + $0xce8] sm:$0xff] }
0x12c7   :  { %6773 = vmatprep.subr.bf16.mxu1 %v6107_v32  ;;  %6937 = vmatprep.subr.bf16.mxu0 %v6109_v61  ;;  %v6210_v32 = vld [vmem:[#allocation8 + $0xce0] sm:$0xff]  ;;  %v6212_v61 = vld [vmem:[#allocation8 + $0xcf0] sm:$0xff] }
0x12ca   :  { %6774 = vmatpush1.bf16.msra.mxu1 %v6106_v47  ;;  %6938 = vmatpush1.bf16.msra.mxu0 %v6108_v63  ;;  %v6219_v47 = vld [vmem:[#allocation8 + $0xd28] sm:$0xff]  ;;  %v6221_v63 = vld [vmem:[#allocation8 + $0xd38] sm:$0xff] }
0x12cb   :  { %6775 = vmatprep.subr.bf16.mxu1 %v6115_v39  ;;  %6939 = vmatprep.subr.bf16.mxu0 %v6117_v52  ;;  %v8908_v39 = vld [vmem:[#allocation13 + $0x26] sm:$0xff]  ;;  %v6220_v52 = vld [vmem:[#allocation8 + $0xd30] sm:$0xff] }
0x12ce   :  { %6776 = vmatpush1.bf16.msra.mxu1 %v6114_v40  ;;  %6940 = vmatpush1.bf16.msra.mxu0 %v6116_v46  ;;  %v6227_v40 = vld [vmem:[#allocation8 + $0xd68] sm:$0xff]  ;;  %v6229_v46 = vld [vmem:[#allocation8 + $0xd78] sm:$0xff] }
0x12cf   :  { %6777 = vmatprep.subr.bf16.mxu1 %v6123_v45  ;;  %6941 = vmatprep.subr.bf16.mxu0 %v6125_v33  ;;  %v6314_v45 = vrot.slane %v8908_v39, %v8585_v15  ;;  %v6322_v33 = vrot.slane %v8908_v39, %v8607_v58 }
0x12d2   :  { %6778 = vmatpush1.bf16.msra.mxu1 %v6122_v1  ;;  %6942 = vmatpush1.bf16.msra.mxu0 %v6124_v50  ;;  %v6318_v1 = vrot.slane %v8908_v39, %v8588_v10  ;;  %v6326_v50 = vrot.slane %v8908_v39, %v8610_v7 }
0x12d3   :  { %6779 = vmatprep.subr.bf16.mxu1 %v6131_v3  ;;  %6943 = vmatprep.subr.bf16.mxu0 %v6133_v48  ;;  %v6226_v3 = vld [vmem:[#allocation8 + $0xd60] sm:$0xff]  ;;  %v6228_v48 = vld [vmem:[#allocation8 + $0xd70] sm:$0xff] }
0x12d6   :  { %6780 = vmatpush1.bf16.msra.mxu1 %v6130_v56  ;;  %6944 = vmatpush1.bf16.msra.mxu0 %v6132_v22 }
0x12d7   :  { %6781 = vmatprep.subr.bf16.mxu1 %v6139_v38  ;;  %6945 = vmatprep.subr.bf16.mxu0 %v6141_v54  ;;  %v6235_v38 = vld [vmem:[#allocation8 + $0xda8] sm:$0xff]  ;;  %v6237_v54 = vld [vmem:[#allocation8 + $0xdb8] sm:$0xff] }
0x12da   :  { %6782 = vmatpush1.bf16.msra.mxu1 %v6138_v36  ;;  %6946 = vmatpush1.bf16.msra.mxu0 %v6140_v25 }
0x12db   :  { %6783 = vmatprep.subr.bf16.mxu1 %v6147_v49  ;;  %6947 = vmatprep.subr.bf16.mxu0 %v6149_v30 }
0x12de   :  { %6784 = vmatpush1.bf16.msra.mxu1 %v6146_v0  ;;  %6948 = vmatpush1.bf16.msra.mxu0 %v6148_v53 }
0x12df   :  { %6785 = vmatprep.subr.bf16.mxu1 %v6155_v21  ;;  %6949 = vmatprep.subr.bf16.mxu0 %v6157_v29 }
0x12e2   :  { %6786 = vmatpush1.bf16.msra.mxu1 %v6154_v12  ;;  %6950 = vmatpush1.bf16.msra.mxu0 %v6156_v28 }
0x12e3   :  { %6787 = vmatprep.subr.bf16.mxu1 %v6163_v37  ;;  %6951 = vmatprep.subr.bf16.mxu0 %v6165_v43  ;;  %v6234_v37 = vld [vmem:[#allocation8 + $0xda0] sm:$0xff]  ;;  %v6236_v43 = vld [vmem:[#allocation8 + $0xdb0] sm:$0xff] }
0x12e6   :  { %6788 = vmatpush1.bf16.msra.mxu1 %v6162_v55  ;;  %6952 = vmatpush1.bf16.msra.mxu0 %v6164_v14 }
0x12e7   :  { %6789 = vmatprep.subr.bf16.mxu1 %v6171_v51  ;;  %6953 = vmatprep.subr.bf16.mxu0 %v6173_v57  ;;  %v6243_v51 = vld [vmem:[#allocation8 + $0xde8] sm:$0xff]  ;;  %v6245_v57 = vld [vmem:[#allocation8 + $0xdf8] sm:$0xff] }
0x12ea   :  { %6790 = vmatpush1.bf16.msra.mxu1 %v6170_v35  ;;  %6954 = vmatpush1.bf16.msra.mxu0 %v6172_v24 }
0x12eb   :  { %6791 = vmatprep.subr.bf16.mxu1 %v6179_v31  ;;  %6955 = vmatprep.subr.bf16.mxu0 %v6181_v5 }
0x12ee   :  { %6792 = vmatpush1.bf16.msra.mxu1 %v6178_v8  ;;  %6956 = vmatpush1.bf16.msra.mxu0 %v6180_v59  ;;  %v6242_v8 = vld [vmem:[#allocation8 + $0xde0] sm:$0xff]  ;;  %v6244_v59 = vld [vmem:[#allocation8 + $0xdf0] sm:$0xff] }
0x12ef   :  { %6802 = vmatprep.subr.bf16.mxu1 %v6187_v6  ;;  %6966 = vmatprep.subr.bf16.mxu0 %v6189_v60  ;;  %v6251_v6 = vld [vmem:[#allocation8 + $0xe28] sm:$0xff]  ;;  %v6253_v60 = vld [vmem:[#allocation8 + $0xe38] sm:$0xff] }
0x12f1   :  { %6794 = vmatmul.mubr.bf16.vlgmr.msra.gmra.mrb[52].mxu1 %v8870_v2  ;;  %6958 = vmatmul.mubr.bf16.vlgmr.msra.gmra.mrb[32].mxu0 %v8870_v2  ;;  %v6213_v2 = vld [vmem:[#allocation8 + $0xcf8] sm:$0xff] }
0x12f2   :  { %6803 = vmatpush1.bf16.msra.mxu1 %v6186_v44  ;;  %6967 = vmatpush1.bf16.msra.mxu0 %v6188_v4  ;;  %v6250_v44 = vld [vmem:[#allocation8 + $0xe20] sm:$0xff]  ;;  %v6252_v4 = vld [vmem:[#allocation8 + $0xe30] sm:$0xff] }
0x12f3   :  { %6804 = vmatprep.subr.bf16.mxu1 %v6195_v16  ;;  %6968 = vmatprep.subr.bf16.mxu0 %v6197_v17  ;;  %v6259_v16 = vld [vmem:[#allocation8 + $0xe68] sm:$0xff]  ;;  %v6261_v17 = vld [vmem:[#allocation8 + $0xe78] sm:$0xff] }
0x12f4   :  { %6834 = vmatprep.mubr.bf16.mxu1 %v8876_v41  ;;  %6998 = vmatprep.mubr.bf16.mxu0 %v8876_v41  ;;  %v6218_v41 = vld [vmem:[#allocation8 + $0xd20] sm:$0xff] }
0x12f6   :  { %6805 = vmatpush1.bf16.msra.mxu1 %v6194_v26  ;;  %6969 = vmatpush1.bf16.msra.mxu0 %v6196_v18  ;;  %v6258_v26 = vld [vmem:[#allocation8 + $0xe60] sm:$0xff]  ;;  %v6260_v18 = vld [vmem:[#allocation8 + $0xe70] sm:$0xff] }
0x12f7   :  { %6806 = vmatprep.subr.bf16.mxu1 %v6203_v13  ;;  %6970 = vmatprep.subr.bf16.mxu0 %v6205_v9  ;;  %v6267_v13 = vld [vmem:[#allocation8 + $0xea8] sm:$0xff]  ;;  %v6269_v9 = vld [vmem:[#allocation8 + $0xeb8] sm:$0xff] }
0x12fa   :  { %6807 = vmatpush1.bf16.msra.mxu1 %v6202_v34  ;;  %6971 = vmatpush1.bf16.msra.mxu0 %v6204_v42  ;;  %v6266_v34 = vld [vmem:[#allocation8 + $0xea0] sm:$0xff]  ;;  %v6268_v42 = vld [vmem:[#allocation8 + $0xeb0] sm:$0xff] }
0x12fb   :  { %6808 = vmatprep.subr.bf16.mxu1 %v6211_v23  ;;  %6972 = vmatprep.subr.bf16.mxu0 %v6213_v2  ;;  %v6275_v23 = vld [vmem:[#allocation8 + $0xee8] sm:$0xff]  ;;  %v6277_v2 = vld [vmem:[#allocation8 + $0xef8] sm:$0xff] }
0x12fe   :  { %6809 = vmatpush1.bf16.msra.mxu1 %v6210_v32  ;;  %6973 = vmatpush1.bf16.msra.mxu0 %v6212_v61  ;;  %v6274_v32 = vld [vmem:[#allocation8 + $0xee0] sm:$0xff]  ;;  %v6276_v61 = vld [vmem:[#allocation8 + $0xef0] sm:$0xff] }
0x12ff   :  { %6810 = vmatprep.subr.bf16.mxu1 %v6219_v47  ;;  %6974 = vmatprep.subr.bf16.mxu0 %v6221_v63  ;;  %v6283_v47 = vld [vmem:[#allocation8 + $0xf28] sm:$0xff]  ;;  %v6285_v63 = vld [vmem:[#allocation8 + $0xf38] sm:$0xff] }
0x1302   :  { %6811 = vmatpush1.bf16.msra.mxu1 %v6218_v41  ;;  %6975 = vmatpush1.bf16.msra.mxu0 %v6220_v52  ;;  %v6282_v41 = vld [vmem:[#allocation8 + $0xf20] sm:$0xff]  ;;  %v6284_v52 = vld [vmem:[#allocation8 + $0xf30] sm:$0xff] }
0x1303   :  { %6812 = vmatprep.subr.bf16.mxu1 %v6227_v40  ;;  %6976 = vmatprep.subr.bf16.mxu0 %v6229_v46  ;;  %v6291_v40 = vld [vmem:[#allocation8 + $0xf68] sm:$0xff]  ;;  %v6293_v46 = vld [vmem:[#allocation8 + $0xf78] sm:$0xff] }
0x1304   :  { %v6508_v56 = vpop.f32.mrb[48].mxu1  ;;  %v6672_v22 = vpop.f32.mrb[28].mxu0 }
0x1305   :  { %v7669_v36 = vadd.f32 %v6508_v56, %v6314_v45  ;;  %v7671_v25 = vadd.f32 %v6672_v22, %v6322_v33  ;;  %v6510_v49 = vpop.f32.mrb[49].mxu1  ;;  %v6674_v58 = vpop.f32.mrb[29].mxu0  ;;  %v6290_v45 = vld [vmem:[#allocation8 + $0xf60] sm:$0xff]  ;;  %v6292_v33 = vld [vmem:[#allocation8 + $0xf70] sm:$0xff]  ;;  %v6307_v56 = vld [vmem:[#allocation8 + $0xfe8] sm:$0xff] }
0x1306   :  { %v7670_v30 = vadd.f32 %v6510_v49, %v6318_v1  ;;  %v7672_v0 = vadd.f32 %v6674_v58, %v6326_v50  ;;  %v6512_v53 = vpop.f32.mrb[50].mxu1  ;;  %v6676_v21 = vpop.f32.mrb[30].mxu0  ;;  %6813 = vmatpush1.bf16.msra.mxu1 %v6226_v3  ;;  %6977 = vmatpush1.bf16.msra.mxu0 %v6228_v48  ;;  %v6299_v1 = vld [vmem:[#allocation8 + $0xfa8] sm:$0xff]  ;;  %v6301_v50 = vld [vmem:[#allocation8 + $0xfb8] sm:$0xff]  ;;  %v6298_v3 = vld [vmem:[#allocation8 + $0xfa0] sm:$0xff]  ;;  %v6334_v49 = vrot.slane %v8908_v39, %v8656_v20 }
0x1307   :  { %v7007_v29 = vmax.f32 %v7669_v36, 0.0  ;;  %v7009_v7 = vmax.f32 %v7671_v25, 0.0  ;;  %v6513_v12 = vpop.f32.mrb[51].mxu1  ;;  %v6677_v28 = vpop.f32.mrb[31].mxu0  ;;  %6814 = vmatprep.subr.bf16.mxu1 %v6235_v38  ;;  %6978 = vmatprep.subr.bf16.mxu0 %v6237_v54  ;;  %v6300_v48 = vld [vmem:[#allocation8 + $0xfb0] sm:$0xff]  ;;  %v6309_v22 = vld [vmem:[#allocation8 + $0xff8] sm:$0xff]  ;;  %v6330_v36 = vrot.slane %v8908_v39, %v8653_v11  ;;  %v6338_v25 = vrot.slane %v8908_v39, %v8667_v19 }
0x1308   :  { %v7008_v55 = vmax.f32 %v7670_v30, 0.0  ;;  %v7010_v14 = vmax.f32 %v7672_v0, 0.0  ;;  %v6306_v38 = vld [vmem:[#allocation8 + $0xfe0] sm:$0xff]  ;;  %v6308_v54 = vld [vmem:[#allocation8 + $0xff0] sm:$0xff]  ;;  %v6342_v58 = vrot.slane %v8908_v39, %v8670_v62 }
0x1309   :  { %v8918_v35 = vpack.c.bf16 %v7007_v29, %v7007_v29  ;;  %v8920_v24 = vpack.c.bf16 %v7009_v7, %v7009_v7 }
0x130a   :  { %v8922_v31 = vpack.c.bf16 %v7008_v55, %v7008_v55  ;;  %v8924_v5 = vpack.c.bf16 %v7010_v14, %v7010_v14  ;;  %6815 = vmatpush1.bf16.msra.mxu1 %v6234_v37  ;;  %6979 = vmatpush1.bf16.msra.mxu0 %v6236_v43 }
0x130b   :  { %6816 = vmatprep.subr.bf16.mxu1 %v6243_v51  ;;  %6980 = vmatprep.subr.bf16.mxu0 %v6245_v57 }
0x130e   :  { %6817 = vmatpush1.bf16.msra.mxu1 %v6242_v8  ;;  %6981 = vmatpush1.bf16.msra.mxu0 %v6244_v59 }
0x130f   :  { %6818 = vmatprep.subr.bf16.mxu1 %v6251_v6  ;;  %6982 = vmatprep.subr.bf16.mxu0 %v6253_v60 }
0x1312   :  { %6819 = vmatpush1.bf16.msra.mxu1 %v6250_v44  ;;  %6983 = vmatpush1.bf16.msra.mxu0 %v6252_v4 }
0x1313   :  { %6820 = vmatprep.subr.bf16.mxu1 %v6259_v16  ;;  %6984 = vmatprep.subr.bf16.mxu0 %v6261_v17 }
0x1316   :  { %6821 = vmatpush1.bf16.msra.mxu1 %v6258_v26  ;;  %6985 = vmatpush1.bf16.msra.mxu0 %v6260_v18 }
0x1317   :  { %6822 = vmatprep.subr.bf16.mxu1 %v6267_v13  ;;  %6986 = vmatprep.subr.bf16.mxu0 %v6269_v9 }
0x131a   :  { %6823 = vmatpush1.bf16.msra.mxu1 %v6266_v34  ;;  %6987 = vmatpush1.bf16.msra.mxu0 %v6268_v42 }
0x131b   :  { %6824 = vmatprep.subr.bf16.mxu1 %v6275_v23  ;;  %6988 = vmatprep.subr.bf16.mxu0 %v6277_v2 }
0x131e   :  { %6825 = vmatpush1.bf16.msra.mxu1 %v6274_v32  ;;  %6989 = vmatpush1.bf16.msra.mxu0 %v6276_v61 }
0x131f   :  { %6826 = vmatprep.subr.bf16.mxu1 %v6283_v47  ;;  %6990 = vmatprep.subr.bf16.mxu0 %v6285_v63 }
0x1322   :  { %6827 = vmatpush1.bf16.msra.mxu1 %v6282_v41  ;;  %6991 = vmatpush1.bf16.msra.mxu0 %v6284_v52 }
0x1323   :  { %6828 = vmatprep.subr.bf16.mxu1 %v6291_v40  ;;  %6992 = vmatprep.subr.bf16.mxu0 %v6293_v46 }
0x1326   :  { %6829 = vmatpush1.bf16.msra.mxu1 %v6290_v45  ;;  %6993 = vmatpush1.bf16.msra.mxu0 %v6292_v33 }
0x1327   :  { %6830 = vmatprep.subr.bf16.mxu1 %v6299_v1  ;;  %6994 = vmatprep.subr.bf16.mxu0 %v6301_v50 }
0x132a   :  { %6831 = vmatpush1.bf16.msra.mxu1 %v6298_v3  ;;  %6995 = vmatpush1.bf16.msra.mxu0 %v6300_v48 }
0x132b   :  { %6832 = vmatprep.subr.bf16.mxu1 %v6307_v56  ;;  %6996 = vmatprep.subr.bf16.mxu0 %v6309_v22 }
0x132e   :  { %6833 = vmatpush1.bf16.msra.mxu1 %v6306_v38  ;;  %6997 = vmatpush1.bf16.msra.mxu0 %v6308_v54 }
0x1331   :  { %6835 = vmatmul.mubr.bf16.vlgmr.msra.gmra.mrb[52].mxu1 %v8872_v27  ;;  %6999 = vmatmul.mubr.bf16.vlgmr.msra.gmra.mrb[32].mxu0 %v8872_v27 }
0x1404   :  { %v6836_v30 = vpop.f32.mrb[52].mxu1  ;;  %v7000_v0 = vpop.f32.mrb[32].mxu0 }
0x1405   :  { %v7673_v53 = vadd.f32 %v6836_v30, %v6330_v36  ;;  %v7675_v21 = vadd.f32 %v7000_v0, %v6338_v25  ;;  %v6838_v29 = vpop.f32.mrb[53].mxu1  ;;  %v7002_v7 = vpop.f32.mrb[33].mxu0 }
0x1406   :  { %v7674_v12 = vadd.f32 %v6838_v29, %v6334_v49  ;;  %v7676_v27 = vadd.f32 %v7002_v7, %v6342_v58  ;;  %v6840_v28 = vpop.f32.mrb[54].mxu1  ;;  %v7004_v37 = vpop.f32.mrb[34].mxu0 }
0x1407   :  { %v7011_v11 = vmax.f32 %v7673_v53, 0.0  ;;  %v7013_v43 = vmax.f32 %v7675_v21, 0.0  ;;  %v6841_v55 = vpop.f32.mrb[55].mxu1  ;;  %v7005_v19 = vpop.f32.mrb[35].mxu0 }
0x1408   :  { %v7012_v14 = vmax.f32 %v7674_v12, 0.0  ;;  %v7014_v51 = vmax.f32 %v7676_v27, 0.0 }
0x1409   :  { %v8936_v20 = vpack.c.bf16 %v7011_v11, %v7011_v11  ;;  %v8938_v57 = vpack.c.bf16 %v7013_v43, %v7013_v43 }
0x140a   :  { %v8940_v62 = vpack.c.bf16 %v7012_v14, %v7012_v14  ;;  %v8942_v39 = vpack.c.bf16 %v7014_v51, %v7014_v51 }
0x140b   :  { %8089 = dma.done.wait [#allocation12 + $0x7], 16384 }
0x140c   :  { %8090 = vsyncadd [#allocation12 + $0x7], 4294950912  ;;  %7198 = vmatprep.mubr.bf16.mxu1 %v8922_v31  ;;  %v7028_v8 = vld [vmem:[#allocation9 + $0x8] sm:$0xff]  ;;  %v7027_v59 = vld [vmem:[#allocation9] sm:$0xff] }
0x140d   :  { %v7030_v6 = vld [vmem:[#allocation9 + $0x18] sm:$0xff]  ;;  %7166 = vmatprep.subr.bf16.mxu1 %v7028_v8  ;;  %v7029_v60 = vld [vmem:[#allocation9 + $0x10] sm:$0xff]  ;;  %v7032_v44 = vld [vmem:[#allocation9 + $0x28] sm:$0xff] }
0x140e   :  { %7167 = vmatpush1.bf16.msra.mxu1 %v7027_v59  ;;  %v7031_v4 = vld [vmem:[#allocation9 + $0x20] sm:$0xff]  ;;  %v7034_v16 = vld [vmem:[#allocation9 + $0x38] sm:$0xff]  ;;  %v7033_v17 = vld [vmem:[#allocation9 + $0x30] sm:$0xff] }
0x140f   :  { %7168 = vmatprep.subr.bf16.mxu1 %v7030_v6  ;;  %v7036_v26 = vld [vmem:[#allocation9 + $0x48] sm:$0xff]  ;;  %v7035_v18 = vld [vmem:[#allocation9 + $0x40] sm:$0xff]  ;;  %v7038_v31 = vld [vmem:[#allocation9 + $0x58] sm:$0xff] }
0x1410   :  { %v7037_v13 = vld [vmem:[#allocation9 + $0x50] sm:$0xff]  ;;  %v7040_v9 = vld [vmem:[#allocation9 + $0x68] sm:$0xff]  ;;  %v7039_v34 = vld [vmem:[#allocation9 + $0x60] sm:$0xff] }
0x1411   :  { %v7042_v42 = vld [vmem:[#allocation9 + $0x78] sm:$0xff]  ;;  %v7041_v23 = vld [vmem:[#allocation9 + $0x70] sm:$0xff]  ;;  %v7044_v2 = vld [vmem:[#allocation9 + $0x88] sm:$0xff] }
0x1412   :  { %7169 = vmatpush1.bf16.msra.mxu1 %v7029_v60  ;;  %v7043_v32 = vld [vmem:[#allocation9 + $0x80] sm:$0xff]  ;;  %v7046_v61 = vld [vmem:[#allocation9 + $0x98] sm:$0xff]  ;;  %v7045_v47 = vld [vmem:[#allocation9 + $0x90] sm:$0xff] }
0x1413   :  { %7170 = vmatprep.subr.bf16.mxu1 %v7032_v44  ;;  %v7048_v63 = vld [vmem:[#allocation9 + $0xa8] sm:$0xff]  ;;  %v7047_v41 = vld [vmem:[#allocation9 + $0xa0] sm:$0xff]  ;;  %v7050_v52 = vld [vmem:[#allocation9 + $0xb8] sm:$0xff] }
0x1414   :  { %v7049_v40 = vld [vmem:[#allocation9 + $0xb0] sm:$0xff]  ;;  %v7052_v46 = vld [vmem:[#allocation9 + $0xc8] sm:$0xff]  ;;  %v7051_v45 = vld [vmem:[#allocation9 + $0xc0] sm:$0xff] }
0x1415   :  { %v7054_v33 = vld [vmem:[#allocation9 + $0xd8] sm:$0xff]  ;;  %v7053_v1 = vld [vmem:[#allocation9 + $0xd0] sm:$0xff]  ;;  %v7056_v50 = vld [vmem:[#allocation9 + $0xe8] sm:$0xff] }
0x1416   :  { %7171 = vmatpush1.bf16.msra.mxu1 %v7031_v4  ;;  %v7055_v3 = vld [vmem:[#allocation9 + $0xe0] sm:$0xff]  ;;  %v7058_v48 = vld [vmem:[#allocation9 + $0xf8] sm:$0xff]  ;;  %v7057_v56 = vld [vmem:[#allocation9 + $0xf0] sm:$0xff] }
0x1417   :  { %7172 = vmatprep.subr.bf16.mxu1 %v7034_v16  ;;  %v7060_v22 = vld [vmem:[#allocation9 + $0x108] sm:$0xff]  ;;  %v7059_v38 = vld [vmem:[#allocation9 + $0x100] sm:$0xff]  ;;  %v7062_v54 = vld [vmem:[#allocation9 + $0x118] sm:$0xff] }
0x1418   :  { %v7061_v36 = vld [vmem:[#allocation9 + $0x110] sm:$0xff]  ;;  %v7064_v25 = vld [vmem:[#allocation9 + $0x128] sm:$0xff]  ;;  %v7063_v49 = vld [vmem:[#allocation9 + $0x120] sm:$0xff] }
0x1419   :  { %v7066_v58 = vld [vmem:[#allocation9 + $0x138] sm:$0xff]  ;;  %v7065_v30 = vld [vmem:[#allocation9 + $0x130] sm:$0xff]  ;;  %v7068_v0 = vld [vmem:[#allocation9 + $0x148] sm:$0xff] }
0x141a   :  { %7173 = vmatpush1.bf16.msra.mxu1 %v7033_v17  ;;  %v7067_v53 = vld [vmem:[#allocation9 + $0x140] sm:$0xff]  ;;  %v7070_v21 = vld [vmem:[#allocation9 + $0x158] sm:$0xff]  ;;  %v7072_v29 = vld [vmem:[#allocation9 + $0x168] sm:$0xff] }
0x141b   :  { %7174 = vmatprep.subr.bf16.mxu1 %v7036_v26  ;;  %v7074_v7 = vld [vmem:[#allocation9 + $0x178] sm:$0xff]  ;;  %v7073_v12 = vld [vmem:[#allocation9 + $0x170] sm:$0xff]  ;;  %v7076_v27 = vld [vmem:[#allocation9 + $0x188] sm:$0xff] }
0x141c   :  { %v7075_v28 = vld [vmem:[#allocation9 + $0x180] sm:$0xff]  ;;  %v7078_v37 = vld [vmem:[#allocation9 + $0x198] sm:$0xff]  ;;  %v7077_v11 = vld [vmem:[#allocation9 + $0x190] sm:$0xff] }
0x141d   :  { %v7080_v43 = vld [vmem:[#allocation9 + $0x1a8] sm:$0xff]  ;;  %v7079_v55 = vld [vmem:[#allocation9 + $0x1a0] sm:$0xff]  ;;  %v7082_v19 = vld [vmem:[#allocation9 + $0x1b8] sm:$0xff] }
0x141e   :  { %7175 = vmatpush1.bf16.msra.mxu1 %v7035_v18  ;;  %v7081_v14 = vld [vmem:[#allocation9 + $0x1b0] sm:$0xff]  ;;  %v7084_v51 = vld [vmem:[#allocation9 + $0x1c8] sm:$0xff]  ;;  %v7083_v8 = vld [vmem:[#allocation9 + $0x1c0] sm:$0xff] }
0x141f   :  { %7176 = vmatprep.subr.bf16.mxu1 %v7038_v31  ;;  %v7086_v59 = vld [vmem:[#allocation9 + $0x1d8] sm:$0xff]  ;;  %v7085_v6 = vld [vmem:[#allocation9 + $0x1d0] sm:$0xff]  ;;  %v7088_v60 = vld [vmem:[#allocation9 + $0x1e8] sm:$0xff] }
0x1420   :  { %v7087_v44 = vld [vmem:[#allocation9 + $0x1e0] sm:$0xff]  ;;  %v7090_v4 = vld [vmem:[#allocation9 + $0x1f8] sm:$0xff]  ;;  %v7089_v16 = vld [vmem:[#allocation9 + $0x1f0] sm:$0xff] }
0x1421   :  { %v7092_v17 = vld [vmem:[#allocation9 + $0x208] sm:$0xff]  ;;  %v7091_v26 = vld [vmem:[#allocation9 + $0x200] sm:$0xff]  ;;  %v7094_v18 = vld [vmem:[#allocation9 + $0x218] sm:$0xff] }
0x1422   :  { %7177 = vmatpush1.bf16.msra.mxu1 %v7037_v13  ;;  %v7093_v31 = vld [vmem:[#allocation9 + $0x210] sm:$0xff]  ;;  %v7096_v13 = vld [vmem:[#allocation9 + $0x228] sm:$0xff] }
0x1423   :  { %7178 = vmatprep.subr.bf16.mxu1 %v7040_v9  ;;  %v7095_v9 = vld [vmem:[#allocation9 + $0x220] sm:$0xff] }
0x1426   :  { %7179 = vmatpush1.bf16.msra.mxu1 %v7039_v34  ;;  %v7098_v34 = vld [vmem:[#allocation9 + $0x238] sm:$0xff] }
0x1427   :  { %7180 = vmatprep.subr.bf16.mxu1 %v7042_v42  ;;  %v7097_v42 = vld [vmem:[#allocation9 + $0x230] sm:$0xff] }
0x142a   :  { %7181 = vmatpush1.bf16.msra.mxu1 %v7041_v23  ;;  %v7100_v23 = vld [vmem:[#allocation9 + $0x248] sm:$0xff] }
0x142b   :  { %7182 = vmatprep.subr.bf16.mxu1 %v7044_v2  ;;  %v7099_v2 = vld [vmem:[#allocation9 + $0x240] sm:$0xff] }
0x142e   :  { %7183 = vmatpush1.bf16.msra.mxu1 %v7043_v32  ;;  %v7102_v32 = vld [vmem:[#allocation9 + $0x258] sm:$0xff] }
0x142f   :  { %7184 = vmatprep.subr.bf16.mxu1 %v7046_v61  ;;  %v7104_v61 = vld [vmem:[#allocation9 + $0x268] sm:$0xff] }
0x1432   :  { %7185 = vmatpush1.bf16.msra.mxu1 %v7045_v47  ;;  %v7106_v47 = vld [vmem:[#allocation9 + $0x278] sm:$0xff] }
0x1433   :  { %7186 = vmatprep.subr.bf16.mxu1 %v7048_v63  ;;  %v7105_v63 = vld [vmem:[#allocation9 + $0x270] sm:$0xff] }
0x1436   :  { %7187 = vmatpush1.bf16.msra.mxu1 %v7047_v41  ;;  %v7108_v41 = vld [vmem:[#allocation9 + $0x288] sm:$0xff] }
0x1437   :  { %7188 = vmatprep.subr.bf16.mxu1 %v7050_v52  ;;  %v7107_v52 = vld [vmem:[#allocation9 + $0x280] sm:$0xff] }
0x143a   :  { %7189 = vmatpush1.bf16.msra.mxu1 %v7049_v40  ;;  %v7110_v40 = vld [vmem:[#allocation9 + $0x298] sm:$0xff] }
0x143b   :  { %7190 = vmatprep.subr.bf16.mxu1 %v7052_v46  ;;  %v7109_v46 = vld [vmem:[#allocation9 + $0x290] sm:$0xff] }
0x143e   :  { %7191 = vmatpush1.bf16.msra.mxu1 %v7051_v45  ;;  %v7112_v45 = vld [vmem:[#allocation9 + $0x2a8] sm:$0xff] }
0x143f   :  { %7192 = vmatprep.subr.bf16.mxu1 %v7054_v33  ;;  %v7111_v33 = vld [vmem:[#allocation9 + $0x2a0] sm:$0xff] }
0x1442   :  { %7193 = vmatpush1.bf16.msra.mxu1 %v7053_v1  ;;  %v7114_v1 = vld [vmem:[#allocation9 + $0x2b8] sm:$0xff] }
0x1443   :  { %7194 = vmatprep.subr.bf16.mxu1 %v7056_v50  ;;  %v7113_v50 = vld [vmem:[#allocation9 + $0x2b0] sm:$0xff] }
0x1446   :  { %7195 = vmatpush1.bf16.msra.mxu1 %v7055_v3  ;;  %v7116_v3 = vld [vmem:[#allocation9 + $0x2c8] sm:$0xff] }
0x1447   :  { %7196 = vmatprep.subr.bf16.mxu1 %v7058_v48  ;;  %v7115_v48 = vld [vmem:[#allocation9 + $0x2c0] sm:$0xff] }
0x144a   :  { %7197 = vmatpush1.bf16.msra.mxu1 %v7057_v56  ;;  %v7118_v56 = vld [vmem:[#allocation9 + $0x2d8] sm:$0xff] }
0x144b   :  { %7207 = vmatprep.subr.bf16.mxu1 %v7060_v22  ;;  %v7117_v22 = vld [vmem:[#allocation9 + $0x2d0] sm:$0xff] }
0x144d   :  { %7199 = vmatmul.mubr.bf16.vlgmr.msra.gmra.mrb[56].mxu1 %v8918_v35  ;;  %v7069_v35 = vld [vmem:[#allocation9 + $0x150] sm:$0xff] }
0x144e   :  { %7208 = vmatpush1.bf16.msra.mxu1 %v7059_v38  ;;  %7239 = vmatprep.mubr.bf16.mxu1 %v8924_v5  ;;  %v7071_v5 = vld [vmem:[#allocation9 + $0x160] sm:$0xff]  ;;  %v7120_v38 = vld [vmem:[#allocation9 + $0x2e8] sm:$0xff] }
0x144f   :  { %7209 = vmatprep.subr.bf16.mxu1 %v7062_v54  ;;  %v7119_v54 = vld [vmem:[#allocation9 + $0x2e0] sm:$0xff] }
0x1452   :  { %7210 = vmatpush1.bf16.msra.mxu1 %v7061_v36  ;;  %v7122_v36 = vld [vmem:[#allocation9 + $0x2f8] sm:$0xff] }
0x1453   :  { %7211 = vmatprep.subr.bf16.mxu1 %v7064_v25  ;;  %v7121_v25 = vld [vmem:[#allocation9 + $0x2f0] sm:$0xff] }
0x1456   :  { %7212 = vmatpush1.bf16.msra.mxu1 %v7063_v49  ;;  %v7124_v49 = vld [vmem:[#allocation9 + $0x308] sm:$0xff] }
0x1457   :  { %7213 = vmatprep.subr.bf16.mxu1 %v7066_v58  ;;  %v7123_v58 = vld [vmem:[#allocation9 + $0x300] sm:$0xff] }
0x145a   :  { %7214 = vmatpush1.bf16.msra.mxu1 %v7065_v30  ;;  %v7126_v30 = vld [vmem:[#allocation9 + $0x318] sm:$0xff] }
0x145b   :  { %7215 = vmatprep.subr.bf16.mxu1 %v7068_v0  ;;  %v7125_v0 = vld [vmem:[#allocation9 + $0x310] sm:$0xff] }
0x145e   :  { %7216 = vmatpush1.bf16.msra.mxu1 %v7067_v53  ;;  %v7128_v53 = vld [vmem:[#allocation9 + $0x328] sm:$0xff] }
0x145f   :  { %7217 = vmatprep.subr.bf16.mxu1 %v7070_v21  ;;  %v7127_v21 = vld [vmem:[#allocation9 + $0x320] sm:$0xff] }
0x1462   :  { %7218 = vmatpush1.bf16.msra.mxu1 %v7069_v35  ;;  %v7130_v35 = vld [vmem:[#allocation9 + $0x338] sm:$0xff] }
0x1463   :  { %7219 = vmatprep.subr.bf16.mxu1 %v7072_v29  ;;  %v7129_v29 = vld [vmem:[#allocation9 + $0x330] sm:$0xff] }
0x1466   :  { %7220 = vmatpush1.bf16.msra.mxu1 %v7071_v5  ;;  %v7132_v5 = vld [vmem:[#allocation9 + $0x348] sm:$0xff] }
0x1467   :  { %7221 = vmatprep.subr.bf16.mxu1 %v7074_v7  ;;  %v7131_v7 = vld [vmem:[#allocation9 + $0x340] sm:$0xff] }
0x146a   :  { %7222 = vmatpush1.bf16.msra.mxu1 %v7073_v12  ;;  %v7134_v12 = vld [vmem:[#allocation9 + $0x358] sm:$0xff] }
0x146b   :  { %7223 = vmatprep.subr.bf16.mxu1 %v7076_v27  ;;  %v7136_v27 = vld [vmem:[#allocation9 + $0x368] sm:$0xff] }
0x146e   :  { %7224 = vmatpush1.bf16.msra.mxu1 %v7075_v28  ;;  %v7138_v28 = vld [vmem:[#allocation9 + $0x378] sm:$0xff] }
0x146f   :  { %7225 = vmatprep.subr.bf16.mxu1 %v7078_v37  ;;  %v7137_v37 = vld [vmem:[#allocation9 + $0x370] sm:$0xff] }
0x1472   :  { %7226 = vmatpush1.bf16.msra.mxu1 %v7077_v11  ;;  %v7140_v11 = vld [vmem:[#allocation9 + $0x388] sm:$0xff] }
0x1473   :  { %7227 = vmatprep.subr.bf16.mxu1 %v7080_v43  ;;  %v7139_v43 = vld [vmem:[#allocation9 + $0x380] sm:$0xff] }
0x1476   :  { %7228 = vmatpush1.bf16.msra.mxu1 %v7079_v55  ;;  %v7142_v55 = vld [vmem:[#allocation9 + $0x398] sm:$0xff] }
0x1477   :  { %7229 = vmatprep.subr.bf16.mxu1 %v7082_v19  ;;  %v7141_v19 = vld [vmem:[#allocation9 + $0x390] sm:$0xff] }
0x147a   :  { %7230 = vmatpush1.bf16.msra.mxu1 %v7081_v14  ;;  %v7144_v14 = vld [vmem:[#allocation9 + $0x3a8] sm:$0xff] }
0x147b   :  { %7231 = vmatprep.subr.bf16.mxu1 %v7084_v51  ;;  %v7143_v51 = vld [vmem:[#allocation9 + $0x3a0] sm:$0xff] }
0x147e   :  { %7232 = vmatpush1.bf16.msra.mxu1 %v7083_v8  ;;  %v7146_v8 = vld [vmem:[#allocation9 + $0x3b8] sm:$0xff] }
0x147f   :  { %7233 = vmatprep.subr.bf16.mxu1 %v7086_v59  ;;  %v7145_v59 = vld [vmem:[#allocation9 + $0x3b0] sm:$0xff] }
0x1482   :  { %7234 = vmatpush1.bf16.msra.mxu1 %v7085_v6  ;;  %v7148_v6 = vld [vmem:[#allocation9 + $0x3c8] sm:$0xff] }
0x1483   :  { %7235 = vmatprep.subr.bf16.mxu1 %v7088_v60  ;;  %v7147_v60 = vld [vmem:[#allocation9 + $0x3c0] sm:$0xff] }
0x1486   :  { %7236 = vmatpush1.bf16.msra.mxu1 %v7087_v44  ;;  %v7150_v44 = vld [vmem:[#allocation9 + $0x3d8] sm:$0xff] }
0x1487   :  { %7237 = vmatprep.subr.bf16.mxu1 %v7090_v4  ;;  %v7149_v4 = vld [vmem:[#allocation9 + $0x3d0] sm:$0xff] }
0x148a   :  { %7238 = vmatpush1.bf16.msra.mxu1 %v7089_v16  ;;  %v7152_v16 = vld [vmem:[#allocation9 + $0x3e8] sm:$0xff] }
0x148b   :  { %7248 = vmatprep.subr.bf16.mxu1 %v7092_v17  ;;  %v7151_v17 = vld [vmem:[#allocation9 + $0x3e0] sm:$0xff] }
0x148d   :  { %7240 = vmatmul.mubr.bf16.vlgmr.msra.gmra.mrb[56].mxu1 %v8920_v24  ;;  %v7101_v24 = vld [vmem:[#allocation9 + $0x250] sm:$0xff] }
0x148e   :  { %7249 = vmatpush1.bf16.msra.mxu1 %v7091_v26  ;;  %7280 = vmatprep.mubr.bf16.mxu1 %v8940_v62  ;;  %v7103_v62 = vld [vmem:[#allocation9 + $0x260] sm:$0xff]  ;;  %v7154_v26 = vld [vmem:[#allocation9 + $0x3f8] sm:$0xff] }
0x148f   :  { %7250 = vmatprep.subr.bf16.mxu1 %v7094_v18  ;;  %v7153_v18 = vld [vmem:[#allocation9 + $0x3f0] sm:$0xff] }
0x1492   :  { %7251 = vmatpush1.bf16.msra.mxu1 %v7093_v31  ;;  %v7026_v31 = vld [vmem:[#allocation13 + $0x2e] sm:$0x3] }
0x1493   :  { %7252 = vmatprep.subr.bf16.mxu1 %v7096_v13  ;;  %v7159_v13 = vrot.slane %v7026_v31, %v8585_v15 }
0x1496   :  { %7253 = vmatpush1.bf16.msra.mxu1 %v7095_v9  ;;  %v7163_v9 = vrot.slane %v7026_v31, %v8588_v10 }
0x1497   :  { %7254 = vmatprep.subr.bf16.mxu1 %v7098_v34 }
0x149a   :  { %7255 = vmatpush1.bf16.msra.mxu1 %v7097_v42 }
0x149b   :  { %7256 = vmatprep.subr.bf16.mxu1 %v7100_v23 }
0x149e   :  { %7257 = vmatpush1.bf16.msra.mxu1 %v7099_v2 }
0x149f   :  { %7258 = vmatprep.subr.bf16.mxu1 %v7102_v32 }
0x14a2   :  { %7259 = vmatpush1.bf16.msra.mxu1 %v7101_v24 }
0x14a3   :  { %7260 = vmatprep.subr.bf16.mxu1 %v7104_v61 }
0x14a6   :  { %7261 = vmatpush1.bf16.msra.mxu1 %v7103_v62 }
0x14a7   :  { %7262 = vmatprep.subr.bf16.mxu1 %v7106_v47 }
0x14aa   :  { %7263 = vmatpush1.bf16.msra.mxu1 %v7105_v63 }
0x14ab   :  { %7264 = vmatprep.subr.bf16.mxu1 %v7108_v41 }
0x14ae   :  { %7265 = vmatpush1.bf16.msra.mxu1 %v7107_v52 }
0x14af   :  { %7266 = vmatprep.subr.bf16.mxu1 %v7110_v40 }
0x14b2   :  { %7267 = vmatpush1.bf16.msra.mxu1 %v7109_v46 }
0x14b3   :  { %7268 = vmatprep.subr.bf16.mxu1 %v7112_v45 }
0x14b6   :  { %7269 = vmatpush1.bf16.msra.mxu1 %v7111_v33 }
0x14b7   :  { %7270 = vmatprep.subr.bf16.mxu1 %v7114_v1 }
0x14ba   :  { %7271 = vmatpush1.bf16.msra.mxu1 %v7113_v50 }
0x14bb   :  { %7272 = vmatprep.subr.bf16.mxu1 %v7116_v3 }
0x14be   :  { %7273 = vmatpush1.bf16.msra.mxu1 %v7115_v48 }
0x14bf   :  { %7274 = vmatprep.subr.bf16.mxu1 %v7118_v56 }
0x14c2   :  { %7275 = vmatpush1.bf16.msra.mxu1 %v7117_v22 }
0x14c3   :  { %7276 = vmatprep.subr.bf16.mxu1 %v7120_v38 }
0x14c6   :  { %7277 = vmatpush1.bf16.msra.mxu1 %v7119_v54 }
0x14c7   :  { %7278 = vmatprep.subr.bf16.mxu1 %v7122_v36 }
0x14ca   :  { %7279 = vmatpush1.bf16.msra.mxu1 %v7121_v25 }
0x14cb   :  { %7289 = vmatprep.subr.bf16.mxu1 %v7124_v49 }
0x14cd   :  { %7281 = vmatmul.mubr.bf16.vlgmr.msra.gmra.mrb[56].mxu1 %v8936_v20  ;;  %v7133_v20 = vld [vmem:[#allocation9 + $0x350] sm:$0xff] }
0x14ce   :  { %7290 = vmatpush1.bf16.msra.mxu1 %v7123_v58  ;;  %7321 = vmatprep.mubr.bf16.mxu1 %v8942_v39  ;;  %v7135_v39 = vld [vmem:[#allocation9 + $0x360] sm:$0xff] }
0x14cf   :  { %7291 = vmatprep.subr.bf16.mxu1 %v7126_v30 }
0x14d2   :  { %7292 = vmatpush1.bf16.msra.mxu1 %v7125_v0 }
0x14d3   :  { %7293 = vmatprep.subr.bf16.mxu1 %v7128_v53 }
0x14d6   :  { %7294 = vmatpush1.bf16.msra.mxu1 %v7127_v21 }
0x14d7   :  { %7295 = vmatprep.subr.bf16.mxu1 %v7130_v35 }
0x14da   :  { %7296 = vmatpush1.bf16.msra.mxu1 %v7129_v29 }
0x14db   :  { %7297 = vmatprep.subr.bf16.mxu1 %v7132_v5 }
0x14de   :  { %7298 = vmatpush1.bf16.msra.mxu1 %v7131_v7 }
0x14df   :  { %7299 = vmatprep.subr.bf16.mxu1 %v7134_v12 }
0x14e2   :  { %7300 = vmatpush1.bf16.msra.mxu1 %v7133_v20 }
0x14e3   :  { %7301 = vmatprep.subr.bf16.mxu1 %v7136_v27 }
0x14e6   :  { %7302 = vmatpush1.bf16.msra.mxu1 %v7135_v39 }
0x14e7   :  { %7303 = vmatprep.subr.bf16.mxu1 %v7138_v28 }
0x14ea   :  { %7304 = vmatpush1.bf16.msra.mxu1 %v7137_v37 }
0x14eb   :  { %7305 = vmatprep.subr.bf16.mxu1 %v7140_v11 }
0x14ee   :  { %7306 = vmatpush1.bf16.msra.mxu1 %v7139_v43 }
0x14ef   :  { %7307 = vmatprep.subr.bf16.mxu1 %v7142_v55 }
0x14f2   :  { %7308 = vmatpush1.bf16.msra.mxu1 %v7141_v19 }
0x14f3   :  { %7309 = vmatprep.subr.bf16.mxu1 %v7144_v14 }
0x14f6   :  { %7310 = vmatpush1.bf16.msra.mxu1 %v7143_v51 }
0x14f7   :  { %7311 = vmatprep.subr.bf16.mxu1 %v7146_v8 }
0x14fa   :  { %7312 = vmatpush1.bf16.msra.mxu1 %v7145_v59 }
0x14fb   :  { %7313 = vmatprep.subr.bf16.mxu1 %v7148_v6 }
0x14fe   :  { %7314 = vmatpush1.bf16.msra.mxu1 %v7147_v60 }
0x14ff   :  { %7315 = vmatprep.subr.bf16.mxu1 %v7150_v44 }
0x1502   :  { %7316 = vmatpush1.bf16.msra.mxu1 %v7149_v4 }
0x1503   :  { %7317 = vmatprep.subr.bf16.mxu1 %v7152_v16 }
0x1506   :  { %7318 = vmatpush1.bf16.msra.mxu1 %v7151_v17 }
0x1507   :  { %7319 = vmatprep.subr.bf16.mxu1 %v7154_v26 }
0x150a   :  { %7320 = vmatpush1.bf16.msra.mxu1 %v7153_v18 }
0x150d   :  { %7322 = vmatmul.mubr.bf16.vlgmr.msra.gmra.mrb[56].mxu1 %v8938_v57 }
0x15e0   :  { %v7323_v34 = vpop.f32.mrb[56].mxu1 }
0x15e1   :  { %v7677_v42 = vadd.f32 %v7323_v34, %v7159_v13  ;;  %v7325_v23 = vpop.f32.mrb[57].mxu1 }
0x15e2   :  { %v7678_v2 = vadd.f32 %v7325_v23, %v7163_v9  ;;  %v7327_v32 = vpop.f32.mrb[58].mxu1 }
0x15e3   :  { %v7330_v24 = vmax.f32 %v7677_v42, 0.0  ;;  %v7328_v61 = vpop.f32.mrb[59].mxu1 }
0x15e4   :  { %v7331_v62 = vmax.f32 %v7678_v2, 0.0 }
0x15e5   :  { %v7332_v47 = vpack.c.bf16 %v7330_v24, %v7330_v24 }
0x15e6   :  { %v7333_v63 = vpack.c.bf16 %v7331_v62, %v7331_v62 }
0x15e7   :  { %8091 = dma.done.wait [#allocation12 + $0x8], 2048 }
0x15e8   :  { %8092 = vsyncadd [#allocation12 + $0x8], 4294965248  ;;  %7392 = vmatprep.mubr.bf16.mxu0 %v7333_v63  ;;  %v7346_v41 = vld [vmem:[#allocation10 + $0x40] sm:$0xff]  ;;  %v7347_v52 = vld [vmem:[#allocation10 + $0x48] sm:$0xff] }
0x15e9   :  { %v7338_v57 = vld [vmem:[#allocation10] sm:$0xff]  ;;  %7584 = vmatprep.subr.bf16.mxu0 %v7346_v41  ;;  %v7339_v15 = vld [vmem:[#allocation10 + $0x8] sm:$0xff]  ;;  %v7348_v10 = vld [vmem:[#allocation10 + $0x50] sm:$0xff] }
0x15ea   :  { %7585 = vmatpush3.bf16.msra.mxu0 %v7338_v57  ;;  %v7340_v40 = vld [vmem:[#allocation10 + $0x10] sm:$0xff]  ;;  %v7349_v46 = vld [vmem:[#allocation10 + $0x58] sm:$0xff]  ;;  %v7350_v33 = vld [vmem:[#allocation10 + $0x60] sm:$0xff] }
0x15eb   :  { %7586 = vmatprep.subr.bf16.mxu0 %v7347_v52  ;;  %v7341_v45 = vld [vmem:[#allocation10 + $0x18] sm:$0xff]  ;;  %v7342_v1 = vld [vmem:[#allocation10 + $0x20] sm:$0xff]  ;;  %v7351_v50 = vld [vmem:[#allocation10 + $0x68] sm:$0xff] }
0x15ec   :  { %v7343_v3 = vld [vmem:[#allocation10 + $0x28] sm:$0xff]  ;;  %v7352_v48 = vld [vmem:[#allocation10 + $0x70] sm:$0xff]  ;;  %v7353_v22 = vld [vmem:[#allocation10 + $0x78] sm:$0xff] }
0x15ed   :  { %v7344_v56 = vld [vmem:[#allocation10 + $0x30] sm:$0xff]  ;;  %v7345_v38 = vld [vmem:[#allocation10 + $0x38] sm:$0xff] }
0x15ee   :  { %7587 = vmatpush3.bf16.msra.mxu0 %v7339_v15  ;;  %v7572_v36 = vld [vmem:[#allocation13 + $0x30] ss:$0 sm:$0xff] }
0x15ef   :  { %7588 = vmatprep.subr.bf16.mxu0 %v7348_v10 }
0x15f2   :  { %7589 = vmatpush3.bf16.msra.mxu0 %v7340_v40 }
0x15f3   :  { %7590 = vmatprep.subr.bf16.mxu0 %v7349_v46 }
0x15f6   :  { %7591 = vmatpush3.bf16.msra.mxu0 %v7341_v45 }
0x15f7   :  { %7592 = vmatprep.subr.bf16.mxu0 %v7350_v33 }
0x15fa   :  { %7593 = vmatpush3.bf16.msra.mxu0 %v7342_v1 }
0x15fb   :  { %7594 = vmatprep.subr.bf16.mxu0 %v7351_v50 }
0x15fe   :  { %7595 = vmatpush3.bf16.msra.mxu0 %v7343_v3 }
0x15ff   :  { %7596 = vmatprep.subr.bf16.mxu0 %v7352_v48 }
0x1602   :  { %7597 = vmatpush3.bf16.msra.mxu0 %v7344_v56 }
0x1603   :  { %7598 = vmatprep.subr.bf16.mxu0 %v7353_v22 }
0x1606   :  { %7599 = vmatpush3.bf16.msra.mxu0 %v7345_v38 }
0x1609   :  { %7393 = vmatmul.mubr.bf16.vlgmr.msra.gmra.mrb[36].mxu0 %v7332_v47 }
0x16dc   :  { %v7600_v54 = vpop.f32.mrb[36].mxu0 }
0x16dd   :  { %v7601_v25 = vpop.f32.mrb[37].mxu0 }
0x16de   :  { %v7602_v49 = vadd.f32 %v7601_v25, %v7600_v54  ;;  %v7603_v58 = vpop.f32.mrb[38].mxu0 }
0x16df   :  { %v7604_v30 = vpop.f32.mrb[39].mxu0 }
0x16e0   :  { %v7395_v0 = vadd.f32 %v7602_v49, %v7572_v36 }
0x16e2   :  { %v7400_v53 = vmax.f32 %v7395_v0, 0.0 }
0x16e4   :  { %v7401_v21 = vpack.c.bf16 %v7400_v53, %v7400_v53 }
0x16e5   :  { %8093 = dma.done.wait [#allocation12 + $0x9], 1024 }
0x16e6   :  { %8094 = vsyncadd [#allocation12 + $0x9], 4294966272  ;;  %v8132_v35 = vmov 0.0   ;;  %vm8133_vm0 = vmmov 0   ;;  %v7407_v29 = vld [vmem:[#allocation11] sm:$0xff]  ;;  %v7408_v5 = vld [vmem:[#allocation11 + $0x8] sm:$0xff] }
0x16e7   :  { %7615 = vmatprep.subr.bf16.mxu0 %v8132_v35  ;;  %7631 = vmatprep.mubr.msk.bf16.mxu0 %vm8133_vm0, %v8132_v35  ;;  %v7409_v7 = vld [vmem:[#allocation11 + $0x10] sm:$0xff]  ;;  %v7410_v12 = vld [vmem:[#allocation11 + $0x18] sm:$0xff]  ;;  %v7411_v20 = vld [vmem:[#allocation11 + $0x20] sm:$0xff]  ;;  %s8134_s0 = smov [#allocation16]  }
0x16e8   :  { %7616 = vmatpush3.bf16.msra.mxu0 %v7407_v29  ;;  %v7412_v27 = vld [vmem:[#allocation11 + $0x28] sm:$0xff]  ;;  %v7413_v39 = vld [vmem:[#allocation11 + $0x30] sm:$0xff]  ;;  %v7414_v28 = vld [vmem:[#allocation11 + $0x38] sm:$0xff]  ;;  %s7478_s4 = sshll.u32 %s8134_s0, 4  ;;  %s7479_s4 = int_to_ptr.vmem [resolvable:$true] %s7478_s4 }
0x16e9   :  { %7617 = vmatprep.subr.bf16.mxu0 %v8132_v35  ;;  %v7573_v37 = vld [vmem:[#allocation13 + $0x31] ss:$0 sm:$0xff]  ;;  %s8051_s2 = scalar_lea.vmem %s7479_s4, 128  ;;  %p8056_p11 = scmp.lt.s32.totalorder %s7479_s4, %s7479_s4 }
0x16ea   :  { %p8052_p10 = scmp.ne.s32.totalorder %s7479_s4, %s8051_s2  ;;  %p8057_p12 = scmp.lt.s32.totalorder %s8051_s2, %s8051_s2 }
0x16ec   :  { %7618 = vmatpush3.bf16.msra.mxu0 %v7408_v5  ;;  %p8058_p13 = por %p8057_p12, %p8056_p11 }
0x16ed   :  { %7619 = vmatprep.subr.bf16.mxu0 %v8132_v35 }
0x16ee   :  { %p8059_p0 = pnand %p8058_p13, %p8052_p10 }
0x16f0   :  { %7620 = vmatpush3.bf16.msra.mxu0 %v7409_v7 }
0x16f1   :  { %7621 = vmatprep.subr.bf16.mxu0 %v8132_v35 }
0x16f4   :  { %7622 = vmatpush3.bf16.msra.mxu0 %v7410_v12 }
0x16f5   :  { %7623 = vmatprep.subr.bf16.mxu0 %v8132_v35 }
0x16f8   :  { %7624 = vmatpush3.bf16.msra.mxu0 %v7411_v20 }
0x16f9   :  { %7625 = vmatprep.subr.bf16.mxu0 %v8132_v35 }
0x16fc   :  { %7626 = vmatpush3.bf16.msra.mxu0 %v7412_v27 }
0x16fd   :  { %7627 = vmatprep.subr.bf16.mxu0 %v8132_v35 }
0x1700   :  { %7628 = vmatpush3.bf16.msra.mxu0 %v7413_v39 }
0x1701   :  { %7629 = vmatprep.subr.bf16.mxu0 %v8132_v35 }
0x1704   :  { %7630 = vmatpush3.bf16.msra.mxu0 %v7414_v28 }
0x1707   :  { %7632 = vmatmul.mubr.bf16.vlgmr.msra.gmra.mrb[40].mxu0 %v7401_v21 }
0x17da   :  { %v7455_v11 = vpop.f32.mrb[40].mxu0 }
0x17db   :  { %v7456_v43 = vadd.f32 %v7573_v37, %v7455_v11  ;;  %v7633_v55 = vpop.f32.mrb[41].mxu0 }
0x17dc   :  { %v7458_v19 = vpop.f32.mrb[42].mxu0 }
0x17dd   :  { %v7634_v14 = vpop.f32.mrb[43].mxu0  ;;  %7461 = vmax.xlane.f32.xlu0 %v7456_v43 }
0x186a   :  { %v7462_v51 = vpop.xlane.xlu0 %7461 }
0x186b   :  { %v7463_v8 = vsub.f32 %v7456_v43, %v7462_v51 }
0x186d   :  { %v7464_v59 = vmul.f32 1.442695, %v7463_v8 }
0x186f   :  { %7981 = vpow2.f32 %v7464_v59 }
0x1879   :  { %v7982_v6 = vpop.eup %7981 }
0x187a   :  { %7466 = vadd.xlane.f32.xlu0 %v7982_v6 }
0x1907   :  { %v7467_v60 = vpop.xlane.xlu0 %7466 }
0x1908   :  { %7983 = vlog2.f32 %v7467_v60 }
0x1912   :  { %v7984_v44 = vpop.eup %7983 }
0x1913   :  { %v7469_v4 = vmul.f32 0.6931472, %v7984_v44 }
0x1915   :  { %v7470_v16 = vsub.f32 %v7463_v8, %v7469_v4 }
0x1917   :  { %7471 = vst [vmem:[#allocation16] sm:$0xff] %v7470_v16 }
0x1918   :  { %8062 = shalt.err (!%p8059_p0)
}
0x1919   :  { %s8063_s14 = scalar_lea.hbm %s8978_s12, 128 }
0x191a   :  { %p8064_p1 = scmp.ne.s32.totalorder %s8978_s12, %s8063_s14  ;;  %p8067_p2 = scmp.lt.u32.totalorder %s8063_s14, %s8978_s12 }
0x191c   :  { %p8069_p3 = pnand %p8067_p2, %p8064_p1 }
0x191e   :  { %8072 = shalt.err (!%p8069_p3)
}
0x191f   :  { %7481 = dma.vmem_to_hbm [thread:$0]  %s7479_s4, 128, %s8978_s12, [#allocation15]  }
0x1920   :  { %8095 = dma.done.wait [#allocation15], 128  }
0x1921   :  { %8096 = vsyncadd [#allocation15], 4294967168 }
0x1922   :  { %7485 = vsyncpa [#allocation14], 1 }
0x1923   :  { %7486 = vsyncpa [#allocation15], 1 }
0x1924   :  { %7487 = vsyncmov [#allocation12] }
0x1927   :  { %s7488_s24 = vpop.sfrf %7487 }
0x1928   :  { %p7574_p4 = scmp.ne.s32.totalorder %s7488_s24, 0 }
0x192a   :  { %7492 = shalt.err (%p7574_p4)  }
0x192b   :  { %7494 = vsyncmov [#allocation12 + $0x1] }
0x192e   :  { %s7495_s21 = vpop.sfrf %7494 }
0x192f   :  { %p7575_p5 = scmp.ne.s32.totalorder %s7495_s21, 0 }
0x1931   :  { %7499 = shalt.err (%p7575_p5)  }
0x1932   :  { %7501 = vsyncmov [#allocation12 + $0x2] }
0x1935   :  { %s7502_s8 = vpop.sfrf %7501 }
0x1936   :  { %p7576_p6 = scmp.ne.s32.totalorder %s7502_s8, 0 }
0x1938   :  { %7506 = shalt.err (%p7576_p6)  }
0x1939   :  { %7508 = vsyncmov [#allocation12 + $0x3] }
0x193c   :  { %s7509_s16 = vpop.sfrf %7508 }
0x193d   :  { %p7577_p7 = scmp.ne.s32.totalorder %s7509_s16, 0 }
0x193f   :  { %7513 = shalt.err (%p7577_p7)  }
0x1940   :  { %7515 = vsyncmov [#allocation12 + $0x4] }
0x1943   :  { %s7516_s12 = vpop.sfrf %7515 }
0x1944   :  { %p7578_p8 = scmp.ne.s32.totalorder %s7516_s12, 0 }
0x1946   :  { %7520 = shalt.err (%p7578_p8)  }
0x1947   :  { %7522 = vsyncmov [#allocation12 + $0x5] }
0x194a   :  { %s7523_s25 = vpop.sfrf %7522 }
0x194b   :  { %p7579_p9 = scmp.ne.s32.totalorder %s7523_s25, 0 }
0x194d   :  { %7527 = shalt.err (%p7579_p9)  }
0x194e   :  { %7529 = vsyncmov [#allocation12 + $0x6] }
0x1951   :  { %s7530_s26 = vpop.sfrf %7529 }
0x1952   :  { %p7580_p10 = scmp.ne.s32.totalorder %s7530_s26, 0 }
0x1954   :  { %7534 = shalt.err (%p7580_p10)  }
0x1955   :  { %7536 = vsyncmov [#allocation12 + $0x7] }
0x1958   :  { %s7537_s27 = vpop.sfrf %7536 }
0x1959   :  { %p7581_p11 = scmp.ne.s32.totalorder %s7537_s27, 0 }
0x195b   :  { %7541 = shalt.err (%p7581_p11)  }
0x195c   :  { %7543 = vsyncmov [#allocation12 + $0x8] }
0x195f   :  { %s7544_s11 = vpop.sfrf %7543 }
0x1960   :  { %p7582_p12 = scmp.ne.s32.totalorder %s7544_s11, 0 }
0x1962   :  { %7548 = shalt.err (%p7582_p12)  }
0x1963   :  { %7550 = vsyncmov [#allocation12 + $0x9] }
0x1966   :  { %s7551_s3 = vpop.sfrf %7550 }
0x1967   :  { %p7583_p13 = scmp.ne.s32.totalorder %s7551_s3, 0 }
0x1969   :  { %7555 = shalt.err (%p7583_p13)  }

</bundles_post_ra>
